<compile_context>
chip_gen: v5e
topology: v5e:2x2
jax: 0.10.0
libtpu: 0.0.40
codegen_flags: <defaults>
</compile_context>

<pallas_src>
import numpy as np
import jax
import jax.numpy as jnp
from jax import lax
from jax.experimental import pallas as pl
from jax.experimental.pallas import tpu as pltpu


# ---------------------------------------------------------------------------
# 1-D bilinear interpolation matrices (PyTorch semantics).
# ---------------------------------------------------------------------------
def _bilinear_matrix(in_size, out_size, align_corners):
    """(out_size, in_size) matrix M so that `out = M @ in` matches PyTorch 1-D bilinear resampling."""
    i = np.arange(out_size, dtype=np.float64)
    if align_corners:
        src = i * ((in_size - 1) / (out_size - 1)) if out_size > 1 else np.zeros_like(i)
    else:
        src = np.maximum((i + 0.5) * (in_size / out_size) - 0.5, 0.0)
    i0 = np.minimum(np.floor(src).astype(np.int64), in_size - 1)
    lam = src - i0
    i1 = np.minimum(i0 + 1, in_size - 1)
    m = np.zeros((out_size, in_size), dtype=np.float64)
    m[np.arange(out_size), i0] += 1.0 - lam
    m[np.arange(out_size), i1] += lam
    return m


def _num_tensorcores():
    """Heuristic TensorCore count per device: 2 on megacore / dual-TC chips, else 1."""
    try:
        kind = jax.devices()[0].device_kind.lower()
    except Exception:
        return 1
    return 2 if any(tag in kind for tag in ("v7", "v5p", "v4")) else 1


def _pick_block_batch(batch, bytes_per_sample, num_cores,
                      vmem_budget_bytes=12 * 1024 * 1024, max_block=8):
    """Largest divisor of `batch` whose per-step working set fits a conservative VMEM budget.
    Only on multi-TensorCore chips do we additionally keep the grid >= num_cores steps; on
    single-TC chips (v5e/v6e) bigger blocks just amortize per-step overhead."""
    cap = max(1, int(vmem_budget_bytes // max(bytes_per_sample, 1)))
    cap = min(cap, max_block, batch)
    if num_cores > 1:
        cap = min(cap, max(1, batch // num_cores))
    for cand in range(cap, 0, -1):
        if batch % cand == 0:
            return cand
    return 1


# ---------------------------------------------------------------------------
# Fused kernel: depthwise 3x3  ->  folded (pointwise+BN+classifier) matmul  ->  Kron resize.
# ---------------------------------------------------------------------------
def _seg_decoder_kernel(xp_ref, wdw_ref, wcomb_ref, bcomb_ref, kron_ref, out_ref):
    bblk, hp, wp, cin = xp_ref.shape
    hh, ww = hp - 2, wp - 2
    hw = hh * ww

    # ---- depthwise 3x3 (halo already padded by the wrapper), f32 accumulation, channels on lanes.
    wdw = wdw_ref[...]                                            # (9, Cin) f32
    acc = None
    for di in range(3):
        for dj in range(3):
            k = di * 3 + dj
            win = xp_ref[:, di:di + hh, dj:dj + ww, :].astype(jnp.float32)   # (bblk, H, W, Cin)
            term = win * wdw[k:k + 1, :]                          # per-channel tap weight on lanes
            acc = term if acc is None else acc + term

    # ---- pointwise 1x1 + BatchNorm(eval) + 1x1 classifier folded into one (ncls, Cin) affine map.
    # rhs-transposed contraction (contract both last dims) keeps the result channel-major: no transpose.
    acc2 = acc.reshape(bblk * hw, cin).astype(jnp.bfloat16)       # (bblk*HW, Cin)
    zt = lax.dot_general(
        wcomb_ref[...], acc2,
        dimension_numbers=(((1,), (1,)), ((), ())),
        preferred_element_type=jnp.float32)                       # (ncls, bblk*HW)
    zt = zt + bcomb_ref[...]                                      # per-class bias
    zt = zt.astype(jnp.bfloat16)

    # ---- fused (x2 align_corners=True upsample) o (resize align_corners=False) as one Kron matmul
    # per sample; lane-dense (szH*szW) stores, channel-major (NCHW) output.
    kron = kron_ref[...]                                          # (HW, szH*szW) bf16
    for b in range(bblk):                                         # bblk is small and static
        zt_b = zt[:, b * hw:(b + 1) * hw]                         # (ncls, HW)
        o_b = jnp.dot(zt_b, kron, preferred_element_type=jnp.float32)   # (ncls, szH*szW)
        out_ref[b] = o_b.astype(out_ref.dtype)


# ---------------------------------------------------------------------------
# Wrapper: Seg_Decoder.forward (eval mode).
# ---------------------------------------------------------------------------
def seg_decoder_forward(x, params, sz):
    """x: (B, Cin, H, W) NCHW; params: PyTorch-layout weights; sz: output (outH, outW)."""
    b, cin, hh, ww = x.shape
    sz_h, sz_w = (sz, sz) if isinstance(sz, int) else tuple(sz)
    dtype = x.dtype

    w_dw = params["dw_weight"]                    # (Cin, 1, 3, 3)
    w_pw = params["pw_weight"][:, :, 0, 0]        # (Cmid, Cin)
    w_cls = params["cls_weight"][:, :, 0, 0]      # (ncls, Cmid)
    gamma, beta = params["bn_weight"], params["bn_bias"]
    mean, var = params["bn_running_mean"], params["bn_running_var"]
    eps = params.get("bn_eps", 1e-5)
    ncls = w_cls.shape[0]

    # Fold pointwise conv + BatchNorm (eval) + 1x1 classifier into one (Cin -> ncls) affine map.
    scale = gamma / jnp.sqrt(var + eps)                               # (Cmid,)
    shift = beta - mean * scale                                       # (Cmid,)
    wcomb = jnp.dot(w_cls, w_pw * scale[:, None])                     # (ncls, Cin)
    bcomb = jnp.dot(w_cls, shift).reshape(ncls, 1)                    # (ncls, 1)
    wdw = jnp.transpose(w_dw[:, 0, :, :], (1, 2, 0)).reshape(9, cin)  # (9, Cin), row = di*3+dj

    # Compose x2 upsample (align_corners=True) with the final resize (align_corners=False), then take
    # the Kronecker product so the entire spatial resampling is ONE lane-dense matmul (HW, szH*szW).
    th = _bilinear_matrix(2 * hh, sz_h, False) @ _bilinear_matrix(hh, 2 * hh, True)   # (szH, H)
    tw = _bilinear_matrix(2 * ww, sz_w, False) @ _bilinear_matrix(ww, 2 * ww, True)   # (szW, W)
    kron = jnp.asarray(np.kron(th, tw).T, dtype=jnp.bfloat16)                         # (H*W, szH*szW)

    # NHWC + 1-pixel zero halo applied in the wrapper -> no in-kernel pad scratch or halo zeroing.
    xp = jnp.pad(jnp.transpose(x, (0, 2, 3, 1)),
                 ((0, 0), (1, 1), (1, 1), (0, 0)))                    # (B, H+2, W+2, Cin)

    hw = hh * ww
    szhw = sz_h * sz_w
    # VMEM accounting: input block (double-buffered) + f32 accumulator & tap temporaries +
    # output block (double-buffered) + class-map intermediate.
    bytes_per_sample = 4 * (2 * (hh + 2) * (ww + 2) * cin
                            + 3 * hh * ww * cin
                            + 2 * ncls * szhw
                            + ncls * hw)
    bblk = _pick_block_batch(b, bytes_per_sample, _num_tensorcores())

    out_flat = pl.pallas_call(
        _seg_decoder_kernel,
        out_shape=jax.ShapeDtypeStruct((b, ncls, szhw), dtype),
        grid_spec=pltpu.PrefetchScalarGridSpec(
            num_scalar_prefetch=0,
            grid=(b // bblk,),
            in_specs=[
                pl.BlockSpec((bblk, hh + 2, ww + 2, cin), lambda i: (i, 0, 0, 0)),
                pl.BlockSpec((9, cin), lambda i: (0, 0)),
                pl.BlockSpec((ncls, cin), lambda i: (0, 0)),
                pl.BlockSpec((ncls, 1), lambda i: (0, 0)),
                pl.BlockSpec((hw, szhw), lambda i: (0, 0)),
            ],
            out_specs=pl.BlockSpec((bblk, ncls, szhw), lambda i: (i, 0, 0)),
        ),
        compiler_params=pltpu.CompilerParams(
            dimension_semantics=("parallel",),
            vmem_limit_bytes=32 * 1024 * 1024),
    )(xp.astype(dtype),
      wdw.astype(jnp.float32),
      wcomb.astype(jnp.bfloat16),
      bcomb.astype(jnp.float32),
      kron)

    return out_flat.reshape(b, ncls, sz_h, sz_w)


# ---------------------------------------------------------------------------
# Pure-JAX reference mirroring the PyTorch forward op-by-op (eval mode).
# ---------------------------------------------------------------------------
def seg_decoder_ref(x, params, sz):
    b, cin, hh, ww = x.shape
    sz_h, sz_w = (sz, sz) if isinstance(sz, int) else tuple(sz)
    dn = ("NCHW", "OIHW", "NCHW")
    y = jax.lax.conv_general_dilated(
        x, params["dw_weight"], window_strides=(1, 1), padding=((1, 1), (1, 1)),
        dimension_numbers=dn, feature_group_count=cin)
    y = jax.lax.conv_general_dilated(
        y, params["pw_weight"], window_strides=(1, 1), padding=((0, 0), (0, 0)),
        dimension_numbers=dn)
    scale = params["bn_weight"] / jnp.sqrt(params["bn_running_var"] + params.get("bn_eps", 1e-5))
    shift = params["bn_bias"] - params["bn_running_mean"] * scale
    y = y * scale[None, :, None, None] + shift[None, :, None, None]
    # Dropout(0.1): identity in eval mode.
    a_h = jnp.asarray(_bilinear_matrix(hh, 2 * hh, True), jnp.float32)
    a_w = jnp.asarray(_bilinear_matrix(ww, 2 * ww, True), jnp.float32)
    y = jnp.einsum("Ih,bchw,Jw->bcIJ", a_h, y, a_w)
    y = jax.lax.conv_general_dilated(
        y, params["cls_weight"], window_strides=(1, 1), padding=((0, 0), (0, 0)),
        dimension_numbers=dn)
    r_h = jnp.asarray(_bilinear_matrix(2 * hh, sz_h, False), jnp.float32)
    r_w = jnp.asarray(_bilinear_matrix(2 * ww, sz_w, False), jnp.float32)
    y = jnp.einsum("Ih,bchw,Jw->bcIJ", r_h, y, r_w)
    return y


if __name__ == "__main__":
    # Shapes consistent with Seg_Decoder defaults: decoder_channels=384, dims[0]=96, num_classes=7;
    # small spatial feature map (8x8) and output size sz=(32, 32).
    B, Cin, Cmid, ncls = 4, 384, 96, 7
    H = W = 8
    sz = (32, 32)

    key = jax.random.PRNGKey(0)
    ks = jax.random.split(key, 8)
    x = jax.random.normal(ks[0], (B, Cin, H, W), dtype=jnp.float32)
    params = {
        "dw_weight": 0.05 * jax.random.normal(ks[1], (Cin, 1, 3, 3), jnp.float32),
        "pw_weight": 0.05 * jax.random.normal(ks[2], (Cmid, Cin, 1, 1), jnp.float32),
        "cls_weight": 0.05 * jax.random.normal(ks[3], (ncls, Cmid, 1, 1), jnp.float32),
        "bn_weight": 1.0 + 0.1 * jax.random.normal(ks[4], (Cmid,), jnp.float32),
        "bn_bias": 0.1 * jax.random.normal(ks[5], (Cmid,), jnp.float32),
        "bn_running_mean": 0.1 * jax.random.normal(ks[6], (Cmid,), jnp.float32),
        "bn_running_var": 1.0 + 0.1 * jax.random.uniform(ks[7], (Cmid,), jnp.float32),
        "bn_eps": 1e-5,
    }

    fwd = jax.jit(lambda xx, pp: seg_decoder_forward(xx, pp, sz))
    out = jax.block_until_ready(fwd(x, params))
    ref = jax.block_until_ready(seg_decoder_ref(x, params, sz))

    assert out.shape == (B, ncls, sz[0], sz[1]), out.shape
    # Tolerance covers bf16 MXU operand feed (f32 accumulation) on the kernel side and default-
    # precision convs/einsums on the reference side; structural errors would be ~100x larger.
    max_err = float(jnp.max(jnp.abs(out - ref)))
    assert jnp.allclose(out, ref, atol=8e-3, rtol=2e-2), max_err
    print("KERNEL_OK")
</pallas_src>

<mosaic_0001>
module attributes {stable_mosaic.version = 11 : i64} {
  func.func @_seg_decoder_kernel(%arg0: i32, %arg1: memref<4x10x10x384xf32, #tpu.memory_space<vmem>>, %arg2: memref<9x384xf32, #tpu.memory_space<vmem>>, %arg3: memref<7x384xbf16, #tpu.memory_space<vmem>>, %arg4: memref<7x1xf32, #tpu.memory_space<vmem>>, %arg5: memref<64x1024xbf16, #tpu.memory_space<vmem>>, %arg6: memref<4x7x1024xf32, #tpu.memory_space<vmem>>) attributes {dimension_semantics = [#tpu.dimension_semantics<parallel>], iteration_bounds = array<i64: 1>, scalar_prefetch = 0 : i64, scratch_operands = 0 : i64, tpu.core_type = #tpu.core_type<tc>, window_params = [{transform_indices = @transform_0, window_bounds = array<i64: 4, 10, 10, 384>}, {pipeline_mode = #tpu.pipeline_mode<synchronous>, transform_indices = @transform_1, window_bounds = array<i64: 9, 384>}, {pipeline_mode = #tpu.pipeline_mode<synchronous>, transform_indices = @transform_2, window_bounds = array<i64: 7, 384>}, {pipeline_mode = #tpu.pipeline_mode<synchronous>, transform_indices = @transform_3, window_bounds = array<i64: 7, 1>}, {pipeline_mode = #tpu.pipeline_mode<synchronous>, transform_indices = @transform_4, window_bounds = array<i64: 64, 1024>}, {transform_indices = @transform_5, window_bounds = array<i64: 4, 7, 1024>}]} {
    %c0 = arith.constant 0 : index
    %c0_0 = arith.constant 0 : index
    %0 = vector.load %arg2[%c0, %c0_0] : memref<9x384xf32, #tpu.memory_space<vmem>>, vector<9x384xf32>
    %c0_1 = arith.constant 0 : index
    %c0_2 = arith.constant 0 : index
    %c0_3 = arith.constant 0 : index
    %c0_4 = arith.constant 0 : index
    %1 = vector.load %arg1[%c0_1, %c0_2, %c0_3, %c0_4] : memref<4x10x10x384xf32, #tpu.memory_space<vmem>>, vector<4x8x8x384xf32>
    %2 = vector.extract_strided_slice %0 {offsets = [0, 0], sizes = [1, 384], strides = [1, 1]} : vector<9x384xf32> to vector<1x384xf32>
    %3 = vector.shape_cast %2 : vector<1x384xf32> to vector<1x1x1x384xf32>
    %4 = vector.broadcast %3 : vector<1x1x1x384xf32> to vector<4x8x8x384xf32>
    %5 = arith.mulf %1, %4 : vector<4x8x8x384xf32>
    %c0_5 = arith.constant 0 : index
    %c0_6 = arith.constant 0 : index
    %c1 = arith.constant 1 : index
    %c0_7 = arith.constant 0 : index
    %6 = vector.load %arg1[%c0_5, %c0_6, %c1, %c0_7] : memref<4x10x10x384xf32, #tpu.memory_space<vmem>>, vector<4x8x8x384xf32>
    %7 = vector.extract_strided_slice %0 {offsets = [1, 0], sizes = [1, 384], strides = [1, 1]} : vector<9x384xf32> to vector<1x384xf32>
    %8 = vector.shape_cast %7 : vector<1x384xf32> to vector<1x1x1x384xf32>
    %9 = vector.broadcast %8 : vector<1x1x1x384xf32> to vector<4x8x8x384xf32>
    %10 = arith.mulf %6, %9 : vector<4x8x8x384xf32>
    %11 = arith.addf %5, %10 : vector<4x8x8x384xf32>
    %c0_8 = arith.constant 0 : index
    %c0_9 = arith.constant 0 : index
    %c2 = arith.constant 2 : index
    %c0_10 = arith.constant 0 : index
    %12 = vector.load %arg1[%c0_8, %c0_9, %c2, %c0_10] : memref<4x10x10x384xf32, #tpu.memory_space<vmem>>, vector<4x8x8x384xf32>
    %13 = vector.extract_strided_slice %0 {offsets = [2, 0], sizes = [1, 384], strides = [1, 1]} : vector<9x384xf32> to vector<1x384xf32>
    %14 = vector.shape_cast %13 : vector<1x384xf32> to vector<1x1x1x384xf32>
    %15 = vector.broadcast %14 : vector<1x1x1x384xf32> to vector<4x8x8x384xf32>
    %16 = arith.mulf %12, %15 : vector<4x8x8x384xf32>
    %17 = arith.addf %11, %16 : vector<4x8x8x384xf32>
    %c0_11 = arith.constant 0 : index
    %c1_12 = arith.constant 1 : index
    %c0_13 = arith.constant 0 : index
    %c0_14 = arith.constant 0 : index
    %18 = vector.load %arg1[%c0_11, %c1_12, %c0_13, %c0_14] : memref<4x10x10x384xf32, #tpu.memory_space<vmem>>, vector<4x8x8x384xf32>
    %19 = vector.extract_strided_slice %0 {offsets = [3, 0], sizes = [1, 384], strides = [1, 1]} : vector<9x384xf32> to vector<1x384xf32>
    %20 = vector.shape_cast %19 : vector<1x384xf32> to vector<1x1x1x384xf32>
    %21 = vector.broadcast %20 : vector<1x1x1x384xf32> to vector<4x8x8x384xf32>
    %22 = arith.mulf %18, %21 : vector<4x8x8x384xf32>
    %23 = arith.addf %17, %22 : vector<4x8x8x384xf32>
    %c0_15 = arith.constant 0 : index
    %c1_16 = arith.constant 1 : index
    %c1_17 = arith.constant 1 : index
    %c0_18 = arith.constant 0 : index
    %24 = vector.load %arg1[%c0_15, %c1_16, %c1_17, %c0_18] : memref<4x10x10x384xf32, #tpu.memory_space<vmem>>, vector<4x8x8x384xf32>
    %25 = vector.extract_strided_slice %0 {offsets = [4, 0], sizes = [1, 384], strides = [1, 1]} : vector<9x384xf32> to vector<1x384xf32>
    %26 = vector.shape_cast %25 : vector<1x384xf32> to vector<1x1x1x384xf32>
    %27 = vector.broadcast %26 : vector<1x1x1x384xf32> to vector<4x8x8x384xf32>
    %28 = arith.mulf %24, %27 : vector<4x8x8x384xf32>
    %29 = arith.addf %23, %28 : vector<4x8x8x384xf32>
    %c0_19 = arith.constant 0 : index
    %c1_20 = arith.constant 1 : index
    %c2_21 = arith.constant 2 : index
    %c0_22 = arith.constant 0 : index
    %30 = vector.load %arg1[%c0_19, %c1_20, %c2_21, %c0_22] : memref<4x10x10x384xf32, #tpu.memory_space<vmem>>, vector<4x8x8x384xf32>
    %31 = vector.extract_strided_slice %0 {offsets = [5, 0], sizes = [1, 384], strides = [1, 1]} : vector<9x384xf32> to vector<1x384xf32>
    %32 = vector.shape_cast %31 : vector<1x384xf32> to vector<1x1x1x384xf32>
    %33 = vector.broadcast %32 : vector<1x1x1x384xf32> to vector<4x8x8x384xf32>
    %34 = arith.mulf %30, %33 : vector<4x8x8x384xf32>
    %35 = arith.addf %29, %34 : vector<4x8x8x384xf32>
    %c0_23 = arith.constant 0 : index
    %c2_24 = arith.constant 2 : index
    %c0_25 = arith.constant 0 : index
    %c0_26 = arith.constant 0 : index
    %36 = vector.load %arg1[%c0_23, %c2_24, %c0_25, %c0_26] : memref<4x10x10x384xf32, #tpu.memory_space<vmem>>, vector<4x8x8x384xf32>
    %37 = vector.extract_strided_slice %0 {offsets = [6, 0], sizes = [1, 384], strides = [1, 1]} : vector<9x384xf32> to vector<1x384xf32>
    %38 = vector.shape_cast %37 : vector<1x384xf32> to vector<1x1x1x384xf32>
    %39 = vector.broadcast %38 : vector<1x1x1x384xf32> to vector<4x8x8x384xf32>
    %40 = arith.mulf %36, %39 : vector<4x8x8x384xf32>
    %41 = arith.addf %35, %40 : vector<4x8x8x384xf32>
    %c0_27 = arith.constant 0 : index
    %c2_28 = arith.constant 2 : index
    %c1_29 = arith.constant 1 : index
    %c0_30 = arith.constant 0 : index
    %42 = vector.load %arg1[%c0_27, %c2_28, %c1_29, %c0_30] : memref<4x10x10x384xf32, #tpu.memory_space<vmem>>, vector<4x8x8x384xf32>
    %43 = vector.extract_strided_slice %0 {offsets = [7, 0], sizes = [1, 384], strides = [1, 1]} : vector<9x384xf32> to vector<1x384xf32>
    %44 = vector.shape_cast %43 : vector<1x384xf32> to vector<1x1x1x384xf32>
    %45 = vector.broadcast %44 : vector<1x1x1x384xf32> to vector<4x8x8x384xf32>
    %46 = arith.mulf %42, %45 : vector<4x8x8x384xf32>
    %47 = arith.addf %41, %46 : vector<4x8x8x384xf32>
    %c0_31 = arith.constant 0 : index
    %c2_32 = arith.constant 2 : index
    %c2_33 = arith.constant 2 : index
    %c0_34 = arith.constant 0 : index
    %48 = vector.load %arg1[%c0_31, %c2_32, %c2_33, %c0_34] : memref<4x10x10x384xf32, #tpu.memory_space<vmem>>, vector<4x8x8x384xf32>
    %49 = vector.extract_strided_slice %0 {offsets = [8, 0], sizes = [1, 384], strides = [1, 1]} : vector<9x384xf32> to vector<1x384xf32>
    %50 = vector.shape_cast %49 : vector<1x384xf32> to vector<1x1x1x384xf32>
    %51 = vector.broadcast %50 : vector<1x1x1x384xf32> to vector<4x8x8x384xf32>
    %52 = arith.mulf %48, %51 : vector<4x8x8x384xf32>
    %53 = arith.addf %47, %52 : vector<4x8x8x384xf32>
    %54 = vector.shape_cast %53 : vector<4x8x8x384xf32> to vector<256x384xf32>
    %55 = arith.truncf %54 : vector<256x384xf32> to vector<256x384xbf16>
    %c0_35 = arith.constant 0 : index
    %c0_36 = arith.constant 0 : index
    %56 = vector.load %arg3[%c0_35, %c0_36] : memref<7x384xbf16, #tpu.memory_space<vmem>>, vector<7x384xbf16>
    %cst = arith.constant dense<0.000000e+00> : vector<7x256xf32>
    %57 = tpu.matmul %56, %55, %cst {dimension_numbers = #tpu.dot_dimension_numbers<[1], [1], [0], [0], [0, 0, 1, 0], [], []>} : vector<7x384xbf16>, vector<256x384xbf16>, vector<7x256xf32> -> vector<7x256xf32>
    %c0_37 = arith.constant 0 : index
    %c0_38 = arith.constant 0 : index
    %58 = vector.load %arg4[%c0_37, %c0_38] : memref<7x1xf32, #tpu.memory_space<vmem>>, vector<7x1xf32>
    %59 = vector.broadcast %58 : vector<7x1xf32> to vector<7x256xf32>
    %60 = arith.addf %57, %59 : vector<7x256xf32>
    %61 = arith.truncf %60 : vector<7x256xf32> to vector<7x256xbf16>
    %c0_39 = arith.constant 0 : index
    %c0_40 = arith.constant 0 : index
    %62 = vector.load %arg5[%c0_39, %c0_40] : memref<64x1024xbf16, #tpu.memory_space<vmem>>, vector<64x1024xbf16>
    %63 = vector.extract_strided_slice %61 {offsets = [0, 0], sizes = [7, 64], strides = [1, 1]} : vector<7x256xbf16> to vector<7x64xbf16>
    %cst_41 = arith.constant dense<0.000000e+00> : vector<7x1024xf32>
    %64 = tpu.matmul %63, %62, %cst_41 {dimension_numbers = #tpu.dot_dimension_numbers<[1], [0], [0], [1], [0, 0, 1, 1], [], []>} : vector<7x64xbf16>, vector<64x1024xbf16>, vector<7x1024xf32> -> vector<7x1024xf32>
    %c0_42 = arith.constant 0 : index
    %c0_43 = arith.constant 0 : index
    %c0_44 = arith.constant 0 : index
    %65 = vector.load %arg6[%c0_42, %c0_43, %c0_44] : memref<4x7x1024xf32, #tpu.memory_space<vmem>>, vector<1x7x1024xf32>
    %66 = vector.shape_cast %65 : vector<1x7x1024xf32> to vector<7x1024xf32>
    %67 = vector.shape_cast %64 : vector<7x1024xf32> to vector<1x7x1024xf32>
    tpu.vector_store %arg6[%c0_42, %c0_43, %c0_44], %67 {strides = array<i32>} : memref<4x7x1024xf32, #tpu.memory_space<vmem>>, vector<1x7x1024xf32>,
    %68 = vector.extract_strided_slice %61 {offsets = [0, 64], sizes = [7, 64], strides = [1, 1]} : vector<7x256xbf16> to vector<7x64xbf16>
    %cst_45 = arith.constant dense<0.000000e+00> : vector<7x1024xf32>
    %69 = tpu.matmul %68, %62, %cst_45 {dimension_numbers = #tpu.dot_dimension_numbers<[1], [0], [0], [1], [0, 0, 1, 1], [], []>} : vector<7x64xbf16>, vector<64x1024xbf16>, vector<7x1024xf32> -> vector<7x1024xf32>
    %c1_46 = arith.constant 1 : index
    %c0_47 = arith.constant 0 : index
    %c0_48 = arith.constant 0 : index
    %70 = vector.load %arg6[%c1_46, %c0_47, %c0_48] : memref<4x7x1024xf32, #tpu.memory_space<vmem>>, vector<1x7x1024xf32>
    %71 = vector.shape_cast %70 : vector<1x7x1024xf32> to vector<7x1024xf32>
    %72 = vector.shape_cast %69 : vector<7x1024xf32> to vector<1x7x1024xf32>
    tpu.vector_store %arg6[%c1_46, %c0_47, %c0_48], %72 {strides = array<i32>} : memref<4x7x1024xf32, #tpu.memory_space<vmem>>, vector<1x7x1024xf32>,
    %73 = vector.extract_strided_slice %61 {offsets = [0, 128], sizes = [7, 64], strides = [1, 1]} : vector<7x256xbf16> to vector<7x64xbf16>
    %cst_49 = arith.constant dense<0.000000e+00> : vector<7x1024xf32>
    %74 = tpu.matmul %73, %62, %cst_49 {dimension_numbers = #tpu.dot_dimension_numbers<[1], [0], [0], [1], [0, 0, 1, 1], [], []>} : vector<7x64xbf16>, vector<64x1024xbf16>, vector<7x1024xf32> -> vector<7x1024xf32>
    %c2_50 = arith.constant 2 : index
    %c0_51 = arith.constant 0 : index
    %c0_52 = arith.constant 0 : index
    %75 = vector.load %arg6[%c2_50, %c0_51, %c0_52] : memref<4x7x1024xf32, #tpu.memory_space<vmem>>, vector<1x7x1024xf32>
    %76 = vector.shape_cast %75 : vector<1x7x1024xf32> to vector<7x1024xf32>
    %77 = vector.shape_cast %74 : vector<7x1024xf32> to vector<1x7x1024xf32>
    tpu.vector_store %arg6[%c2_50, %c0_51, %c0_52], %77 {strides = array<i32>} : memref<4x7x1024xf32, #tpu.memory_space<vmem>>, vector<1x7x1024xf32>,
    %78 = vector.extract_strided_slice %61 {offsets = [0, 192], sizes = [7, 64], strides = [1, 1]} : vector<7x256xbf16> to vector<7x64xbf16>
    %cst_53 = arith.constant dense<0.000000e+00> : vector<7x1024xf32>
    %79 = tpu.matmul %78, %62, %cst_53 {dimension_numbers = #tpu.dot_dimension_numbers<[1], [0], [0], [1], [0, 0, 1, 1], [], []>} : vector<7x64xbf16>, vector<64x1024xbf16>, vector<7x1024xf32> -> vector<7x1024xf32>
    %c3 = arith.constant 3 : index
    %c0_54 = arith.constant 0 : index
    %c0_55 = arith.constant 0 : index
    %80 = vector.load %arg6[%c3, %c0_54, %c0_55] : memref<4x7x1024xf32, #tpu.memory_space<vmem>>, vector<1x7x1024xf32>
    %81 = vector.shape_cast %80 : vector<1x7x1024xf32> to vector<7x1024xf32>
    %82 = vector.shape_cast %79 : vector<7x1024xf32> to vector<1x7x1024xf32>
    tpu.vector_store %arg6[%c3, %c0_54, %c0_55], %82 {strides = array<i32>} : memref<4x7x1024xf32, #tpu.memory_space<vmem>>, vector<1x7x1024xf32>,
    return
  }
  func.func @transform_0(%arg0: i32) -> (i32, i32, i32, i32) {
    %c0_i32 = arith.constant 0 : i32
    %c0_i32_0 = arith.constant 0 : i32
    %c0_i32_1 = arith.constant 0 : i32
    %c0_i32_2 = arith.constant 0 : i32
    return %arg0, %c0_i32, %c0_i32_0, %c0_i32_1 : i32, i32, i32, i32
  }
  func.func @transform_1(%arg0: i32) -> (i32, i32) {
    %c0_i32 = arith.constant 0 : i32
    %c0_i32_0 = arith.constant 0 : i32
    %c0_i32_1 = arith.constant 0 : i32
    return %c0_i32, %c0_i32_0 : i32, i32
  }
  func.func @transform_2(%arg0: i32) -> (i32, i32) {
    %c0_i32 = arith.constant 0 : i32
    %c0_i32_0 = arith.constant 0 : i32
    %c0_i32_1 = arith.constant 0 : i32
    return %c0_i32, %c0_i32_0 : i32, i32
  }
  func.func @transform_3(%arg0: i32) -> (i32, i32) {
    %c0_i32 = arith.constant 0 : i32
    %c0_i32_0 = arith.constant 0 : i32
    %c0_i32_1 = arith.constant 0 : i32
    return %c0_i32, %c0_i32_0 : i32, i32
  }
  func.func @transform_4(%arg0: i32) -> (i32, i32) {
    %c0_i32 = arith.constant 0 : i32
    %c0_i32_0 = arith.constant 0 : i32
    %c0_i32_1 = arith.constant 0 : i32
    return %c0_i32, %c0_i32_0 : i32, i32
  }
  func.func @transform_5(%arg0: i32) -> (i32, i32, i32) {
    %c0_i32 = arith.constant 0 : i32
    %c0_i32_0 = arith.constant 0 : i32
    %c0_i32_1 = arith.constant 0 : i32
    return %arg0, %c0_i32, %c0_i32_0 : i32, i32, i32
  }
}

</mosaic_0001>

<bundles_post_ra>
// kernel: _lambda_.1
= control target key start
LH: loop header
LB: loop body
LE: loop exit
PB: predicated region body
PF: predicated region fallthrough
CT: control target
= control target key end

     0   :  { %vm801_vm0 = vcmask 1046528   ;;  %vm1861_vm1 = vcmask 1045504   ;;  %vm7500_vm2 = vcmask 523264   ;;  %s16157_s0 = inlined_call_operand.vmem [shape: f32[4,10,10,384], index: 0, kind: input, shape index: {}]   ;;  %s16158_s1 = inlined_call_operand.vmem [shape: f32[9,384], index: 1, kind: input, shape index: {}]   ;;  %s16159_s2 = inlined_call_operand.vmem [shape: bf16[7,384], index: 2, kind: input, shape index: {}]   ;;  %s16160_s3 = inlined_call_operand.vmem [shape: f32[7,1], index: 3, kind: input, shape index: {}]   ;;  %s16161_s4 = inlined_call_operand.vmem [shape: bf16[64,1024], index: 4, kind: input, shape index: {}]   ;;  %s16162_s5 = inlined_call_operand.vmem [shape: f32[4,7,1024], index: 5, kind: output, shape index: {}]  }
   0x1   :  { %v9213_v0 = vld [vmem:[%s16158_s1] sm:$0xff]  ;;  %v9223_v2 = vld [vmem:[%s16157_s0 + $0x330] sm:$0xff]  ;;  %v309_v6 = vld [vmem:[%s16157_s0 + $0x318] sm:$0x1] }
   0x2   :  { %v9218_v1 = vld [vmem:[%s16157_s0 + $0x300] sm:$0xff]  ;;  %v9226_v3 = vperm.slane %v9213_v0, 0  ;;  %v9229_v4 = vperm.slane %v9213_v0, 1  ;;  %v312_v7 = vld [vmem:[%s16157_s0 + $0x330] sm:$0xfe]  ;;  %v9264_v19 = vperm.slane %v9213_v0, 2 }
   0x3   :  { %v306_v5 = vld [vmem:[%s16157_s0 + $0x300] sm:$0xfe]  ;;  %v315_v9 = vld [vmem:[%s16157_s0 + $0x348] sm:$0x1]  ;;  %v1369_v13 = vld [vmem:[%s16157_s0 + $0x318] sm:$0x3] }
   0x4   :  { %v168_v8 = vmul.f32 %v9226_v3, %v9218_v1  ;;  %v501_v10 = vmul.f32 %v9229_v4, %v306_v5  ;;  %v504_v11 = vmul.f32 %v9229_v4, %v309_v6  ;;  %v1366_v12 = vld [vmem:[%s16157_s0 + $0x300] sm:$0xfc]  ;;  %v171_v14 = vmul.f32 %v9226_v3, %v9223_v2  ;;  %v1372_v17 = vld [vmem:[%s16157_s0 + $0x330] sm:$0xfc]  ;;  %v1375_v18 = vld [vmem:[%s16157_s0 + $0x348] sm:$0x3] }
   0x5   :  { %v507_v15 = vmul.f32 %v9229_v4, %v312_v7  ;;  %v510_v16 = vmul.f32 %v9229_v4, %v315_v9  ;;  %v9267_v22 = vperm.slane %v9213_v0, 3  ;;  %v9270_v23 = vperm.slane %v9213_v0, 4  ;;  %v9277_v28 = vld [vmem:[%s16157_s0 + $0x360] sm:$0xff]  ;;  %v8157_v33 = vld [vmem:[%s16157_s0 + $0x330] sm:$0xfe] }
   0x6   :  { %v928_v20 = vrot.slane %v501_v10, 1  ;;  %v929_v21 = vrot.slane %v504_v11, 1  ;;  %v1561_v26 = vmul.f32 %v9264_v19, %v1366_v12  ;;  %v1564_v27 = vmul.f32 %v9264_v19, %v1369_v13  ;;  %v8160_v34 = vld [vmem:[%s16157_s0 + $0x348] sm:$0x1]  ;;  %v8163_v35 = vld [vmem:[%s16157_s0 + $0x360] sm:$0xfe] }
   0x7   :  { %v937_v24 = vrot.slane %v507_v15, 1  ;;  %v938_v25 = vrot.slane %v510_v16, 1  ;;  %v1567_v30 = vmul.f32 %v9264_v19, %v1372_v17  ;;  %v1570_v31 = vmul.f32 %v9264_v19, %v1375_v18  ;;  %v8166_v40 = vld [vmem:[%s16157_s0 + $0x378] sm:$0x1]  ;;  %v8349_v49 = vld [vmem:[%s16157_s0 + $0x330] sm:$0xfc] }
   0x8   :  { %v930_v29 = vsel %vm801_vm0, %v928_v20, %v929_v21  ;;  %v2484_v32 = vmul.f32 %v9267_v22, %v9223_v2  ;;  %v1988_v38 = vrot.slane %v1561_v26, 2  ;;  %v1989_v39 = vrot.slane %v1564_v27, 2  ;;  %v8352_v50 = vld [vmem:[%s16157_s0 + $0x348] sm:$0x3]  ;;  %v8355_v54 = vld [vmem:[%s16157_s0 + $0x360] sm:$0xfc] }
   0x9   :  { %v939_v36 = vsel %vm801_vm0, %v937_v24, %v938_v25  ;;  %v1228_v37 = vadd.f32 %v930_v29, %v168_v8  ;;  %v1997_v42 = vrot.slane %v1567_v30, 2  ;;  %v1998_v43 = vrot.slane %v1570_v31, 2  ;;  %v8358_v55 = vld [vmem:[%s16157_s0 + $0x378] sm:$0x3]  ;;  %v8502_v6 = vld [vmem:[%s16157_s0 + $0x390] sm:$0xff] }
   0xa   :  { %v1231_v41 = vadd.f32 %v939_v36, %v171_v14  ;;  %v2487_v44 = vmul.f32 %v9277_v28, %v9267_v22  ;;  %v1990_v45 = vsel %vm1861_vm1, %v1988_v38, %v1989_v39  ;;  %v2913_v46 = vmul.f32 %v8157_v33, %v9270_v23  ;;  %v9328_v7 = vld [vmem:[%s16158_s1 + $0x18] ss:$0 sm:$0xff]  ;;  %v8637_v12 = vld [vmem:[%s16157_s0 + $0x360] sm:$0xfe]  ;;  %v8643_v21 = vld [vmem:[%s16157_s0 + $0x390] sm:$0xfe] }
   0xb   :  { %v2916_v47 = vmul.f32 %v8160_v34, %v9270_v23  ;;  %v2919_v48 = vmul.f32 %v8163_v35, %v9270_v23  ;;  %v1999_v51 = vsel %vm1861_vm1, %v1997_v42, %v1998_v43  ;;  %v2288_v52 = vadd.f32 %v1990_v45, %v1228_v37  ;;  %v8829_v13 = vld [vmem:[%s16157_s0 + $0x360] sm:$0xfc]  ;;  %v8832_v14 = vld [vmem:[%s16157_s0 + $0x378] sm:$0x3]  ;;  %v8646_v29 = vld [vmem:[%s16157_s0 + $0x3a8] sm:$0x1] }
   0xc   :  { %v2922_v53 = vmul.f32 %v8166_v40, %v9270_v23  ;;  %v9318_v56 = vperm.slane %v9213_v0, 5  ;;  %v2291_v57 = vadd.f32 %v1999_v51, %v1231_v41  ;;  %v3339_v58 = vrot.slane %v2913_v46, 1  ;;  %v8640_v20 = vld [vmem:[%s16157_s0 + $0x378] sm:$0x1]  ;;  %v8838_v33 = vld [vmem:[%s16157_s0 + $0x3a8] sm:$0x3] }
   0xd   :  { %v3340_v59 = vrot.slane %v2916_v47, 1  ;;  %v3348_v60 = vrot.slane %v2919_v48, 1  ;;  %v2580_v61 = vadd.f32 %v2484_v32, %v2288_v52  ;;  %v9350_v27 = vperm.slane %v9213_v0, 6  ;;  %v8835_v32 = vld [vmem:[%s16157_s0 + $0x390] sm:$0xfc]  ;;  %v9385_v47 = vld [vmem:[%s16157_s0 + $0x308] sm:$0xff] }
   0xe   :  { %v3349_v62 = vrot.slane %v2922_v53, 1  ;;  %v3972_v63 = vmul.f32 %v8349_v49, %v9318_v56  ;;  %v3975_v5 = vmul.f32 %v8352_v50, %v9318_v56  ;;  %v2583_v8 = vadd.f32 %v2487_v44, %v2291_v57  ;;  %v9390_v52 = vld [vmem:[%s16157_s0 + $0x338] sm:$0xff]  ;;  %v307_v53 = vld [vmem:[%s16157_s0 + $0x308] sm:$0xfe] }
   0xf   :  { %v3341_v9 = vsel %vm801_vm0, %v3339_v58, %v3340_v59  ;;  %v3978_v10 = vmul.f32 %v8355_v54, %v9318_v56  ;;  %v3981_v11 = vmul.f32 %v8358_v55, %v9318_v56  ;;  %v9357_v31 = vperm.slane %v9213_v0, 7  ;;  %v310_v54 = vld [vmem:[%s16157_s0 + $0x320] sm:$0x1] }
  0x10   :  { %v3350_v15 = vsel %vm801_vm0, %v3348_v60, %v3349_v62  ;;  %v3639_v16 = vadd.f32 %v3341_v9, %v2580_v61  ;;  %v4398_v17 = vrot.slane %v3972_v63, 2  ;;  %v4399_v18 = vrot.slane %v3975_v5, 2  ;;  %v313_v60 = vld [vmem:[%s16157_s0 + $0x338] sm:$0xfe]  ;;  %v316_v5 = vld [vmem:[%s16157_s0 + $0x350] sm:$0x1] }
  0x11   :  { %v3642_v24 = vadd.f32 %v3350_v15, %v2583_v8  ;;  %v4407_v25 = vrot.slane %v3978_v10, 2  ;;  %v4408_v26 = vrot.slane %v3981_v11, 2  ;;  %v6382_v34 = vmul.f32 %v9328_v7, %v8829_v13  ;;  %v1367_v11 = vld [vmem:[%s16157_s0 + $0x308] sm:$0xfc] }
  0x12   :  { %v4400_v30 = vsel %vm1861_vm1, %v4398_v17, %v4399_v18  ;;  %v6385_v35 = vmul.f32 %v9328_v7, %v8832_v14  ;;  %v4894_v38 = vmul.f32 %v9277_v28, %v9350_v27  ;;  %v4897_v0 = vmul.f32 %v8502_v6, %v9350_v27  ;;  %v9380_v28 = vld [vmem:[%s16158_s1 + $0x8] sm:$0xff]  ;;  %v1373_v18 = vld [vmem:[%s16157_s0 + $0x338] sm:$0xfc] }
  0x13   :  { %v4409_v36 = vsel %vm1861_vm1, %v4407_v25, %v4408_v26  ;;  %v4698_v37 = vadd.f32 %v4400_v30, %v3639_v16  ;;  %v5323_v40 = vmul.f32 %v8637_v12, %v9357_v31  ;;  %v5326_v41 = vmul.f32 %v8640_v20, %v9357_v31  ;;  %v1370_v12 = vld [vmem:[%s16157_s0 + $0x320] sm:$0x3]  ;;  %v1376_v26 = vld [vmem:[%s16157_s0 + $0x350] sm:$0x3] }
  0x14   :  { %v4701_v39 = vadd.f32 %v4409_v36, %v3642_v24  ;;  %v5329_v42 = vmul.f32 %v8643_v21, %v9357_v31  ;;  %v5332_v44 = vmul.f32 %v8646_v29, %v9357_v31  ;;  %v6388_v45 = vmul.f32 %v9328_v7, %v8835_v32 }
  0x15   :  { %v4990_v43 = vadd.f32 %v4894_v38, %v4698_v37  ;;  %v6391_v46 = vmul.f32 %v9328_v7, %v8838_v33  ;;  %v5749_v49 = vrot.slane %v5323_v40, 1  ;;  %v5750_v50 = vrot.slane %v5326_v41, 1  ;;  %v8023_v41 = vld [vmem:[%s16157_s0 + $0x368] sm:$0xff] }
  0x16   :  { %v4993_v48 = vadd.f32 %v4897_v0, %v4701_v39  ;;  %v5758_v51 = vrot.slane %v5329_v42, 1  ;;  %v5759_v55 = vrot.slane %v5332_v44, 1  ;;  %v6808_v57 = vrot.slane %v6382_v34, 2  ;;  %v8158_v42 = vld [vmem:[%s16157_s0 + $0x338] sm:$0xfe] }
  0x17   :  { %v6809_v58 = vrot.slane %v6385_v35, 2  ;;  %v6817_v59 = vrot.slane %v6388_v45, 2  ;;  %v5751_v61 = vsel %vm801_vm0, %v5749_v49, %v5750_v50  ;;  %v6818_v62 = vrot.slane %v6391_v46, 2 }
  0x18   :  { %v9403_v63 = vperm.slane %v9380_v28, 0  ;;  %v9409_v6 = vperm.slane %v9380_v28, 1  ;;  %v5760_v8 = vsel %vm801_vm0, %v5758_v51, %v5759_v55  ;;  %v6049_v9 = vadd.f32 %v5751_v61, %v4990_v43 }
  0x19   :  { %v6810_v10 = vsel %vm1861_vm1, %v6808_v57, %v6809_v58  ;;  %v9420_v13 = vperm.slane %v9380_v28, 2  ;;  %v6052_v14 = vadd.f32 %v5760_v8, %v4993_v48  ;;  %v6819_v15 = vsel %vm1861_vm1, %v6817_v59, %v6818_v62  ;;  %v8161_v48 = vld [vmem:[%s16157_s0 + $0x350] sm:$0x1] }
  0x1a   :  { %v169_v16 = vmul.f32 %v9403_v63, %v9385_v47  ;;  %v172_v17 = vmul.f32 %v9403_v63, %v9390_v52  ;;  %v7108_v20 = vadd.f32 %v6810_v10, %v6049_v9  ;;  %v502_v21 = vmul.f32 %v9409_v6, %v307_v53  ;;  %v8164_v53 = vld [vmem:[%s16157_s0 + $0x368] sm:$0xfe]  ;;  %v8350_v9 = vld [vmem:[%s16157_s0 + $0x338] sm:$0xfc]  ;;  %v8353_v10 = vld [vmem:[%s16157_s0 + $0x350] sm:$0x3] }
  0x1b   :  { %v505_v24 = vmul.f32 %v9409_v6, %v310_v54  ;;  %v508_v25 = vmul.f32 %v9409_v6, %v313_v60  ;;  %v7111_v29 = vadd.f32 %v6819_v15, %v6052_v14  ;;  %v511_v30 = vmul.f32 %v9409_v6, %v316_v5  ;;  %v8167_v54 = vld [vmem:[%s16157_s0 + $0x380] sm:$0x1]  ;;  %v8356_v15 = vld [vmem:[%s16157_s0 + $0x368] sm:$0xfc] }
  0x1c   :  { %v1562_v32 = vmul.f32 %v9420_v13, %v1367_v11  ;;  %v1565_v33 = vmul.f32 %v9420_v13, %v1370_v12  ;;  %v931_v34 = vrot.slane %v502_v21, 1  ;;  %v1568_v37 = vmul.f32 %v9420_v13, %v1373_v18 }
  0x1d   :  { %v932_v35 = vrot.slane %v505_v24, 1  ;;  %v940_v36 = vrot.slane %v508_v25, 1  ;;  %v7183_v38 = vpack.c.bf16 %v7111_v29, %v7108_v20  ;;  %v941_v0 = vrot.slane %v511_v30, 1  ;;  %v9494_v25 = vld [vmem:[%s16158_s1 + $0x20] ss:$0 sm:$0xff] }
  0x1e   :  { %v1571_v39 = vmul.f32 %v9420_v13, %v1376_v26  ;;  %v1991_v40 = vrot.slane %v1562_v32, 2  ;;  %v1992_v44 = vrot.slane %v1565_v33, 2  ;;  %v2000_v45 = vrot.slane %v1568_v37, 2  ;;  %v8503_v33 = vld [vmem:[%s16157_s0 + $0x398] sm:$0xff] }
  0x1f   :  { %v933_v43 = vsel %vm801_vm0, %v931_v34, %v932_v35  ;;  %v9449_v46 = vperm.slane %v9380_v28, 3  ;;  %7229 = vmatpush.bf16.xpose.msra.mxu0 %v7183_v38  ;;  %v942_v49 = vsel %vm801_vm0, %v940_v36, %v941_v0  ;;  %v9462_v55 = vperm.slane %v9380_v28, 4  ;;  %v8638_v38 = vld [vmem:[%s16157_s0 + $0x368] sm:$0xfe] }
  0x20   :  { %v1229_v50 = vadd.f32 %v933_v43, %v169_v16  ;;  %v2001_v51 = vrot.slane %v1571_v39, 2  ;;  %v1232_v57 = vadd.f32 %v942_v49, %v172_v17  ;;  %v1993_v58 = vsel %vm1861_vm1, %v1991_v40, %v1992_v44  ;;  %v8359_v16 = vld [vmem:[%s16157_s0 + $0x380] sm:$0x3]  ;;  %v8830_v0 = vld [vmem:[%s16157_s0 + $0x368] sm:$0xfc] }
  0x21   :  { %v2485_v59 = vmul.f32 %v9449_v46, %v9390_v52  ;;  %v2488_v60 = vmul.f32 %v8023_v41, %v9449_v46  ;;  %v2914_v5 = vmul.f32 %v8158_v42, %v9462_v55  ;;  %v2917_v8 = vmul.f32 %v8161_v48, %v9462_v55  ;;  %v8833_v39 = vld [vmem:[%s16157_s0 + $0x380] sm:$0x3]  ;;  %v8839_v48 = vld [vmem:[%s16157_s0 + $0x3b0] sm:$0x3] }
  0x22   :  { %v2002_v61 = vsel %vm1861_vm1, %v2000_v45, %v2001_v51  ;;  %v2289_v62 = vadd.f32 %v1993_v58, %v1229_v50  ;;  %v2920_v12 = vmul.f32 %v8164_v53, %v9462_v55  ;;  %v2923_v14 = vmul.f32 %v8167_v54, %v9462_v55  ;;  %v8836_v45 = vld [vmem:[%s16157_s0 + $0x398] sm:$0xfc]  ;;  %v8641_v54 = vld [vmem:[%s16157_s0 + $0x380] sm:$0x1]  ;;  %v8647_v58 = vld [vmem:[%s16157_s0 + $0x3b0] sm:$0x1] }
  0x23   :  { %v2292_v11 = vadd.f32 %v2002_v61, %v1232_v57  ;;  %v9486_v17 = vperm.slane %v9380_v28, 5  ;;  %v3342_v20 = vrot.slane %v2914_v5, 1  ;;  %v3343_v21 = vrot.slane %v2917_v8, 1 }
  0x24   :  { %v2581_v18 = vadd.f32 %v2485_v59, %v2289_v62  ;;  %v9489_v24 = vperm.slane %v9380_v28, 6  ;;  %v3351_v29 = vrot.slane %v2920_v12, 1  ;;  %v3352_v30 = vrot.slane %v2923_v14, 1 }
  0x25   :  { %v2584_v26 = vadd.f32 %v2488_v60, %v2292_v11  ;;  %v3973_v32 = vmul.f32 %v8350_v9, %v9486_v17  ;;  %v3344_v34 = vsel %vm801_vm0, %v3342_v20, %v3343_v21  ;;  %v3976_v35 = vmul.f32 %v8353_v10, %v9486_v17  ;;  %v9547_v20 = vld [vmem:[%s16157_s0 + $0x2a0] sm:$0xff]  ;;  %v9552_v21 = vld [vmem:[%s16157_s0 + $0x2d0] sm:$0xff] }
  0x26   :  { %v3979_v36 = vmul.f32 %v8356_v15, %v9486_v17  ;;  %v3982_v37 = vmul.f32 %v8359_v16, %v9486_v17  ;;  %v3353_v40 = vsel %vm801_vm0, %v3351_v29, %v3352_v30  ;;  %v3640_v42 = vadd.f32 %v3344_v34, %v2581_v18  ;;  %v297_v34 = vld [vmem:[%s16157_s0 + $0x2b8] sm:$0x1] }
  0x27   :  { %v4401_v43 = vrot.slane %v3973_v32, 2  ;;  %v4895_v44 = vmul.f32 %v8023_v41, %v9489_v24  ;;  %v3643_v49 = vadd.f32 %v3353_v40, %v2584_v26  ;;  %v4402_v50 = vrot.slane %v3976_v35, 2  ;;  %v8644_v41 = vld [vmem:[%s16157_s0 + $0x398] sm:$0xfe]  ;;  %v294_v26 = vld [vmem:[%s16157_s0 + $0x2a0] sm:$0xfe] }
  0x28   :  { %v4410_v51 = vrot.slane %v3979_v36, 2  ;;  %v4411_v53 = vrot.slane %v3982_v37, 2  ;;  %v4898_v57 = vmul.f32 %v8503_v33, %v9489_v24  ;;  %v9532_v59 = vperm.slane %v9380_v28, 7  ;;  %v300_v35 = vld [vmem:[%s16157_s0 + $0x2d0] sm:$0xfe] }
  0x29   :  { %v6383_v60 = vmul.f32 %v9494_v25, %v8830_v0  ;;  %v6386_v61 = vmul.f32 %v9494_v25, %v8833_v39  ;;  %v4403_v62 = vsel %vm1861_vm1, %v4401_v43, %v4402_v50  ;;  %v6389_v8 = vmul.f32 %v9494_v25, %v8836_v45  ;;  %v303_v39 = vld [vmem:[%s16157_s0 + $0x2e8] sm:$0x1]  ;;  %v1354_v45 = vld [vmem:[%s16157_s0 + $0x2a0] sm:$0xfc] }
  0x2a   :  { %v4412_v5 = vsel %vm1861_vm1, %v4410_v51, %v4411_v53  ;;  %v6392_v9 = vmul.f32 %v9494_v25, %v8839_v48  ;;  %v4699_v10 = vadd.f32 %v4403_v62, %v3640_v42  ;;  %v5324_v12 = vmul.f32 %v8638_v38, %v9532_v59  ;;  %v1357_v53 = vld [vmem:[%s16157_s0 + $0x2b8] sm:$0x3] }
  0x2b   :  { %v4702_v11 = vadd.f32 %v4412_v5, %v3643_v49  ;;  %v5327_v14 = vmul.f32 %v8641_v54, %v9532_v59  ;;  %v5330_v28 = vmul.f32 %v8644_v41, %v9532_v59  ;;  %v5333_v15 = vmul.f32 %v8647_v58, %v9532_v59 }
  0x2c   :  { %v6811_v16 = vrot.slane %v6383_v60, 2  ;;  %v6812_v18 = vrot.slane %v6386_v61, 2  ;;  %v4991_v29 = vadd.f32 %v4895_v44, %v4699_v10  ;;  %v5752_v32 = vrot.slane %v5324_v12, 1  ;;  %v1360_v60 = vld [vmem:[%s16157_s0 + $0x2d0] sm:$0xfc] }
  0x2d   :  { %v4994_v30 = vadd.f32 %v4898_v57, %v4702_v11  ;;  %v5753_v33 = vrot.slane %v5327_v14, 1  ;;  %v5761_v36 = vrot.slane %v5330_v28, 1  ;;  %v5762_v37 = vrot.slane %v5333_v15, 1  ;;  %v1363_v61 = vld [vmem:[%s16157_s0 + $0x2e8] sm:$0x3] }
  0x2e   :  { %v6813_v38 = vsel %vm1861_vm1, %v6811_v16, %v6812_v18  ;;  %v6820_v0 = vrot.slane %v6389_v8, 2  ;;  %v6821_v42 = vrot.slane %v6392_v9, 2  ;;  %v162_v43 = vmul.f32 %v9226_v3, %v9547_v20 }
  0x2f   :  { %v5754_v40 = vsel %vm801_vm0, %v5752_v32, %v5753_v33  ;;  %v165_v44 = vmul.f32 %v9226_v3, %v9552_v21  ;;  %v5763_v48 = vsel %vm801_vm0, %v5761_v36, %v5762_v37  ;;  %v489_v50 = vmul.f32 %v9229_v4, %v294_v26  ;;  %v8145_v26 = vld [vmem:[%s16157_s0 + $0x2d0] sm:$0xfe]  ;;  %v8154_v36 = vld [vmem:[%s16157_s0 + $0x318] sm:$0x1] }
  0x30   :  { %v6050_v49 = vadd.f32 %v5754_v40, %v4991_v29  ;;  %v492_v51 = vmul.f32 %v9229_v4, %v297_v34  ;;  %v6053_v54 = vadd.f32 %v5763_v48, %v4994_v30  ;;  %v6822_v57 = vsel %vm1861_vm1, %v6820_v0, %v6821_v42  ;;  %v8148_v29 = vld [vmem:[%s16157_s0 + $0x2e8] sm:$0x1]  ;;  %v8337_v40 = vld [vmem:[%s16157_s0 + $0x2d0] sm:$0xfc] }
  0x31   :  { %v495_v41 = vmul.f32 %v9229_v4, %v300_v35  ;;  %v498_v58 = vmul.f32 %v9229_v4, %v303_v39  ;;  %v910_v5 = vrot.slane %v489_v50, 1  ;;  %v1549_v9 = vmul.f32 %v9264_v19, %v1354_v45  ;;  %v8151_v35 = vld [vmem:[%s16157_s0 + $0x300] sm:$0xfe] }
  0x32   :  { %v7109_v62 = vadd.f32 %v6813_v38, %v6050_v49  ;;  %v911_v8 = vrot.slane %v492_v51, 1  ;;  %v7112_v10 = vadd.f32 %v6822_v57, %v6053_v54  ;;  %v1552_v14 = vmul.f32 %v9264_v19, %v1357_v53  ;;  %v8343_v54 = vld [vmem:[%s16157_s0 + $0x300] sm:$0xfc]  ;;  %v8346_v57 = vld [vmem:[%s16157_s0 + $0x318] sm:$0x3] }
  0x33   :  { %v919_v11 = vrot.slane %v495_v41, 1  ;;  %v920_v12 = vrot.slane %v498_v58, 1  ;;  %v1555_v15 = vmul.f32 %v9264_v19, %v1360_v60  ;;  %v1558_v16 = vmul.f32 %v9264_v19, %v1363_v61 }
  0x34   :  { %v912_v28 = vsel %vm801_vm0, %v910_v5, %v911_v8  ;;  %v1970_v18 = vrot.slane %v1549_v9, 2  ;;  %v7184_v30 = vpack.c.bf16 %v7112_v10, %v7109_v62  ;;  %v1971_v34 = vrot.slane %v1552_v14, 2 }
  0x35   :  { %v921_v32 = vsel %vm801_vm0, %v919_v11, %v920_v12  ;;  %v1222_v33 = vadd.f32 %v912_v28, %v162_v43  ;;  %v1979_v38 = vrot.slane %v1555_v15, 2  ;;  %v1980_v0 = vrot.slane %v1558_v16, 2  ;;  %v8625_v28 = vld [vmem:[%s16157_s0 + $0x300] sm:$0xfe]  ;;  %v8628_v15 = vld [vmem:[%s16157_s0 + $0x318] sm:$0x1] }
  0x36   :  { %v1225_v37 = vadd.f32 %v921_v32, %v165_v44  ;;  %v2478_v39 = vmul.f32 %v9267_v22, %v9552_v21  ;;  %7242 = vmatpush.bf16.xpose.msra.mxu1 %v7184_v30  ;;  %v1972_v42 = vsel %vm1861_vm1, %v1970_v18, %v1971_v34  ;;  %v2481_v43 = vmul.f32 %v9267_v22, %v9218_v1  ;;  %v8340_v44 = vld [vmem:[%s16157_s0 + $0x2e8] sm:$0x3]  ;;  %v8631_v30 = vld [vmem:[%s16157_s0 + $0x330] sm:$0xfe] }
  0x37   :  { %v2901_v45 = vmul.f32 %v8145_v26, %v9270_v23  ;;  %v2904_v48 = vmul.f32 %v8148_v29, %v9270_v23  ;;  %v1981_v49 = vsel %vm1861_vm1, %v1979_v38, %v1980_v0  ;;  %v2282_v50 = vadd.f32 %v1972_v42, %v1222_v33  ;;  %v8634_v32 = vld [vmem:[%s16157_s0 + $0x348] sm:$0x1]  ;;  %v8820_v42 = vld [vmem:[%s16157_s0 + $0x318] sm:$0x3] }
  0x38   :  { %v2907_v51 = vmul.f32 %v8151_v35, %v9270_v23  ;;  %v2910_v53 = vmul.f32 %v8154_v36, %v9270_v23  ;;  %v2285_v41 = vadd.f32 %v1981_v49, %v1225_v37  ;;  %v3960_v61 = vmul.f32 %v8337_v40, %v9318_v56  ;;  %v8817_v37 = vld [vmem:[%s16157_s0 + $0x300] sm:$0xfc] }
  0x39   :  { %v3321_v58 = vrot.slane %v2901_v45, 1  ;;  %v3322_v60 = vrot.slane %v2904_v48, 1  ;;  %v2574_v62 = vadd.f32 %v2478_v39, %v2282_v50  ;;  %v3963_v9 = vmul.f32 %v8340_v44, %v9318_v56  ;;  %v8823_v44 = vld [vmem:[%s16157_s0 + $0x330] sm:$0xfc] }
  0x3a   :  { %v3330_v5 = vrot.slane %v2907_v51, 1  ;;  %v3331_v8 = vrot.slane %v2910_v53, 1  ;;  %v2577_v10 = vadd.f32 %v2481_v43, %v2285_v41  ;;  %v3966_v12 = vmul.f32 %v8343_v54, %v9318_v56 }
  0x3b   :  { %v3323_v11 = vsel %vm801_vm0, %v3321_v58, %v3322_v60  ;;  %v3969_v14 = vmul.f32 %v8346_v57, %v9318_v56  ;;  %v4380_v26 = vrot.slane %v3960_v61, 2  ;;  %v4381_v29 = vrot.slane %v3963_v9, 2  ;;  %v9675_v60 = vld [vmem:[%s16157_s0 + $0x2a8] sm:$0xff]  ;;  %v9683_v9 = vld [vmem:[%s16157_s0 + $0x2d8] sm:$0xff] }
  0x3c   :  { %v3332_v16 = vsel %vm801_vm0, %v3330_v5, %v3331_v8  ;;  %v3633_v18 = vadd.f32 %v3323_v11, %v2574_v62  ;;  %v4389_v34 = vrot.slane %v3966_v12, 2  ;;  %v4888_v36 = vmul.f32 %v9350_v27, %v9218_v1  ;;  %v298_v11 = vld [vmem:[%s16157_s0 + $0x2c0] sm:$0x1] }
  0x3d   :  { %v3636_v33 = vadd.f32 %v3332_v16, %v2577_v10  ;;  %v4390_v35 = vrot.slane %v3969_v14, 2  ;;  %v4382_v38 = vsel %vm1861_vm1, %v4380_v26, %v4381_v29  ;;  %v4891_v0 = vmul.f32 %v9350_v27, %v9223_v2  ;;  %v8826_v2 = vld [vmem:[%s16157_s0 + $0x348] sm:$0x3]  ;;  %v301_v16 = vld [vmem:[%s16157_s0 + $0x2d8] sm:$0xfe] }
  0x3e   :  { %v5311_v39 = vmul.f32 %v8625_v28, %v9357_v31  ;;  %v5314_v40 = vmul.f32 %v8628_v15, %v9357_v31  ;;  %v4692_v1 = vadd.f32 %v4382_v38, %v3633_v18  ;;  %v5317_v45 = vmul.f32 %v8631_v30, %v9357_v31  ;;  %v295_v10 = vld [vmem:[%s16157_s0 + $0x2a8] sm:$0xfe]  ;;  %v304_v18 = vld [vmem:[%s16157_s0 + $0x2f0] sm:$0x1]  ;;  %v1358_v38 = vld [vmem:[%s16157_s0 + $0x2c0] sm:$0x3] }
  0x3f   :  { %v4391_v43 = vsel %vm1861_vm1, %v4389_v34, %v4390_v35  ;;  %v5320_v48 = vmul.f32 %v8634_v32, %v9357_v31  ;;  %v6370_v53 = vmul.f32 %v9328_v7, %v8817_v37  ;;  %v6373_v58 = vmul.f32 %v9328_v7, %v8820_v42 }
  0x40   :  { %v4695_v49 = vadd.f32 %v4391_v43, %v3636_v33  ;;  %v5731_v50 = vrot.slane %v5311_v39, 1  ;;  %v5732_v51 = vrot.slane %v5314_v40, 1  ;;  %v4984_v54 = vadd.f32 %v4888_v36, %v4692_v1  ;;  %v1355_v33 = vld [vmem:[%s16157_s0 + $0x2a8] sm:$0xfc]  ;;  %v1364_v1 = vld [vmem:[%s16157_s0 + $0x2f0] sm:$0x3] }
  0x41   :  { %v5740_v57 = vrot.slane %v5317_v45, 1  ;;  %v5741_v41 = vrot.slane %v5320_v48, 1  ;;  %v6376_v5 = vmul.f32 %v9328_v7, %v8823_v44  ;;  %v6379_v8 = vmul.f32 %v9328_v7, %v8826_v2 }
  0x42   :  { %v4987_v61 = vadd.f32 %v4891_v0, %v4695_v49  ;;  %v5733_v62 = vsel %vm801_vm0, %v5731_v50, %v5732_v51  ;;  %v6790_v28 = vrot.slane %v6370_v53, 2  ;;  %v6791_v15 = vrot.slane %v6373_v58, 2  ;;  %v1361_v0 = vld [vmem:[%s16157_s0 + $0x2d8] sm:$0xfc] }
  0x43   :  { %v5742_v12 = vsel %vm801_vm0, %v5740_v57, %v5741_v41  ;;  %v6043_v14 = vadd.f32 %v5733_v62, %v4984_v54  ;;  %v6799_v29 = vrot.slane %v6376_v5, 2  ;;  %v6800_v30 = vrot.slane %v6379_v8, 2  ;;  %v8146_v54 = vld [vmem:[%s16157_s0 + $0x2d8] sm:$0xfe]  ;;  %v8149_v62 = vld [vmem:[%s16157_s0 + $0x2f0] sm:$0x1] }
  0x44   :  { %v6046_v26 = vadd.f32 %v5742_v12, %v4987_v61  ;;  %v163_v32 = vmul.f32 %v9403_v63, %v9675_v60  ;;  %v6792_v34 = vsel %vm1861_vm1, %v6790_v28, %v6791_v15  ;;  %v166_v35 = vmul.f32 %v9403_v63, %v9683_v9  ;;  %v8152_v5 = vld [vmem:[%s16157_s0 + $0x308] sm:$0xfe]  ;;  %v8338_v28 = vld [vmem:[%s16157_s0 + $0x2d8] sm:$0xfc] }
  0x45   :  { %v490_v36 = vmul.f32 %v9409_v6, %v295_v10  ;;  %v493_v37 = vmul.f32 %v9409_v6, %v298_v11  ;;  %v6801_v39 = vsel %vm1861_vm1, %v6799_v29, %v6800_v30  ;;  %v7102_v40 = vadd.f32 %v6792_v34, %v6043_v14  ;;  %v8155_v14 = vld [vmem:[%s16157_s0 + $0x320] sm:$0x1]  ;;  %v8341_v34 = vld [vmem:[%s16157_s0 + $0x2f0] sm:$0x3] }
  0x46   :  { %v496_v42 = vmul.f32 %v9409_v6, %v301_v16  ;;  %v499_v43 = vmul.f32 %v9409_v6, %v304_v18  ;;  %v7105_v45 = vadd.f32 %v6801_v39, %v6046_v26  ;;  %v1550_v2 = vmul.f32 %v9420_v13, %v1355_v33 }
  0x47   :  { %v913_v48 = vrot.slane %v490_v36, 1  ;;  %v914_v44 = vrot.slane %v493_v37, 1  ;;  %v1553_v51 = vmul.f32 %v9420_v13, %v1358_v38  ;;  %v1556_v53 = vmul.f32 %v9420_v13, %v1361_v0  ;;  %v8347_v0 = vld [vmem:[%s16157_s0 + $0x320] sm:$0x3] }
  0x48   :  { %v922_v49 = vrot.slane %v496_v42, 1  ;;  %v923_v50 = vrot.slane %v499_v43, 1  ;;  %v7180_v57 = vpack.c.bf16 %v7105_v45, %v7102_v40  ;;  %v1559_v58 = vmul.f32 %v9420_v13, %v1364_v1 }
  0x49   :  { %v915_v41 = vsel %vm801_vm0, %v913_v48, %v914_v44  ;;  %v1973_v61 = vrot.slane %v1550_v2, 2  ;;  %v1974_v11 = vrot.slane %v1553_v51, 2  ;;  %v1982_v12 = vrot.slane %v1556_v53, 2 }
  0x4a   :  { %v924_v8 = vsel %vm801_vm0, %v922_v49, %v923_v50  ;;  %v1223_v10 = vadd.f32 %v915_v41, %v163_v32  ;;  %7230 = vmatpush.bf16.xpose.msra.mxu0 %v7180_v57  ;;  %v1983_v16 = vrot.slane %v1559_v58, 2  ;;  %v2479_v18 = vmul.f32 %v9449_v46, %v9683_v9  ;;  %v8626_v49 = vld [vmem:[%s16157_s0 + $0x308] sm:$0xfe]  ;;  %v8629_v57 = vld [vmem:[%s16157_s0 + $0x320] sm:$0x1] }
  0x4b   :  { %v1226_v15 = vadd.f32 %v924_v8, %v166_v35  ;;  %v2482_v26 = vmul.f32 %v9449_v46, %v9385_v47  ;;  %v1975_v29 = vsel %vm1861_vm1, %v1973_v61, %v1974_v11  ;;  %v2902_v30 = vmul.f32 %v8146_v54, %v9462_v55  ;;  %v8344_v35 = vld [vmem:[%s16157_s0 + $0x308] sm:$0xfc]  ;;  %v8632_v41 = vld [vmem:[%s16157_s0 + $0x338] sm:$0xfe]  ;;  %v8635_v8 = vld [vmem:[%s16157_s0 + $0x350] sm:$0x1] }
  0x4c   :  { %v2905_v32 = vmul.f32 %v8149_v62, %v9462_v55  ;;  %v2908_v33 = vmul.f32 %v8152_v5, %v9462_v55  ;;  %v1984_v36 = vsel %vm1861_vm1, %v1982_v12, %v1983_v16  ;;  %v2283_v37 = vadd.f32 %v1975_v29, %v1223_v10  ;;  %v8818_v10 = vld [vmem:[%s16157_s0 + $0x308] sm:$0xfc]  ;;  %v8821_v29 = vld [vmem:[%s16157_s0 + $0x320] sm:$0x3] }
  0x4d   :  { %v2911_v38 = vmul.f32 %v8155_v14, %v9462_v55  ;;  %v3961_v39 = vmul.f32 %v8338_v28, %v9486_v17  ;;  %v2286_v40 = vadd.f32 %v1984_v36, %v1226_v15  ;;  %v3324_v42 = vrot.slane %v2902_v30, 1  ;;  %v8824_v30 = vld [vmem:[%s16157_s0 + $0x338] sm:$0xfc] }
  0x4e   :  { %v3325_v43 = vrot.slane %v2905_v32, 1  ;;  %v3333_v1 = vrot.slane %v2908_v33, 1  ;;  %v2575_v45 = vadd.f32 %v2479_v18, %v2283_v37  ;;  %v3964_v44 = vmul.f32 %v8341_v34, %v9486_v17  ;;  %v8827_v33 = vld [vmem:[%s16157_s0 + $0x350] sm:$0x3] }
  0x4f   :  { %v3334_v48 = vrot.slane %v2911_v38, 1  ;;  %v3967_v2 = vmul.f32 %v8344_v35, %v9486_v17  ;;  %v2578_v50 = vadd.f32 %v2482_v26, %v2286_v40  ;;  %v3970_v53 = vmul.f32 %v8347_v0, %v9486_v17 }
  0x50   :  { %v3326_v51 = vsel %vm801_vm0, %v3324_v42, %v3325_v43  ;;  %v4383_v54 = vrot.slane %v3961_v39, 2  ;;  %v4384_v62 = vrot.slane %v3964_v44, 2  ;;  %v4889_v14 = vmul.f32 %v9489_v24, %v9385_v47  ;;  %v9806_v43 = vld [vmem:[%s16157_s0 + $0x240] sm:$0xff] }
  0x51   :  { %v3335_v58 = vsel %vm801_vm0, %v3333_v1, %v3334_v48  ;;  %v3634_v61 = vadd.f32 %v3326_v51, %v2575_v45  ;;  %v4392_v5 = vrot.slane %v3967_v2, 2  ;;  %v4393_v12 = vrot.slane %v3970_v53, 2  ;;  %v9811_v1 = vld [vmem:[%s16157_s0 + $0x270] sm:$0xff]  ;;  %v282_v45 = vld [vmem:[%s16157_s0 + $0x240] sm:$0xfe] }
  0x52   :  { %v3637_v11 = vadd.f32 %v3335_v58, %v2578_v50  ;;  %v4892_v28 = vmul.f32 %v9489_v24, %v9390_v52  ;;  %v4385_v15 = vsel %vm1861_vm1, %v4383_v54, %v4384_v62  ;;  %v5312_v16 = vmul.f32 %v8626_v49, %v9532_v59  ;;  %v285_v50 = vld [vmem:[%s16157_s0 + $0x258] sm:$0x1]  ;;  %v288_v51 = vld [vmem:[%s16157_s0 + $0x270] sm:$0xfe]  ;;  %v291_v58 = vld [vmem:[%s16157_s0 + $0x288] sm:$0x1] }
  0x53   :  { %v5315_v18 = vmul.f32 %v8629_v57, %v9532_v59  ;;  %v5318_v26 = vmul.f32 %v8632_v41, %v9532_v59  ;;  %v4394_v47 = vsel %vm1861_vm1, %v4392_v5, %v4393_v12  ;;  %v4693_v32 = vadd.f32 %v4385_v15, %v3634_v61  ;;  %v1342_v61 = vld [vmem:[%s16157_s0 + $0x240] sm:$0xfc]  ;;  %v1345_v15 = vld [vmem:[%s16157_s0 + $0x258] sm:$0x3] }
  0x54   :  { %v5321_v52 = vmul.f32 %v8635_v8, %v9532_v59  ;;  %v6371_v34 = vmul.f32 %v9494_v25, %v8818_v10  ;;  %v4696_v35 = vadd.f32 %v4394_v47, %v3637_v11  ;;  %v5734_v36 = vrot.slane %v5312_v16, 1  ;;  %v1348_v16 = vld [vmem:[%s16157_s0 + $0x270] sm:$0xfc] }
  0x55   :  { %v5735_v37 = vrot.slane %v5315_v18, 1  ;;  %v5743_v38 = vrot.slane %v5318_v26, 1  ;;  %v4985_v0 = vadd.f32 %v4889_v14, %v4693_v32  ;;  %v6374_v40 = vmul.f32 %v9494_v25, %v8821_v29  ;;  %v1351_v18 = vld [vmem:[%s16157_s0 + $0x288] sm:$0x3] }
  0x56   :  { %v5744_v39 = vrot.slane %v5321_v52, 1  ;;  %v6377_v42 = vmul.f32 %v9494_v25, %v8824_v30  ;;  %v4988_v48 = vadd.f32 %v4892_v28, %v4696_v35  ;;  %v6380_v2 = vmul.f32 %v9494_v25, %v8827_v33 }
  0x57   :  { %v5736_v44 = vsel %vm801_vm0, %v5734_v36, %v5735_v37  ;;  %v6793_v49 = vrot.slane %v6371_v34, 2  ;;  %v6794_v57 = vrot.slane %v6374_v40, 2  ;;  %v156_v8 = vmul.f32 %v9226_v3, %v9806_v43 }
  0x58   :  { %v5745_v53 = vsel %vm801_vm0, %v5743_v38, %v5744_v39  ;;  %v6044_v54 = vadd.f32 %v5736_v44, %v4985_v0  ;;  %v6802_v41 = vrot.slane %v6377_v42, 2  ;;  %v6803_v5 = vrot.slane %v6380_v2, 2  ;;  %v8133_v0 = vld [vmem:[%s16157_s0 + $0x270] sm:$0xfe]  ;;  %v8136_v39 = vld [vmem:[%s16157_s0 + $0x288] sm:$0x1] }
  0x59   :  { %v6047_v62 = vadd.f32 %v5745_v53, %v4988_v48  ;;  %v159_v10 = vmul.f32 %v9226_v3, %v9811_v1  ;;  %v6795_v11 = vsel %vm1861_vm1, %v6793_v49, %v6794_v57  ;;  %v477_v12 = vmul.f32 %v9229_v4, %v282_v45  ;;  %v8139_v44 = vld [vmem:[%s16157_s0 + $0x2a0] sm:$0xfe]  ;;  %v8142_v2 = vld [vmem:[%s16157_s0 + $0x2b8] sm:$0x1] }
  0x5a   :  { %v480_v14 = vmul.f32 %v9229_v4, %v285_v50  ;;  %v483_v28 = vmul.f32 %v9229_v4, %v288_v51  ;;  %v6804_v26 = vsel %vm1861_vm1, %v6802_v41, %v6803_v5  ;;  %v7103_v29 = vadd.f32 %v6795_v11, %v6044_v54  ;;  %v8325_v54 = vld [vmem:[%s16157_s0 + $0x270] sm:$0xfc] }
  0x5b   :  { %v486_v30 = vmul.f32 %v9229_v4, %v291_v58  ;;  %v1537_v47 = vmul.f32 %v9264_v19, %v1342_v61  ;;  %v7106_v32 = vadd.f32 %v6804_v26, %v6047_v62  ;;  %v892_v52 = vrot.slane %v477_v12, 1  ;;  %v8328_v12 = vld [vmem:[%s16157_s0 + $0x288] sm:$0x3] }
  0x5c   :  { %v893_v33 = vrot.slane %v480_v14, 1  ;;  %v901_v34 = vrot.slane %v483_v28, 1  ;;  %v1540_v36 = vmul.f32 %v9264_v19, %v1345_v15  ;;  %v1543_v37 = vmul.f32 %v9264_v19, %v1348_v16  ;;  %v8334_v14 = vld [vmem:[%s16157_s0 + $0x2b8] sm:$0x3] }
  0x5d   :  { %v902_v35 = vrot.slane %v486_v30, 1  ;;  %v1546_v38 = vmul.f32 %v9264_v19, %v1351_v18  ;;  %v7181_v40 = vpack.c.bf16 %v7106_v32, %v7103_v29  ;;  %v1952_v45 = vrot.slane %v1537_v47, 2 }
  0x5e   :  { %v894_v42 = vsel %vm801_vm0, %v892_v52, %v893_v33  ;;  %v2472_v48 = vmul.f32 %v9267_v22, %v9811_v1  ;;  %v1953_v51 = vrot.slane %v1540_v36, 2  ;;  %v1961_v53 = vrot.slane %v1543_v37, 2 }
  0x5f   :  { %v903_v49 = vsel %vm801_vm0, %v901_v34, %v902_v35  ;;  %v1216_v50 = vadd.f32 %v894_v42, %v156_v8  ;;  %7243 = vmatpush.bf16.xpose.msra.mxu1 %v7181_v40  ;;  %v1962_v41 = vrot.slane %v1546_v38, 2  ;;  %v2475_v58 = vmul.f32 %v9267_v22, %v9547_v20  ;;  %v8613_v35 = vld [vmem:[%s16157_s0 + $0x2a0] sm:$0xfe]  ;;  %v8619_v40 = vld [vmem:[%s16157_s0 + $0x2d0] sm:$0xfe] }
  0x60   :  { %v1219_v57 = vadd.f32 %v903_v49, %v159_v10  ;;  %v2889_v61 = vmul.f32 %v8133_v0, %v9270_v23  ;;  %v1954_v62 = vsel %vm1861_vm1, %v1952_v45, %v1953_v51  ;;  %v2892_v5 = vmul.f32 %v8136_v39, %v9270_v23  ;;  %v8331_v10 = vld [vmem:[%s16157_s0 + $0x2a0] sm:$0xfc]  ;;  %v8616_v39 = vld [vmem:[%s16157_s0 + $0x2b8] sm:$0x1] }
  0x61   :  { %v2895_v8 = vmul.f32 %v8139_v44, %v9270_v23  ;;  %v2898_v11 = vmul.f32 %v8142_v2, %v9270_v23  ;;  %v1963_v28 = vsel %vm1861_vm1, %v1961_v53, %v1962_v41  ;;  %v2276_v15 = vadd.f32 %v1954_v62, %v1216_v50  ;;  %v8622_v2 = vld [vmem:[%s16157_s0 + $0x2e8] sm:$0x1] }
  0x62   :  { %v3303_v16 = vrot.slane %v2889_v61, 1  ;;  %v3948_v18 = vmul.f32 %v8325_v54, %v9318_v56  ;;  %v2279_v26 = vadd.f32 %v1963_v28, %v1219_v57  ;;  %v3304_v29 = vrot.slane %v2892_v5, 1  ;;  %v8805_v54 = vld [vmem:[%s16157_s0 + $0x2a0] sm:$0xfc]  ;;  %v8808_v57 = vld [vmem:[%s16157_s0 + $0x2b8] sm:$0x3] }
  0x63   :  { %v3312_v30 = vrot.slane %v2895_v8, 1  ;;  %v3313_v47 = vrot.slane %v2898_v11, 1  ;;  %v2568_v32 = vadd.f32 %v2472_v48, %v2276_v15  ;;  %v3951_v52 = vmul.f32 %v8328_v12, %v9318_v56  ;;  %v8814_v12 = vld [vmem:[%s16157_s0 + $0x2e8] sm:$0x3] }
  0x64   :  { %v3954_v33 = vmul.f32 %v8331_v10, %v9318_v56  ;;  %v3957_v34 = vmul.f32 %v8334_v14, %v9318_v56  ;;  %v2571_v36 = vadd.f32 %v2475_v58, %v2279_v26  ;;  %v3305_v37 = vsel %vm801_vm0, %v3303_v16, %v3304_v29  ;;  %v9935_v16 = vld [vmem:[%s16157_s0 + $0x248] sm:$0xff] }
  0x65   :  { %v3314_v38 = vsel %vm801_vm0, %v3312_v30, %v3313_v47  ;;  %v4362_v0 = vrot.slane %v3948_v18, 2  ;;  %v3627_v42 = vadd.f32 %v3305_v37, %v2568_v32  ;;  %v4363_v45 = vrot.slane %v3951_v52, 2  ;;  %v9941_v47 = vld [vmem:[%s16157_s0 + $0x278] sm:$0xff]  ;;  %v283_v32 = vld [vmem:[%s16157_s0 + $0x248] sm:$0xfe] }
  0x66   :  { %v4371_v48 = vrot.slane %v3954_v33, 2  ;;  %v4372_v44 = vrot.slane %v3957_v34, 2  ;;  %v3630_v49 = vadd.f32 %v3314_v38, %v2571_v36  ;;  %v4882_v50 = vmul.f32 %v9350_v27, %v9547_v20  ;;  %v286_v52 = vld [vmem:[%s16157_s0 + $0x260] sm:$0x1]  ;;  %v289_v37 = vld [vmem:[%s16157_s0 + $0x278] sm:$0xfe] }
  0x67   :  { %v4885_v51 = vmul.f32 %v9350_v27, %v9552_v21  ;;  %v5299_v53 = vmul.f32 %v8613_v35, %v9357_v31  ;;  %v4364_v41 = vsel %vm1861_vm1, %v4362_v0, %v4363_v45  ;;  %v5302_v61 = vmul.f32 %v8616_v39, %v9357_v31  ;;  %v8811_v21 = vld [vmem:[%s16157_s0 + $0x2d0] sm:$0xfc]  ;;  %v292_v38 = vld [vmem:[%s16157_s0 + $0x290] sm:$0x1]  ;;  %v1346_v45 = vld [vmem:[%s16157_s0 + $0x260] sm:$0x3] }
  0x68   :  { %v4373_v58 = vsel %vm1861_vm1, %v4371_v48, %v4372_v44  ;;  %v5305_v20 = vmul.f32 %v8619_v40, %v9357_v31  ;;  %v4686_v62 = vadd.f32 %v4364_v41, %v3627_v42  ;;  %v5308_v8 = vmul.f32 %v8622_v2, %v9357_v31  ;;  %v1352_v41 = vld [vmem:[%s16157_s0 + $0x290] sm:$0x3] }
  0x69   :  { %v4689_v5 = vadd.f32 %v4373_v58, %v3630_v49  ;;  %v5713_v11 = vrot.slane %v5299_v53, 1  ;;  %v5714_v10 = vrot.slane %v5302_v61, 1  ;;  %v6358_v28 = vmul.f32 %v9328_v7, %v8805_v54 }
  0x6a   :  { %v5722_v14 = vrot.slane %v5305_v20, 1  ;;  %v6361_v15 = vmul.f32 %v9328_v7, %v8808_v57  ;;  %v4978_v18 = vadd.f32 %v4882_v50, %v4686_v62  ;;  %v5723_v29 = vrot.slane %v5308_v8, 1  ;;  %v1349_v57 = vld [vmem:[%s16157_s0 + $0x278] sm:$0xfc] }
  0x6b   :  { %v4981_v26 = vadd.f32 %v4885_v51, %v4689_v5  ;;  %v6364_v30 = vmul.f32 %v9328_v7, %v8811_v21  ;;  %v5715_v33 = vsel %vm801_vm0, %v5713_v11, %v5714_v10  ;;  %v6367_v34 = vmul.f32 %v9328_v7, %v8814_v12  ;;  %v1343_v7 = vld [vmem:[%s16157_s0 + $0x248] sm:$0xfc] }
  0x6c   :  { %v6772_v35 = vrot.slane %v6358_v28, 2  ;;  %v6773_v36 = vrot.slane %v6361_v15, 2  ;;  %v5724_v0 = vsel %vm801_vm0, %v5722_v14, %v5723_v29  ;;  %v6037_v39 = vadd.f32 %v5715_v33, %v4978_v18  ;;  %v8134_v15 = vld [vmem:[%s16157_s0 + $0x278] sm:$0xfe] }
  0x6d   :  { %v6781_v40 = vrot.slane %v6364_v30, 2  ;;  %v157_v42 = vmul.f32 %v9403_v63, %v9935_v16  ;;  %v6040_v48 = vadd.f32 %v5724_v0, %v4981_v26  ;;  %v6782_v2 = vrot.slane %v6367_v34, 2 }
  0x6e   :  { %v6774_v44 = vsel %vm1861_vm1, %v6772_v35, %v6773_v36  ;;  %v160_v49 = vmul.f32 %v9403_v63, %v9941_v47  ;;  %v478_v51 = vmul.f32 %v9409_v6, %v283_v32  ;;  %v481_v53 = vmul.f32 %v9409_v6, %v286_v52  ;;  %v8137_v32 = vld [vmem:[%s16157_s0 + $0x290] sm:$0x1]  ;;  %v8140_v52 = vld [vmem:[%s16157_s0 + $0x2a8] sm:$0xfe] }
  0x6f   :  { %v7096_v50 = vadd.f32 %v6774_v44, %v6037_v39  ;;  %v484_v54 = vmul.f32 %v9409_v6, %v289_v37  ;;  %v6783_v58 = vsel %vm1861_vm1, %v6781_v40, %v6782_v2  ;;  %v487_v61 = vmul.f32 %v9409_v6, %v292_v38  ;;  %v8143_v37 = vld [vmem:[%s16157_s0 + $0x2c0] sm:$0x1]  ;;  %v8326_v38 = vld [vmem:[%s16157_s0 + $0x278] sm:$0xfc] }
  0x70   :  { %v1538_v20 = vmul.f32 %v9420_v13, %v1343_v7  ;;  %v1541_v21 = vmul.f32 %v9420_v13, %v1346_v45  ;;  %v7099_v62 = vadd.f32 %v6783_v58, %v6040_v48  ;;  %v895_v5 = vrot.slane %v478_v51, 1 }
  0x71   :  { %v896_v8 = vrot.slane %v481_v53, 1  ;;  %v904_v11 = vrot.slane %v484_v54, 1  ;;  %v905_v12 = vrot.slane %v487_v61, 1  ;;  %v1544_v10 = vmul.f32 %v9420_v13, %v1349_v57 }
  0x72   :  { %v1547_v14 = vmul.f32 %v9420_v13, %v1352_v41  ;;  %v1955_v28 = vrot.slane %v1538_v20, 2  ;;  %v7177_v18 = vpack.c.bf16 %v7099_v62, %v7096_v50  ;;  %v1956_v29 = vrot.slane %v1541_v21, 2  ;;  %v8335_v50 = vld [vmem:[%s16157_s0 + $0x2c0] sm:$0x3] }
  0x73   :  { %v897_v26 = vsel %vm801_vm0, %v895_v5, %v896_v8  ;;  %v2473_v30 = vmul.f32 %v9449_v46, %v9941_v47  ;;  %v906_v33 = vsel %vm801_vm0, %v904_v11, %v905_v12  ;;  %v1964_v35 = vrot.slane %v1544_v10, 2  ;;  %v8614_v11 = vld [vmem:[%s16157_s0 + $0x2a8] sm:$0xfe] }
  0x74   :  { %v1217_v34 = vadd.f32 %v897_v26, %v157_v42  ;;  %v1965_v36 = vrot.slane %v1547_v14, 2  ;;  %7231 = vmatpush.bf16.xpose.msra.mxu0 %v7177_v18  ;;  %v1220_v0 = vadd.f32 %v906_v33, %v160_v49  ;;  %v1957_v39 = vsel %vm1861_vm1, %v1955_v28, %v1956_v29  ;;  %v8329_v42 = vld [vmem:[%s16157_s0 + $0x290] sm:$0x3]  ;;  %v8332_v49 = vld [vmem:[%s16157_s0 + $0x2a8] sm:$0xfc] }
  0x75   :  { %v2476_v40 = vmul.f32 %v9449_v46, %v9675_v60  ;;  %v2890_v7 = vmul.f32 %v8134_v15, %v9462_v55  ;;  %v2893_v44 = vmul.f32 %v8137_v32, %v9462_v55  ;;  %v2896_v2 = vmul.f32 %v8140_v52, %v9462_v55  ;;  %v8617_v15 = vld [vmem:[%s16157_s0 + $0x2c0] sm:$0x1]  ;;  %v8620_v18 = vld [vmem:[%s16157_s0 + $0x2d8] sm:$0xfe]  ;;  %v8623_v52 = vld [vmem:[%s16157_s0 + $0x2f0] sm:$0x1] }
  0x76   :  { %v1966_v45 = vsel %vm1861_vm1, %v1964_v35, %v1965_v36  ;;  %v2277_v48 = vadd.f32 %v1957_v39, %v1217_v34  ;;  %v2899_v53 = vmul.f32 %v8143_v37, %v9462_v55  ;;  %v3949_v57 = vmul.f32 %v8326_v38, %v9486_v17  ;;  %v8809_v37 = vld [vmem:[%s16157_s0 + $0x2c0] sm:$0x3] }
  0x77   :  { %v2280_v51 = vadd.f32 %v1966_v45, %v1220_v0  ;;  %v3306_v54 = vrot.slane %v2890_v7, 1  ;;  %v3307_v58 = vrot.slane %v2893_v44, 1  ;;  %v3315_v61 = vrot.slane %v2896_v2, 1  ;;  %v8812_v7 = vld [vmem:[%s16157_s0 + $0x2d8] sm:$0xfc]  ;;  %v51_v2 = vld [vmem:[%s16157_s0 + $0x1e0] sm:$0xff] }
  0x78   :  { %v2569_v41 = vadd.f32 %v2473_v30, %v2277_v48  ;;  %v3952_v20 = vmul.f32 %v8329_v42, %v9486_v17  ;;  %v3316_v62 = vrot.slane %v2899_v53, 1  ;;  %v3955_v5 = vmul.f32 %v8332_v49, %v9486_v17 }
  0x79   :  { %v2572_v21 = vadd.f32 %v2476_v40, %v2280_v51  ;;  %v3958_v8 = vmul.f32 %v8335_v50, %v9486_v17  ;;  %v3308_v12 = vsel %vm801_vm0, %v3306_v54, %v3307_v58  ;;  %v4365_v10 = vrot.slane %v3949_v57, 2 }
  0x7a   :  { %v4366_v14 = vrot.slane %v3952_v20, 2  ;;  %v4883_v28 = vmul.f32 %v9489_v24, %v9675_v60  ;;  %v3317_v26 = vsel %vm801_vm0, %v3315_v61, %v3316_v62  ;;  %v3628_v29 = vadd.f32 %v3308_v12, %v2569_v41  ;;  %v8806_v60 = vld [vmem:[%s16157_s0 + $0x2a8] sm:$0xfc]  ;;  %v54_v61 = vld [vmem:[%s16157_s0 + $0x210] sm:$0xff]  ;;  %v270_v20 = vld [vmem:[%s16157_s0 + $0x1e0] sm:$0xfe] }
  0x7b   :  { %v4374_v30 = vrot.slane %v3955_v5, 2  ;;  %v4375_v32 = vrot.slane %v3958_v8, 2  ;;  %v3631_v33 = vadd.f32 %v3317_v26, %v2572_v21  ;;  %v4886_v35 = vmul.f32 %v9489_v24, %v9683_v9  ;;  %v8815_v9 = vld [vmem:[%s16157_s0 + $0x2f0] sm:$0x3] }
  0x7c   :  { %v4367_v34 = vsel %vm1861_vm1, %v4365_v10, %v4366_v14  ;;  %v5300_v36 = vmul.f32 %v8614_v11, %v9532_v59  ;;  %v5303_v39 = vmul.f32 %v8617_v15, %v9532_v59  ;;  %v5306_v40 = vmul.f32 %v8620_v18, %v9532_v59  ;;  %v273_v11 = vld [vmem:[%s16157_s0 + $0x1f8] sm:$0x1]  ;;  %v279_v15 = vld [vmem:[%s16157_s0 + $0x228] sm:$0x1]  ;;  %v1330_v18 = vld [vmem:[%s16157_s0 + $0x1e0] sm:$0xfc] }
  0x7d   :  { %v4376_v38 = vsel %vm1861_vm1, %v4374_v30, %v4375_v32  ;;  %v4687_v0 = vadd.f32 %v4367_v34, %v3628_v29  ;;  %v5309_v45 = vmul.f32 %v8623_v52, %v9532_v59  ;;  %v6359_v44 = vmul.f32 %v9494_v25, %v8806_v60  ;;  %v1333_v52 = vld [vmem:[%s16157_s0 + $0x1f8] sm:$0x3]  ;;  %v1336_v60 = vld [vmem:[%s16157_s0 + $0x210] sm:$0xfc] }
  0x7e   :  { %v4690_v42 = vadd.f32 %v4376_v38, %v3631_v33  ;;  %v5716_v48 = vrot.slane %v5300_v36, 1  ;;  %v5717_v50 = vrot.slane %v5303_v39, 1  ;;  %v5725_v51 = vrot.slane %v5306_v40, 1 }
  0x7f   :  { %v4979_v49 = vadd.f32 %v4883_v28, %v4687_v0  ;;  %v6362_v53 = vmul.f32 %v9494_v25, %v8809_v37  ;;  %v5726_v57 = vrot.slane %v5309_v45, 1  ;;  %v6365_v41 = vmul.f32 %v9494_v25, %v8812_v7  ;;  %v1339_v37 = vld [vmem:[%s16157_s0 + $0x228] sm:$0x3] }
  0x80   :  { %v4982_v54 = vadd.f32 %v4886_v35, %v4690_v42  ;;  %v6368_v58 = vmul.f32 %v9494_v25, %v8815_v9  ;;  %v5718_v21 = vsel %vm801_vm0, %v5716_v48, %v5717_v50  ;;  %v6775_v62 = vrot.slane %v6359_v44, 2  ;;  %v276_v25 = vld [vmem:[%s16157_s0 + $0x210] sm:$0xfe] }
  0x81   :  { %v6776_v5 = vrot.slane %v6362_v53, 2  ;;  %v150_v8 = vmul.f32 %v9226_v3, %v51_v2  ;;  %v5727_v12 = vsel %vm801_vm0, %v5725_v51, %v5726_v57  ;;  %v6038_v10 = vadd.f32 %v5718_v21, %v4979_v49  ;;  %v8121_v50 = vld [vmem:[%s16157_s0 + $0x210] sm:$0xfe]  ;;  %v8124_v51 = vld [vmem:[%s16157_s0 + $0x228] sm:$0x1] }
  0x82   :  { %v6784_v14 = vrot.slane %v6365_v41, 2  ;;  %v6785_v28 = vrot.slane %v6368_v58, 2  ;;  %v6041_v26 = vadd.f32 %v5727_v12, %v4982_v54  ;;  %v153_v30 = vmul.f32 %v9226_v3, %v54_v61  ;;  %v8127_v58 = vld [vmem:[%s16157_s0 + $0x240] sm:$0xfe] }
  0x83   :  { %v6777_v29 = vsel %vm1861_vm1, %v6775_v62, %v6776_v5  ;;  %v465_v32 = vmul.f32 %v9229_v4, %v270_v20  ;;  %v468_v35 = vmul.f32 %v9229_v4, %v273_v11  ;;  %v471_v36 = vmul.f32 %v9229_v4, %v276_v25  ;;  %v8130_v20 = vld [vmem:[%s16157_s0 + $0x258] sm:$0x1] }
  0x84   :  { %v6786_v33 = vsel %vm1861_vm1, %v6784_v14, %v6785_v28  ;;  %v7097_v34 = vadd.f32 %v6777_v29, %v6038_v10  ;;  %v474_v0 = vmul.f32 %v9229_v4, %v279_v15  ;;  %v1525_v40 = vmul.f32 %v9264_v19, %v1330_v18  ;;  %v8316_v28 = vld [vmem:[%s16157_s0 + $0x228] sm:$0x3]  ;;  %v8319_v29 = vld [vmem:[%s16157_s0 + $0x240] sm:$0xfc] }
  0x85   :  { %v7100_v38 = vadd.f32 %v6786_v33, %v6041_v26  ;;  %v874_v39 = vrot.slane %v465_v32, 1  ;;  %v875_v7 = vrot.slane %v468_v35, 1  ;;  %v883_v9 = vrot.slane %v471_v36, 1 }
  0x86   :  { %v1528_v42 = vmul.f32 %v9264_v19, %v1333_v52  ;;  %v1531_v45 = vmul.f32 %v9264_v19, %v1336_v60  ;;  %v884_v44 = vrot.slane %v474_v0, 1  ;;  %v1534_v2 = vmul.f32 %v9264_v19, %v1339_v37 }
  0x87   :  { %v7178_v48 = vpack.c.bf16 %v7100_v38, %v7097_v34  ;;  %v1934_v49 = vrot.slane %v1525_v40, 2  ;;  %v876_v53 = vsel %vm801_vm0, %v874_v39, %v875_v7  ;;  %v2466_v41 = vmul.f32 %v9267_v22, %v54_v61  ;;  %v8313_v61 = vld [vmem:[%s16157_s0 + $0x210] sm:$0xfc]  ;;  %v8601_v7 = vld [vmem:[%s16157_s0 + $0x240] sm:$0xfe] }
  0x88   :  { %v1935_v54 = vrot.slane %v1528_v42, 2  ;;  %v1943_v57 = vrot.slane %v1531_v45, 2  ;;  %v885_v21 = vsel %vm801_vm0, %v883_v9, %v884_v44  ;;  %v1210_v62 = vadd.f32 %v876_v53, %v150_v8  ;;  %v8604_v9 = vld [vmem:[%s16157_s0 + $0x258] sm:$0x1] }
  0x89   :  { %7244 = vmatpush.bf16.xpose.msra.mxu1 %v7178_v48  ;;  %v1944_v5 = vrot.slane %v1534_v2, 2  ;;  %v2469_v11 = vmul.f32 %v9267_v22, %v9806_v43  ;;  %v1213_v25 = vadd.f32 %v885_v21, %v153_v30  ;;  %v2877_v10 = vmul.f32 %v8121_v50, %v9270_v23  ;;  %v8322_v30 = vld [vmem:[%s16157_s0 + $0x258] sm:$0x3]  ;;  %v8607_v2 = vld [vmem:[%s16157_s0 + $0x270] sm:$0xfe] }
  0x8a   :  { %v1936_v12 = vsel %vm1861_vm1, %v1934_v49, %v1935_v54  ;;  %v2880_v14 = vmul.f32 %v8124_v51, %v9270_v23  ;;  %v2883_v18 = vmul.f32 %v8127_v58, %v9270_v23  ;;  %v2886_v26 = vmul.f32 %v8130_v20, %v9270_v23  ;;  %v8610_v49 = vld [vmem:[%s16157_s0 + $0x288] sm:$0x1] }
  0x8b   :  { %v1945_v8 = vsel %vm1861_vm1, %v1943_v57, %v1944_v5  ;;  %v2270_v15 = vadd.f32 %v1936_v12, %v1210_v62  ;;  %v3285_v52 = vrot.slane %v2877_v10, 1  ;;  %v3936_v33 = vmul.f32 %v8313_v61, %v9318_v56  ;;  %v8793_v57 = vld [vmem:[%s16157_s0 + $0x240] sm:$0xfc]  ;;  %v8796_v62 = vld [vmem:[%s16157_s0 + $0x258] sm:$0x3] }
  0x8c   :  { %v2273_v32 = vadd.f32 %v1945_v8, %v1213_v25  ;;  %v3286_v60 = vrot.slane %v2880_v14, 1  ;;  %v3294_v35 = vrot.slane %v2883_v18, 1  ;;  %v3295_v36 = vrot.slane %v2886_v26, 1  ;;  %v8799_v25 = vld [vmem:[%s16157_s0 + $0x270] sm:$0xfc] }
  0x8d   :  { %v2562_v34 = vadd.f32 %v2466_v41, %v2270_v15  ;;  %v3939_v37 = vmul.f32 %v8316_v28, %v9318_v56  ;;  %v3942_v39 = vmul.f32 %v8319_v29, %v9318_v56  ;;  %v3945_v40 = vmul.f32 %v8322_v30, %v9318_v56  ;;  %v10186_v28 = vld [vmem:[%s16158_s1 + $0x18] ss:$0 sm:$0xff]  ;;  %v52_v30 = vld [vmem:[%s16157_s0 + $0x1e8] sm:$0xff] }
  0x8e   :  { %v2565_v38 = vadd.f32 %v2469_v11, %v2273_v32  ;;  %v3287_v0 = vsel %vm801_vm0, %v3285_v52, %v3286_v60  ;;  %v3296_v42 = vsel %vm801_vm0, %v3294_v35, %v3295_v36  ;;  %v4344_v48 = vrot.slane %v3936_v33, 2  ;;  %v271_v35 = vld [vmem:[%s16157_s0 + $0x1e8] sm:$0xfe]  ;;  %v274_v36 = vld [vmem:[%s16157_s0 + $0x200] sm:$0x1] }
  0x8f   :  { %v3621_v45 = vadd.f32 %v3287_v0, %v2562_v34  ;;  %v4345_v44 = vrot.slane %v3939_v37, 2  ;;  %v4353_v51 = vrot.slane %v3942_v39, 2  ;;  %v4354_v53 = vrot.slane %v3945_v40, 2  ;;  %v55_v34 = vld [vmem:[%s16157_s0 + $0x218] sm:$0xff] }
  0x90   :  { %v3624_v50 = vadd.f32 %v3296_v42, %v2565_v38  ;;  %v4876_v54 = vmul.f32 %v9350_v27, %v9806_v43  ;;  %v4879_v58 = vmul.f32 %v9350_v27, %v9811_v1  ;;  %v5287_v20 = vmul.f32 %v8601_v7, %v9357_v31  ;;  %v8802_v1 = vld [vmem:[%s16157_s0 + $0x288] sm:$0x3]  ;;  %v277_v40 = vld [vmem:[%s16157_s0 + $0x218] sm:$0xfe]  ;;  %v280_v7 = vld [vmem:[%s16157_s0 + $0x230] sm:$0x1] }
  0x91   :  { %v4346_v41 = vsel %vm1861_vm1, %v4344_v48, %v4345_v44  ;;  %v5290_v21 = vmul.f32 %v8604_v9, %v9357_v31  ;;  %v4355_v5 = vsel %vm1861_vm1, %v4353_v51, %v4354_v53  ;;  %v5293_v11 = vmul.f32 %v8607_v2, %v9357_v31  ;;  %v1331_v44 = vld [vmem:[%s16157_s0 + $0x1e8] sm:$0xfc]  ;;  %v1334_v53 = vld [vmem:[%s16157_s0 + $0x200] sm:$0x3] }
  0x92   :  { %v4680_v43 = vadd.f32 %v4346_v41, %v3621_v45  ;;  %v5296_v61 = vmul.f32 %v8610_v49, %v9357_v31  ;;  %v4683_v12 = vadd.f32 %v4355_v5, %v3624_v50  ;;  %v5695_v10 = vrot.slane %v5287_v20, 1 }
  0x93   :  { %v5696_v14 = vrot.slane %v5290_v21, 1  ;;  %v6346_v8 = vmul.f32 %v10186_v28, %v8793_v57  ;;  %v5704_v18 = vrot.slane %v5293_v11, 1  ;;  %v6349_v29 = vmul.f32 %v10186_v28, %v8796_v62  ;;  %v1340_v21 = vld [vmem:[%s16157_s0 + $0x230] sm:$0x3] }
  0x94   :  { %v4972_v15 = vadd.f32 %v4876_v54, %v4680_v43  ;;  %v5705_v26 = vrot.slane %v5296_v61, 1  ;;  %v4975_v32 = vadd.f32 %v4879_v58, %v4683_v12  ;;  %v6352_v60 = vmul.f32 %v10186_v28, %v8799_v25  ;;  %v1337_v54 = vld [vmem:[%s16157_s0 + $0x218] sm:$0xfc] }
  0x95   :  { %v5697_v52 = vsel %vm801_vm0, %v5695_v10, %v5696_v14  ;;  %v6355_v33 = vmul.f32 %v10186_v28, %v8802_v1  ;;  %v6754_v0 = vrot.slane %v6346_v8, 2  ;;  %v6755_v39 = vrot.slane %v6349_v29, 2  ;;  %v8122_v10 = vld [vmem:[%s16157_s0 + $0x218] sm:$0xfe]  ;;  %v8128_v29 = vld [vmem:[%s16157_s0 + $0x248] sm:$0xfe] }
  0x96   :  { %v5706_v37 = vsel %vm801_vm0, %v5704_v18, %v5705_v26  ;;  %v6031_v38 = vadd.f32 %v5697_v52, %v4972_v15  ;;  %v6763_v42 = vrot.slane %v6352_v60, 2  ;;  %v151_v48 = vmul.f32 %v9403_v63, %v52_v30  ;;  %v8125_v26 = vld [vmem:[%s16157_s0 + $0x230] sm:$0x1] }
  0x97   :  { %v6034_v9 = vadd.f32 %v5706_v37, %v4975_v32  ;;  %v6764_v45 = vrot.slane %v6355_v33, 2  ;;  %v6756_v2 = vsel %vm1861_vm1, %v6754_v0, %v6755_v39  ;;  %v154_v49 = vmul.f32 %v9403_v63, %v55_v34  ;;  %v8131_v33 = vld [vmem:[%s16157_s0 + $0x260] sm:$0x1] }
  0x98   :  { %v466_v50 = vmul.f32 %v9409_v6, %v271_v35  ;;  %v469_v51 = vmul.f32 %v9409_v6, %v274_v36  ;;  %v7090_v41 = vadd.f32 %v6756_v2, %v6031_v38  ;;  %v472_v58 = vmul.f32 %v9409_v6, %v277_v40  ;;  %v8314_v35 = vld [vmem:[%s16157_s0 + $0x218] sm:$0xfc]  ;;  %v8323_v2 = vld [vmem:[%s16157_s0 + $0x260] sm:$0x3] }
  0x99   :  { %v6765_v57 = vsel %vm1861_vm1, %v6763_v42, %v6764_v45  ;;  %v475_v20 = vmul.f32 %v9409_v6, %v280_v7  ;;  %v1526_v11 = vmul.f32 %v9420_v13, %v1331_v44  ;;  %v1529_v1 = vmul.f32 %v9420_v13, %v1334_v53  ;;  %v8317_v42 = vld [vmem:[%s16157_s0 + $0x230] sm:$0x3]  ;;  %v8320_v45 = vld [vmem:[%s16157_s0 + $0x248] sm:$0xfc] }
  0x9a   :  { %v7093_v62 = vadd.f32 %v6765_v57, %v6034_v9  ;;  %v877_v5 = vrot.slane %v466_v50, 1  ;;  %v878_v43 = vrot.slane %v469_v51, 1  ;;  %v886_v61 = vrot.slane %v472_v58, 1 }
  0x9b   :  { %v887_v25 = vrot.slane %v475_v20, 1  ;;  %v1532_v12 = vmul.f32 %v9420_v13, %v1337_v54  ;;  %v1535_v15 = vmul.f32 %v9420_v13, %v1340_v21  ;;  %v1937_v18 = vrot.slane %v1526_v11, 2  ;;  %v8602_v21 = vld [vmem:[%s16157_s0 + $0x248] sm:$0xfe] }
  0x9c   :  { %v7174_v14 = vpack.c.bf16 %v7093_v62, %v7090_v41  ;;  %v879_v8 = vsel %vm801_vm0, %v877_v5, %v878_v43  ;;  %v1938_v52 = vrot.slane %v1529_v1, 2  ;;  %v2467_v38 = vmul.f32 %v9449_v46, %v55_v34 }
  0x9d   :  { %v888_v30 = vsel %vm801_vm0, %v886_v61, %v887_v25  ;;  %v1211_v32 = vadd.f32 %v879_v8, %v151_v48  ;;  %v1946_v60 = vrot.slane %v1532_v12, 2  ;;  %v1947_v37 = vrot.slane %v1535_v15, 2  ;;  %v8605_v61 = vld [vmem:[%s16157_s0 + $0x260] sm:$0x1]  ;;  %v8608_v25 = vld [vmem:[%s16157_s0 + $0x278] sm:$0xfe] }
  0x9e   :  { %7232 = vmatpush.bf16.xpose.msra.mxu0 %v7174_v14  ;;  %v1214_v36 = vadd.f32 %v888_v30, %v154_v49  ;;  %v2470_v0 = vmul.f32 %v9449_v46, %v9935_v16  ;;  %v1939_v39 = vsel %vm1861_vm1, %v1937_v18, %v1938_v52  ;;  %v2878_v40 = vmul.f32 %v8122_v10, %v9462_v55  ;;  %v8611_v8 = vld [vmem:[%s16157_s0 + $0x290] sm:$0x1]  ;;  %v8794_v15 = vld [vmem:[%s16157_s0 + $0x248] sm:$0xfc] }
  0x9f   :  { %v2881_v7 = vmul.f32 %v8125_v26, %v9462_v55  ;;  %v2884_v9 = vmul.f32 %v8128_v29, %v9462_v55  ;;  %v1948_v34 = vsel %vm1861_vm1, %v1946_v60, %v1947_v37  ;;  %v2271_v48 = vadd.f32 %v1939_v39, %v1211_v32 }
  0xa0   :  { %v2887_v44 = vmul.f32 %v8131_v33, %v9462_v55  ;;  %v3937_v49 = vmul.f32 %v8314_v35, %v9486_v17  ;;  %v2274_v50 = vadd.f32 %v1948_v34, %v1214_v36  ;;  %v3288_v51 = vrot.slane %v2878_v40, 1  ;;  %v8797_v35 = vld [vmem:[%s16157_s0 + $0x260] sm:$0x3]  ;;  %v8800_v36 = vld [vmem:[%s16157_s0 + $0x278] sm:$0xfc] }
  0xa1   :  { %v3289_v53 = vrot.slane %v2881_v7, 1  ;;  %v3297_v54 = vrot.slane %v2884_v9, 1  ;;  %v2563_v57 = vadd.f32 %v2467_v38, %v2271_v48  ;;  %v3940_v58 = vmul.f32 %v8317_v42, %v9486_v17  ;;  %v8803_v38 = vld [vmem:[%s16157_s0 + $0x290] sm:$0x3] }
  0xa2   :  { %v3298_v41 = vrot.slane %v2887_v44, 1  ;;  %v3943_v20 = vmul.f32 %v8320_v45, %v9486_v17  ;;  %v2566_v62 = vadd.f32 %v2470_v0, %v2274_v50  ;;  %v3946_v43 = vmul.f32 %v8323_v2, %v9486_v17  ;;  %v10314_v0 = vld [vmem:[%s16158_s1 + $0x20] ss:$0 sm:$0xff]  ;;  %v258_v50 = vld [vmem:[%s16157_s0 + $0x120] sm:$0xfe] }
  0xa3   :  { %v3290_v5 = vsel %vm801_vm0, %v3288_v51, %v3289_v53  ;;  %v4347_v11 = vrot.slane %v3937_v49, 2  ;;  %v4348_v10 = vrot.slane %v3940_v58, 2  ;;  %v4877_v29 = vmul.f32 %v9489_v24, %v9935_v16  ;;  %v10322_v2 = vld [vmem:[%s16157_s0 + $0x120] sm:$0xff]  ;;  %v10327_v49 = vld [vmem:[%s16157_s0 + $0x150] sm:$0xff] }
  0xa4   :  { %v3299_v1 = vsel %vm801_vm0, %v3297_v54, %v3298_v41  ;;  %v3622_v12 = vadd.f32 %v3290_v5, %v2563_v57  ;;  %v4356_v14 = vrot.slane %v3943_v20, 2  ;;  %v4357_v26 = vrot.slane %v3946_v43, 2  ;;  %v261_v41 = vld [vmem:[%s16157_s0 + $0x138] sm:$0x1]  ;;  %v264_v58 = vld [vmem:[%s16157_s0 + $0x150] sm:$0xfe] }
  0xa5   :  { %v3625_v18 = vadd.f32 %v3299_v1, %v2566_v62  ;;  %v4880_v30 = vmul.f32 %v9489_v24, %v9941_v47  ;;  %v4349_v32 = vsel %vm1861_vm1, %v4347_v11, %v4348_v10  ;;  %v5288_v52 = vmul.f32 %v8602_v21, %v9532_v59  ;;  %v267_v43 = vld [vmem:[%s16157_s0 + $0x168] sm:$0x1]  ;;  %v1318_v11 = vld [vmem:[%s16157_s0 + $0x120] sm:$0xfc] }
  0xa6   :  { %v5291_v60 = vmul.f32 %v8605_v61, %v9532_v59  ;;  %v5294_v33 = vmul.f32 %v8608_v25, %v9532_v59  ;;  %v4358_v16 = vsel %vm1861_vm1, %v4356_v14, %v4357_v26  ;;  %v4681_v37 = vadd.f32 %v4349_v32, %v3622_v12  ;;  %v1324_v26 = vld [vmem:[%s16157_s0 + $0x150] sm:$0xfc] }
  0xa7   :  { %v5297_v47 = vmul.f32 %v8611_v8, %v9532_v59  ;;  %v6347_v39 = vmul.f32 %v10314_v0, %v8794_v15  ;;  %v4684_v40 = vadd.f32 %v4358_v16, %v3625_v18  ;;  %v5698_v7 = vrot.slane %v5288_v52, 1  ;;  %v1321_v18 = vld [vmem:[%s16157_s0 + $0x138] sm:$0x3] }
  0xa8   :  { %v5699_v9 = vrot.slane %v5291_v60, 1  ;;  %v5707_v42 = vrot.slane %v5294_v33, 1  ;;  %v4973_v45 = vadd.f32 %v4877_v29, %v4681_v37  ;;  %v6350_v48 = vmul.f32 %v10314_v0, %v8797_v35  ;;  %v1327_v29 = vld [vmem:[%s16157_s0 + $0x168] sm:$0x3] }
  0xa9   :  { %v5708_v34 = vrot.slane %v5297_v47, 1  ;;  %v6353_v44 = vmul.f32 %v10314_v0, %v8800_v36  ;;  %v4976_v51 = vadd.f32 %v4880_v30, %v4684_v40  ;;  %v6356_v54 = vmul.f32 %v10314_v0, %v8803_v38  ;;  %v7998_v40 = vld [vmem:[%s16157_s0 + $0x180] sm:$0xff] }
  0xaa   :  { %v5700_v53 = vsel %vm801_vm0, %v5698_v7, %v5699_v9  ;;  %v6757_v57 = vrot.slane %v6347_v39, 2  ;;  %v6758_v62 = vrot.slane %v6350_v48, 2  ;;  %v144_v1 = vmul.f32 %v9226_v3, %v10322_v2  ;;  %v8109_v7 = vld [vmem:[%s16157_s0 + $0x150] sm:$0xfe]  ;;  %v8112_v9 = vld [vmem:[%s16157_s0 + $0x168] sm:$0x1] }
  0xab   :  { %v5709_v20 = vsel %vm801_vm0, %v5707_v42, %v5708_v34  ;;  %v6032_v21 = vadd.f32 %v5700_v53, %v4973_v45  ;;  %v6766_v5 = vrot.slane %v6353_v44, 2  ;;  %v6767_v25 = vrot.slane %v6356_v54, 2  ;;  %v8115_v44 = vld [vmem:[%s16157_s0 + $0x180] sm:$0xfe] }
  0xac   :  { %v6035_v61 = vadd.f32 %v5709_v20, %v4976_v51  ;;  %v147_v12 = vmul.f32 %v9226_v3, %v10327_v49  ;;  %v6759_v10 = vsel %vm1861_vm1, %v6757_v57, %v6758_v62  ;;  %v453_v14 = vmul.f32 %v9229_v4, %v258_v50  ;;  %v8118_v50 = vld [vmem:[%s16157_s0 + $0x198] sm:$0x1] }
  0xad   :  { %v456_v8 = vmul.f32 %v9229_v4, %v261_v41  ;;  %v459_v15 = vmul.f32 %v9229_v4, %v264_v58  ;;  %v6768_v30 = vsel %vm1861_vm1, %v6766_v5, %v6767_v25  ;;  %v7091_v32 = vadd.f32 %v6759_v10, %v6032_v21  ;;  %v8301_v41 = vld [vmem:[%s16157_s0 + $0x150] sm:$0xfc]  ;;  %v8304_v25 = vld [vmem:[%s16157_s0 + $0x168] sm:$0x3] }
  0xae   :  { %v462_v52 = vmul.f32 %v9229_v4, %v267_v43  ;;  %v1513_v60 = vmul.f32 %v9264_v19, %v1318_v11  ;;  %v7094_v33 = vadd.f32 %v6768_v30, %v6035_v61  ;;  %v856_v35 = vrot.slane %v453_v14, 1 }
  0xaf   :  { %v857_v36 = vrot.slane %v456_v8, 1  ;;  %v865_v16 = vrot.slane %v459_v15, 1  ;;  %v1516_v47 = vmul.f32 %v9264_v19, %v1321_v18  ;;  %v1519_v38 = vmul.f32 %v9264_v19, %v1324_v26 }
  0xb0   :  { %v866_v37 = vrot.slane %v462_v52, 1  ;;  %v1522_v39 = vmul.f32 %v9264_v19, %v1327_v29  ;;  %v7175_v42 = vpack.c.bf16 %v7094_v33, %v7091_v32  ;;  %v1916_v34 = vrot.slane %v1513_v60, 2 }
  0xb1   :  { %v858_v45 = vsel %vm801_vm0, %v856_v35, %v857_v36  ;;  %v2460_v48 = vmul.f32 %v9267_v22, %v10327_v49  ;;  %v1917_v54 = vrot.slane %v1516_v47, 2  ;;  %v1925_v57 = vrot.slane %v1519_v38, 2  ;;  %v8478_v35 = vld [vmem:[%s16157_s0 + $0x1b0] sm:$0xff]  ;;  %v8589_v36 = vld [vmem:[%s16157_s0 + $0x180] sm:$0xfe] }
  0xb2   :  { %v867_v51 = vsel %vm801_vm0, %v865_v16, %v866_v37  ;;  %v1204_v53 = vadd.f32 %v858_v45, %v144_v1  ;;  %7245 = vmatpush.bf16.xpose.msra.mxu1 %v7175_v42  ;;  %v1926_v20 = vrot.slane %v1522_v39, 2  ;;  %v2463_v21 = vmul.f32 %v7998_v40, %v9267_v22  ;;  %v8307_v1 = vld [vmem:[%s16157_s0 + $0x180] sm:$0xfc]  ;;  %v8592_v39 = vld [vmem:[%s16157_s0 + $0x198] sm:$0x1] }
  0xb3   :  { %v1207_v58 = vadd.f32 %v867_v51, %v147_v12  ;;  %v2865_v62 = vmul.f32 %v8109_v7, %v9270_v23  ;;  %v1918_v5 = vsel %vm1861_vm1, %v1916_v34, %v1917_v54  ;;  %v2868_v43 = vmul.f32 %v8112_v9, %v9270_v23  ;;  %v8310_v12 = vld [vmem:[%s16157_s0 + $0x198] sm:$0x3]  ;;  %v8595_v7 = vld [vmem:[%s16157_s0 + $0x1b0] sm:$0xfe]  ;;  %v8781_v54 = vld [vmem:[%s16157_s0 + $0x180] sm:$0xfc] }
  0xb4   :  { %v2871_v11 = vmul.f32 %v8115_v44, %v9270_v23  ;;  %v2874_v61 = vmul.f32 %v8118_v50, %v9270_v23  ;;  %v1927_v10 = vsel %vm1861_vm1, %v1925_v57, %v1926_v20  ;;  %v2264_v14 = vadd.f32 %v1918_v5, %v1204_v53  ;;  %v8784_v57 = vld [vmem:[%s16157_s0 + $0x198] sm:$0x3] }
  0xb5   :  { %v3267_v8 = vrot.slane %v2865_v62, 1  ;;  %v3924_v15 = vmul.f32 %v8301_v41, %v9318_v56  ;;  %v2267_v18 = vadd.f32 %v1927_v10, %v1207_v58  ;;  %v3268_v26 = vrot.slane %v2868_v43, 1 }
  0xb6   :  { %v3276_v29 = vrot.slane %v2871_v11, 1  ;;  %v3277_v30 = vrot.slane %v2874_v61, 1  ;;  %v2556_v32 = vadd.f32 %v2460_v48, %v2264_v14  ;;  %v3927_v52 = vmul.f32 %v8304_v25, %v9318_v56  ;;  %v8598_v48 = vld [vmem:[%s16157_s0 + $0x1c8] sm:$0x1] }
  0xb7   :  { %v3930_v60 = vmul.f32 %v8307_v1, %v9318_v56  ;;  %v3933_v33 = vmul.f32 %v8310_v12, %v9318_v56  ;;  %v2559_v16 = vadd.f32 %v2463_v21, %v2267_v18  ;;  %v3269_v37 = vsel %vm801_vm0, %v3267_v8, %v3268_v26  ;;  %v8787_v21 = vld [vmem:[%s16157_s0 + $0x1b0] sm:$0xfc]  ;;  %v8790_v61 = vld [vmem:[%s16157_s0 + $0x1c8] sm:$0x3] }
  0xb8   :  { %v3278_v47 = vsel %vm801_vm0, %v3276_v29, %v3277_v30  ;;  %v4326_v38 = vrot.slane %v3924_v15, 2  ;;  %v3615_v9 = vadd.f32 %v3269_v37, %v2556_v32  ;;  %v4327_v42 = vrot.slane %v3927_v52, 2  ;;  %v10454_v14 = vld [vmem:[%s16157_s0 + $0x128] sm:$0xff]  ;;  %v10460_v29 = vld [vmem:[%s16157_s0 + $0x158] sm:$0xff]  ;;  %v262_v32 = vld [vmem:[%s16157_s0 + $0x140] sm:$0x1] }
  0xb9   :  { %v4335_v45 = vrot.slane %v3930_v60, 2  ;;  %v4336_v34 = vrot.slane %v3933_v33, 2  ;;  %v3618_v44 = vadd.f32 %v3278_v47, %v2559_v16  ;;  %v4870_v50 = vmul.f32 %v7998_v40, %v9350_v27  ;;  %v259_v30 = vld [vmem:[%s16157_s0 + $0x128] sm:$0xfe]  ;;  %v268_v16 = vld [vmem:[%s16157_s0 + $0x170] sm:$0x1] }
  0xba   :  { %v4873_v51 = vmul.f32 %v8478_v35, %v9350_v27  ;;  %v5275_v53 = vmul.f32 %v8589_v36, %v9357_v31  ;;  %v4328_v41 = vsel %vm1861_vm1, %v4326_v38, %v4327_v42  ;;  %v5278_v20 = vmul.f32 %v8592_v39, %v9357_v31  ;;  %v265_v36 = vld [vmem:[%s16157_s0 + $0x158] sm:$0xfe] }
  0xbb   :  { %v4337_v58 = vsel %vm1861_vm1, %v4335_v45, %v4336_v34  ;;  %v5281_v40 = vmul.f32 %v8595_v7, %v9357_v31  ;;  %v4674_v62 = vadd.f32 %v4328_v41, %v3615_v9  ;;  %v5284_v43 = vmul.f32 %v8598_v48, %v9357_v31  ;;  %v1322_v7 = vld [vmem:[%s16157_s0 + $0x140] sm:$0x3] }
  0xbc   :  { %v4677_v5 = vadd.f32 %v4337_v58, %v3618_v44  ;;  %v5677_v11 = vrot.slane %v5275_v53, 1  ;;  %v5678_v25 = vrot.slane %v5278_v20, 1  ;;  %v6334_v12 = vmul.f32 %v10186_v28, %v8781_v54  ;;  %v1325_v53 = vld [vmem:[%s16157_s0 + $0x158] sm:$0xfc]  ;;  %v1328_v54 = vld [vmem:[%s16157_s0 + $0x170] sm:$0x3] }
  0xbd   :  { %v5686_v1 = vrot.slane %v5281_v40, 1  ;;  %v6337_v10 = vmul.f32 %v10186_v28, %v8784_v57  ;;  %v4966_v8 = vadd.f32 %v4870_v50, %v4674_v62  ;;  %v5687_v18 = vrot.slane %v5284_v43, 1 }
  0xbe   :  { %v4969_v15 = vadd.f32 %v4873_v51, %v4677_v5  ;;  %v6340_v26 = vmul.f32 %v10186_v28, %v8787_v21  ;;  %v5679_v52 = vsel %vm801_vm0, %v5677_v11, %v5678_v25  ;;  %v6343_v60 = vmul.f32 %v10186_v28, %v8790_v61  ;;  %v1319_v28 = vld [vmem:[%s16157_s0 + $0x128] sm:$0xfc] }
  0xbf   :  { %v6736_v33 = vrot.slane %v6334_v12, 2  ;;  %v6737_v35 = vrot.slane %v6337_v10, 2  ;;  %v5688_v37 = vsel %vm801_vm0, %v5686_v1, %v5687_v18  ;;  %v6025_v47 = vadd.f32 %v5679_v52, %v4966_v8  ;;  %v7999_v1 = vld [vmem:[%s16157_s0 + $0x188] sm:$0xff]  ;;  %v8110_v12 = vld [vmem:[%s16157_s0 + $0x158] sm:$0xfe] }
  0xc0   :  { %v6745_v38 = vrot.slane %v6340_v26, 2  ;;  %v145_v39 = vmul.f32 %v9403_v63, %v10454_v14  ;;  %v6028_v9 = vadd.f32 %v5688_v37, %v4969_v15  ;;  %v6746_v45 = vrot.slane %v6343_v60, 2  ;;  %v8113_v26 = vld [vmem:[%s16157_s0 + $0x170] sm:$0x1] }
  0xc1   :  { %v6738_v42 = vsel %vm1861_vm1, %v6736_v33, %v6737_v35  ;;  %v148_v34 = vmul.f32 %v9403_v63, %v10460_v29  ;;  %v454_v44 = vmul.f32 %v9409_v6, %v259_v30  ;;  %v457_v50 = vmul.f32 %v9409_v6, %v262_v32  ;;  %v8116_v30 = vld [vmem:[%s16157_s0 + $0x188] sm:$0xfe]  ;;  %v8119_v35 = vld [vmem:[%s16157_s0 + $0x1a0] sm:$0x1] }
  0xc2   :  { %v7084_v48 = vadd.f32 %v6738_v42, %v6025_v47  ;;  %v460_v51 = vmul.f32 %v9409_v6, %v265_v36  ;;  %v6747_v57 = vsel %vm1861_vm1, %v6745_v38, %v6746_v45  ;;  %v463_v41 = vmul.f32 %v9409_v6, %v268_v16  ;;  %v8302_v36 = vld [vmem:[%s16157_s0 + $0x158] sm:$0xfc]  ;;  %v8308_v45 = vld [vmem:[%s16157_s0 + $0x188] sm:$0xfc] }
  0xc3   :  { %v1514_v58 = vmul.f32 %v9420_v13, %v1319_v28  ;;  %v1517_v20 = vmul.f32 %v9420_v13, %v1322_v7  ;;  %v7087_v40 = vadd.f32 %v6747_v57, %v6028_v9  ;;  %v859_v21 = vrot.slane %v454_v44, 1 }
  0xc4   :  { %v860_v62 = vrot.slane %v457_v50, 1  ;;  %v868_v5 = vrot.slane %v460_v51, 1  ;;  %v869_v43 = vrot.slane %v463_v41, 1  ;;  %v1520_v11 = vmul.f32 %v9420_v13, %v1325_v53 }
  0xc5   :  { %v1523_v61 = vmul.f32 %v9420_v13, %v1328_v54  ;;  %v1919_v25 = vrot.slane %v1514_v58, 2  ;;  %v7171_v10 = vpack.c.bf16 %v7087_v40, %v7084_v48  ;;  %v1920_v15 = vrot.slane %v1517_v20, 2 }
  0xc6   :  { %v861_v8 = vsel %vm801_vm0, %v859_v21, %v860_v62  ;;  %v2461_v18 = vmul.f32 %v9449_v46, %v10460_v29  ;;  %v870_v32 = vsel %vm801_vm0, %v868_v5, %v869_v43  ;;  %v1928_v60 = vrot.slane %v1520_v11, 2  ;;  %v8479_v62 = vld [vmem:[%s16157_s0 + $0x1b8] sm:$0xff]  ;;  %v8590_v5 = vld [vmem:[%s16157_s0 + $0x188] sm:$0xfe] }
  0xc7   :  { %v1205_v52 = vadd.f32 %v861_v8, %v145_v39  ;;  %v1929_v33 = vrot.slane %v1523_v61, 2  ;;  %7233 = vmatpush.bf16.xpose.msra.mxu0 %v7171_v10  ;;  %v1208_v16 = vadd.f32 %v870_v32, %v148_v34  ;;  %v1921_v37 = vsel %vm1861_vm1, %v1919_v25, %v1920_v15  ;;  %v8305_v39 = vld [vmem:[%s16157_s0 + $0x170] sm:$0x3]  ;;  %v8311_v34 = vld [vmem:[%s16157_s0 + $0x1a0] sm:$0x3] }
  0xc8   :  { %v2464_v47 = vmul.f32 %v7999_v1, %v9449_v46  ;;  %v2866_v38 = vmul.f32 %v8110_v12, %v9462_v55  ;;  %v2869_v9 = vmul.f32 %v8113_v26, %v9462_v55  ;;  %v2872_v42 = vmul.f32 %v8116_v30, %v9462_v55  ;;  %v8593_v12 = vld [vmem:[%s16157_s0 + $0x1a0] sm:$0x1]  ;;  %v8596_v10 = vld [vmem:[%s16157_s0 + $0x1b8] sm:$0xfe]  ;;  %v8599_v30 = vld [vmem:[%s16157_s0 + $0x1d0] sm:$0x1] }
  0xc9   :  { %v1930_v28 = vsel %vm1861_vm1, %v1928_v60, %v1929_v33  ;;  %v2265_v7 = vadd.f32 %v1921_v37, %v1205_v52  ;;  %v2875_v44 = vmul.f32 %v8119_v35, %v9462_v55  ;;  %v3925_v51 = vmul.f32 %v8302_v36, %v9486_v17  ;;  %v8785_v35 = vld [vmem:[%s16157_s0 + $0x1a0] sm:$0x3] }
  0xca   :  { %v2268_v48 = vadd.f32 %v1930_v28, %v1208_v16  ;;  %v3270_v50 = vrot.slane %v2866_v38, 1  ;;  %v3271_v54 = vrot.slane %v2869_v9, 1  ;;  %v3279_v57 = vrot.slane %v2872_v42, 1  ;;  %v8788_v38 = vld [vmem:[%s16157_s0 + $0x1b8] sm:$0xfc] }
  0xcb   :  { %v2557_v53 = vadd.f32 %v2461_v18, %v2265_v7  ;;  %v3928_v41 = vmul.f32 %v8305_v39, %v9486_v17  ;;  %v3280_v20 = vrot.slane %v2875_v44, 1  ;;  %v3931_v40 = vmul.f32 %v8308_v45, %v9486_v17  ;;  %v8791_v39 = vld [vmem:[%s16157_s0 + $0x1d0] sm:$0x3] }
  0xcc   :  { %v2560_v58 = vadd.f32 %v2464_v47, %v2268_v48  ;;  %v3934_v21 = vmul.f32 %v8311_v34, %v9486_v17  ;;  %v3272_v43 = vsel %vm801_vm0, %v3270_v50, %v3271_v54  ;;  %v4329_v11 = vrot.slane %v3925_v51, 2 }
  0xcd   :  { %v4330_v61 = vrot.slane %v3928_v41, 2  ;;  %v4871_v25 = vmul.f32 %v7999_v1, %v9489_v24  ;;  %v3281_v8 = vsel %vm801_vm0, %v3279_v57, %v3280_v20  ;;  %v3616_v15 = vadd.f32 %v3272_v43, %v2557_v53  ;;  %v8782_v1 = vld [vmem:[%s16157_s0 + $0x188] sm:$0xfc]  ;;  %v10589_v57 = vld [vmem:[%s16158_s1 + $0x10] sm:$0xff] }
  0xce   :  { %v4338_v18 = vrot.slane %v3931_v40, 2  ;;  %v4339_v26 = vrot.slane %v3934_v21, 2  ;;  %v3619_v32 = vadd.f32 %v3281_v8, %v2560_v58  ;;  %v4874_v60 = vmul.f32 %v8479_v62, %v9489_v24  ;;  %v10594_v41 = vld [vmem:[%s16157_s0 + $0x310] sm:$0xff]  ;;  %v74_v58 = vld [vmem:[%s16157_s0 + $0x340] sm:$0xff] }
  0xcf   :  { %v4331_v52 = vsel %vm1861_vm1, %v4329_v11, %v4330_v61  ;;  %v5276_v33 = vmul.f32 %v8590_v5, %v9532_v59  ;;  %v5279_v37 = vmul.f32 %v8593_v12, %v9532_v59  ;;  %v5282_v47 = vmul.f32 %v8596_v10, %v9532_v59  ;;  %v308_v61 = vld [vmem:[%s16157_s0 + $0x310] sm:$0xfe] }
  0xd0   :  { %v4340_v36 = vsel %vm1861_vm1, %v4338_v18, %v4339_v26  ;;  %v4675_v16 = vadd.f32 %v4331_v52, %v3616_v15  ;;  %v5285_v7 = vmul.f32 %v8599_v30, %v9532_v59  ;;  %v6335_v42 = vmul.f32 %v10314_v0, %v8782_v1  ;;  %v314_v18 = vld [vmem:[%s16157_s0 + $0x340] sm:$0xfe]  ;;  %v317_v26 = vld [vmem:[%s16157_s0 + $0x358] sm:$0x1]  ;;  %v1368_v30 = vld [vmem:[%s16157_s0 + $0x310] sm:$0xfc] }
  0xd1   :  { %v4678_v28 = vadd.f32 %v4340_v36, %v3619_v32  ;;  %v5680_v9 = vrot.slane %v5276_v33, 1  ;;  %v5681_v34 = vrot.slane %v5279_v37, 1  ;;  %v5689_v48 = vrot.slane %v5282_v47, 1  ;;  %v1374_v33 = vld [vmem:[%s16157_s0 + $0x340] sm:$0xfc] }
  0xd2   :  { %v4967_v45 = vadd.f32 %v4871_v25, %v4675_v16  ;;  %v6338_v44 = vmul.f32 %v10314_v0, %v8785_v35  ;;  %v5690_v51 = vrot.slane %v5285_v7, 1  ;;  %v6341_v53 = vmul.f32 %v10314_v0, %v8788_v38  ;;  %v311_v25 = vld [vmem:[%s16157_s0 + $0x328] sm:$0x1] }
  0xd3   :  { %v4970_v50 = vadd.f32 %v4874_v60, %v4678_v28  ;;  %v6344_v54 = vmul.f32 %v10314_v0, %v8791_v39  ;;  %v5682_v20 = vsel %vm801_vm0, %v5680_v9, %v5681_v34  ;;  %v6739_v40 = vrot.slane %v6335_v42, 2  ;;  %v1371_v60 = vld [vmem:[%s16157_s0 + $0x328] sm:$0x3]  ;;  %v1377_v9 = vld [vmem:[%s16157_s0 + $0x358] sm:$0x3] }
  0xd4   :  { %v6740_v21 = vrot.slane %v6338_v44, 2  ;;  %v10601_v0 = vperm.slane %v10589_v57, 0  ;;  %v5691_v62 = vsel %vm801_vm0, %v5689_v48, %v5690_v51  ;;  %v6026_v5 = vadd.f32 %v5682_v20, %v4967_v45  ;;  %v10658_v44 = vld [vmem:[%s16157_s0 + $0x370] sm:$0xff]  ;;  %v8162_v51 = vld [vmem:[%s16157_s0 + $0x358] sm:$0x1] }
  0xd5   :  { %v6748_v43 = vrot.slane %v6341_v53, 2  ;;  %v6749_v11 = vrot.slane %v6344_v54, 2  ;;  %v6029_v12 = vadd.f32 %v5691_v62, %v4970_v50  ;;  %v10625_v52 = vperm.slane %v10589_v57, 1  ;;  %v8159_v50 = vld [vmem:[%s16157_s0 + $0x340] sm:$0xfe] }
  0xd6   :  { %v6741_v10 = vsel %vm1861_vm1, %v6739_v40, %v6740_v21  ;;  %v170_v8 = vmul.f32 %v10601_v0, %v10594_v41  ;;  %v173_v15 = vmul.f32 %v10601_v0, %v74_v58  ;;  %v10634_v35 = vperm.slane %v10589_v57, 2  ;;  %v8165_v21 = vld [vmem:[%s16157_s0 + $0x370] sm:$0xfe] }
  0xd7   :  { %v6750_v1 = vsel %vm1861_vm1, %v6748_v43, %v6749_v11  ;;  %v7085_v32 = vadd.f32 %v6741_v10, %v6026_v5  ;;  %v10637_v16 = vperm.slane %v10589_v57, 3  ;;  %v10640_v37 = vperm.slane %v10589_v57, 4 }
  0xd8   :  { %v7088_v36 = vadd.f32 %v6750_v1, %v6029_v12  ;;  %v10643_v47 = vperm.slane %v10589_v57, 5  ;;  %v503_v38 = vmul.f32 %v10625_v52, %v308_v61  ;;  %v506_v39 = vmul.f32 %v10625_v52, %v311_v25  ;;  %v8168_v61 = vld [vmem:[%s16157_s0 + $0x388] sm:$0x1] }
  0xd9   :  { %v509_v28 = vmul.f32 %v10625_v52, %v314_v18  ;;  %v512_v7 = vmul.f32 %v10625_v52, %v317_v26  ;;  %v1563_v45 = vmul.f32 %v10634_v35, %v1368_v30  ;;  %v1566_v34 = vmul.f32 %v10634_v35, %v1371_v60  ;;  %v8351_v26 = vld [vmem:[%s16157_s0 + $0x340] sm:$0xfc]  ;;  %v8354_v30 = vld [vmem:[%s16157_s0 + $0x358] sm:$0x3] }
  0xda   :  { %v7172_v42 = vpack.c.bf16 %v7088_v36, %v7085_v32  ;;  %v1569_v48 = vmul.f32 %v10634_v35, %v1374_v33  ;;  %v934_v53 = vrot.slane %v503_v38, 1  ;;  %v935_v54 = vrot.slane %v506_v39, 1 }
  0xdb   :  { %v943_v20 = vrot.slane %v509_v28, 1  ;;  %v944_v40 = vrot.slane %v512_v7, 1  ;;  %v1572_v62 = vmul.f32 %v10634_v35, %v1377_v9  ;;  %v1994_v5 = vrot.slane %v1563_v45, 2  ;;  %v8357_v28 = vld [vmem:[%s16157_s0 + $0x370] sm:$0xfc] }
  0xdc   :  { %7246 = vmatpush.bf16.xpose.msra.mxu1 %v7172_v42  ;;  %v1995_v43 = vrot.slane %v1566_v34, 2  ;;  %v2003_v11 = vrot.slane %v1569_v48, 2  ;;  %v936_v25 = vsel %vm801_vm0, %v934_v53, %v935_v54  ;;  %v2486_v10 = vmul.f32 %v10637_v16, %v74_v58 }
  0xdd   :  { %v945_v12 = vsel %vm801_vm0, %v943_v20, %v944_v40  ;;  %v2489_v18 = vmul.f32 %v10658_v44, %v10637_v16  ;;  %v1230_v1 = vadd.f32 %v936_v25, %v170_v8  ;;  %v2004_v33 = vrot.slane %v1572_v62, 2  ;;  %v8360_v8 = vld [vmem:[%s16157_s0 + $0x388] sm:$0x3]  ;;  %v8831_v25 = vld [vmem:[%s16157_s0 + $0x370] sm:$0xfc] }
  0xde   :  { %v1233_v32 = vadd.f32 %v945_v12, %v173_v15  ;;  %v1996_v60 = vsel %vm1861_vm1, %v1994_v5, %v1995_v43  ;;  %v2915_v36 = vmul.f32 %v8159_v50, %v10640_v37  ;;  %v2918_v58 = vmul.f32 %v8162_v51, %v10640_v37  ;;  %v10701_v51 = vld [vmem:[%s16158_s1 + $0x28] ss:$0 sm:$0xff] }
  0xdf   :  { %v2921_v38 = vmul.f32 %v8165_v21, %v10640_v37  ;;  %v2924_v39 = vmul.f32 %v8168_v61, %v10640_v37  ;;  %v2005_v15 = vsel %vm1861_vm1, %v2003_v11, %v2004_v33  ;;  %v2290_v7 = vadd.f32 %v1996_v60, %v1230_v1  ;;  %v8639_v21 = vld [vmem:[%s16157_s0 + $0x370] sm:$0xfe]  ;;  %v8642_v61 = vld [vmem:[%s16157_s0 + $0x388] sm:$0x1]  ;;  %v8504_v1 = vld [vmem:[%s16157_s0 + $0x3a0] sm:$0xff] }
  0xe0   :  { %v3974_v9 = vmul.f32 %v8351_v26, %v10643_v47  ;;  %v3977_v42 = vmul.f32 %v8354_v30, %v10643_v47  ;;  %v2293_v45 = vadd.f32 %v2005_v15, %v1233_v32  ;;  %v3345_v34 = vrot.slane %v2915_v36, 1  ;;  %v8834_v12 = vld [vmem:[%s16157_s0 + $0x388] sm:$0x3]  ;;  %v8645_v32 = vld [vmem:[%s16157_s0 + $0x3a0] sm:$0xfe] }
  0xe1   :  { %v3346_v48 = vrot.slane %v2918_v58, 1  ;;  %v3354_v50 = vrot.slane %v2921_v38, 1  ;;  %v2582_v53 = vadd.f32 %v2486_v10, %v2290_v7  ;;  %v3355_v54 = vrot.slane %v2924_v39, 1  ;;  %v8648_v58 = vld [vmem:[%s16157_s0 + $0x3b8] sm:$0x1] }
  0xe2   :  { %v3980_v20 = vmul.f32 %v8357_v28, %v10643_v47  ;;  %v3983_v40 = vmul.f32 %v8360_v8, %v10643_v47  ;;  %v2585_v62 = vadd.f32 %v2489_v18, %v2293_v45  ;;  %v4404_v43 = vrot.slane %v3974_v9, 2  ;;  %v8837_v39 = vld [vmem:[%s16157_s0 + $0x3a0] sm:$0xfc]  ;;  %v8840_v15 = vld [vmem:[%s16157_s0 + $0x3b8] sm:$0x3] }
  0xe3   :  { %v3347_v5 = vsel %vm801_vm0, %v3345_v34, %v3346_v48  ;;  %v4405_v11 = vrot.slane %v3977_v42, 2  ;;  %v3356_v10 = vsel %vm801_vm0, %v3354_v50, %v3355_v54  ;;  %v10727_v36 = vperm.slane %v10589_v57, 6 }
  0xe4   :  { %v3641_v26 = vadd.f32 %v3347_v5, %v2582_v53  ;;  %v4413_v18 = vrot.slane %v3980_v20, 2  ;;  %v4414_v30 = vrot.slane %v3983_v40, 2  ;;  %v3644_v60 = vadd.f32 %v3356_v10, %v2585_v62  ;;  %v10755_v20 = vld [vmem:[%s16157_s0 + $0xc0] sm:$0xff] }
  0xe5   :  { %v4406_v33 = vsel %vm1861_vm1, %v4404_v43, %v4405_v11  ;;  %v10733_v38 = vperm.slane %v10589_v57, 7  ;;  %v6384_v7 = vmul.f32 %v10701_v51, %v8831_v25  ;;  %v6387_v9 = vmul.f32 %v10701_v51, %v8834_v12  ;;  %v246_v43 = vld [vmem:[%s16157_s0 + $0xc0] sm:$0xfe]  ;;  %v249_v11 = vld [vmem:[%s16157_s0 + $0xd8] sm:$0x1] }
  0xe6   :  { %v4415_v28 = vsel %vm1861_vm1, %v4413_v18, %v4414_v30  ;;  %v4700_v8 = vadd.f32 %v4406_v33, %v3641_v26  ;;  %v4896_v57 = vmul.f32 %v10658_v44, %v10727_v36  ;;  %v4899_v45 = vmul.f32 %v8504_v1, %v10727_v36  ;;  %v252_v26 = vld [vmem:[%s16157_s0 + $0xf0] sm:$0xfe] }
  0xe7   :  { %v4703_v42 = vadd.f32 %v4415_v28, %v3644_v60  ;;  %v5325_v34 = vmul.f32 %v8639_v21, %v10733_v38  ;;  %v5328_v48 = vmul.f32 %v8642_v61, %v10733_v38  ;;  %v5331_v50 = vmul.f32 %v8645_v32, %v10733_v38  ;;  %v42_v21 = vld [vmem:[%s16157_s0 + $0xf0] sm:$0xff]  ;;  %v255_v60 = vld [vmem:[%s16157_s0 + $0x108] sm:$0x1] }
  0xe8   :  { %v5334_v53 = vmul.f32 %v8648_v58, %v10733_v38  ;;  %v6390_v54 = vmul.f32 %v10701_v51, %v8837_v39  ;;  %v4992_v40 = vadd.f32 %v4896_v57, %v4700_v8  ;;  %v6393_v5 = vmul.f32 %v10701_v51, %v8840_v15  ;;  %v1306_v8 = vld [vmem:[%s16157_s0 + $0xc0] sm:$0xfc]  ;;  %v1309_v15 = vld [vmem:[%s16157_s0 + $0xd8] sm:$0x3] }
  0xe9   :  { %v4995_v62 = vadd.f32 %v4899_v45, %v4703_v42  ;;  %v5755_v44 = vrot.slane %v5325_v34, 1  ;;  %v5756_v61 = vrot.slane %v5328_v48, 1  ;;  %v5764_v25 = vrot.slane %v5331_v50, 1  ;;  %v1312_v45 = vld [vmem:[%s16157_s0 + $0xf0] sm:$0xfc] }
  0xea   :  { %v5765_v12 = vrot.slane %v5334_v53, 1  ;;  %v6814_v10 = vrot.slane %v6384_v7, 2  ;;  %v6815_v18 = vrot.slane %v6387_v9, 2  ;;  %v6823_v30 = vrot.slane %v6390_v54, 2  ;;  %v1315_v54 = vld [vmem:[%s16157_s0 + $0x108] sm:$0x3] }
  0xeb   :  { %v6824_v1 = vrot.slane %v6393_v5, 2  ;;  %v138_v32 = vmul.f32 %v9226_v3, %v10755_v20  ;;  %v5757_v33 = vsel %vm801_vm0, %v5755_v44, %v5756_v61  ;;  %v141_v39 = vmul.f32 %v9226_v3, %v42_v21 }
  0xec   :  { %v5766_v58 = vsel %vm801_vm0, %v5764_v25, %v5765_v12  ;;  %v441_v28 = vmul.f32 %v9229_v4, %v246_v43  ;;  %v6051_v7 = vadd.f32 %v5757_v33, %v4992_v40  ;;  %v6816_v42 = vsel %vm1861_vm1, %v6814_v10, %v6815_v18  ;;  %v8097_v12 = vld [vmem:[%s16157_s0 + $0xf0] sm:$0xfe] }
  0xed   :  { %v6054_v9 = vadd.f32 %v5766_v58, %v4995_v62  ;;  %v6825_v57 = vsel %vm1861_vm1, %v6823_v30, %v6824_v1  ;;  %v444_v34 = vmul.f32 %v9229_v4, %v249_v11  ;;  %v447_v48 = vmul.f32 %v9229_v4, %v252_v26  ;;  %v8100_v1 = vld [vmem:[%s16157_s0 + $0x108] sm:$0x1] }
  0xee   :  { %v450_v50 = vmul.f32 %v9229_v4, %v255_v60  ;;  %v838_v53 = vrot.slane %v441_v28, 1  ;;  %v7110_v40 = vadd.f32 %v6816_v42, %v6051_v7  ;;  %v1501_v44 = vmul.f32 %v9264_v19, %v1306_v8  ;;  %v8103_v60 = vld [vmem:[%s16157_s0 + $0x120] sm:$0xfe]  ;;  %v8289_v7 = vld [vmem:[%s16157_s0 + $0xf0] sm:$0xfc] }
  0xef   :  { %v7113_v62 = vadd.f32 %v6825_v57, %v6054_v9  ;;  %v1504_v5 = vmul.f32 %v9264_v19, %v1309_v15  ;;  %v839_v43 = vrot.slane %v444_v34, 1  ;;  %v847_v61 = vrot.slane %v447_v48, 1  ;;  %v8106_v15 = vld [vmem:[%s16157_s0 + $0x138] sm:$0x1] }
  0xf0   :  { %v848_v25 = vrot.slane %v450_v50, 1  ;;  %v1507_v11 = vmul.f32 %v9264_v19, %v1312_v45  ;;  %v1510_v26 = vmul.f32 %v9264_v19, %v1315_v54  ;;  %v1898_v18 = vrot.slane %v1501_v44, 2 }
  0xf1   :  { %v7185_v10 = vpack.c.bf16 %v7113_v62, %v7110_v40  ;;  %v1899_v30 = vrot.slane %v1504_v5, 2  ;;  %v840_v33 = vsel %vm801_vm0, %v838_v53, %v839_v43  ;;  %v2454_v8 = vmul.f32 %v9267_v22, %v42_v21  ;;  %v8292_v53 = vld [vmem:[%s16157_s0 + $0x108] sm:$0x3]  ;;  %v8298_v62 = vld [vmem:[%s16157_s0 + $0x138] sm:$0x3] }
  0xf2   :  { %v849_v58 = vsel %vm801_vm0, %v847_v61, %v848_v25  ;;  %v1907_v28 = vrot.slane %v1507_v11, 2  ;;  %v1198_v9 = vadd.f32 %v840_v33, %v138_v32  ;;  %v1908_v45 = vrot.slane %v1510_v26, 2  ;;  %v8295_v32 = vld [vmem:[%s16157_s0 + $0x120] sm:$0xfc] }
  0xf3   :  { %7255 = vmatpush.bf16.xpose.msra.mxu2 %v7185_v10  ;;  %v1201_v42 = vadd.f32 %v849_v58, %v141_v39  ;;  %v1900_v57 = vsel %vm1861_vm1, %v1898_v18, %v1899_v30  ;;  %v2457_v34 = vmul.f32 %v9267_v22, %v10322_v2  ;;  %v2853_v48 = vmul.f32 %v8097_v12, %v9270_v23  ;;  %v8577_v18 = vld [vmem:[%s16157_s0 + $0x120] sm:$0xfe]  ;;  %v8580_v58 = vld [vmem:[%s16157_s0 + $0x138] sm:$0x1] }
  0xf4   :  { %v2856_v21 = vmul.f32 %v8100_v1, %v9270_v23  ;;  %v2859_v50 = vmul.f32 %v8103_v60, %v9270_v23  ;;  %v1909_v39 = vsel %vm1861_vm1, %v1907_v28, %v1908_v45  ;;  %v2258_v54 = vadd.f32 %v1900_v57, %v1198_v9  ;;  %v8583_v28 = vld [vmem:[%s16157_s0 + $0x150] sm:$0xfe]  ;;  %v8769_v57 = vld [vmem:[%s16157_s0 + $0x120] sm:$0xfc] }
  0xf5   :  { %v2862_v40 = vmul.f32 %v8106_v15, %v9270_v23  ;;  %v3912_v44 = vmul.f32 %v8289_v7, %v9318_v56  ;;  %v2261_v5 = vadd.f32 %v1909_v39, %v1201_v42  ;;  %v3249_v43 = vrot.slane %v2853_v48, 1  ;;  %v8586_v42 = vld [vmem:[%s16157_s0 + $0x168] sm:$0x1] }
  0xf6   :  { %v3250_v61 = vrot.slane %v2856_v21, 1  ;;  %v3258_v25 = vrot.slane %v2859_v50, 1  ;;  %v2550_v11 = vadd.f32 %v2454_v8, %v2258_v54  ;;  %v3915_v10 = vmul.f32 %v8292_v53, %v9318_v56  ;;  %v8772_v54 = vld [vmem:[%s16157_s0 + $0x138] sm:$0x3] }
  0xf7   :  { %v3259_v12 = vrot.slane %v2862_v40, 1  ;;  %v3918_v26 = vmul.f32 %v8295_v32, %v9318_v56  ;;  %v2553_v30 = vadd.f32 %v2457_v34, %v2261_v5  ;;  %v3921_v60 = vmul.f32 %v8298_v62, %v9318_v56  ;;  %v8775_v40 = vld [vmem:[%s16157_s0 + $0x150] sm:$0xfc]  ;;  %v10878_v5 = vld [vmem:[%s16158_s1 + $0x18] ss:$0 sm:$0xff] }
  0xf8   :  { %v3251_v1 = vsel %vm801_vm0, %v3249_v43, %v3250_v61  ;;  %v4308_v33 = vrot.slane %v3912_v44, 2  ;;  %v4309_v7 = vrot.slane %v3915_v10, 2  ;;  %v4864_v48 = vmul.f32 %v9350_v27, %v10322_v2  ;;  %v8778_v44 = vld [vmem:[%s16157_s0 + $0x168] sm:$0x3] }
  0xf9   :  { %v3260_v8 = vsel %vm801_vm0, %v3258_v25, %v3259_v12  ;;  %v3609_v15 = vadd.f32 %v3251_v1, %v2550_v11  ;;  %v4317_v9 = vrot.slane %v3918_v26, 2  ;;  %v4318_v34 = vrot.slane %v3921_v60, 2  ;;  %v10886_v1 = vld [vmem:[%s16157_s0 + $0xc8] sm:$0xff]  ;;  %v43_v60 = vld [vmem:[%s16157_s0 + $0xf8] sm:$0xff] }
  0xfa   :  { %v3612_v45 = vadd.f32 %v3260_v8, %v2553_v30  ;;  %v4867_v21 = vmul.f32 %v9350_v27, %v10327_v49  ;;  %v4310_v50 = vsel %vm1861_vm1, %v4308_v33, %v4309_v7  ;;  %v5263_v53 = vmul.f32 %v8577_v18, %v9357_v31  ;;  %v247_v33 = vld [vmem:[%s16157_s0 + $0xc8] sm:$0xfe]  ;;  %v250_v7 = vld [vmem:[%s16157_s0 + $0xe0] sm:$0x1] }
  0xfb   :  { %v5266_v32 = vmul.f32 %v8580_v58, %v9357_v31  ;;  %v5269_v39 = vmul.f32 %v8583_v28, %v9357_v31  ;;  %v4319_v2 = vsel %vm1861_vm1, %v4317_v9, %v4318_v34  ;;  %v4668_v62 = vadd.f32 %v4310_v50, %v3609_v15  ;;  %v253_v9 = vld [vmem:[%s16157_s0 + $0xf8] sm:$0xfe] }
  0xfc   :  { %v5272_v49 = vmul.f32 %v8586_v42, %v9357_v31  ;;  %v6322_v43 = vmul.f32 %v10878_v5, %v8769_v57  ;;  %v4671_v61 = vadd.f32 %v4319_v2, %v3612_v45  ;;  %v5659_v25 = vrot.slane %v5263_v53, 1 }
  0xfd   :  { %v5660_v11 = vrot.slane %v5266_v32, 1  ;;  %v5668_v12 = vrot.slane %v5269_v39, 1  ;;  %v4960_v10 = vadd.f32 %v4864_v48, %v4668_v62  ;;  %v6325_v18 = vmul.f32 %v10878_v5, %v8772_v54  ;;  %v256_v48 = vld [vmem:[%s16157_s0 + $0x110] sm:$0x1] }
  0xfe   :  { %v5669_v26 = vrot.slane %v5272_v49, 1  ;;  %v6328_v30 = vmul.f32 %v10878_v5, %v8775_v40  ;;  %v4963_v58 = vadd.f32 %v4867_v21, %v4671_v61  ;;  %v6331_v8 = vmul.f32 %v10878_v5, %v8778_v44  ;;  %v1307_v21 = vld [vmem:[%s16157_s0 + $0xc8] sm:$0xfc]  ;;  %v1310_v49 = vld [vmem:[%s16157_s0 + $0xe0] sm:$0x3] }
  0xff   :  { %v5661_v28 = vsel %vm801_vm0, %v5659_v25, %v5660_v11  ;;  %v6718_v15 = vrot.slane %v6322_v43, 2  ;;  %v6719_v45 = vrot.slane %v6325_v18, 2  ;;  %v139_v32 = vmul.f32 %v9403_v63, %v10886_v1  ;;  %v1313_v44 = vld [vmem:[%s16157_s0 + $0xf8] sm:$0xfc]  ;;  %v1316_v43 = vld [vmem:[%s16157_s0 + $0x110] sm:$0x3] }
 0x100   :  { %v5670_v42 = vsel %vm801_vm0, %v5668_v12, %v5669_v26  ;;  %v6019_v57 = vadd.f32 %v5661_v28, %v4960_v10  ;;  %v6727_v34 = vrot.slane %v6328_v30, 2  ;;  %v6728_v53 = vrot.slane %v6331_v8, 2 }
 0x101   :  { %v6022_v50 = vadd.f32 %v5670_v42, %v4963_v58  ;;  %v142_v39 = vmul.f32 %v9403_v63, %v43_v60  ;;  %v6720_v54 = vsel %vm1861_vm1, %v6718_v15, %v6719_v45  ;;  %v442_v40 = vmul.f32 %v9409_v6, %v247_v33  ;;  %v8098_v15 = vld [vmem:[%s16157_s0 + $0xf8] sm:$0xfe] }
 0x102   :  { %v445_v2 = vmul.f32 %v9409_v6, %v250_v7  ;;  %v448_v62 = vmul.f32 %v9409_v6, %v253_v9  ;;  %v6729_v61 = vsel %vm1861_vm1, %v6727_v34, %v6728_v53  ;;  %v7078_v25 = vadd.f32 %v6720_v54, %v6019_v57  ;;  %v8101_v7 = vld [vmem:[%s16157_s0 + $0x110] sm:$0x1]  ;;  %v8104_v34 = vld [vmem:[%s16157_s0 + $0x128] sm:$0xfe] }
 0x103   :  { %v451_v11 = vmul.f32 %v9409_v6, %v256_v48  ;;  %v1502_v12 = vmul.f32 %v9420_v13, %v1307_v21  ;;  %v7081_v10 = vadd.f32 %v6729_v61, %v6022_v50  ;;  %v841_v26 = vrot.slane %v442_v40, 1  ;;  %v8107_v48 = vld [vmem:[%s16157_s0 + $0x140] sm:$0x1]  ;;  %v8290_v40 = vld [vmem:[%s16157_s0 + $0xf8] sm:$0xfc] }
 0x104   :  { %v842_v18 = vrot.slane %v445_v2, 1  ;;  %v850_v30 = vrot.slane %v448_v62, 1  ;;  %v1505_v58 = vmul.f32 %v9420_v13, %v1310_v49  ;;  %v1508_v28 = vmul.f32 %v9420_v13, %v1313_v44 }
 0x105   :  { %v851_v33 = vrot.slane %v451_v11, 1  ;;  %v1511_v8 = vmul.f32 %v9420_v13, %v1316_v43  ;;  %v7168_v9 = vpack.c.bf16 %v7081_v10, %v7078_v25  ;;  %v1901_v57 = vrot.slane %v1502_v12, 2  ;;  %v8293_v25 = vld [vmem:[%s16157_s0 + $0x110] sm:$0x3]  ;;  %v8299_v11 = vld [vmem:[%s16157_s0 + $0x140] sm:$0x3] }
 0x106   :  { %v843_v42 = vsel %vm801_vm0, %v841_v26, %v842_v18  ;;  %v2455_v45 = vmul.f32 %v9449_v46, %v43_v60  ;;  %v1902_v53 = vrot.slane %v1505_v58, 2  ;;  %v1910_v54 = vrot.slane %v1508_v28, 2 }
 0x107   :  { %v852_v21 = vsel %vm801_vm0, %v850_v30, %v851_v33  ;;  %v1199_v50 = vadd.f32 %v843_v42, %v139_v32  ;;  %7234 = vmatpush.bf16.xpose.msra.mxu0 %v7168_v9  ;;  %v1911_v60 = vrot.slane %v1511_v8, 2  ;;  %v2458_v62 = vmul.f32 %v9449_v46, %v10454_v14  ;;  %v8578_v42 = vld [vmem:[%s16157_s0 + $0x128] sm:$0xfe] }
 0x108   :  { %v1202_v2 = vadd.f32 %v852_v21, %v142_v39  ;;  %v2854_v49 = vmul.f32 %v8098_v15, %v9462_v55  ;;  %v1903_v44 = vsel %vm1861_vm1, %v1901_v57, %v1902_v53  ;;  %v2857_v43 = vmul.f32 %v8101_v7, %v9462_v55  ;;  %v8296_v39 = vld [vmem:[%s16157_s0 + $0x128] sm:$0xfc] }
 0x109   :  { %v2860_v32 = vmul.f32 %v8104_v34, %v9462_v55  ;;  %v2863_v61 = vmul.f32 %v8107_v48, %v9462_v55  ;;  %v1912_v12 = vsel %vm1861_vm1, %v1910_v54, %v1911_v60  ;;  %v2259_v10 = vadd.f32 %v1903_v44, %v1199_v50  ;;  %v8584_v50 = vld [vmem:[%s16157_s0 + $0x158] sm:$0xfe]  ;;  %v8587_v60 = vld [vmem:[%s16157_s0 + $0x170] sm:$0x1] }
 0x10a   :  { %v3252_v26 = vrot.slane %v2854_v49, 1  ;;  %v3913_v18 = vmul.f32 %v8290_v40, %v9486_v17  ;;  %v2262_v30 = vadd.f32 %v1912_v12, %v1202_v2  ;;  %v3253_v33 = vrot.slane %v2857_v43, 1 }
 0x10b   :  { %v3261_v58 = vrot.slane %v2860_v32, 1  ;;  %v3262_v28 = vrot.slane %v2863_v61, 1  ;;  %v2551_v8 = vadd.f32 %v2455_v45, %v2259_v10  ;;  %v3916_v15 = vmul.f32 %v8293_v25, %v9486_v17  ;;  %v8581_v45 = vld [vmem:[%s16157_s0 + $0x140] sm:$0x1]  ;;  %v8770_v32 = vld [vmem:[%s16157_s0 + $0x128] sm:$0xfc] }
 0x10c   :  { %v3919_v7 = vmul.f32 %v8296_v39, %v9486_v17  ;;  %v3922_v9 = vmul.f32 %v8299_v11, %v9486_v17  ;;  %v2554_v57 = vadd.f32 %v2458_v62, %v2262_v30  ;;  %v3254_v34 = vsel %vm801_vm0, %v3252_v26, %v3253_v33  ;;  %v8773_v61 = vld [vmem:[%s16157_s0 + $0x140] sm:$0x3]  ;;  %v8779_v30 = vld [vmem:[%s16157_s0 + $0x170] sm:$0x3] }
 0x10d   :  { %v3263_v48 = vsel %vm801_vm0, %v3261_v58, %v3262_v28  ;;  %v4311_v21 = vrot.slane %v3913_v18, 2  ;;  %v3610_v53 = vadd.f32 %v3254_v34, %v2551_v8  ;;  %v4312_v54 = vrot.slane %v3916_v15, 2  ;;  %v11009_v28 = vld [vmem:[%s16158_s1 + $0x20] ss:$0 sm:$0xff] }
 0x10e   :  { %v4320_v40 = vrot.slane %v3919_v7, 2  ;;  %v4321_v2 = vrot.slane %v3922_v9, 2  ;;  %v3613_v62 = vadd.f32 %v3263_v48, %v2554_v57  ;;  %v4865_v49 = vmul.f32 %v9489_v24, %v10454_v14  ;;  %v11016_v7 = vld [vmem:[%s16157_s0 + $0x6c0] sm:$0xff]  ;;  %v120_v48 = vld [vmem:[%s16157_s0 + $0x6f0] sm:$0xff] }
 0x10f   :  { %v4868_v44 = vmul.f32 %v9489_v24, %v10460_v29  ;;  %v5264_v43 = vmul.f32 %v8578_v42, %v9532_v59  ;;  %v4313_v25 = vsel %vm1861_vm1, %v4311_v21, %v4312_v54  ;;  %v5267_v11 = vmul.f32 %v8581_v45, %v9532_v59  ;;  %v8776_v29 = vld [vmem:[%s16157_s0 + $0x158] sm:$0xfc]  ;;  %v402_v21 = vld [vmem:[%s16157_s0 + $0x6c0] sm:$0xfe]  ;;  %v405_v45 = vld [vmem:[%s16157_s0 + $0x6d8] sm:$0x1] }
 0x110   :  { %v4322_v39 = vsel %vm1861_vm1, %v4320_v40, %v4321_v2  ;;  %v5270_v14 = vmul.f32 %v8584_v50, %v9532_v59  ;;  %v4669_v12 = vadd.f32 %v4313_v25, %v3610_v53  ;;  %v5273_v26 = vmul.f32 %v8587_v60, %v9532_v59  ;;  %v408_v2 = vld [vmem:[%s16157_s0 + $0x6f0] sm:$0xfe]  ;;  %v411_v60 = vld [vmem:[%s16157_s0 + $0x708] sm:$0x1] }
 0x111   :  { %v4672_v10 = vadd.f32 %v4322_v39, %v3613_v62  ;;  %v5662_v18 = vrot.slane %v5264_v43, 1  ;;  %v5663_v33 = vrot.slane %v5267_v11, 1  ;;  %v6323_v8 = vmul.f32 %v11009_v28, %v8770_v32  ;;  %v1462_v32 = vld [vmem:[%s16157_s0 + $0x6c0] sm:$0xfc] }
 0x112   :  { %v5671_v58 = vrot.slane %v5270_v14, 1  ;;  %v6326_v15 = vmul.f32 %v11009_v28, %v8773_v61  ;;  %v4961_v9 = vadd.f32 %v4865_v49, %v4669_v12  ;;  %v5672_v57 = vrot.slane %v5273_v26, 1  ;;  %v1465_v61 = vld [vmem:[%s16157_s0 + $0x6d8] sm:$0x3] }
 0x113   :  { %v4964_v42 = vadd.f32 %v4868_v44, %v4672_v10  ;;  %v6329_v34 = vmul.f32 %v11009_v28, %v8776_v29  ;;  %v5664_v50 = vsel %vm801_vm0, %v5662_v18, %v5663_v33  ;;  %v6332_v53 = vmul.f32 %v11009_v28, %v8779_v30  ;;  %v1468_v18 = vld [vmem:[%s16157_s0 + $0x6f0] sm:$0xfc]  ;;  %v1471_v30 = vld [vmem:[%s16157_s0 + $0x708] sm:$0x3] }
 0x114   :  { %v6721_v54 = vrot.slane %v6323_v8, 2  ;;  %v6722_v40 = vrot.slane %v6326_v15, 2  ;;  %v5673_v62 = vsel %vm801_vm0, %v5671_v58, %v5672_v57  ;;  %v6020_v49 = vadd.f32 %v5664_v50, %v4961_v9 }
 0x115   :  { %v6730_v44 = vrot.slane %v6329_v34, 2  ;;  %v216_v43 = vmul.f32 %v9226_v3, %v11016_v7  ;;  %v6023_v25 = vadd.f32 %v5673_v62, %v4964_v42  ;;  %v6731_v11 = vrot.slane %v6332_v53, 2 }
 0x116   :  { %v6723_v39 = vsel %vm1861_vm1, %v6721_v54, %v6722_v40  ;;  %v219_v14 = vmul.f32 %v9226_v3, %v120_v48  ;;  %v597_v12 = vmul.f32 %v9229_v4, %v402_v21  ;;  %v600_v10 = vmul.f32 %v9229_v4, %v405_v45  ;;  %v8070_v54 = vld [vmem:[%s16157_s0 + $0x720] sm:$0xff]  ;;  %v8253_v40 = vld [vmem:[%s16157_s0 + $0x6f0] sm:$0xfe] }
 0x117   :  { %v7079_v29 = vadd.f32 %v6723_v39, %v6020_v49  ;;  %v603_v26 = vmul.f32 %v9229_v4, %v408_v2  ;;  %v6732_v33 = vsel %vm1861_vm1, %v6730_v44, %v6731_v11  ;;  %v606_v58 = vmul.f32 %v9229_v4, %v411_v60  ;;  %v8256_v44 = vld [vmem:[%s16157_s0 + $0x708] sm:$0x1] }
 0x118   :  { %v1657_v8 = vmul.f32 %v9264_v19, %v1462_v32  ;;  %v1660_v15 = vmul.f32 %v9264_v19, %v1465_v61  ;;  %v7082_v9 = vadd.f32 %v6732_v33, %v6023_v25  ;;  %v1072_v42 = vrot.slane %v597_v12, 1  ;;  %v8259_v32 = vld [vmem:[%s16157_s0 + $0x720] sm:$0xfe] }
 0x119   :  { %v1073_v57 = vrot.slane %v600_v10, 1  ;;  %v1081_v34 = vrot.slane %v603_v26, 1  ;;  %v1082_v21 = vrot.slane %v606_v58, 1  ;;  %v1663_v45 = vmul.f32 %v9264_v19, %v1468_v18 }
 0x11a   :  { %v1666_v50 = vmul.f32 %v9264_v19, %v1471_v30  ;;  %v2132_v53 = vrot.slane %v1657_v8, 2  ;;  %v7169_v2 = vpack.c.bf16 %v7082_v9, %v7079_v29  ;;  %v2133_v62 = vrot.slane %v1660_v15, 2  ;;  %v8262_v29 = vld [vmem:[%s16157_s0 + $0x738] sm:$0x1] }
 0x11b   :  { %v1074_v60 = vsel %vm801_vm0, %v1072_v42, %v1073_v57  ;;  %v2532_v49 = vmul.f32 %v9267_v22, %v120_v48  ;;  %v1083_v61 = vsel %vm801_vm0, %v1081_v34, %v1082_v21  ;;  %v2141_v39 = vrot.slane %v1663_v45, 2  ;;  %v8445_v48 = vld [vmem:[%s16157_s0 + $0x6f0] sm:$0xfc]  ;;  %v8454_v15 = vld [vmem:[%s16157_s0 + $0x738] sm:$0x3] }
 0x11c   :  { %v1276_v25 = vadd.f32 %v1074_v60, %v216_v43  ;;  %v2142_v11 = vrot.slane %v1666_v50, 2  ;;  %7247 = vmatpush.bf16.xpose.msra.mxu1 %v7169_v2  ;;  %v1279_v12 = vadd.f32 %v1083_v61, %v219_v14  ;;  %v2134_v10 = vsel %vm1861_vm1, %v2132_v53, %v2133_v62  ;;  %v8448_v43 = vld [vmem:[%s16157_s0 + $0x708] sm:$0x3]  ;;  %v8451_v14 = vld [vmem:[%s16157_s0 + $0x720] sm:$0xfc] }
 0x11d   :  { %v2535_v26 = vmul.f32 %v8070_v54, %v9267_v22  ;;  %v3009_v18 = vmul.f32 %v8253_v40, %v9270_v23  ;;  %v3012_v58 = vmul.f32 %v8256_v44, %v9270_v23  ;;  %v3015_v8 = vmul.f32 %v8259_v32, %v9270_v23  ;;  %v8550_v44 = vld [vmem:[%s16157_s0 + $0x750] sm:$0xff]  ;;  %v8733_v32 = vld [vmem:[%s16157_s0 + $0x720] sm:$0xfe] }
 0x11e   :  { %v2143_v30 = vsel %vm1861_vm1, %v2141_v39, %v2142_v11  ;;  %v2336_v33 = vadd.f32 %v2134_v10, %v1276_v25  ;;  %v3018_v42 = vmul.f32 %v8262_v29, %v9270_v23  ;;  %v4068_v34 = vmul.f32 %v8445_v48, %v9318_v56  ;;  %v8736_v11 = vld [vmem:[%s16157_s0 + $0x738] sm:$0x1]  ;;  %v8739_v29 = vld [vmem:[%s16157_s0 + $0x750] sm:$0xfe] }
 0x11f   :  { %v2339_v9 = vadd.f32 %v2143_v30, %v1279_v12  ;;  %v3483_v57 = vrot.slane %v3009_v18, 1  ;;  %v3484_v45 = vrot.slane %v3012_v58, 1  ;;  %v3492_v50 = vrot.slane %v3015_v8, 1  ;;  %v8742_v18 = vld [vmem:[%s16157_s0 + $0x768] sm:$0x1] }
 0x120   :  { %v2628_v21 = vadd.f32 %v2532_v49, %v2336_v33  ;;  %v4071_v53 = vmul.f32 %v8448_v43, %v9318_v56  ;;  %v3493_v2 = vrot.slane %v3018_v42, 1  ;;  %v4074_v60 = vmul.f32 %v8451_v14, %v9318_v56  ;;  %v8928_v8 = vld [vmem:[%s16157_s0 + $0x738] sm:$0x3] }
 0x121   :  { %v2631_v40 = vadd.f32 %v2535_v26, %v2339_v9  ;;  %v4077_v62 = vmul.f32 %v8454_v15, %v9318_v56  ;;  %v3485_v49 = vsel %vm801_vm0, %v3483_v57, %v3484_v45  ;;  %v4542_v61 = vrot.slane %v4068_v34, 2  ;;  %v8931_v57 = vld [vmem:[%s16157_s0 + $0x750] sm:$0xfc]  ;;  %v8934_v34 = vld [vmem:[%s16157_s0 + $0x768] sm:$0x3] }
 0x122   :  { %v4543_v25 = vrot.slane %v4071_v53, 2  ;;  %v4942_v39 = vmul.f32 %v8070_v54, %v9350_v27  ;;  %v3494_v48 = vsel %vm801_vm0, %v3492_v50, %v3493_v2  ;;  %v3687_v12 = vadd.f32 %v3485_v49, %v2628_v21  ;;  %v8925_v54 = vld [vmem:[%s16157_s0 + $0x720] sm:$0xfc] }
 0x123   :  { %v4551_v10 = vrot.slane %v4074_v60, 2  ;;  %v4552_v26 = vrot.slane %v4077_v62, 2  ;;  %v3690_v43 = vadd.f32 %v3494_v48, %v2631_v40  ;;  %v4945_v33 = vmul.f32 %v8550_v44, %v9350_v27  ;;  %v11144_v40 = vld [vmem:[%s16157_s0 + $0x2b0] sm:$0xff] }
 0x124   :  { %v4544_v30 = vsel %vm1861_vm1, %v4542_v61, %v4543_v25  ;;  %v5419_v58 = vmul.f32 %v8733_v32, %v9357_v31  ;;  %v5422_v9 = vmul.f32 %v8736_v11, %v9357_v31  ;;  %v5425_v42 = vmul.f32 %v8739_v29, %v9357_v31  ;;  %v68_v11 = vld [vmem:[%s16157_s0 + $0x2e0] sm:$0xff]  ;;  %v296_v29 = vld [vmem:[%s16157_s0 + $0x2b0] sm:$0xfe] }
 0x125   :  { %v4553_v14 = vsel %vm1861_vm1, %v4551_v10, %v4552_v26  ;;  %v4746_v15 = vadd.f32 %v4544_v30, %v3687_v12  ;;  %v5428_v45 = vmul.f32 %v8742_v18, %v9357_v31  ;;  %v6478_v53 = vmul.f32 %v10878_v5, %v8925_v54  ;;  %v299_v26 = vld [vmem:[%s16157_s0 + $0x2c8] sm:$0x1]  ;;  %v302_v18 = vld [vmem:[%s16157_s0 + $0x2e0] sm:$0xfe] }
 0x126   :  { %v4749_v21 = vadd.f32 %v4553_v14, %v3690_v43  ;;  %v5893_v50 = vrot.slane %v5419_v58, 1  ;;  %v5894_v60 = vrot.slane %v5422_v9, 1  ;;  %v5902_v62 = vrot.slane %v5425_v42, 1  ;;  %v305_v58 = vld [vmem:[%s16157_s0 + $0x2f8] sm:$0x1] }
 0x127   :  { %v5038_v2 = vadd.f32 %v4942_v39, %v4746_v15  ;;  %v6481_v44 = vmul.f32 %v10878_v5, %v8928_v8  ;;  %v5903_v49 = vrot.slane %v5428_v45, 1  ;;  %v6484_v61 = vmul.f32 %v10878_v5, %v8931_v57  ;;  %v1356_v8 = vld [vmem:[%s16157_s0 + $0x2b0] sm:$0xfc]  ;;  %v1359_v57 = vld [vmem:[%s16157_s0 + $0x2c8] sm:$0x3] }
 0x128   :  { %v5041_v32 = vadd.f32 %v4945_v33, %v4749_v21  ;;  %v6487_v25 = vmul.f32 %v10878_v5, %v8934_v34  ;;  %v5895_v39 = vsel %vm801_vm0, %v5893_v50, %v5894_v60  ;;  %v6952_v48 = vrot.slane %v6478_v53, 2  ;;  %v1362_v34 = vld [vmem:[%s16157_s0 + $0x2e0] sm:$0xfc] }
 0x129   :  { %v6953_v12 = vrot.slane %v6481_v44, 2  ;;  %v164_v10 = vmul.f32 %v10601_v0, %v11144_v40  ;;  %v5904_v54 = vsel %vm801_vm0, %v5902_v62, %v5903_v49  ;;  %v6097_v43 = vadd.f32 %v5895_v39, %v5038_v2  ;;  %v1365_v2 = vld [vmem:[%s16157_s0 + $0x2f8] sm:$0x3] }
 0x12a   :  { %v6961_v30 = vrot.slane %v6484_v61, 2  ;;  %v6962_v33 = vrot.slane %v6487_v25, 2  ;;  %v6100_v14 = vadd.f32 %v5904_v54, %v5041_v32  ;;  %v167_v9 = vmul.f32 %v10601_v0, %v68_v11  ;;  %v8150_v54 = vld [vmem:[%s16157_s0 + $0x2f8] sm:$0x1] }
 0x12b   :  { %v6954_v15 = vsel %vm1861_vm1, %v6952_v48, %v6953_v12  ;;  %v491_v42 = vmul.f32 %v10625_v52, %v296_v29  ;;  %v494_v50 = vmul.f32 %v10625_v52, %v299_v26  ;;  %v497_v53 = vmul.f32 %v10625_v52, %v302_v18  ;;  %v8147_v18 = vld [vmem:[%s16157_s0 + $0x2e0] sm:$0xfe] }
 0x12c   :  { %v6963_v21 = vsel %vm1861_vm1, %v6961_v30, %v6962_v33  ;;  %v7156_v45 = vadd.f32 %v6954_v15, %v6097_v43  ;;  %v500_v62 = vmul.f32 %v10625_v52, %v305_v58  ;;  %v1551_v32 = vmul.f32 %v10634_v35, %v1356_v8  ;;  %v8153_v8 = vld [vmem:[%s16157_s0 + $0x310] sm:$0xfe] }
 0x12d   :  { %v7159_v60 = vadd.f32 %v6963_v21, %v6100_v14  ;;  %v916_v44 = vrot.slane %v491_v42, 1  ;;  %v917_v49 = vrot.slane %v494_v50, 1  ;;  %v925_v61 = vrot.slane %v497_v53, 1  ;;  %v8156_v14 = vld [vmem:[%s16157_s0 + $0x328] sm:$0x1] }
 0x12e   :  { %v1554_v25 = vmul.f32 %v10634_v35, %v1359_v57  ;;  %v1557_v29 = vmul.f32 %v10634_v35, %v1362_v34  ;;  %v926_v48 = vrot.slane %v500_v62, 1  ;;  %v1560_v12 = vmul.f32 %v10634_v35, %v1365_v2  ;;  %v8342_v2 = vld [vmem:[%s16157_s0 + $0x2f8] sm:$0x3] }
 0x12f   :  { %v7207_v39 = vpack.c.bf16 %v7159_v60, %v7156_v45  ;;  %v1976_v26 = vrot.slane %v1551_v32, 2  ;;  %v918_v43 = vsel %vm801_vm0, %v916_v44, %v917_v49  ;;  %v2480_v58 = vmul.f32 %v10637_v16, %v68_v11  ;;  %v8339_v11 = vld [vmem:[%s16157_s0 + $0x2e0] sm:$0xfc]  ;;  %v8348_v44 = vld [vmem:[%s16157_s0 + $0x328] sm:$0x3] }
 0x130   :  { %v1977_v30 = vrot.slane %v1554_v25, 2  ;;  %v1985_v33 = vrot.slane %v1557_v29, 2  ;;  %v927_v15 = vsel %vm801_vm0, %v925_v61, %v926_v48  ;;  %v1224_v42 = vadd.f32 %v918_v43, %v164_v10 }
 0x131   :  { %7268 = vmatpush.bf16.xpose.msra.mxu3 %v7207_v39  ;;  %v1986_v57 = vrot.slane %v1560_v12, 2  ;;  %v2483_v34 = vmul.f32 %v10637_v16, %v10594_v41  ;;  %v1227_v21 = vadd.f32 %v927_v15, %v167_v9  ;;  %v2903_v50 = vmul.f32 %v8147_v18, %v10640_v37  ;;  %v8345_v9 = vld [vmem:[%s16157_s0 + $0x310] sm:$0xfc] }
 0x132   :  { %v1978_v45 = vsel %vm1861_vm1, %v1976_v26, %v1977_v30  ;;  %v2906_v53 = vmul.f32 %v8150_v54, %v10640_v37  ;;  %v2909_v41 = vmul.f32 %v8153_v8, %v10640_v37  ;;  %v2912_v62 = vmul.f32 %v8156_v14, %v10640_v37  ;;  %v8495_v26 = vld [vmem:[%s16157_s0 + $0x310] sm:$0xff]  ;;  %v8630_v8 = vld [vmem:[%s16157_s0 + $0x328] sm:$0x1] }
 0x133   :  { %v1987_v10 = vsel %vm1861_vm1, %v1985_v33, %v1986_v57  ;;  %v2284_v60 = vadd.f32 %v1978_v45, %v1224_v42  ;;  %v3327_v49 = vrot.slane %v2903_v50, 1  ;;  %v3962_v25 = vmul.f32 %v8339_v11, %v10643_v47  ;;  %v8498_v33 = vld [vmem:[%s16157_s0 + $0x340] sm:$0xff]  ;;  %v8636_v11 = vld [vmem:[%s16157_s0 + $0x358] sm:$0x1] }
 0x134   :  { %v2287_v32 = vadd.f32 %v1987_v10, %v1227_v21  ;;  %v3328_v61 = vrot.slane %v2906_v53, 1  ;;  %v3336_v39 = vrot.slane %v2909_v41, 1  ;;  %v3337_v48 = vrot.slane %v2912_v62, 1 }
 0x135   :  { %v2576_v29 = vadd.f32 %v2480_v58, %v2284_v60  ;;  %v3965_v12 = vmul.f32 %v8342_v2, %v10643_v47  ;;  %v3968_v43 = vmul.f32 %v8345_v9, %v10643_v47  ;;  %v3971_v30 = vmul.f32 %v8348_v44, %v10643_v47  ;;  %v8627_v58 = vld [vmem:[%s16157_s0 + $0x310] sm:$0xfe]  ;;  %v8822_v9 = vld [vmem:[%s16157_s0 + $0x328] sm:$0x3] }
 0x136   :  { %v2579_v18 = vadd.f32 %v2483_v34, %v2287_v32  ;;  %v3329_v54 = vsel %vm801_vm0, %v3327_v49, %v3328_v61  ;;  %v3338_v14 = vsel %vm801_vm0, %v3336_v39, %v3337_v48  ;;  %v4386_v42 = vrot.slane %v3962_v25, 2  ;;  %v8633_v34 = vld [vmem:[%s16157_s0 + $0x340] sm:$0xfe]  ;;  %v8819_v2 = vld [vmem:[%s16157_s0 + $0x310] sm:$0xfc] }
 0x137   :  { %v3635_v15 = vadd.f32 %v3329_v54, %v2576_v29  ;;  %v4387_v57 = vrot.slane %v3965_v12, 2  ;;  %v4395_v45 = vrot.slane %v3968_v43, 2  ;;  %v4396_v50 = vrot.slane %v3971_v30, 2  ;;  %v8825_v25 = vld [vmem:[%s16157_s0 + $0x340] sm:$0xfc] }
 0x138   :  { %v3638_v21 = vadd.f32 %v3338_v14, %v2579_v18  ;;  %v4890_v53 = vmul.f32 %v8495_v26, %v10727_v36  ;;  %v4893_v60 = vmul.f32 %v8498_v33, %v10727_v36  ;;  %v5313_v41 = vmul.f32 %v8627_v58, %v10733_v38  ;;  %v8828_v29 = vld [vmem:[%s16157_s0 + $0x358] sm:$0x3]  ;;  %v11275_v33 = vld [vmem:[%s16157_s0 + $0x60] sm:$0xff] }
 0x139   :  { %v4388_v10 = vsel %vm1861_vm1, %v4386_v42, %v4387_v57  ;;  %v5316_v62 = vmul.f32 %v8630_v8, %v10733_v38  ;;  %v4397_v44 = vsel %vm1861_vm1, %v4395_v45, %v4396_v50  ;;  %v5319_v49 = vmul.f32 %v8633_v34, %v10733_v38  ;;  %v36_v42 = vld [vmem:[%s16157_s0 + $0x90] sm:$0xff]  ;;  %v234_v57 = vld [vmem:[%s16157_s0 + $0x60] sm:$0xfe]  ;;  %v237_v34 = vld [vmem:[%s16157_s0 + $0x78] sm:$0x1] }
 0x13a   :  { %v4694_v32 = vadd.f32 %v4388_v10, %v3635_v15  ;;  %v5322_v61 = vmul.f32 %v8636_v11, %v10733_v38  ;;  %v4697_v39 = vadd.f32 %v4397_v44, %v3638_v21  ;;  %v5737_v48 = vrot.slane %v5313_v41, 1 }
 0x13b   :  { %v5738_v12 = vrot.slane %v5316_v62, 1  ;;  %v6372_v26 = vmul.f32 %v10701_v51, %v8819_v2  ;;  %v5746_v54 = vrot.slane %v5319_v49, 1  ;;  %v6375_v30 = vmul.f32 %v10701_v51, %v8822_v9  ;;  %v1294_v62 = vld [vmem:[%s16157_s0 + $0x60] sm:$0xfc] }
 0x13c   :  { %v4986_v18 = vadd.f32 %v4890_v53, %v4694_v32  ;;  %v5747_v43 = vrot.slane %v5322_v61, 1  ;;  %v4989_v58 = vadd.f32 %v4893_v60, %v4697_v39  ;;  %v6378_v14 = vmul.f32 %v10701_v51, %v8825_v25  ;;  %v243_v53 = vld [vmem:[%s16157_s0 + $0xa8] sm:$0x1]  ;;  %v1297_v61 = vld [vmem:[%s16157_s0 + $0x78] sm:$0x3] }
 0x13d   :  { %v5739_v8 = vsel %vm801_vm0, %v5737_v48, %v5738_v12  ;;  %v6381_v15 = vmul.f32 %v10701_v51, %v8828_v29  ;;  %v6796_v45 = vrot.slane %v6372_v26, 2  ;;  %v6797_v50 = vrot.slane %v6375_v30, 2  ;;  %v240_v51 = vld [vmem:[%s16157_s0 + $0x90] sm:$0xfe]  ;;  %v1303_v26 = vld [vmem:[%s16157_s0 + $0xa8] sm:$0x3] }
 0x13e   :  { %v5748_v11 = vsel %vm801_vm0, %v5746_v54, %v5747_v43  ;;  %v6045_v21 = vadd.f32 %v5739_v8, %v4986_v18  ;;  %v6805_v10 = vrot.slane %v6378_v14, 2  ;;  %v132_v41 = vmul.f32 %v9226_v3, %v11275_v33  ;;  %v1300_v25 = vld [vmem:[%s16157_s0 + $0x90] sm:$0xfc] }
 0x13f   :  { %v6048_v2 = vadd.f32 %v5748_v11, %v4989_v58  ;;  %v6806_v60 = vrot.slane %v6381_v15, 2  ;;  %v6798_v9 = vsel %vm1861_vm1, %v6796_v45, %v6797_v50  ;;  %v135_v44 = vmul.f32 %v9226_v3, %v36_v42  ;;  %v8088_v50 = vld [vmem:[%s16157_s0 + $0xa8] sm:$0x1] }
 0x140   :  { %v429_v32 = vmul.f32 %v9229_v4, %v234_v57  ;;  %v432_v49 = vmul.f32 %v9229_v4, %v237_v34  ;;  %v7104_v39 = vadd.f32 %v6798_v9, %v6045_v21  ;;  %v435_v48 = vmul.f32 %v9229_v4, %v240_v51  ;;  %v8085_v57 = vld [vmem:[%s16157_s0 + $0x90] sm:$0xfe]  ;;  %v8091_v51 = vld [vmem:[%s16157_s0 + $0xc0] sm:$0xfe] }
 0x141   :  { %v6807_v29 = vsel %vm1861_vm1, %v6805_v10, %v6806_v60  ;;  %v438_v12 = vmul.f32 %v9229_v4, %v243_v53  ;;  %v1489_v30 = vmul.f32 %v9264_v19, %v1294_v62  ;;  %v1492_v14 = vmul.f32 %v9264_v19, %v1297_v61  ;;  %v8094_v62 = vld [vmem:[%s16157_s0 + $0xd8] sm:$0x1]  ;;  %v8277_v9 = vld [vmem:[%s16157_s0 + $0x90] sm:$0xfc] }
 0x142   :  { %v7107_v18 = vadd.f32 %v6807_v29, %v6048_v2  ;;  %v820_v54 = vrot.slane %v429_v32, 1  ;;  %v821_v43 = vrot.slane %v432_v49, 1  ;;  %v829_v58 = vrot.slane %v435_v48, 1 }
 0x143   :  { %v830_v8 = vrot.slane %v438_v12, 1  ;;  %v1495_v15 = vmul.f32 %v9264_v19, %v1300_v25  ;;  %v1498_v21 = vmul.f32 %v9264_v19, %v1303_v26  ;;  %v1880_v45 = vrot.slane %v1489_v30, 2  ;;  %v8280_v12 = vld [vmem:[%s16157_s0 + $0xa8] sm:$0x3] }
 0x144   :  { %v7182_v34 = vpack.c.bf16 %v7107_v18, %v7104_v39  ;;  %v822_v11 = vsel %vm801_vm0, %v820_v54, %v821_v43  ;;  %v1881_v10 = vrot.slane %v1492_v14, 2  ;;  %v2448_v61 = vmul.f32 %v9267_v22, %v36_v42  ;;  %v8286_v18 = vld [vmem:[%s16157_s0 + $0xd8] sm:$0x3] }
 0x145   :  { %v831_v53 = vsel %vm801_vm0, %v829_v58, %v830_v8  ;;  %v1192_v2 = vadd.f32 %v822_v11, %v132_v41  ;;  %v1889_v60 = vrot.slane %v1495_v15, 2  ;;  %v1890_v49 = vrot.slane %v1498_v21, 2  ;;  %v8463_v11 = vld [vmem:[%s16157_s0 + $0xc0] sm:$0xff]  ;;  %v8466_v21 = vld [vmem:[%s16157_s0 + $0xf0] sm:$0xff] }
 0x146   :  { %7256 = vmatpush.bf16.xpose.msra.mxu2 %v7182_v34  ;;  %v1195_v32 = vadd.f32 %v831_v53, %v135_v44  ;;  %v2451_v25 = vmul.f32 %v9267_v22, %v10755_v20  ;;  %v1882_v41 = vsel %vm1861_vm1, %v1880_v45, %v1881_v10  ;;  %v2841_v29 = vmul.f32 %v8085_v57, %v9270_v23  ;;  %v8283_v44 = vld [vmem:[%s16157_s0 + $0xc0] sm:$0xfc]  ;;  %v8568_v10 = vld [vmem:[%s16157_s0 + $0xd8] sm:$0x1] }
 0x147   :  { %v2844_v39 = vmul.f32 %v8088_v50, %v9270_v23  ;;  %v2847_v48 = vmul.f32 %v8091_v51, %v9270_v23  ;;  %v1891_v42 = vsel %vm1861_vm1, %v1889_v60, %v1890_v49  ;;  %v2252_v26 = vadd.f32 %v1882_v41, %v1192_v2  ;;  %v8565_v45 = vld [vmem:[%s16157_s0 + $0xc0] sm:$0xfe]  ;;  %v8571_v60 = vld [vmem:[%s16157_s0 + $0xf0] sm:$0xfe] }
 0x148   :  { %v2850_v20 = vmul.f32 %v8094_v62, %v9270_v23  ;;  %v3900_v54 = vmul.f32 %v8277_v9, %v9318_v56  ;;  %v2255_v43 = vadd.f32 %v1891_v42, %v1195_v32  ;;  %v3231_v30 = vrot.slane %v2841_v29, 1 }
 0x149   :  { %v3232_v58 = vrot.slane %v2844_v39, 1  ;;  %v3240_v8 = vrot.slane %v2847_v48, 1  ;;  %v2544_v14 = vadd.f32 %v2448_v61, %v2252_v26  ;;  %v3903_v57 = vmul.f32 %v8280_v12, %v9318_v56  ;;  %v8574_v61 = vld [vmem:[%s16157_s0 + $0x108] sm:$0x1] }
 0x14a   :  { %v3241_v15 = vrot.slane %v2850_v20, 1  ;;  %v3906_v34 = vmul.f32 %v8283_v44, %v9318_v56  ;;  %v2547_v50 = vadd.f32 %v2451_v25, %v2255_v43  ;;  %v3909_v53 = vmul.f32 %v8286_v18, %v9318_v56  ;;  %v8757_v25 = vld [vmem:[%s16157_s0 + $0xc0] sm:$0xfc]  ;;  %v8760_v20 = vld [vmem:[%s16157_s0 + $0xd8] sm:$0x3] }
 0x14b   :  { %v3233_v51 = vsel %vm801_vm0, %v3231_v30, %v3232_v58  ;;  %v4290_v2 = vrot.slane %v3900_v54, 2  ;;  %v4291_v32 = vrot.slane %v3903_v57, 2  ;;  %v4858_v39 = vmul.f32 %v8463_v11, %v9350_v27  ;;  %v8763_v18 = vld [vmem:[%s16157_s0 + $0xf0] sm:$0xfc]  ;;  %v8766_v58 = vld [vmem:[%s16157_s0 + $0x108] sm:$0x3] }
 0x14c   :  { %v3242_v62 = vsel %vm801_vm0, %v3240_v8, %v3241_v15  ;;  %v3603_v9 = vadd.f32 %v3233_v51, %v2544_v14  ;;  %v4299_v49 = vrot.slane %v3906_v34, 2  ;;  %v4300_v29 = vrot.slane %v3909_v53, 2  ;;  %v11406_v51 = vld [vmem:[%s16157_s0 + $0x68] sm:$0xff]  ;;  %v37_v53 = vld [vmem:[%s16157_s0 + $0x98] sm:$0xff] }
 0x14d   :  { %v3606_v41 = vadd.f32 %v3242_v62, %v2547_v50  ;;  %v4861_v48 = vmul.f32 %v8466_v21, %v9350_v27  ;;  %v4292_v12 = vsel %vm1861_vm1, %v4290_v2, %v4291_v32  ;;  %v5251_v44 = vmul.f32 %v8565_v45, %v9357_v31  ;;  %v235_v2 = vld [vmem:[%s16157_s0 + $0x68] sm:$0xfe]  ;;  %v238_v32 = vld [vmem:[%s16157_s0 + $0x80] sm:$0x1] }
 0x14e   :  { %v5254_v42 = vmul.f32 %v8568_v10, %v9357_v31  ;;  %v5257_v26 = vmul.f32 %v8571_v60, %v9357_v31  ;;  %v4301_v54 = vsel %vm1861_vm1, %v4299_v49, %v4300_v29  ;;  %v4662_v43 = vadd.f32 %v4292_v12, %v3603_v9  ;;  %v241_v49 = vld [vmem:[%s16157_s0 + $0x98] sm:$0xfe] }
 0x14f   :  { %v5260_v30 = vmul.f32 %v8574_v61, %v9357_v31  ;;  %v6310_v8 = vmul.f32 %v10878_v5, %v8757_v25  ;;  %v4665_v14 = vadd.f32 %v4301_v54, %v3606_v41  ;;  %v5641_v15 = vrot.slane %v5251_v44, 1 }
 0x150   :  { %v5642_v57 = vrot.slane %v5254_v42, 1  ;;  %v5650_v34 = vrot.slane %v5257_v26, 1  ;;  %v4954_v11 = vadd.f32 %v4858_v39, %v4662_v43  ;;  %v6313_v45 = vmul.f32 %v10878_v5, %v8760_v20  ;;  %v244_v39 = vld [vmem:[%s16157_s0 + $0xb0] sm:$0x1]  ;;  %v1298_v43 = vld [vmem:[%s16157_s0 + $0x80] sm:$0x3] }
 0x151   :  { %v5651_v21 = vrot.slane %v5260_v30, 1  ;;  %v6316_v50 = vmul.f32 %v10878_v5, %v8763_v18  ;;  %v4957_v10 = vadd.f32 %v4861_v48, %v4665_v14  ;;  %v6319_v62 = vmul.f32 %v10878_v5, %v8766_v58  ;;  %v1295_v5 = vld [vmem:[%s16157_s0 + $0x68] sm:$0xfc]  ;;  %v1301_v30 = vld [vmem:[%s16157_s0 + $0x98] sm:$0xfc] }
 0x152   :  { %v5643_v60 = vsel %vm801_vm0, %v5641_v15, %v5642_v57  ;;  %v6700_v9 = vrot.slane %v6310_v8, 2  ;;  %v6701_v41 = vrot.slane %v6313_v45, 2  ;;  %v133_v44 = vmul.f32 %v9403_v63, %v11406_v51  ;;  %v1304_v58 = vld [vmem:[%s16157_s0 + $0xb0] sm:$0x3] }
 0x153   :  { %v5652_v61 = vsel %vm801_vm0, %v5650_v34, %v5651_v21  ;;  %v6013_v25 = vadd.f32 %v5643_v60, %v4954_v11  ;;  %v6709_v29 = vrot.slane %v6316_v50, 2  ;;  %v6710_v12 = vrot.slane %v6319_v62, 2  ;;  %v8086_v62 = vld [vmem:[%s16157_s0 + $0x98] sm:$0xfe] }
 0x154   :  { %v6016_v48 = vadd.f32 %v5652_v61, %v4957_v10  ;;  %v136_v42 = vmul.f32 %v9403_v63, %v37_v53  ;;  %v6702_v26 = vsel %vm1861_vm1, %v6700_v9, %v6701_v41  ;;  %v430_v20 = vmul.f32 %v9409_v6, %v235_v2  ;;  %v8089_v9 = vld [vmem:[%s16157_s0 + $0xb0] sm:$0x1]  ;;  %v8092_v41 = vld [vmem:[%s16157_s0 + $0xc8] sm:$0xfe] }
 0x155   :  { %v433_v18 = vmul.f32 %v9409_v6, %v238_v32  ;;  %v436_v54 = vmul.f32 %v9409_v6, %v241_v49  ;;  %v6711_v8 = vsel %vm1861_vm1, %v6709_v29, %v6710_v12  ;;  %v7072_v14 = vadd.f32 %v6702_v26, %v6013_v25  ;;  %v8095_v29 = vld [vmem:[%s16157_s0 + $0xe0] sm:$0x1]  ;;  %v8278_v26 = vld [vmem:[%s16157_s0 + $0x98] sm:$0xfc] }
 0x156   :  { %v439_v15 = vmul.f32 %v9409_v6, %v244_v39  ;;  %v1490_v57 = vmul.f32 %v9420_v13, %v1295_v5  ;;  %v7075_v34 = vadd.f32 %v6711_v8, %v6016_v48  ;;  %v823_v11 = vrot.slane %v430_v20, 1  ;;  %v8281_v8 = vld [vmem:[%s16157_s0 + $0xb0] sm:$0x3] }
 0x157   :  { %v824_v21 = vrot.slane %v433_v18, 1  ;;  %v832_v45 = vrot.slane %v436_v54, 1  ;;  %v1493_v2 = vmul.f32 %v9420_v13, %v1298_v43  ;;  %v1496_v10 = vmul.f32 %v9420_v13, %v1301_v30 }
 0x158   :  { %v833_v50 = vrot.slane %v439_v15, 1  ;;  %v1499_v60 = vmul.f32 %v9420_v13, %v1304_v58  ;;  %v7165_v32 = vpack.c.bf16 %v7075_v34, %v7072_v14  ;;  %v1883_v61 = vrot.slane %v1490_v57, 2 }
 0x159   :  { %v825_v49 = vsel %vm801_vm0, %v823_v11, %v824_v21  ;;  %v2449_v25 = vmul.f32 %v9449_v46, %v37_v53  ;;  %v1884_v48 = vrot.slane %v1493_v2, 2  ;;  %v1892_v12 = vrot.slane %v1496_v10, 2 }
 0x15a   :  { %v834_v39 = vsel %vm801_vm0, %v832_v45, %v833_v50  ;;  %v1193_v5 = vadd.f32 %v825_v49, %v133_v44  ;;  %7235 = vmatpush.bf16.xpose.msra.mxu0 %v7165_v32  ;;  %v1893_v53 = vrot.slane %v1499_v60, 2  ;;  %v2452_v18 = vmul.f32 %v9449_v46, %v10886_v1  ;;  %v8287_v1 = vld [vmem:[%s16157_s0 + $0xe0] sm:$0x3]  ;;  %v8467_v32 = vld [vmem:[%s16157_s0 + $0xf8] sm:$0xff]  ;;  %v8566_v49 = vld [vmem:[%s16157_s0 + $0xc8] sm:$0xfe] }
 0x15b   :  { %v1196_v20 = vadd.f32 %v834_v39, %v136_v42  ;;  %v2842_v54 = vmul.f32 %v8086_v62, %v9462_v55  ;;  %v1885_v43 = vsel %vm1861_vm1, %v1883_v61, %v1884_v48  ;;  %v2845_v30 = vmul.f32 %v8089_v9, %v9462_v55  ;;  %v8284_v42 = vld [vmem:[%s16157_s0 + $0xc8] sm:$0xfc]  ;;  %v8569_v39 = vld [vmem:[%s16157_s0 + $0xe0] sm:$0x1] }
 0x15c   :  { %v2848_v44 = vmul.f32 %v8092_v41, %v9462_v55  ;;  %v2851_v58 = vmul.f32 %v8095_v29, %v9462_v55  ;;  %v1894_v14 = vsel %vm1861_vm1, %v1892_v12, %v1893_v53  ;;  %v2253_v15 = vadd.f32 %v1885_v43, %v1193_v5  ;;  %v8464_v9 = vld [vmem:[%s16157_s0 + $0xc8] sm:$0xff]  ;;  %v8572_v5 = vld [vmem:[%s16157_s0 + $0xf8] sm:$0xfe]  ;;  %v8575_v53 = vld [vmem:[%s16157_s0 + $0x110] sm:$0x1] }
 0x15d   :  { %v3234_v57 = vrot.slane %v2842_v54, 1  ;;  %v3901_v34 = vmul.f32 %v8278_v26, %v9486_v17  ;;  %v2256_v11 = vadd.f32 %v1894_v14, %v1196_v20  ;;  %v3235_v21 = vrot.slane %v2845_v30, 1 }
 0x15e   :  { %v3243_v45 = vrot.slane %v2848_v44, 1  ;;  %v3244_v50 = vrot.slane %v2851_v58, 1  ;;  %v2545_v2 = vadd.f32 %v2449_v25, %v2253_v15  ;;  %v3904_v10 = vmul.f32 %v8281_v8, %v9486_v17  ;;  %v8758_v44 = vld [vmem:[%s16157_s0 + $0xc8] sm:$0xfc]  ;;  %v8761_v58 = vld [vmem:[%s16157_s0 + $0xe0] sm:$0x3] }
 0x15f   :  { %v3907_v60 = vmul.f32 %v8284_v42, %v9486_v17  ;;  %v3910_v62 = vmul.f32 %v8287_v1, %v9486_v17  ;;  %v2548_v61 = vadd.f32 %v2452_v18, %v2256_v11  ;;  %v3236_v25 = vsel %vm801_vm0, %v3234_v57, %v3235_v21  ;;  %v8764_v15 = vld [vmem:[%s16157_s0 + $0xf8] sm:$0xfc] }
 0x160   :  { %v3245_v41 = vsel %vm801_vm0, %v3243_v45, %v3244_v50  ;;  %v4293_v29 = vrot.slane %v3901_v34, 2  ;;  %v3604_v48 = vadd.f32 %v3236_v25, %v2545_v2  ;;  %v4294_v12 = vrot.slane %v3904_v10, 2  ;;  %v8767_v45 = vld [vmem:[%s16157_s0 + $0x110] sm:$0x3] }
 0x161   :  { %v4302_v26 = vrot.slane %v3907_v60, 2  ;;  %v4303_v20 = vrot.slane %v3910_v62, 2  ;;  %v3607_v18 = vadd.f32 %v3245_v41, %v2548_v61  ;;  %v4859_v54 = vmul.f32 %v8464_v9, %v9489_v24  ;;  %v11535_v62 = vld [vmem:[%s16157_s0 + $0x660] sm:$0xff]  ;;  %v114_v25 = vld [vmem:[%s16157_s0 + $0x690] sm:$0xff] }
 0x162   :  { %v4862_v43 = vmul.f32 %v8467_v32, %v9489_v24  ;;  %v5252_v30 = vmul.f32 %v8566_v49, %v9532_v59  ;;  %v4295_v8 = vsel %vm1861_vm1, %v4293_v29, %v4294_v12  ;;  %v5255_v1 = vmul.f32 %v8569_v39, %v9532_v59  ;;  %v390_v41 = vld [vmem:[%s16157_s0 + $0x660] sm:$0xfe]  ;;  %v393_v29 = vld [vmem:[%s16157_s0 + $0x678] sm:$0x1] }
 0x163   :  { %v4304_v42 = vsel %vm1861_vm1, %v4302_v26, %v4303_v20  ;;  %v5258_v14 = vmul.f32 %v8572_v5, %v9532_v59  ;;  %v4663_v57 = vadd.f32 %v4295_v8, %v3604_v48  ;;  %v5261_v11 = vmul.f32 %v8575_v53, %v9532_v59  ;;  %v396_v26 = vld [vmem:[%s16157_s0 + $0x690] sm:$0xfe]  ;;  %v399_v20 = vld [vmem:[%s16157_s0 + $0x6a8] sm:$0x1] }
 0x164   :  { %v4666_v34 = vadd.f32 %v4304_v42, %v3607_v18  ;;  %v5644_v21 = vrot.slane %v5252_v30, 1  ;;  %v5645_v50 = vrot.slane %v5255_v1, 1  ;;  %v6311_v10 = vmul.f32 %v11009_v28, %v8758_v44  ;;  %v1453_v30 = vld [vmem:[%s16157_s0 + $0x678] sm:$0x3] }
 0x165   :  { %v5653_v2 = vrot.slane %v5258_v14, 1  ;;  %v6314_v60 = vmul.f32 %v11009_v28, %v8761_v58  ;;  %v4955_v9 = vadd.f32 %v4859_v54, %v4663_v57  ;;  %v5654_v49 = vrot.slane %v5261_v11, 1  ;;  %v1459_v11 = vld [vmem:[%s16157_s0 + $0x6a8] sm:$0x3] }
 0x166   :  { %v4958_v32 = vadd.f32 %v4862_v43, %v4666_v34  ;;  %v6317_v61 = vmul.f32 %v11009_v28, %v8764_v15  ;;  %v5646_v39 = vsel %vm801_vm0, %v5644_v21, %v5645_v50  ;;  %v6320_v5 = vmul.f32 %v11009_v28, %v8767_v45  ;;  %v1450_v28 = vld [vmem:[%s16157_s0 + $0x660] sm:$0xfc]  ;;  %v1456_v34 = vld [vmem:[%s16157_s0 + $0x690] sm:$0xfc] }
 0x167   :  { %v6703_v48 = vrot.slane %v6311_v10, 2  ;;  %v6704_v12 = vrot.slane %v6314_v60, 2  ;;  %v5655_v53 = vsel %vm801_vm0, %v5653_v2, %v5654_v49  ;;  %v6014_v18 = vadd.f32 %v5646_v39, %v4955_v9  ;;  %v8241_v39 = vld [vmem:[%s16157_s0 + $0x690] sm:$0xfe] }
 0x168   :  { %v6712_v54 = vrot.slane %v6317_v61, 2  ;;  %v210_v43 = vmul.f32 %v9226_v3, %v11535_v62  ;;  %v6017_v44 = vadd.f32 %v5655_v53, %v4958_v32  ;;  %v6713_v8 = vrot.slane %v6320_v5, 2  ;;  %v8247_v53 = vld [vmem:[%s16157_s0 + $0x6c0] sm:$0xfe] }
 0x169   :  { %v6705_v58 = vsel %vm1861_vm1, %v6703_v48, %v6704_v12  ;;  %v213_v42 = vmul.f32 %v9226_v3, %v114_v25  ;;  %v585_v14 = vmul.f32 %v9229_v4, %v390_v41  ;;  %v588_v15 = vmul.f32 %v9229_v4, %v393_v29 }
 0x16a   :  { %v7073_v1 = vadd.f32 %v6705_v58, %v6014_v18  ;;  %v591_v57 = vmul.f32 %v9229_v4, %v396_v26  ;;  %v6714_v21 = vsel %vm1861_vm1, %v6712_v54, %v6713_v8  ;;  %v594_v45 = vmul.f32 %v9229_v4, %v399_v20  ;;  %v8244_v20 = vld [vmem:[%s16157_s0 + $0x6a8] sm:$0x1] }
 0x16b   :  { %v1645_v50 = vmul.f32 %v9264_v19, %v1450_v28  ;;  %v1648_v2 = vmul.f32 %v9264_v19, %v1453_v30  ;;  %v7076_v10 = vadd.f32 %v6714_v21, %v6017_v44  ;;  %v1054_v60 = vrot.slane %v585_v14, 1  ;;  %v8250_v44 = vld [vmem:[%s16157_s0 + $0x6d8] sm:$0x1] }
 0x16c   :  { %v1055_v9 = vrot.slane %v588_v15, 1  ;;  %v1063_v32 = vrot.slane %v591_v57, 1  ;;  %v1064_v49 = vrot.slane %v594_v45, 1  ;;  %v1651_v61 = vmul.f32 %v9264_v19, %v1456_v34 }
 0x16d   :  { %v1654_v41 = vmul.f32 %v9264_v19, %v1459_v11  ;;  %v2114_v29 = vrot.slane %v1645_v50, 2  ;;  %v7166_v5 = vpack.c.bf16 %v7076_v10, %v7073_v1  ;;  %v2115_v12 = vrot.slane %v1648_v2, 2  ;;  %v8541_v10 = vld [vmem:[%s16157_s0 + $0x6c0] sm:$0xff] }
 0x16e   :  { %v1056_v48 = vsel %vm801_vm0, %v1054_v60, %v1055_v9  ;;  %v2526_v26 = vmul.f32 %v9267_v22, %v114_v25  ;;  %v1065_v18 = vsel %vm801_vm0, %v1063_v32, %v1064_v49  ;;  %v2123_v28 = vrot.slane %v1651_v61, 2  ;;  %v8433_v25 = vld [vmem:[%s16157_s0 + $0x690] sm:$0xfc] }
 0x16f   :  { %v1270_v54 = vadd.f32 %v1056_v48, %v210_v43  ;;  %v2124_v30 = vrot.slane %v1654_v41, 2  ;;  %7248 = vmatpush.bf16.xpose.msra.mxu1 %v7166_v5  ;;  %v1273_v58 = vadd.f32 %v1065_v18, %v213_v42  ;;  %v2116_v8 = vsel %vm1861_vm1, %v2114_v29, %v2115_v12  ;;  %v8436_v43 = vld [vmem:[%s16157_s0 + $0x6a8] sm:$0x3]  ;;  %v8439_v42 = vld [vmem:[%s16157_s0 + $0x6c0] sm:$0xfc]  ;;  %v8544_v5 = vld [vmem:[%s16157_s0 + $0x6f0] sm:$0xff] }
 0x170   :  { %v2529_v1 = vmul.f32 %v9267_v22, %v11016_v7  ;;  %v2997_v14 = vmul.f32 %v8241_v39, %v9270_v23  ;;  %v3000_v34 = vmul.f32 %v8244_v20, %v9270_v23  ;;  %v3003_v11 = vmul.f32 %v8247_v53, %v9270_v23  ;;  %v8442_v7 = vld [vmem:[%s16157_s0 + $0x6d8] sm:$0x3]  ;;  %v8721_v48 = vld [vmem:[%s16157_s0 + $0x6c0] sm:$0xfe] }
 0x171   :  { %v2125_v15 = vsel %vm1861_vm1, %v2123_v28, %v2124_v30  ;;  %v2330_v57 = vadd.f32 %v2116_v8, %v1270_v54  ;;  %v3006_v45 = vmul.f32 %v8250_v44, %v9270_v23  ;;  %v4056_v2 = vmul.f32 %v8433_v25, %v9318_v56  ;;  %v8724_v18 = vld [vmem:[%s16157_s0 + $0x6d8] sm:$0x1]  ;;  %v8727_v54 = vld [vmem:[%s16157_s0 + $0x6f0] sm:$0xfe]  ;;  %v8913_v8 = vld [vmem:[%s16157_s0 + $0x6c0] sm:$0xfc] }
 0x172   :  { %v2333_v21 = vadd.f32 %v2125_v15, %v1273_v58  ;;  %v3465_v50 = vrot.slane %v2997_v14, 1  ;;  %v3466_v9 = vrot.slane %v3000_v34, 1  ;;  %v3474_v32 = vrot.slane %v3003_v11, 1  ;;  %v8730_v58 = vld [vmem:[%s16157_s0 + $0x708] sm:$0x1] }
 0x173   :  { %v2622_v60 = vadd.f32 %v2526_v26, %v2330_v57  ;;  %v4059_v49 = vmul.f32 %v8436_v43, %v9318_v56  ;;  %v3475_v41 = vrot.slane %v3006_v45, 1  ;;  %v4062_v29 = vmul.f32 %v8439_v42, %v9318_v56  ;;  %v8916_v57 = vld [vmem:[%s16157_s0 + $0x6d8] sm:$0x3]  ;;  %v8922_v45 = vld [vmem:[%s16157_s0 + $0x708] sm:$0x3] }
 0x174   :  { %v2625_v61 = vadd.f32 %v2529_v1, %v2333_v21  ;;  %v4065_v39 = vmul.f32 %v8442_v7, %v9318_v56  ;;  %v3467_v12 = vsel %vm801_vm0, %v3465_v50, %v3466_v9  ;;  %v4524_v26 = vrot.slane %v4056_v2, 2  ;;  %v8919_v21 = vld [vmem:[%s16157_s0 + $0x6f0] sm:$0xfc] }
 0x175   :  { %v4525_v20 = vrot.slane %v4059_v49, 2  ;;  %v4936_v53 = vmul.f32 %v8541_v10, %v9350_v27  ;;  %v3476_v28 = vsel %vm801_vm0, %v3474_v32, %v3475_v41  ;;  %v3681_v30 = vadd.f32 %v3467_v12, %v2622_v60  ;;  %v11663_v60 = vld [vmem:[%s16158_s1 + $0x18] ss:$0 sm:$0xff]  ;;  %v59_v32 = vld [vmem:[%s16157_s0 + $0x250] sm:$0xff] }
 0x176   :  { %v4533_v44 = vrot.slane %v4062_v29, 2  ;;  %v4534_v25 = vrot.slane %v4065_v39, 2  ;;  %v3684_v1 = vadd.f32 %v3476_v28, %v2625_v61  ;;  %v4939_v43 = vmul.f32 %v8544_v5, %v9350_v27 }
 0x177   :  { %v4526_v14 = vsel %vm1861_vm1, %v4524_v26, %v4525_v20  ;;  %v5407_v15 = vmul.f32 %v8721_v48, %v9357_v31  ;;  %v5410_v42 = vmul.f32 %v8724_v18, %v9357_v31  ;;  %v5413_v7 = vmul.f32 %v8727_v54, %v9357_v31  ;;  %v62_v26 = vld [vmem:[%s16157_s0 + $0x280] sm:$0xff]  ;;  %v284_v20 = vld [vmem:[%s16157_s0 + $0x250] sm:$0xfe] }
 0x178   :  { %v4535_v34 = vsel %vm1861_vm1, %v4533_v44, %v4534_v25  ;;  %v4740_v11 = vadd.f32 %v4526_v14, %v3681_v30  ;;  %v5416_v2 = vmul.f32 %v8730_v58, %v9357_v31  ;;  %v6466_v9 = vmul.f32 %v11663_v60, %v8913_v8  ;;  %v287_v30 = vld [vmem:[%s16157_s0 + $0x268] sm:$0x1]  ;;  %v290_v44 = vld [vmem:[%s16157_s0 + $0x280] sm:$0xfe]  ;;  %v293_v14 = vld [vmem:[%s16157_s0 + $0x298] sm:$0x1] }
 0x179   :  { %v4743_v50 = vadd.f32 %v4535_v34, %v3684_v1  ;;  %v5875_v10 = vrot.slane %v5407_v15, 1  ;;  %v5876_v61 = vrot.slane %v5410_v42, 1  ;;  %v5884_v41 = vrot.slane %v5413_v7, 1  ;;  %v1347_v42 = vld [vmem:[%s16157_s0 + $0x268] sm:$0x3] }
 0x17a   :  { %v5032_v49 = vadd.f32 %v4936_v53, %v4740_v11  ;;  %v6469_v29 = vmul.f32 %v11663_v60, %v8916_v57  ;;  %v5885_v5 = vrot.slane %v5416_v2, 1  ;;  %v6472_v48 = vmul.f32 %v11663_v60, %v8919_v21  ;;  %v1350_v7 = vld [vmem:[%s16157_s0 + $0x280] sm:$0xfc] }
 0x17b   :  { %v5035_v39 = vadd.f32 %v4939_v43, %v4743_v50  ;;  %v6475_v12 = vmul.f32 %v11663_v60, %v8922_v45  ;;  %v5877_v53 = vsel %vm801_vm0, %v5875_v10, %v5876_v61  ;;  %v6934_v18 = vrot.slane %v6466_v9, 2  ;;  %v1344_v43 = vld [vmem:[%s16157_s0 + $0x250] sm:$0xfc]  ;;  %v1353_v10 = vld [vmem:[%s16157_s0 + $0x298] sm:$0x3] }
 0x17c   :  { %v6935_v54 = vrot.slane %v6469_v29, 2  ;;  %v158_v28 = vmul.f32 %v10601_v0, %v59_v32  ;;  %v5886_v25 = vsel %vm801_vm0, %v5884_v41, %v5885_v5  ;;  %v6091_v58 = vadd.f32 %v5877_v53, %v5032_v49 }
 0x17d   :  { %v6943_v8 = vrot.slane %v6472_v48, 2  ;;  %v6944_v1 = vrot.slane %v6475_v12, 2  ;;  %v6094_v15 = vadd.f32 %v5886_v25, %v5035_v39  ;;  %v161_v34 = vmul.f32 %v10601_v0, %v62_v26 }
 0x17e   :  { %v6936_v57 = vsel %vm1861_vm1, %v6934_v18, %v6935_v54  ;;  %v479_v11 = vmul.f32 %v10625_v52, %v284_v20  ;;  %v482_v50 = vmul.f32 %v10625_v52, %v287_v30  ;;  %v485_v2 = vmul.f32 %v10625_v52, %v290_v44  ;;  %v8135_v18 = vld [vmem:[%s16157_s0 + $0x280] sm:$0xfe]  ;;  %v8138_v54 = vld [vmem:[%s16157_s0 + $0x298] sm:$0x1] }
 0x17f   :  { %v6945_v21 = vsel %vm1861_vm1, %v6943_v8, %v6944_v1  ;;  %v7150_v45 = vadd.f32 %v6936_v57, %v6091_v58  ;;  %v488_v32 = vmul.f32 %v10625_v52, %v293_v14  ;;  %v1539_v61 = vmul.f32 %v10634_v35, %v1344_v43  ;;  %v8141_v8 = vld [vmem:[%s16157_s0 + $0x2b0] sm:$0xfe]  ;;  %v8144_v1 = vld [vmem:[%s16157_s0 + $0x2c8] sm:$0x1] }
 0x180   :  { %v7153_v9 = vadd.f32 %v6945_v21, %v6094_v15  ;;  %v898_v49 = vrot.slane %v479_v11, 1  ;;  %v899_v41 = vrot.slane %v482_v50, 1  ;;  %v907_v29 = vrot.slane %v485_v2, 1 }
 0x181   :  { %v1542_v39 = vmul.f32 %v10634_v35, %v1347_v42  ;;  %v1545_v5 = vmul.f32 %v10634_v35, %v1350_v7  ;;  %v908_v12 = vrot.slane %v488_v32, 1  ;;  %v1548_v20 = vmul.f32 %v10634_v35, %v1353_v10  ;;  %v8336_v10 = vld [vmem:[%s16157_s0 + $0x2c8] sm:$0x3] }
 0x182   :  { %v7204_v48 = vpack.c.bf16 %v7153_v9, %v7150_v45  ;;  %v1958_v53 = vrot.slane %v1539_v61, 2  ;;  %v900_v30 = vsel %vm801_vm0, %v898_v49, %v899_v41  ;;  %v2474_v58 = vmul.f32 %v10637_v16, %v62_v26  ;;  %v8327_v26 = vld [vmem:[%s16157_s0 + $0x280] sm:$0xfc]  ;;  %v8330_v45 = vld [vmem:[%s16157_s0 + $0x298] sm:$0x3] }
 0x183   :  { %v1959_v44 = vrot.slane %v1542_v39, 2  ;;  %v1967_v25 = vrot.slane %v1545_v5, 2  ;;  %v909_v14 = vsel %vm801_vm0, %v907_v29, %v908_v12  ;;  %v1218_v43 = vadd.f32 %v900_v30, %v158_v28  ;;  %v8615_v30 = vld [vmem:[%s16157_s0 + $0x2b0] sm:$0xfe] }
 0x184   :  { %7269 = vmatpush.bf16.xpose.msra.mxu3 %v7204_v48  ;;  %v1968_v15 = vrot.slane %v1548_v20, 2  ;;  %v2477_v57 = vmul.f32 %v10637_v16, %v11144_v40  ;;  %v1221_v11 = vadd.f32 %v909_v14, %v161_v34  ;;  %v2891_v7 = vmul.f32 %v8135_v18, %v10640_v37  ;;  %v8333_v34 = vld [vmem:[%s16157_s0 + $0x2b0] sm:$0xfc]  ;;  %v8621_v14 = vld [vmem:[%s16157_s0 + $0x2e0] sm:$0xfe] }
 0x185   :  { %v1960_v42 = vsel %vm1861_vm1, %v1958_v53, %v1959_v44  ;;  %v2894_v21 = vmul.f32 %v8138_v54, %v10640_v37  ;;  %v2897_v40 = vmul.f32 %v8141_v8, %v10640_v37  ;;  %v2900_v2 = vmul.f32 %v8144_v1, %v10640_v37  ;;  %v8489_v48 = vld [vmem:[%s16157_s0 + $0x2b0] sm:$0xff]  ;;  %v8492_v54 = vld [vmem:[%s16157_s0 + $0x2e0] sm:$0xff]  ;;  %v8618_v44 = vld [vmem:[%s16157_s0 + $0x2c8] sm:$0x1] }
 0x186   :  { %v1969_v28 = vsel %vm1861_vm1, %v1967_v25, %v1968_v15  ;;  %v2278_v50 = vadd.f32 %v1960_v42, %v1218_v43  ;;  %v3309_v32 = vrot.slane %v2891_v7, 1  ;;  %v3950_v61 = vmul.f32 %v8327_v26, %v10643_v47  ;;  %v8624_v43 = vld [vmem:[%s16157_s0 + $0x2f8] sm:$0x1]  ;;  %v8807_v42 = vld [vmem:[%s16157_s0 + $0x2b0] sm:$0xfc] }
 0x187   :  { %v2281_v9 = vadd.f32 %v1969_v28, %v1221_v11  ;;  %v3310_v49 = vrot.slane %v2894_v21, 1  ;;  %v3318_v29 = vrot.slane %v2897_v40, 1  ;;  %v3319_v39 = vrot.slane %v2900_v2, 1 }
 0x188   :  { %v2570_v41 = vadd.f32 %v2474_v58, %v2278_v50  ;;  %v3953_v5 = vmul.f32 %v8330_v45, %v10643_v47  ;;  %v3956_v53 = vmul.f32 %v8333_v34, %v10643_v47  ;;  %v3959_v18 = vmul.f32 %v8336_v10, %v10643_v47  ;;  %v8810_v50 = vld [vmem:[%s16157_s0 + $0x2c8] sm:$0x3] }
 0x189   :  { %v2573_v12 = vadd.f32 %v2477_v57, %v2281_v9  ;;  %v3311_v20 = vsel %vm801_vm0, %v3309_v32, %v3310_v49  ;;  %v3320_v25 = vsel %vm801_vm0, %v3318_v29, %v3319_v39  ;;  %v4368_v8 = vrot.slane %v3950_v61, 2  ;;  %v8813_v9 = vld [vmem:[%s16157_s0 + $0x2e0] sm:$0xfc]  ;;  %v8816_v32 = vld [vmem:[%s16157_s0 + $0x2f8] sm:$0x3] }
 0x18a   :  { %v3629_v58 = vadd.f32 %v3311_v20, %v2570_v41  ;;  %v4369_v1 = vrot.slane %v3953_v5, 2  ;;  %v4377_v57 = vrot.slane %v3956_v53, 2  ;;  %v4378_v26 = vrot.slane %v3959_v18, 2  ;;  %v9164_v29 = vld [vmem:[%s16158_s1 + $0x28] ss:$0 sm:$0xff]  ;;  %v27_v53 = vld [vmem:[%s16157_s0] sm:$0xff] }
 0x18b   :  { %v3632_v15 = vadd.f32 %v3320_v25, %v2573_v12  ;;  %v4884_v11 = vmul.f32 %v8489_v48, %v10727_v36  ;;  %v4887_v21 = vmul.f32 %v8492_v54, %v10727_v36  ;;  %v5301_v45 = vmul.f32 %v8615_v30, %v10733_v38  ;;  %v30_v25 = vld [vmem:[%s16157_s0 + $0x30] sm:$0xff] }
 0x18c   :  { %v4370_v7 = vsel %vm1861_vm1, %v4368_v8, %v4369_v1  ;;  %v5304_v28 = vmul.f32 %v8618_v44, %v10733_v38  ;;  %v4379_v40 = vsel %vm1861_vm1, %v4377_v57, %v4378_v26  ;;  %v5307_v34 = vmul.f32 %v8621_v14, %v10733_v38  ;;  %v225_v8 = vld [vmem:[%s16157_s0 + $0x18] sm:$0x1]  ;;  %v228_v57 = vld [vmem:[%s16157_s0 + $0x30] sm:$0xfe]  ;;  %v231_v26 = vld [vmem:[%s16157_s0 + $0x48] sm:$0x1] }
 0x18d   :  { %v4688_v2 = vadd.f32 %v4370_v7, %v3629_v58  ;;  %v5310_v10 = vmul.f32 %v8624_v43, %v10733_v38  ;;  %v4691_v49 = vadd.f32 %v4379_v40, %v3632_v15  ;;  %v5719_v61 = vrot.slane %v5301_v45, 1  ;;  %v222_v58 = vld [vmem:[%s16157_s0] sm:$0xfe] }
 0x18e   :  { %v5720_v41 = vrot.slane %v5304_v28, 1  ;;  %v6360_v39 = vmul.f32 %v9164_v29, %v8807_v42  ;;  %v5728_v48 = vrot.slane %v5307_v34, 1  ;;  %v6363_v20 = vmul.f32 %v9164_v29, %v8810_v50  ;;  %v1282_v45 = vld [vmem:[%s16157_s0] sm:$0xfc]  ;;  %v1285_v34 = vld [vmem:[%s16157_s0 + $0x18] sm:$0x3] }
 0x18f   :  { %v4980_v5 = vadd.f32 %v4884_v11, %v4688_v2  ;;  %v5729_v12 = vrot.slane %v5310_v10, 1  ;;  %v4983_v18 = vadd.f32 %v4887_v21, %v4691_v49  ;;  %v6366_v30 = vmul.f32 %v9164_v29, %v8813_v9  ;;  %v1288_v10 = vld [vmem:[%s16157_s0 + $0x30] sm:$0xfc] }
 0x190   :  { %v5721_v54 = vsel %vm801_vm0, %v5719_v61, %v5720_v41  ;;  %v6369_v44 = vmul.f32 %v9164_v29, %v8816_v32  ;;  %v6778_v43 = vrot.slane %v6360_v39, 2  ;;  %v6779_v15 = vrot.slane %v6363_v20, 2  ;;  %v1291_v41 = vld [vmem:[%s16157_s0 + $0x48] sm:$0x3] }
 0x191   :  { %v5730_v1 = vsel %vm801_vm0, %v5728_v48, %v5729_v12  ;;  %v6039_v14 = vadd.f32 %v5721_v54, %v4980_v5  ;;  %v6787_v42 = vrot.slane %v6366_v30, 2  ;;  %v126_v21 = vmul.f32 %v9226_v3, %v27_v53  ;;  %v8073_v54 = vld [vmem:[%s16157_s0 + $0x30] sm:$0xfe] }
 0x192   :  { %v6042_v11 = vadd.f32 %v5730_v1, %v4983_v18  ;;  %v6788_v7 = vrot.slane %v6369_v44, 2  ;;  %v6780_v28 = vsel %vm1861_vm1, %v6778_v43, %v6779_v15  ;;  %v129_v50 = vmul.f32 %v9226_v3, %v30_v25  ;;  %v8076_v1 = vld [vmem:[%s16157_s0 + $0x48] sm:$0x1] }
 0x193   :  { %v417_v40 = vmul.f32 %v9229_v4, %v222_v58  ;;  %v420_v2 = vmul.f32 %v9229_v4, %v225_v8  ;;  %v7098_v32 = vadd.f32 %v6780_v28, %v6039_v14  ;;  %v423_v49 = vmul.f32 %v9229_v4, %v228_v57  ;;  %v8079_v14 = vld [vmem:[%s16157_s0 + $0x60] sm:$0xfe] }
 0x194   :  { %v6789_v9 = vsel %vm1861_vm1, %v6787_v42, %v6788_v7  ;;  %v426_v61 = vmul.f32 %v9229_v4, %v231_v26  ;;  %v1477_v48 = vmul.f32 %v9264_v19, %v1282_v45  ;;  %v1480_v53 = vmul.f32 %v9264_v19, %v1285_v34  ;;  %v8265_v42 = vld [vmem:[%s16157_s0 + $0x30] sm:$0xfc] }
 0x195   :  { %v7101_v29 = vadd.f32 %v6789_v9, %v6042_v11  ;;  %v802_v39 = vrot.slane %v417_v40, 1  ;;  %v803_v5 = vrot.slane %v420_v2, 1  ;;  %v811_v12 = vrot.slane %v423_v49, 1  ;;  %v8082_v11 = vld [vmem:[%s16157_s0 + $0x78] sm:$0x1] }
 0x196   :  { %v812_v20 = vrot.slane %v426_v61, 1  ;;  %v1483_v18 = vmul.f32 %v9264_v19, %v1288_v10  ;;  %v1486_v58 = vmul.f32 %v9264_v19, %v1291_v41  ;;  %v1862_v8 = vrot.slane %v1477_v48, 2  ;;  %v8268_v9 = vld [vmem:[%s16157_s0 + $0x48] sm:$0x3]  ;;  %v8274_v49 = vld [vmem:[%s16157_s0 + $0x78] sm:$0x3] }
 0x197   :  { %v7179_v30 = vpack.c.bf16 %v7101_v29, %v7098_v32  ;;  %v804_v44 = vsel %vm801_vm0, %v802_v39, %v803_v5  ;;  %v1863_v57 = vrot.slane %v1480_v53, 2  ;;  %v2442_v28 = vmul.f32 %v9267_v22, %v30_v25 }
 0x198   :  { %v813_v43 = vsel %vm801_vm0, %v811_v12, %v812_v20  ;;  %v1186_v15 = vadd.f32 %v804_v44, %v126_v21  ;;  %v1871_v26 = vrot.slane %v1483_v18, 2  ;;  %v1872_v45 = vrot.slane %v1486_v58, 2  ;;  %v8457_v18 = vld [vmem:[%s16157_s0 + $0x60] sm:$0xff] }
 0x199   :  { %7257 = vmatpush.bf16.xpose.msra.mxu2 %v7179_v30  ;;  %v1189_v7 = vadd.f32 %v813_v43, %v129_v50  ;;  %v2445_v40 = vmul.f32 %v9267_v22, %v11275_v33  ;;  %v1864_v21 = vsel %vm1861_vm1, %v1862_v8, %v1863_v57  ;;  %v2829_v2 = vmul.f32 %v8073_v54, %v9270_v23  ;;  %v8271_v50 = vld [vmem:[%s16157_s0 + $0x60] sm:$0xfc]  ;;  %v8460_v54 = vld [vmem:[%s16157_s0 + $0x90] sm:$0xff] }
 0x19a   :  { %v2832_v34 = vmul.f32 %v8076_v1, %v9270_v23  ;;  %v2835_v10 = vmul.f32 %v8079_v14, %v9270_v23  ;;  %v1873_v25 = vsel %vm1861_vm1, %v1871_v26, %v1872_v45  ;;  %v2246_v32 = vadd.f32 %v1864_v21, %v1186_v15  ;;  %v8553_v30 = vld [vmem:[%s16157_s0 + $0x60] sm:$0xfe]  ;;  %v8556_v14 = vld [vmem:[%s16157_s0 + $0x78] sm:$0x1]  ;;  %v8559_v43 = vld [vmem:[%s16157_s0 + $0x90] sm:$0xfe] }
 0x19b   :  { %v2838_v33 = vmul.f32 %v8082_v11, %v9270_v23  ;;  %v3888_v61 = vmul.f32 %v8265_v42, %v9318_v56  ;;  %v2249_v41 = vadd.f32 %v1873_v25, %v1189_v7  ;;  %v3213_v29 = vrot.slane %v2829_v2, 1  ;;  %v8562_v42 = vld [vmem:[%s16157_s0 + $0xa8] sm:$0x1]  ;;  %v8745_v7 = vld [vmem:[%s16157_s0 + $0x60] sm:$0xfc] }
 0x19c   :  { %v3214_v39 = vrot.slane %v2832_v34, 1  ;;  %v3222_v5 = vrot.slane %v2835_v10, 1  ;;  %v2538_v48 = vadd.f32 %v2442_v28, %v2246_v32  ;;  %v3891_v20 = vmul.f32 %v8268_v9, %v9318_v56  ;;  %v8751_v25 = vld [vmem:[%s16157_s0 + $0x90] sm:$0xfc] }
 0x19d   :  { %v3223_v12 = vrot.slane %v2838_v33, 1  ;;  %v3894_v53 = vmul.f32 %v8271_v50, %v9318_v56  ;;  %v2541_v44 = vadd.f32 %v2445_v40, %v2249_v41  ;;  %v3897_v8 = vmul.f32 %v8274_v49, %v9318_v56  ;;  %v8748_v50 = vld [vmem:[%s16157_s0 + $0x78] sm:$0x3] }
 0x19e   :  { %v3215_v58 = vsel %vm801_vm0, %v3213_v29, %v3214_v39  ;;  %v4272_v1 = vrot.slane %v3888_v61, 2  ;;  %v4273_v26 = vrot.slane %v3891_v20, 2  ;;  %v4852_v40 = vmul.f32 %v8457_v18, %v9350_v27  ;;  %v8754_v61 = vld [vmem:[%s16157_s0 + $0xa8] sm:$0x3] }
 0x19f   :  { %v3224_v15 = vsel %vm801_vm0, %v3222_v5, %v3223_v12  ;;  %v3597_v57 = vadd.f32 %v3215_v58, %v2538_v48  ;;  %v4281_v11 = vrot.slane %v3894_v53, 2  ;;  %v4282_v28 = vrot.slane %v3897_v8, 2 }
 0x1a0   :  { %v3600_v45 = vadd.f32 %v3224_v15, %v2541_v44  ;;  %v4855_v21 = vmul.f32 %v8460_v54, %v9350_v27  ;;  %v4274_v2 = vsel %vm1861_vm1, %v4272_v1, %v4273_v26  ;;  %v5239_v34 = vmul.f32 %v8553_v30, %v9357_v31  ;;  %v28_v54 = vld [vmem:[%s16157_s0 + $0x8] sm:$0xff]  ;;  %v31_v30 = vld [vmem:[%s16157_s0 + $0x38] sm:$0xff] }
 0x1a1   :  { %v5242_v10 = vmul.f32 %v8556_v14, %v9357_v31  ;;  %v5245_v9 = vmul.f32 %v8559_v43, %v9357_v31  ;;  %v4283_v32 = vsel %vm1861_vm1, %v4281_v11, %v4282_v28  ;;  %v4656_v33 = vadd.f32 %v4274_v2, %v3597_v57  ;;  %v223_v44 = vld [vmem:[%s16157_s0 + $0x8] sm:$0xfe]  ;;  %v226_v43 = vld [vmem:[%s16157_s0 + $0x20] sm:$0x1]  ;;  %v229_v15 = vld [vmem:[%s16157_s0 + $0x38] sm:$0xfe] }
 0x1a2   :  { %v5248_v49 = vmul.f32 %v8562_v42, %v9357_v31  ;;  %v6298_v41 = vmul.f32 %v11663_v60, %v8745_v7  ;;  %v4659_v29 = vadd.f32 %v4283_v32, %v3600_v45  ;;  %v5623_v39 = vrot.slane %v5239_v34, 1  ;;  %v232_v7 = vld [vmem:[%s16157_s0 + $0x50] sm:$0x1]  ;;  %v1283_v45 = vld [vmem:[%s16157_s0 + $0x8] sm:$0xfc] }
 0x1a3   :  { %v5624_v5 = vrot.slane %v5242_v10, 1  ;;  %v5632_v48 = vrot.slane %v5245_v9, 1  ;;  %v4948_v12 = vadd.f32 %v4852_v40, %v4656_v33  ;;  %v6301_v53 = vmul.f32 %v11663_v60, %v8748_v50  ;;  %v1289_v32 = vld [vmem:[%s16157_s0 + $0x38] sm:$0xfc]  ;;  %v1292_v33 = vld [vmem:[%s16157_s0 + $0x50] sm:$0x3] }
 0x1a4   :  { %v5633_v20 = vrot.slane %v5248_v49, 1  ;;  %v6304_v18 = vmul.f32 %v11663_v60, %v8751_v25  ;;  %v4951_v58 = vadd.f32 %v4855_v21, %v4659_v29  ;;  %v6307_v1 = vmul.f32 %v11663_v60, %v8754_v61  ;;  %v1286_v25 = vld [vmem:[%s16157_s0 + $0x20] sm:$0x3] }
 0x1a5   :  { %v5625_v8 = vsel %vm801_vm0, %v5623_v39, %v5624_v5  ;;  %v6682_v14 = vrot.slane %v6298_v41, 2  ;;  %v6683_v11 = vrot.slane %v6301_v53, 2  ;;  %v127_v21 = vmul.f32 %v9403_v63, %v28_v54 }
 0x1a6   :  { %v5634_v57 = vsel %vm801_vm0, %v5632_v48, %v5633_v20  ;;  %v6007_v26 = vadd.f32 %v5625_v8, %v4948_v12  ;;  %v6691_v42 = vrot.slane %v6304_v18, 2  ;;  %v6692_v40 = vrot.slane %v6307_v1, 2 }
 0x1a7   :  { %v6010_v28 = vadd.f32 %v5634_v57, %v4951_v58  ;;  %v130_v2 = vmul.f32 %v9403_v63, %v31_v30  ;;  %v6684_v34 = vsel %vm1861_vm1, %v6682_v14, %v6683_v11  ;;  %v418_v10 = vmul.f32 %v9409_v6, %v223_v44  ;;  %v8074_v44 = vld [vmem:[%s16157_s0 + $0x38] sm:$0xfe]  ;;  %v8077_v58 = vld [vmem:[%s16157_s0 + $0x50] sm:$0x1]  ;;  %v8083_v57 = vld [vmem:[%s16157_s0 + $0x80] sm:$0x1] }
 0x1a8   :  { %v421_v9 = vmul.f32 %v9409_v6, %v226_v43  ;;  %v424_v50 = vmul.f32 %v9409_v6, %v229_v15  ;;  %v6693_v49 = vsel %vm1861_vm1, %v6691_v42, %v6692_v40  ;;  %v7066_v61 = vadd.f32 %v6684_v34, %v6007_v26  ;;  %v8080_v15 = vld [vmem:[%s16157_s0 + $0x68] sm:$0xfe] }
 0x1a9   :  { %v427_v41 = vmul.f32 %v9409_v6, %v232_v7  ;;  %v1478_v29 = vmul.f32 %v9420_v13, %v1283_v45  ;;  %v7069_v39 = vadd.f32 %v6693_v49, %v6010_v28  ;;  %v805_v5 = vrot.slane %v418_v10, 1  ;;  %v8266_v45 = vld [vmem:[%s16157_s0 + $0x38] sm:$0xfc] }
 0x1aa   :  { %v806_v48 = vrot.slane %v421_v9, 1  ;;  %v814_v12 = vrot.slane %v424_v50, 1  ;;  %v1481_v53 = vmul.f32 %v9420_v13, %v1286_v25  ;;  %v1484_v18 = vmul.f32 %v9420_v13, %v1289_v32  ;;  %v8269_v25 = vld [vmem:[%s16157_s0 + $0x50] sm:$0x3] }
 0x1ab   :  { %v815_v20 = vrot.slane %v427_v41, 1  ;;  %v1487_v54 = vmul.f32 %v9420_v13, %v1292_v33  ;;  %v7162_v8 = vpack.c.bf16 %v7069_v39, %v7066_v61  ;;  %v1865_v14 = vrot.slane %v1478_v29, 2 }
 0x1ac   :  { %v807_v1 = vsel %vm801_vm0, %v805_v5, %v806_v48  ;;  %v2443_v43 = vmul.f32 %v9449_v46, %v31_v30  ;;  %v1866_v42 = vrot.slane %v1481_v53, 2  ;;  %v1874_v7 = vrot.slane %v1484_v18, 2  ;;  %v8458_v18 = vld [vmem:[%s16157_s0 + $0x68] sm:$0xff] }
 0x1ad   :  { %v816_v26 = vsel %vm801_vm0, %v814_v12, %v815_v20  ;;  %v1187_v11 = vadd.f32 %v807_v1, %v127_v21  ;;  %7236 = vmatpush.bf16.xpose.msra.mxu0 %v7162_v8  ;;  %v1875_v30 = vrot.slane %v1487_v54, 2  ;;  %v2446_v40 = vmul.f32 %v9449_v46, %v11406_v51  ;;  %v8275_v51 = vld [vmem:[%s16157_s0 + $0x80] sm:$0x3]  ;;  %v8461_v54 = vld [vmem:[%s16157_s0 + $0x98] sm:$0xff] }
 0x1ae   :  { %v1190_v28 = vadd.f32 %v816_v26, %v130_v2  ;;  %v2830_v34 = vmul.f32 %v8074_v44, %v9462_v55  ;;  %v1867_v10 = vsel %vm1861_vm1, %v1865_v14, %v1866_v42  ;;  %v2833_v9 = vmul.f32 %v8077_v58, %v9462_v55  ;;  %v8272_v2 = vld [vmem:[%s16157_s0 + $0x68] sm:$0xfc] }
 0x1af   :  { %v2836_v21 = vmul.f32 %v8080_v15, %v9462_v55  ;;  %v2839_v50 = vmul.f32 %v8083_v57, %v9462_v55  ;;  %v1876_v32 = vsel %vm1861_vm1, %v1874_v7, %v1875_v30  ;;  %v2247_v33 = vadd.f32 %v1867_v10, %v1187_v11  ;;  %v8554_v44 = vld [vmem:[%s16157_s0 + $0x68] sm:$0xfe]  ;;  %v8560_v15 = vld [vmem:[%s16157_s0 + $0x98] sm:$0xfe]  ;;  %v8563_v7 = vld [vmem:[%s16157_s0 + $0xb0] sm:$0x1] }
 0x1b0   :  { %v3216_v49 = vrot.slane %v2830_v34, 1  ;;  %v3889_v61 = vmul.f32 %v8266_v45, %v9486_v17  ;;  %v2250_v41 = vadd.f32 %v1876_v32, %v1190_v28  ;;  %v3217_v29 = vrot.slane %v2833_v9, 1  ;;  %v8746_v34 = vld [vmem:[%s16157_s0 + $0x68] sm:$0xfc]  ;;  %v8749_v10 = vld [vmem:[%s16157_s0 + $0x80] sm:$0x3] }
 0x1b1   :  { %v3225_v39 = vrot.slane %v2836_v21, 1  ;;  %v3226_v5 = vrot.slane %v2839_v50, 1  ;;  %v2539_v48 = vadd.f32 %v2443_v43, %v2247_v33  ;;  %v3892_v12 = vmul.f32 %v8269_v25, %v9486_v17  ;;  %v8557_v43 = vld [vmem:[%s16157_s0 + $0x80] sm:$0x1] }
 0x1b2   :  { %v3895_v20 = vmul.f32 %v8272_v2, %v9486_v17  ;;  %v3898_v53 = vmul.f32 %v8275_v51, %v9486_v17  ;;  %v2542_v58 = vadd.f32 %v2446_v40, %v2250_v41  ;;  %v3218_v8 = vsel %vm801_vm0, %v3216_v49, %v3217_v29  ;;  %v8752_v2 = vld [vmem:[%s16157_s0 + $0x98] sm:$0xfc] }
 0x1b3   :  { %v3227_v1 = vsel %vm801_vm0, %v3225_v39, %v3226_v5  ;;  %v4275_v14 = vrot.slane %v3889_v61, 2  ;;  %v3598_v57 = vadd.f32 %v3218_v8, %v2539_v48  ;;  %v4276_v26 = vrot.slane %v3892_v12, 2  ;;  %v8755_v61 = vld [vmem:[%s16157_s0 + $0xb0] sm:$0x3]  ;;  %v12048_v39 = vld [vmem:[%s16158_s1 + $0x20] ss:$0 sm:$0xff] }
 0x1b4   :  { %v4284_v11 = vrot.slane %v3895_v20, 2  ;;  %v4285_v42 = vrot.slane %v3898_v53, 2  ;;  %v3601_v45 = vadd.f32 %v3227_v1, %v2542_v58  ;;  %v4853_v28 = vmul.f32 %v8458_v18, %v9489_v24  ;;  %v12055_v12 = vld [vmem:[%s16157_s0 + $0x600] sm:$0xff]  ;;  %v381_v8 = vld [vmem:[%s16157_s0 + $0x618] sm:$0x1] }
 0x1b5   :  { %v4856_v30 = vmul.f32 %v8461_v54, %v9489_v24  ;;  %v5240_v40 = vmul.f32 %v8554_v44, %v9532_v59  ;;  %v4277_v9 = vsel %vm1861_vm1, %v4275_v14, %v4276_v26  ;;  %v5243_v50 = vmul.f32 %v8557_v43, %v9532_v59  ;;  %v108_v44 = vld [vmem:[%s16157_s0 + $0x630] sm:$0xff]  ;;  %v378_v58 = vld [vmem:[%s16157_s0 + $0x600] sm:$0xfe]  ;;  %v387_v26 = vld [vmem:[%s16157_s0 + $0x648] sm:$0x1] }
 0x1b6   :  { %v4286_v21 = vsel %vm1861_vm1, %v4284_v11, %v4285_v42  ;;  %v5246_v25 = vmul.f32 %v8560_v15, %v9532_v59  ;;  %v4657_v51 = vadd.f32 %v4277_v9, %v3598_v57  ;;  %v5249_v33 = vmul.f32 %v8563_v7, %v9532_v59  ;;  %v384_v57 = vld [vmem:[%s16157_s0 + $0x630] sm:$0xfe] }
 0x1b7   :  { %v4660_v32 = vadd.f32 %v4286_v21, %v3601_v45  ;;  %v5626_v49 = vrot.slane %v5240_v40, 1  ;;  %v5627_v41 = vrot.slane %v5243_v50, 1  ;;  %v6299_v5 = vmul.f32 %v12048_v39, %v8746_v34 }
 0x1b8   :  { %v5635_v29 = vrot.slane %v5246_v25, 1  ;;  %v6302_v48 = vmul.f32 %v12048_v39, %v8749_v10  ;;  %v4949_v20 = vadd.f32 %v4853_v28, %v4657_v51  ;;  %v5636_v18 = vrot.slane %v5249_v33, 1  ;;  %v1438_v28 = vld [vmem:[%s16157_s0 + $0x600] sm:$0xfc]  ;;  %v1444_v51 = vld [vmem:[%s16157_s0 + $0x630] sm:$0xfc] }
 0x1b9   :  { %v4952_v53 = vadd.f32 %v4856_v30, %v4660_v32  ;;  %v6305_v54 = vmul.f32 %v12048_v39, %v8752_v2  ;;  %v5628_v1 = vsel %vm801_vm0, %v5626_v49, %v5627_v41  ;;  %v6308_v14 = vmul.f32 %v12048_v39, %v8755_v61  ;;  %v1441_v30 = vld [vmem:[%s16157_s0 + $0x618] sm:$0x3]  ;;  %v1447_v32 = vld [vmem:[%s16157_s0 + $0x648] sm:$0x3] }
 0x1ba   :  { %v6685_v43 = vrot.slane %v6299_v5, 2  ;;  %v6686_v15 = vrot.slane %v6302_v48, 2  ;;  %v5637_v11 = vsel %vm801_vm0, %v5635_v29, %v5636_v18  ;;  %v6008_v42 = vadd.f32 %v5628_v1, %v4949_v20 }
 0x1bb   :  { %v6694_v7 = vrot.slane %v6305_v54, 2  ;;  %v204_v45 = vmul.f32 %v9226_v3, %v12055_v12  ;;  %v6011_v40 = vadd.f32 %v5637_v11, %v4952_v53  ;;  %v6695_v10 = vrot.slane %v6308_v14, 2 }
 0x1bc   :  { %v6687_v34 = vsel %vm1861_vm1, %v6685_v43, %v6686_v15  ;;  %v207_v9 = vmul.f32 %v9226_v3, %v108_v44  ;;  %v573_v50 = vmul.f32 %v9229_v4, %v378_v58  ;;  %v576_v25 = vmul.f32 %v9229_v4, %v381_v8  ;;  %v8229_v8 = vld [vmem:[%s16157_s0 + $0x630] sm:$0xfe] }
 0x1bd   :  { %v7067_v21 = vadd.f32 %v6687_v34, %v6008_v42  ;;  %v579_v2 = vmul.f32 %v9229_v4, %v384_v57  ;;  %v6696_v33 = vsel %vm1861_vm1, %v6694_v7, %v6695_v10  ;;  %v582_v49 = vmul.f32 %v9229_v4, %v387_v26  ;;  %v8232_v57 = vld [vmem:[%s16157_s0 + $0x648] sm:$0x1]  ;;  %v8235_v26 = vld [vmem:[%s16157_s0 + $0x660] sm:$0xfe] }
 0x1be   :  { %v1633_v61 = vmul.f32 %v9264_v19, %v1438_v28  ;;  %v1636_v41 = vmul.f32 %v9264_v19, %v1441_v30  ;;  %v7070_v29 = vadd.f32 %v6696_v33, %v6011_v40  ;;  %v1036_v5 = vrot.slane %v573_v50, 1  ;;  %v8238_v30 = vld [vmem:[%s16157_s0 + $0x678] sm:$0x1] }
 0x1bf   :  { %v1037_v48 = vrot.slane %v576_v25, 1  ;;  %v1045_v20 = vrot.slane %v579_v2, 1  ;;  %v1046_v53 = vrot.slane %v582_v49, 1  ;;  %v1639_v18 = vmul.f32 %v9264_v19, %v1444_v51 }
 0x1c0   :  { %v1642_v54 = vmul.f32 %v9264_v19, %v1447_v32  ;;  %v2096_v58 = vrot.slane %v1633_v61, 2  ;;  %v7163_v1 = vpack.c.bf16 %v7070_v29, %v7067_v21  ;;  %v2097_v43 = vrot.slane %v1636_v41, 2  ;;  %v8535_v41 = vld [vmem:[%s16157_s0 + $0x660] sm:$0xff] }
 0x1c1   :  { %v1038_v14 = vsel %vm801_vm0, %v1036_v5, %v1037_v48  ;;  %v2520_v15 = vmul.f32 %v9267_v22, %v108_v44  ;;  %v1047_v11 = vsel %vm801_vm0, %v1045_v20, %v1046_v53  ;;  %v2105_v7 = vrot.slane %v1639_v18, 2  ;;  %v8421_v44 = vld [vmem:[%s16157_s0 + $0x630] sm:$0xfc] }
 0x1c2   :  { %v1264_v42 = vadd.f32 %v1038_v14, %v204_v45  ;;  %v2106_v28 = vrot.slane %v1642_v54, 2  ;;  %7249 = vmatpush.bf16.xpose.msra.mxu1 %v7163_v1  ;;  %v1267_v40 = vadd.f32 %v1047_v11, %v207_v9  ;;  %v2098_v34 = vsel %vm1861_vm1, %v2096_v58, %v2097_v43  ;;  %v8424_v45 = vld [vmem:[%s16157_s0 + $0x648] sm:$0x3]  ;;  %v8427_v9 = vld [vmem:[%s16157_s0 + $0x660] sm:$0xfc] }
 0x1c3   :  { %v2523_v10 = vmul.f32 %v9267_v22, %v11535_v62  ;;  %v2985_v21 = vmul.f32 %v8229_v8, %v9270_v23  ;;  %v2988_v2 = vmul.f32 %v8232_v57, %v9270_v23  ;;  %v2991_v51 = vmul.f32 %v8235_v26, %v9270_v23  ;;  %v8430_v62 = vld [vmem:[%s16157_s0 + $0x678] sm:$0x3]  ;;  %v8538_v8 = vld [vmem:[%s16157_s0 + $0x690] sm:$0xff]  ;;  %v8709_v1 = vld [vmem:[%s16157_s0 + $0x660] sm:$0xfe] }
 0x1c4   :  { %v2107_v50 = vsel %vm1861_vm1, %v2105_v7, %v2106_v28  ;;  %v2324_v25 = vadd.f32 %v2098_v34, %v1264_v42  ;;  %v2994_v33 = vmul.f32 %v8238_v30, %v9270_v23  ;;  %v4044_v61 = vmul.f32 %v8421_v44, %v9318_v56  ;;  %v8712_v26 = vld [vmem:[%s16157_s0 + $0x678] sm:$0x1]  ;;  %v8715_v11 = vld [vmem:[%s16157_s0 + $0x690] sm:$0xfe]  ;;  %v8718_v44 = vld [vmem:[%s16157_s0 + $0x6a8] sm:$0x1] }
 0x1c5   :  { %v2327_v32 = vadd.f32 %v2107_v50, %v1267_v40  ;;  %v3447_v49 = vrot.slane %v2985_v21, 1  ;;  %v3448_v5 = vrot.slane %v2988_v2, 1  ;;  %v3456_v48 = vrot.slane %v2991_v51, 1  ;;  %v8901_v40 = vld [vmem:[%s16157_s0 + $0x660] sm:$0xfc] }
 0x1c6   :  { %v2616_v29 = vadd.f32 %v2520_v15, %v2324_v25  ;;  %v4047_v20 = vmul.f32 %v8424_v45, %v9318_v56  ;;  %v3457_v18 = vrot.slane %v2994_v33, 1  ;;  %v4050_v54 = vmul.f32 %v8427_v9, %v9318_v56  ;;  %v8904_v50 = vld [vmem:[%s16157_s0 + $0x678] sm:$0x3] }
 0x1c7   :  { %v2619_v53 = vadd.f32 %v2523_v10, %v2327_v32  ;;  %v4053_v58 = vmul.f32 %v8430_v62, %v9318_v56  ;;  %v3449_v14 = vsel %vm801_vm0, %v3447_v49, %v3448_v5  ;;  %v4506_v43 = vrot.slane %v4044_v61, 2  ;;  %v8907_v62 = vld [vmem:[%s16157_s0 + $0x690] sm:$0xfc]  ;;  %v8910_v32 = vld [vmem:[%s16157_s0 + $0x6a8] sm:$0x3] }
 0x1c8   :  { %v4507_v15 = vrot.slane %v4047_v20, 2  ;;  %v4930_v57 = vmul.f32 %v8535_v41, %v9350_v27  ;;  %v3458_v42 = vsel %vm801_vm0, %v3456_v48, %v3457_v18  ;;  %v3675_v7 = vadd.f32 %v3449_v14, %v2616_v29  ;;  %v12184_v29 = vld [vmem:[%s16157_s0 + $0x6c8] sm:$0xff] }
 0x1c9   :  { %v4515_v28 = vrot.slane %v4050_v54, 2  ;;  %v4516_v30 = vrot.slane %v4053_v58, 2  ;;  %v3678_v34 = vadd.f32 %v3458_v42, %v2619_v53  ;;  %v4933_v21 = vmul.f32 %v8538_v8, %v9350_v27  ;;  %v403_v14 = vld [vmem:[%s16157_s0 + $0x6c8] sm:$0xfe] }
 0x1ca   :  { %v4508_v10 = vsel %vm1861_vm1, %v4506_v43, %v4507_v15  ;;  %v5395_v45 = vmul.f32 %v8709_v1, %v9357_v31  ;;  %v5398_v51 = vmul.f32 %v8712_v26, %v9357_v31  ;;  %v5401_v9 = vmul.f32 %v8715_v11, %v9357_v31  ;;  %v121_v1 = vld [vmem:[%s16157_s0 + $0x6f8] sm:$0xff]  ;;  %v406_v11 = vld [vmem:[%s16157_s0 + $0x6e0] sm:$0x1] }
 0x1cb   :  { %v4517_v25 = vsel %vm1861_vm1, %v4515_v28, %v4516_v30  ;;  %v4734_v2 = vadd.f32 %v4508_v10, %v3675_v7  ;;  %v5404_v49 = vmul.f32 %v8718_v44, %v9357_v31  ;;  %v6454_v41 = vmul.f32 %v11663_v60, %v8901_v40  ;;  %v412_v44 = vld [vmem:[%s16157_s0 + $0x710] sm:$0x1]  ;;  %v1463_v40 = vld [vmem:[%s16157_s0 + $0x6c8] sm:$0xfc] }
 0x1cc   :  { %v4737_v33 = vadd.f32 %v4517_v25, %v3678_v34  ;;  %v5857_v61 = vrot.slane %v5395_v45, 1  ;;  %v5858_v48 = vrot.slane %v5398_v51, 1  ;;  %v5866_v20 = vrot.slane %v5401_v9, 1  ;;  %v1469_v25 = vld [vmem:[%s16157_s0 + $0x6f8] sm:$0xfc] }
 0x1cd   :  { %v5026_v5 = vadd.f32 %v4930_v57, %v4734_v2  ;;  %v6457_v53 = vmul.f32 %v11663_v60, %v8904_v50  ;;  %v5867_v54 = vrot.slane %v5404_v49, 1  ;;  %v6460_v58 = vmul.f32 %v11663_v60, %v8907_v62  ;;  %v1466_v50 = vld [vmem:[%s16157_s0 + $0x6e0] sm:$0x3] }
 0x1ce   :  { %v5029_v18 = vadd.f32 %v4933_v21, %v4737_v33  ;;  %v6463_v8 = vmul.f32 %v11663_v60, %v8910_v32  ;;  %v5859_v43 = vsel %vm801_vm0, %v5857_v61, %v5858_v48  ;;  %v6916_v15 = vrot.slane %v6454_v41, 2  ;;  %v409_v60 = vld [vmem:[%s16157_s0 + $0x6f8] sm:$0xfe]  ;;  %v1472_v32 = vld [vmem:[%s16157_s0 + $0x710] sm:$0x3] }
 0x1cf   :  { %v6917_v57 = vrot.slane %v6457_v53, 2  ;;  %v217_v26 = vmul.f32 %v9403_v63, %v12184_v29  ;;  %v5868_v42 = vsel %vm801_vm0, %v5866_v20, %v5867_v54  ;;  %v6085_v7 = vadd.f32 %v5859_v43, %v5026_v5  ;;  %v8254_v43 = vld [vmem:[%s16157_s0 + $0x6f8] sm:$0xfe] }
 0x1d0   :  { %v6925_v28 = vrot.slane %v6460_v58, 2  ;;  %v6926_v30 = vrot.slane %v6463_v8, 2  ;;  %v6088_v34 = vadd.f32 %v5868_v42, %v5029_v18  ;;  %v220_v21 = vmul.f32 %v9403_v63, %v121_v1  ;;  %v8071_v18 = vld [vmem:[%s16157_s0 + $0x728] sm:$0xff] }
 0x1d1   :  { %v6918_v10 = vsel %vm1861_vm1, %v6916_v15, %v6917_v57  ;;  %v598_v45 = vmul.f32 %v9409_v6, %v403_v14  ;;  %v601_v9 = vmul.f32 %v9409_v6, %v406_v11  ;;  %v604_v62 = vmul.f32 %v9409_v6, %v409_v60  ;;  %v8257_v15 = vld [vmem:[%s16157_s0 + $0x710] sm:$0x1] }
 0x1d2   :  { %v6927_v2 = vsel %vm1861_vm1, %v6925_v28, %v6926_v30  ;;  %v7144_v51 = vadd.f32 %v6918_v10, %v6085_v7  ;;  %v607_v49 = vmul.f32 %v9409_v6, %v412_v44  ;;  %v1658_v41 = vmul.f32 %v9420_v13, %v1463_v40  ;;  %v8260_v7 = vld [vmem:[%s16157_s0 + $0x728] sm:$0xfe]  ;;  %v8263_v28 = vld [vmem:[%s16157_s0 + $0x740] sm:$0x1]  ;;  %v8446_v10 = vld [vmem:[%s16157_s0 + $0x6f8] sm:$0xfc] }
 0x1d3   :  { %v7147_v33 = vadd.f32 %v6927_v2, %v6088_v34  ;;  %v1075_v61 = vrot.slane %v598_v45, 1  ;;  %v1076_v5 = vrot.slane %v601_v9, 1  ;;  %v1084_v48 = vrot.slane %v604_v62, 1  ;;  %v8449_v2 = vld [vmem:[%s16157_s0 + $0x710] sm:$0x3] }
 0x1d4   :  { %v1661_v20 = vmul.f32 %v9420_v13, %v1466_v50  ;;  %v1664_v53 = vmul.f32 %v9420_v13, %v1469_v25  ;;  %v1085_v58 = vrot.slane %v607_v49, 1  ;;  %v1667_v8 = vmul.f32 %v9420_v13, %v1472_v32  ;;  %v8455_v32 = vld [vmem:[%s16157_s0 + $0x740] sm:$0x3] }
 0x1d5   :  { %v7201_v54 = vpack.c.bf16 %v7147_v33, %v7144_v51  ;;  %v2135_v14 = vrot.slane %v1658_v41, 2  ;;  %v1077_v57 = vsel %vm801_vm0, %v1075_v61, %v1076_v5  ;;  %v2533_v42 = vmul.f32 %v9449_v46, %v121_v1 }
 0x1d6   :  { %v2136_v11 = vrot.slane %v1661_v20, 2  ;;  %v2144_v60 = vrot.slane %v1664_v53, 2  ;;  %v1086_v30 = vsel %vm801_vm0, %v1084_v48, %v1085_v58  ;;  %v1277_v44 = vadd.f32 %v1077_v57, %v217_v26  ;;  %v8737_v57 = vld [vmem:[%s16157_s0 + $0x740] sm:$0x1] }
 0x1d7   :  { %7270 = vmatpush.bf16.xpose.msra.mxu3 %v7201_v54  ;;  %v2145_v40 = vrot.slane %v1667_v8, 2  ;;  %v2536_v34 = vmul.f32 %v8071_v18, %v9449_v46  ;;  %v1280_v1 = vadd.f32 %v1086_v30, %v220_v21  ;;  %v3010_v50 = vmul.f32 %v8254_v43, %v9462_v55  ;;  %v8452_v21 = vld [vmem:[%s16157_s0 + $0x728] sm:$0xfc]  ;;  %v8551_v43 = vld [vmem:[%s16157_s0 + $0x758] sm:$0xff]  ;;  %v8743_v30 = vld [vmem:[%s16157_s0 + $0x770] sm:$0x1] }
 0x1d8   :  { %v2137_v45 = vsel %vm1861_vm1, %v2135_v14, %v2136_v11  ;;  %v3013_v25 = vmul.f32 %v8257_v15, %v9462_v55  ;;  %v3016_v9 = vmul.f32 %v8260_v7, %v9462_v55  ;;  %v3019_v62 = vmul.f32 %v8263_v28, %v9462_v55  ;;  %v8734_v15 = vld [vmem:[%s16157_s0 + $0x728] sm:$0xfe]  ;;  %v8740_v28 = vld [vmem:[%s16157_s0 + $0x758] sm:$0xfe] }
 0x1d9   :  { %v2146_v26 = vsel %vm1861_vm1, %v2144_v60, %v2145_v40  ;;  %v2337_v51 = vadd.f32 %v2137_v45, %v1277_v44  ;;  %v3486_v49 = vrot.slane %v3010_v50, 1  ;;  %v4069_v41 = vmul.f32 %v8446_v10, %v9486_v17 }
 0x1da   :  { %v2340_v33 = vadd.f32 %v2146_v26, %v1280_v1  ;;  %v3487_v61 = vrot.slane %v3013_v25, 1  ;;  %v3495_v48 = vrot.slane %v3016_v9, 1  ;;  %v3496_v20 = vrot.slane %v3019_v62, 1  ;;  %v8926_v1 = vld [vmem:[%s16157_s0 + $0x728] sm:$0xfc] }
 0x1db   :  { %v2629_v5 = vadd.f32 %v2533_v42, %v2337_v51  ;;  %v4072_v53 = vmul.f32 %v8449_v2, %v9486_v17  ;;  %v4075_v8 = vmul.f32 %v8452_v21, %v9486_v17  ;;  %v4078_v14 = vmul.f32 %v8455_v32, %v9486_v17  ;;  %v8929_v26 = vld [vmem:[%s16157_s0 + $0x740] sm:$0x3]  ;;  %v8932_v21 = vld [vmem:[%s16157_s0 + $0x758] sm:$0xfc]  ;;  %v8935_v32 = vld [vmem:[%s16157_s0 + $0x770] sm:$0x3] }
 0x1dc   :  { %v2632_v54 = vadd.f32 %v2536_v34, %v2340_v33  ;;  %v3488_v58 = vsel %vm801_vm0, %v3486_v49, %v3487_v61  ;;  %v3497_v11 = vsel %vm801_vm0, %v3495_v48, %v3496_v20  ;;  %v4545_v42 = vrot.slane %v4069_v41, 2 }
 0x1dd   :  { %v3688_v60 = vadd.f32 %v3488_v58, %v2629_v5  ;;  %v4546_v7 = vrot.slane %v4072_v53, 2  ;;  %v4554_v40 = vrot.slane %v4075_v8, 2  ;;  %v4555_v34 = vrot.slane %v4078_v14, 2 }
 0x1de   :  { %v3691_v44 = vadd.f32 %v3497_v11, %v2632_v54  ;;  %v4943_v10 = vmul.f32 %v8071_v18, %v9489_v24  ;;  %v4946_v50 = vmul.f32 %v8551_v43, %v9489_v24  ;;  %v5420_v25 = vmul.f32 %v8734_v15, %v9532_v59  ;;  %v12314_v54 = vld [vmem:[%s16157_s0 + $0x6d0] sm:$0xff]  ;;  %v122_v15 = vld [vmem:[%s16157_s0 + $0x700] sm:$0xff]  ;;  %v407_v11 = vld [vmem:[%s16157_s0 + $0x6e8] sm:$0x1] }
 0x1df   :  { %v4547_v45 = vsel %vm1861_vm1, %v4545_v42, %v4546_v7  ;;  %v5423_v2 = vmul.f32 %v8737_v57, %v9532_v59  ;;  %v4556_v51 = vsel %vm1861_vm1, %v4554_v40, %v4555_v34  ;;  %v5426_v18 = vmul.f32 %v8740_v28, %v9532_v59  ;;  %v404_v57 = vld [vmem:[%s16157_s0 + $0x6d0] sm:$0xfe] }
 0x1e0   :  { %v4747_v9 = vadd.f32 %v4547_v45, %v3688_v60  ;;  %v5429_v62 = vmul.f32 %v8743_v30, %v9532_v59  ;;  %v4750_v33 = vadd.f32 %v4556_v51, %v3691_v44  ;;  %v5896_v49 = vrot.slane %v5420_v25, 1  ;;  %v413_v30 = vld [vmem:[%s16157_s0 + $0x718] sm:$0x1]  ;;  %v1470_v51 = vld [vmem:[%s16157_s0 + $0x700] sm:$0xfc] }
 0x1e1   :  { %v5897_v61 = vrot.slane %v5423_v2, 1  ;;  %v6479_v41 = vmul.f32 %v12048_v39, %v8926_v1  ;;  %v5905_v48 = vrot.slane %v5426_v18, 1  ;;  %v6482_v53 = vmul.f32 %v12048_v39, %v8929_v26  ;;  %v1464_v1 = vld [vmem:[%s16157_s0 + $0x6d0] sm:$0xfc]  ;;  %v1467_v26 = vld [vmem:[%s16157_s0 + $0x6e8] sm:$0x3] }
 0x1e2   :  { %v5039_v5 = vadd.f32 %v4943_v10, %v4747_v9  ;;  %v5906_v20 = vrot.slane %v5429_v62, 1  ;;  %v5042_v58 = vadd.f32 %v4946_v50, %v4750_v33  ;;  %v6485_v14 = vmul.f32 %v12048_v39, %v8932_v21 }
 0x1e3   :  { %v5898_v8 = vsel %vm801_vm0, %v5896_v49, %v5897_v61  ;;  %v6488_v43 = vmul.f32 %v12048_v39, %v8935_v32  ;;  %v6955_v7 = vrot.slane %v6479_v41, 2  ;;  %v6956_v28 = vrot.slane %v6482_v53, 2  ;;  %v410_v39 = vld [vmem:[%s16157_s0 + $0x700] sm:$0xfe]  ;;  %v1473_v32 = vld [vmem:[%s16157_s0 + $0x718] sm:$0x3] }
 0x1e4   :  { %v5907_v60 = vsel %vm801_vm0, %v5905_v48, %v5906_v20  ;;  %v6098_v42 = vadd.f32 %v5898_v8, %v5039_v5  ;;  %v6964_v40 = vrot.slane %v6485_v14, 2  ;;  %v218_v10 = vmul.f32 %v10601_v0, %v12314_v54  ;;  %v8255_v8 = vld [vmem:[%s16157_s0 + $0x700] sm:$0xfe] }
 0x1e5   :  { %v6101_v44 = vadd.f32 %v5907_v60, %v5042_v58  ;;  %v6965_v34 = vrot.slane %v6488_v43, 2  ;;  %v6957_v45 = vsel %vm1861_vm1, %v6955_v7, %v6956_v28  ;;  %v221_v50 = vmul.f32 %v10601_v0, %v122_v15  ;;  %v8072_v58 = vld [vmem:[%s16157_s0 + $0x730] sm:$0xff]  ;;  %v8258_v60 = vld [vmem:[%s16157_s0 + $0x718] sm:$0x1] }
 0x1e6   :  { %v599_v25 = vmul.f32 %v10625_v52, %v404_v57  ;;  %v602_v2 = vmul.f32 %v10625_v52, %v407_v11  ;;  %v7157_v18 = vadd.f32 %v6957_v45, %v6098_v42  ;;  %v605_v62 = vmul.f32 %v10625_v52, %v410_v39  ;;  %v8261_v42 = vld [vmem:[%s16157_s0 + $0x730] sm:$0xfe] }
 0x1e7   :  { %v6966_v9 = vsel %vm1861_vm1, %v6964_v40, %v6965_v34  ;;  %v608_v21 = vmul.f32 %v10625_v52, %v413_v30  ;;  %v1659_v41 = vmul.f32 %v10634_v35, %v1464_v1  ;;  %v1662_v20 = vmul.f32 %v10634_v35, %v1467_v26  ;;  %v8447_v40 = vld [vmem:[%s16157_s0 + $0x700] sm:$0xfc] }
 0x1e8   :  { %v7160_v33 = vadd.f32 %v6966_v9, %v6101_v44  ;;  %v1078_v49 = vrot.slane %v599_v25, 1  ;;  %v1079_v61 = vrot.slane %v602_v2, 1  ;;  %v1087_v5 = vrot.slane %v605_v62, 1  ;;  %v8264_v44 = vld [vmem:[%s16157_s0 + $0x748] sm:$0x1] }
 0x1e9   :  { %v1088_v48 = vrot.slane %v608_v21, 1  ;;  %v1665_v53 = vmul.f32 %v10634_v35, %v1470_v51  ;;  %v1668_v57 = vmul.f32 %v10634_v35, %v1473_v32  ;;  %v2138_v11 = vrot.slane %v1659_v41, 2  ;;  %v8450_v9 = vld [vmem:[%s16157_s0 + $0x718] sm:$0x3]  ;;  %v8456_v21 = vld [vmem:[%s16157_s0 + $0x748] sm:$0x3] }
 0x1ea   :  { %v7208_v14 = vpack.c.bf16 %v7160_v33, %v7157_v18  ;;  %v1080_v43 = vsel %vm801_vm0, %v1078_v49, %v1079_v61  ;;  %v2139_v39 = vrot.slane %v1662_v20, 2  ;;  %v2534_v45 = vmul.f32 %v10637_v16, %v122_v15 }
 0x1eb   :  { %v1089_v7 = vsel %vm801_vm0, %v1087_v5, %v1088_v48  ;;  %v1278_v28 = vadd.f32 %v1080_v43, %v218_v10  ;;  %v2147_v30 = vrot.slane %v1665_v53, 2  ;;  %v2148_v1 = vrot.slane %v1668_v57, 2 }
 0x1ec   :  { %7281 = vmatpush.bf16.xpose.msrb.mxu0 %v7208_v14  ;;  %v1281_v34 = vadd.f32 %v1089_v7, %v221_v50  ;;  %v2537_v25 = vmul.f32 %v8072_v58, %v10637_v16  ;;  %v2140_v2 = vsel %vm1861_vm1, %v2138_v11, %v2139_v39  ;;  %v3011_v10 = vmul.f32 %v8255_v8, %v10640_v37  ;;  %v8453_v50 = vld [vmem:[%s16157_s0 + $0x730] sm:$0xfc]  ;;  %v8552_v8 = vld [vmem:[%s16157_s0 + $0x760] sm:$0xff] }
 0x1ed   :  { %v3014_v26 = vmul.f32 %v8258_v60, %v10640_v37  ;;  %v3017_v51 = vmul.f32 %v8261_v42, %v10640_v37  ;;  %v2149_v15 = vsel %vm1861_vm1, %v2147_v30, %v2148_v1  ;;  %v2338_v18 = vadd.f32 %v2140_v2, %v1278_v28  ;;  %v8735_v14 = vld [vmem:[%s16157_s0 + $0x730] sm:$0xfe]  ;;  %v8738_v42 = vld [vmem:[%s16157_s0 + $0x748] sm:$0x1]  ;;  %v8741_v7 = vld [vmem:[%s16157_s0 + $0x760] sm:$0xfe] }
 0x1ee   :  { %v3020_v62 = vmul.f32 %v8264_v44, %v10640_v37  ;;  %v4070_v32 = vmul.f32 %v8447_v40, %v10643_v47  ;;  %v2341_v33 = vadd.f32 %v2149_v15, %v1281_v34  ;;  %v3489_v49 = vrot.slane %v3011_v10, 1  ;;  %v8744_v40 = vld [vmem:[%s16157_s0 + $0x778] sm:$0x1]  ;;  %v8927_v34 = vld [vmem:[%s16157_s0 + $0x730] sm:$0xfc] }
 0x1ef   :  { %v3490_v61 = vrot.slane %v3014_v26, 1  ;;  %v3498_v41 = vrot.slane %v3017_v51, 1  ;;  %v2630_v5 = vadd.f32 %v2534_v45, %v2338_v18  ;;  %v4073_v20 = vmul.f32 %v8450_v9, %v10643_v47  ;;  %v8933_v15 = vld [vmem:[%s16157_s0 + $0x760] sm:$0xfc] }
 0x1f0   :  { %v3499_v48 = vrot.slane %v3020_v62, 1  ;;  %v4076_v53 = vmul.f32 %v8453_v50, %v10643_v47  ;;  %v2633_v43 = vadd.f32 %v2537_v25, %v2341_v33  ;;  %v4079_v11 = vmul.f32 %v8456_v21, %v10643_v47  ;;  %v8930_v50 = vld [vmem:[%s16157_s0 + $0x748] sm:$0x3]  ;;  %v8936_v21 = vld [vmem:[%s16157_s0 + $0x778] sm:$0x3] }
 0x1f1   :  { %v3491_v57 = vsel %vm801_vm0, %v3489_v49, %v3490_v61  ;;  %v4548_v60 = vrot.slane %v4070_v32, 2  ;;  %v4549_v30 = vrot.slane %v4073_v20, 2  ;;  %v4944_v25 = vmul.f32 %v8072_v58, %v10727_v36  ;;  %v12441_v32 = vld [vmem:[%s16158_s1 + $0x28] ss:$0 sm:$0xff] }
 0x1f2   :  { %v3500_v28 = vsel %vm801_vm0, %v3498_v41, %v3499_v48  ;;  %v3689_v39 = vadd.f32 %v3491_v57, %v2630_v5  ;;  %v4557_v44 = vrot.slane %v4076_v53, 2  ;;  %v4558_v45 = vrot.slane %v4079_v11, 2  ;;  %v272_v57 = vld [vmem:[%s16157_s0 + $0x1f0] sm:$0xfe] }
 0x1f3   :  { %v3692_v1 = vadd.f32 %v3500_v28, %v2633_v43  ;;  %v4947_v2 = vmul.f32 %v8552_v8, %v10727_v36  ;;  %v4550_v10 = vsel %vm1861_vm1, %v4548_v60, %v4549_v30  ;;  %v5421_v26 = vmul.f32 %v8735_v14, %v10733_v38  ;;  %v53_v14 = vld [vmem:[%s16157_s0 + $0x1f0] sm:$0xff]  ;;  %v56_v43 = vld [vmem:[%s16157_s0 + $0x220] sm:$0xff]  ;;  %v275_v28 = vld [vmem:[%s16157_s0 + $0x208] sm:$0x1] }
 0x1f4   :  { %v5424_v51 = vmul.f32 %v8738_v42, %v10733_v38  ;;  %v5427_v9 = vmul.f32 %v8741_v7, %v10733_v38  ;;  %v4559_v58 = vsel %vm1861_vm1, %v4557_v44, %v4558_v45  ;;  %v4748_v18 = vadd.f32 %v4550_v10, %v3689_v39  ;;  %v278_v39 = vld [vmem:[%s16157_s0 + $0x220] sm:$0xfe]  ;;  %v1332_v45 = vld [vmem:[%s16157_s0 + $0x1f0] sm:$0xfc] }
 0x1f5   :  { %v5430_v62 = vmul.f32 %v8744_v40, %v10733_v38  ;;  %v6480_v33 = vmul.f32 %v12441_v32, %v8927_v34  ;;  %v4751_v49 = vadd.f32 %v4559_v58, %v3692_v1  ;;  %v5899_v61 = vrot.slane %v5421_v26, 1  ;;  %v281_v1 = vld [vmem:[%s16157_s0 + $0x238] sm:$0x1]  ;;  %v1335_v58 = vld [vmem:[%s16157_s0 + $0x208] sm:$0x3] }
 0x1f6   :  { %v5900_v41 = vrot.slane %v5424_v51, 1  ;;  %v5908_v5 = vrot.slane %v5427_v9, 1  ;;  %v5040_v48 = vadd.f32 %v4944_v25, %v4748_v18  ;;  %v6483_v53 = vmul.f32 %v12441_v32, %v8930_v50  ;;  %v1338_v18 = vld [vmem:[%s16157_s0 + $0x220] sm:$0xfc] }
 0x1f7   :  { %v5909_v20 = vrot.slane %v5430_v62, 1  ;;  %v6486_v8 = vmul.f32 %v12441_v32, %v8933_v15  ;;  %v5043_v11 = vadd.f32 %v4947_v2, %v4751_v49  ;;  %v6489_v42 = vmul.f32 %v12441_v32, %v8936_v21  ;;  %v1341_v62 = vld [vmem:[%s16157_s0 + $0x238] sm:$0x3] }
 0x1f8   :  { %v5901_v60 = vsel %vm801_vm0, %v5899_v61, %v5900_v41  ;;  %v6958_v7 = vrot.slane %v6480_v33, 2  ;;  %v6959_v40 = vrot.slane %v6483_v53, 2  ;;  %v152_v10 = vmul.f32 %v10601_v0, %v53_v14 }
 0x1f9   :  { %v5910_v30 = vsel %vm801_vm0, %v5908_v5, %v5909_v20  ;;  %v6099_v44 = vadd.f32 %v5901_v60, %v5040_v48  ;;  %v6967_v34 = vrot.slane %v6486_v8, 2  ;;  %v6968_v2 = vrot.slane %v6489_v42, 2  ;;  %v8123_v60 = vld [vmem:[%s16157_s0 + $0x220] sm:$0xfe]  ;;  %v8126_v42 = vld [vmem:[%s16157_s0 + $0x238] sm:$0x1] }
 0x1fa   :  { %v6102_v25 = vadd.f32 %v5910_v30, %v5043_v11  ;;  %v155_v26 = vmul.f32 %v10601_v0, %v56_v43  ;;  %v6960_v51 = vsel %vm1861_vm1, %v6958_v7, %v6959_v40  ;;  %v467_v9 = vmul.f32 %v10625_v52, %v272_v57  ;;  %v8006_v11 = vld [vmem:[%s16157_s0 + $0x250] sm:$0xff]  ;;  %v8132_v40 = vld [vmem:[%s16157_s0 + $0x268] sm:$0x1] }
 0x1fb   :  { %v470_v50 = vmul.f32 %v10625_v52, %v275_v28  ;;  %v473_v15 = vmul.f32 %v10625_v52, %v278_v39  ;;  %v6969_v21 = vsel %vm1861_vm1, %v6967_v34, %v6968_v2  ;;  %v7158_v33 = vadd.f32 %v6960_v51, %v6099_v44  ;;  %v8129_v44 = vld [vmem:[%s16157_s0 + $0x250] sm:$0xfe]  ;;  %v8315_v2 = vld [vmem:[%s16157_s0 + $0x220] sm:$0xfc] }
 0x1fc   :  { %v476_v49 = vmul.f32 %v10625_v52, %v281_v1  ;;  %v1527_v61 = vmul.f32 %v10634_v35, %v1332_v45  ;;  %v7161_v41 = vadd.f32 %v6969_v21, %v6102_v25  ;;  %v880_v5 = vrot.slane %v467_v9, 1  ;;  %v8324_v21 = vld [vmem:[%s16157_s0 + $0x268] sm:$0x3] }
 0x1fd   :  { %v881_v48 = vrot.slane %v470_v50, 1  ;;  %v889_v20 = vrot.slane %v473_v15, 1  ;;  %v1530_v8 = vmul.f32 %v10634_v35, %v1335_v58  ;;  %v1533_v14 = vmul.f32 %v10634_v35, %v1338_v18 }
 0x1fe   :  { %v890_v53 = vrot.slane %v476_v49, 1  ;;  %v1536_v57 = vmul.f32 %v10634_v35, %v1341_v62  ;;  %v7209_v7 = vpack.c.bf16 %v7161_v41, %v7158_v33  ;;  %v1940_v39 = vrot.slane %v1527_v61, 2  ;;  %v8318_v62 = vld [vmem:[%s16157_s0 + $0x238] sm:$0x3] }
 0x1ff   :  { %v882_v28 = vsel %vm801_vm0, %v880_v5, %v881_v48  ;;  %v2468_v30 = vmul.f32 %v10637_v16, %v56_v43  ;;  %v1941_v45 = vrot.slane %v1530_v8, 2  ;;  %v1949_v25 = vrot.slane %v1533_v14, 2 }
 0x200   :  { %v891_v34 = vsel %vm801_vm0, %v889_v20, %v890_v53  ;;  %v1212_v1 = vadd.f32 %v882_v28, %v152_v10  ;;  %7294 = vmatpush.bf16.xpose.msrb.mxu1 %v7209_v7  ;;  %v1950_v43 = vrot.slane %v1536_v57, 2  ;;  %v2471_v9 = vmul.f32 %v8006_v11, %v10637_v16  ;;  %v8603_v7 = vld [vmem:[%s16157_s0 + $0x250] sm:$0xfe] }
 0x201   :  { %v1215_v51 = vadd.f32 %v891_v34, %v155_v26  ;;  %v2879_v50 = vmul.f32 %v8123_v60, %v10640_v37  ;;  %v1942_v15 = vsel %vm1861_vm1, %v1940_v39, %v1941_v45  ;;  %v2882_v58 = vmul.f32 %v8126_v42, %v10640_v37  ;;  %v8321_v26 = vld [vmem:[%s16157_s0 + $0x250] sm:$0xfc]  ;;  %v8486_v42 = vld [vmem:[%s16157_s0 + $0x280] sm:$0xff] }
 0x202   :  { %v2885_v18 = vmul.f32 %v8129_v44, %v10640_v37  ;;  %v2888_v10 = vmul.f32 %v8132_v40, %v10640_v37  ;;  %v1951_v33 = vsel %vm1861_vm1, %v1949_v25, %v1950_v43  ;;  %v2272_v49 = vadd.f32 %v1942_v15, %v1212_v1  ;;  %v8606_v40 = vld [vmem:[%s16157_s0 + $0x268] sm:$0x1]  ;;  %v8609_v34 = vld [vmem:[%s16157_s0 + $0x280] sm:$0xfe] }
 0x203   :  { %v3291_v61 = vrot.slane %v2879_v50, 1  ;;  %v3938_v41 = vmul.f32 %v8315_v2, %v10643_v47  ;;  %v2275_v5 = vadd.f32 %v1951_v33, %v1215_v51  ;;  %v3292_v48 = vrot.slane %v2882_v58, 1  ;;  %v8612_v51 = vld [vmem:[%s16157_s0 + $0x298] sm:$0x1]  ;;  %v8795_v58 = vld [vmem:[%s16157_s0 + $0x250] sm:$0xfc] }
 0x204   :  { %v3300_v20 = vrot.slane %v2885_v18, 1  ;;  %v3301_v53 = vrot.slane %v2888_v10, 1  ;;  %v2564_v8 = vadd.f32 %v2468_v30, %v2272_v49  ;;  %v3941_v14 = vmul.f32 %v8318_v62, %v10643_v47  ;;  %v8798_v18 = vld [vmem:[%s16157_s0 + $0x268] sm:$0x3] }
 0x205   :  { %v3944_v57 = vmul.f32 %v8321_v26, %v10643_v47  ;;  %v3947_v60 = vmul.f32 %v8324_v21, %v10643_v47  ;;  %v2567_v28 = vadd.f32 %v2471_v9, %v2275_v5  ;;  %v3293_v39 = vsel %vm801_vm0, %v3291_v61, %v3292_v48  ;;  %v8801_v21 = vld [vmem:[%s16157_s0 + $0x280] sm:$0xfc]  ;;  %v8804_v5 = vld [vmem:[%s16157_s0 + $0x298] sm:$0x3] }
 0x206   :  { %v3302_v44 = vsel %vm801_vm0, %v3300_v20, %v3301_v53  ;;  %v4350_v30 = vrot.slane %v3938_v41, 2  ;;  %v3623_v1 = vadd.f32 %v3293_v39, %v2564_v8  ;;  %v4351_v45 = vrot.slane %v3941_v14, 2  ;;  %v99_v14 = vld [vmem:[%s16157_s0 + $0x5a0] sm:$0xff] }
 0x207   :  { %v4359_v25 = vrot.slane %v3944_v57, 2  ;;  %v4360_v2 = vrot.slane %v3947_v60, 2  ;;  %v3626_v43 = vadd.f32 %v3302_v44, %v2567_v28  ;;  %v4878_v9 = vmul.f32 %v8006_v11, %v10727_v36  ;;  %v102_v28 = vld [vmem:[%s16157_s0 + $0x5d0] sm:$0xff]  ;;  %v366_v39 = vld [vmem:[%s16157_s0 + $0x5a0] sm:$0xfe] }
 0x208   :  { %v4881_v50 = vmul.f32 %v8486_v42, %v10727_v36  ;;  %v5289_v15 = vmul.f32 %v8603_v7, %v10733_v38  ;;  %v4352_v10 = vsel %vm1861_vm1, %v4350_v30, %v4351_v45  ;;  %v5292_v26 = vmul.f32 %v8606_v40, %v10733_v38  ;;  %v369_v44 = vld [vmem:[%s16157_s0 + $0x5b8] sm:$0x1]  ;;  %v372_v45 = vld [vmem:[%s16157_s0 + $0x5d0] sm:$0xfe] }
 0x209   :  { %v4361_v62 = vsel %vm1861_vm1, %v4359_v25, %v4360_v2  ;;  %v5295_v11 = vmul.f32 %v8609_v34, %v10733_v38  ;;  %v4682_v33 = vadd.f32 %v4352_v10, %v3623_v1  ;;  %v5298_v61 = vmul.f32 %v8612_v51, %v10733_v38  ;;  %v375_v25 = vld [vmem:[%s16157_s0 + $0x5e8] sm:$0x1] }
 0x20a   :  { %v4685_v49 = vadd.f32 %v4361_v62, %v3626_v43  ;;  %v5701_v41 = vrot.slane %v5289_v15, 1  ;;  %v5702_v48 = vrot.slane %v5292_v26, 1  ;;  %v6348_v53 = vmul.f32 %v12441_v32, %v8795_v58  ;;  %v1429_v15 = vld [vmem:[%s16157_s0 + $0x5b8] sm:$0x3] }
 0x20b   :  { %v5710_v20 = vrot.slane %v5295_v11, 1  ;;  %v6351_v8 = vmul.f32 %v12441_v32, %v8798_v18  ;;  %v4974_v57 = vadd.f32 %v4878_v9, %v4682_v33  ;;  %v5711_v42 = vrot.slane %v5298_v61, 1  ;;  %v1435_v61 = vld [vmem:[%s16157_s0 + $0x5e8] sm:$0x3] }
 0x20c   :  { %v4977_v60 = vadd.f32 %v4881_v50, %v4685_v49  ;;  %v6354_v7 = vmul.f32 %v12441_v32, %v8801_v21  ;;  %v5703_v30 = vsel %vm801_vm0, %v5701_v41, %v5702_v48  ;;  %v6357_v40 = vmul.f32 %v12441_v32, %v8804_v5  ;;  %v1426_v50 = vld [vmem:[%s16157_s0 + $0x5a0] sm:$0xfc]  ;;  %v1432_v49 = vld [vmem:[%s16157_s0 + $0x5d0] sm:$0xfc] }
 0x20d   :  { %v6760_v34 = vrot.slane %v6348_v53, 2  ;;  %v6761_v1 = vrot.slane %v6351_v8, 2  ;;  %v5712_v2 = vsel %vm801_vm0, %v5710_v20, %v5711_v42  ;;  %v6033_v51 = vadd.f32 %v5703_v30, %v4974_v57 }
 0x20e   :  { %v6769_v43 = vrot.slane %v6354_v7, 2  ;;  %v198_v9 = vmul.f32 %v9226_v3, %v99_v14  ;;  %v6036_v58 = vadd.f32 %v5712_v2, %v4977_v60  ;;  %v6770_v10 = vrot.slane %v6357_v40, 2 }
 0x20f   :  { %v6762_v18 = vsel %vm1861_vm1, %v6760_v34, %v6761_v1  ;;  %v201_v62 = vmul.f32 %v9226_v3, %v102_v28  ;;  %v561_v11 = vmul.f32 %v9229_v4, %v366_v39  ;;  %v564_v21 = vmul.f32 %v9229_v4, %v369_v44  ;;  %v8217_v44 = vld [vmem:[%s16157_s0 + $0x5d0] sm:$0xfe] }
 0x210   :  { %v7092_v26 = vadd.f32 %v6762_v18, %v6033_v51  ;;  %v567_v33 = vmul.f32 %v9229_v4, %v372_v45  ;;  %v6771_v41 = vsel %vm1861_vm1, %v6769_v43, %v6770_v10  ;;  %v570_v5 = vmul.f32 %v9229_v4, %v375_v25  ;;  %v8220_v45 = vld [vmem:[%s16157_s0 + $0x5e8] sm:$0x1]  ;;  %v8223_v25 = vld [vmem:[%s16157_s0 + $0x600] sm:$0xfe] }
 0x211   :  { %v1621_v48 = vmul.f32 %v9264_v19, %v1426_v50  ;;  %v1624_v20 = vmul.f32 %v9264_v19, %v1429_v15  ;;  %v7095_v53 = vadd.f32 %v6771_v41, %v6036_v58  ;;  %v1018_v8 = vrot.slane %v561_v11, 1  ;;  %v8226_v15 = vld [vmem:[%s16157_s0 + $0x618] sm:$0x1] }
 0x212   :  { %v1019_v14 = vrot.slane %v564_v21, 1  ;;  %v1027_v57 = vrot.slane %v567_v33, 1  ;;  %v1028_v60 = vrot.slane %v570_v5, 1  ;;  %v1627_v42 = vmul.f32 %v9264_v19, %v1432_v49 }
 0x213   :  { %v1630_v7 = vmul.f32 %v9264_v19, %v1435_v61  ;;  %v2078_v39 = vrot.slane %v1621_v48, 2  ;;  %v7176_v30 = vpack.c.bf16 %v7095_v53, %v7092_v26  ;;  %v2079_v34 = vrot.slane %v1624_v20, 2  ;;  %v8529_v20 = vld [vmem:[%s16157_s0 + $0x600] sm:$0xff] }
 0x214   :  { %v1020_v40 = vsel %vm801_vm0, %v1018_v8, %v1019_v14  ;;  %v2514_v1 = vmul.f32 %v9267_v22, %v102_v28  ;;  %v1029_v2 = vsel %vm801_vm0, %v1027_v57, %v1028_v60  ;;  %v2087_v43 = vrot.slane %v1627_v42, 2  ;;  %v8409_v28 = vld [vmem:[%s16157_s0 + $0x5d0] sm:$0xfc] }
 0x215   :  { %v1258_v51 = vadd.f32 %v1020_v40, %v198_v9  ;;  %v2088_v50 = vrot.slane %v1630_v7, 2  ;;  %7258 = vmatpush.bf16.xpose.msra.mxu2 %v7176_v30  ;;  %v1261_v58 = vadd.f32 %v1029_v2, %v201_v62  ;;  %v2080_v18 = vsel %vm1861_vm1, %v2078_v39, %v2079_v34  ;;  %v8412_v9 = vld [vmem:[%s16157_s0 + $0x5e8] sm:$0x3]  ;;  %v8415_v62 = vld [vmem:[%s16157_s0 + $0x600] sm:$0xfc] }
 0x216   :  { %v2517_v10 = vmul.f32 %v9267_v22, %v12055_v12  ;;  %v2973_v26 = vmul.f32 %v8217_v44, %v9270_v23  ;;  %v2976_v33 = vmul.f32 %v8220_v45, %v9270_v23  ;;  %v2979_v49 = vmul.f32 %v8223_v25, %v9270_v23  ;;  %v8418_v12 = vld [vmem:[%s16157_s0 + $0x618] sm:$0x3]  ;;  %v8532_v44 = vld [vmem:[%s16157_s0 + $0x630] sm:$0xff]  ;;  %v8697_v30 = vld [vmem:[%s16157_s0 + $0x600] sm:$0xfe] }
 0x217   :  { %v2089_v11 = vsel %vm1861_vm1, %v2087_v43, %v2088_v50  ;;  %v2318_v21 = vadd.f32 %v2080_v18, %v1258_v51  ;;  %v2982_v41 = vmul.f32 %v8226_v15, %v9270_v23  ;;  %v4032_v48 = vmul.f32 %v8409_v28, %v9318_v56  ;;  %v8700_v25 = vld [vmem:[%s16157_s0 + $0x618] sm:$0x1]  ;;  %v8703_v2 = vld [vmem:[%s16157_s0 + $0x630] sm:$0xfe]  ;;  %v8706_v28 = vld [vmem:[%s16157_s0 + $0x648] sm:$0x1] }
 0x218   :  { %v2321_v61 = vadd.f32 %v2089_v11, %v1261_v58  ;;  %v3429_v5 = vrot.slane %v2973_v26, 1  ;;  %v3430_v8 = vrot.slane %v2976_v33, 1  ;;  %v3438_v14 = vrot.slane %v2979_v49, 1  ;;  %v8889_v58 = vld [vmem:[%s16157_s0 + $0x600] sm:$0xfc] }
 0x219   :  { %v2610_v53 = vadd.f32 %v2514_v1, %v2318_v21  ;;  %v4035_v57 = vmul.f32 %v8412_v9, %v9318_v56  ;;  %v3439_v42 = vrot.slane %v2982_v41, 1  ;;  %v4038_v7 = vmul.f32 %v8415_v62, %v9318_v56  ;;  %v8892_v11 = vld [vmem:[%s16157_s0 + $0x618] sm:$0x3] }
 0x21a   :  { %v2613_v60 = vadd.f32 %v2517_v10, %v2321_v61  ;;  %v4041_v39 = vmul.f32 %v8418_v12, %v9318_v56  ;;  %v3431_v40 = vsel %vm801_vm0, %v3429_v5, %v3430_v8  ;;  %v4488_v34 = vrot.slane %v4032_v48, 2  ;;  %v8895_v12 = vld [vmem:[%s16157_s0 + $0x630] sm:$0xfc]  ;;  %v8898_v61 = vld [vmem:[%s16157_s0 + $0x648] sm:$0x3] }
 0x21b   :  { %v4489_v1 = vrot.slane %v4035_v57, 2  ;;  %v4924_v45 = vmul.f32 %v8529_v20, %v9350_v27  ;;  %v3440_v51 = vsel %vm801_vm0, %v3438_v14, %v3439_v42  ;;  %v3669_v43 = vadd.f32 %v3431_v40, %v2610_v53  ;;  %v12699_v20 = vld [vmem:[%s16158_s1 + $0x18] ss:$0 sm:$0xff]  ;;  %v12705_v8 = vld [vmem:[%s16157_s0 + $0x668] sm:$0xff] }
 0x21c   :  { %v4497_v50 = vrot.slane %v4038_v7, 2  ;;  %v4498_v15 = vrot.slane %v4041_v39, 2  ;;  %v3672_v18 = vadd.f32 %v3440_v51, %v2613_v60  ;;  %v4927_v26 = vmul.f32 %v8532_v44, %v9350_v27  ;;  %v115_v40 = vld [vmem:[%s16157_s0 + $0x698] sm:$0xff]  ;;  %v394_v51 = vld [vmem:[%s16157_s0 + $0x680] sm:$0x1] }
 0x21d   :  { %v4490_v10 = vsel %vm1861_vm1, %v4488_v34, %v4489_v1  ;;  %v5383_v9 = vmul.f32 %v8697_v30, %v9357_v31  ;;  %v5386_v49 = vmul.f32 %v8700_v25, %v9357_v31  ;;  %v5389_v62 = vmul.f32 %v8703_v2, %v9357_v31  ;;  %v391_v34 = vld [vmem:[%s16157_s0 + $0x668] sm:$0xfe] }
 0x21e   :  { %v4499_v21 = vsel %vm1861_vm1, %v4497_v50, %v4498_v15  ;;  %v4728_v33 = vadd.f32 %v4490_v10, %v3669_v43  ;;  %v5392_v5 = vmul.f32 %v8706_v28, %v9357_v31  ;;  %v6442_v53 = vmul.f32 %v12699_v20, %v8889_v58  ;;  %v397_v43 = vld [vmem:[%s16157_s0 + $0x698] sm:$0xfe]  ;;  %v1451_v10 = vld [vmem:[%s16157_s0 + $0x668] sm:$0xfc] }
 0x21f   :  { %v4731_v41 = vadd.f32 %v4499_v21, %v3672_v18  ;;  %v5839_v48 = vrot.slane %v5383_v9, 1  ;;  %v5840_v57 = vrot.slane %v5386_v49, 1  ;;  %v5848_v60 = vrot.slane %v5389_v62, 1  ;;  %v400_v18 = vld [vmem:[%s16157_s0 + $0x6b0] sm:$0x1] }
 0x220   :  { %v5020_v14 = vadd.f32 %v4924_v45, %v4728_v33  ;;  %v6445_v42 = vmul.f32 %v12699_v20, %v8892_v11  ;;  %v5849_v39 = vrot.slane %v5392_v5, 1  ;;  %v6448_v44 = vmul.f32 %v12699_v20, %v8895_v12  ;;  %v1454_v33 = vld [vmem:[%s16157_s0 + $0x680] sm:$0x3]  ;;  %v1457_v49 = vld [vmem:[%s16157_s0 + $0x698] sm:$0xfc] }
 0x221   :  { %v5023_v7 = vadd.f32 %v4927_v26, %v4731_v41  ;;  %v6451_v30 = vmul.f32 %v12699_v20, %v8898_v61  ;;  %v5841_v1 = vsel %vm801_vm0, %v5839_v48, %v5840_v57  ;;  %v6898_v45 = vrot.slane %v6442_v53, 2  ;;  %v1460_v5 = vld [vmem:[%s16157_s0 + $0x6b0] sm:$0x3] }
 0x222   :  { %v6899_v25 = vrot.slane %v6445_v42, 2  ;;  %v211_v2 = vmul.f32 %v9403_v63, %v12705_v8  ;;  %v5850_v50 = vsel %vm801_vm0, %v5848_v60, %v5849_v39  ;;  %v6079_v15 = vadd.f32 %v5841_v1, %v5020_v14 }
 0x223   :  { %v6907_v28 = vrot.slane %v6448_v44, 2  ;;  %v6908_v58 = vrot.slane %v6451_v30, 2  ;;  %v6082_v26 = vadd.f32 %v5850_v50, %v5023_v7  ;;  %v214_v11 = vmul.f32 %v9403_v63, %v115_v40 }
 0x224   :  { %v6900_v9 = vsel %vm1861_vm1, %v6898_v45, %v6899_v25  ;;  %v586_v21 = vmul.f32 %v9409_v6, %v391_v34  ;;  %v589_v61 = vmul.f32 %v9409_v6, %v394_v51  ;;  %v592_v41 = vmul.f32 %v9409_v6, %v397_v43  ;;  %v8242_v45 = vld [vmem:[%s16157_s0 + $0x698] sm:$0xfe]  ;;  %v8245_v25 = vld [vmem:[%s16157_s0 + $0x6b0] sm:$0x1] }
 0x225   :  { %v6909_v62 = vsel %vm1861_vm1, %v6907_v28, %v6908_v58  ;;  %v7138_v12 = vadd.f32 %v6900_v9, %v6079_v15  ;;  %v595_v53 = vmul.f32 %v9409_v6, %v400_v18  ;;  %v1646_v57 = vmul.f32 %v9420_v13, %v1451_v10  ;;  %v8248_v28 = vld [vmem:[%s16157_s0 + $0x6c8] sm:$0xfe]  ;;  %v8251_v58 = vld [vmem:[%s16157_s0 + $0x6e0] sm:$0x1] }
 0x226   :  { %v7141_v48 = vadd.f32 %v6909_v62, %v6082_v26  ;;  %v1057_v14 = vrot.slane %v586_v21, 1  ;;  %v1058_v60 = vrot.slane %v589_v61, 1  ;;  %v1066_v42 = vrot.slane %v592_v41, 1 }
 0x227   :  { %v1649_v7 = vmul.f32 %v9420_v13, %v1454_v33  ;;  %v1652_v39 = vmul.f32 %v9420_v13, %v1457_v49  ;;  %v1067_v30 = vrot.slane %v595_v53, 1  ;;  %v1655_v34 = vmul.f32 %v9420_v13, %v1460_v5  ;;  %v8443_v5 = vld [vmem:[%s16157_s0 + $0x6e0] sm:$0x3] }
 0x228   :  { %v7198_v44 = vpack.c.bf16 %v7141_v48, %v7138_v12  ;;  %v2117_v1 = vrot.slane %v1646_v57, 2  ;;  %v1059_v51 = vsel %vm801_vm0, %v1057_v14, %v1058_v60  ;;  %v2527_v15 = vmul.f32 %v9449_v46, %v115_v40  ;;  %v8434_v40 = vld [vmem:[%s16157_s0 + $0x698] sm:$0xfc]  ;;  %v8437_v12 = vld [vmem:[%s16157_s0 + $0x6b0] sm:$0x3] }
 0x229   :  { %v2118_v43 = vrot.slane %v1649_v7, 2  ;;  %v2126_v50 = vrot.slane %v1652_v39, 2  ;;  %v1068_v18 = vsel %vm801_vm0, %v1066_v42, %v1067_v30  ;;  %v1271_v10 = vadd.f32 %v1059_v51, %v211_v2  ;;  %v8722_v51 = vld [vmem:[%s16157_s0 + $0x6c8] sm:$0xfe] }
 0x22a   :  { %7271 = vmatpush.bf16.xpose.msra.mxu3 %v7198_v44  ;;  %v2127_v26 = vrot.slane %v1655_v34, 2  ;;  %v2530_v9 = vmul.f32 %v9449_v46, %v12184_v29  ;;  %v1274_v21 = vadd.f32 %v1068_v18, %v214_v11  ;;  %v2998_v49 = vmul.f32 %v8242_v45, %v9462_v55  ;;  %v8440_v11 = vld [vmem:[%s16157_s0 + $0x6c8] sm:$0xfc]  ;;  %v8728_v18 = vld [vmem:[%s16157_s0 + $0x6f8] sm:$0xfe] }
 0x22b   :  { %v2119_v33 = vsel %vm1861_vm1, %v2117_v1, %v2118_v43  ;;  %v3001_v62 = vmul.f32 %v8245_v25, %v9462_v55  ;;  %v3004_v29 = vmul.f32 %v8248_v28, %v9462_v55  ;;  %v3007_v41 = vmul.f32 %v8251_v58, %v9462_v55  ;;  %v8542_v44 = vld [vmem:[%s16157_s0 + $0x6c8] sm:$0xff]  ;;  %v8545_v25 = vld [vmem:[%s16157_s0 + $0x6f8] sm:$0xff]  ;;  %v8725_v43 = vld [vmem:[%s16157_s0 + $0x6e0] sm:$0x1] }
 0x22c   :  { %v2128_v2 = vsel %vm1861_vm1, %v2126_v50, %v2127_v26  ;;  %v2331_v61 = vadd.f32 %v2119_v33, %v1271_v10  ;;  %v3468_v53 = vrot.slane %v2998_v49, 1  ;;  %v4057_v57 = vmul.f32 %v8434_v40, %v9486_v17  ;;  %v8731_v10 = vld [vmem:[%s16157_s0 + $0x710] sm:$0x1]  ;;  %v8914_v33 = vld [vmem:[%s16157_s0 + $0x6c8] sm:$0xfc] }
 0x22d   :  { %v2334_v48 = vadd.f32 %v2128_v2, %v1274_v21  ;;  %v3469_v14 = vrot.slane %v3001_v62, 1  ;;  %v3477_v42 = vrot.slane %v3004_v29, 1  ;;  %v3478_v7 = vrot.slane %v3007_v41, 1 }
 0x22e   :  { %v2623_v60 = vadd.f32 %v2527_v15, %v2331_v61  ;;  %v4060_v39 = vmul.f32 %v8437_v12, %v9486_v17  ;;  %v4063_v1 = vmul.f32 %v8440_v11, %v9486_v17  ;;  %v4066_v45 = vmul.f32 %v8443_v5, %v9486_v17  ;;  %v8917_v61 = vld [vmem:[%s16157_s0 + $0x6e0] sm:$0x3] }
 0x22f   :  { %v2626_v30 = vadd.f32 %v2530_v9, %v2334_v48  ;;  %v3470_v34 = vsel %vm801_vm0, %v3468_v53, %v3469_v14  ;;  %v3479_v50 = vsel %vm801_vm0, %v3477_v42, %v3478_v7  ;;  %v4527_v28 = vrot.slane %v4057_v57, 2  ;;  %v8920_v48 = vld [vmem:[%s16157_s0 + $0x6f8] sm:$0xfc]  ;;  %v8923_v53 = vld [vmem:[%s16157_s0 + $0x710] sm:$0x3] }
 0x230   :  { %v3682_v15 = vadd.f32 %v3470_v34, %v2623_v60  ;;  %v4528_v58 = vrot.slane %v4060_v39, 2  ;;  %v4536_v9 = vrot.slane %v4063_v1, 2  ;;  %v4537_v40 = vrot.slane %v4066_v45, 2  ;;  %v12834_v42 = vld [vmem:[%s16158_s1 + $0x20] ss:$0 sm:$0xff]  ;;  %v12841_v1 = vld [vmem:[%s16157_s0 + $0x670] sm:$0xff] }
 0x231   :  { %v3685_v26 = vadd.f32 %v3479_v50, %v2626_v30  ;;  %v4937_v21 = vmul.f32 %v8542_v44, %v9489_v24  ;;  %v4940_v62 = vmul.f32 %v8545_v25, %v9489_v24  ;;  %v5408_v12 = vmul.f32 %v8722_v51, %v9532_v59  ;;  %v116_v50 = vld [vmem:[%s16157_s0 + $0x6a0] sm:$0xff] }
 0x232   :  { %v4529_v49 = vsel %vm1861_vm1, %v4527_v28, %v4528_v58  ;;  %v5411_v2 = vmul.f32 %v8725_v43, %v9532_v59  ;;  %v4538_v29 = vsel %vm1861_vm1, %v4536_v9, %v4537_v40  ;;  %v5414_v11 = vmul.f32 %v8728_v18, %v9532_v59  ;;  %v395_v28 = vld [vmem:[%s16157_s0 + $0x688] sm:$0x1]  ;;  %v398_v9 = vld [vmem:[%s16157_s0 + $0x6a0] sm:$0xfe]  ;;  %v401_v40 = vld [vmem:[%s16157_s0 + $0x6b8] sm:$0x1] }
 0x233   :  { %v4741_v41 = vadd.f32 %v4529_v49, %v3682_v15  ;;  %v5417_v5 = vmul.f32 %v8731_v10, %v9532_v59  ;;  %v4744_v14 = vadd.f32 %v4538_v29, %v3685_v26  ;;  %v5878_v57 = vrot.slane %v5408_v12, 1  ;;  %v392_v15 = vld [vmem:[%s16157_s0 + $0x670] sm:$0xfe] }
 0x234   :  { %v5879_v60 = vrot.slane %v5411_v2, 1  ;;  %v6467_v7 = vmul.f32 %v12834_v42, %v8914_v33  ;;  %v5887_v44 = vrot.slane %v5414_v11, 1  ;;  %v6470_v34 = vmul.f32 %v12834_v42, %v8917_v61  ;;  %v1452_v12 = vld [vmem:[%s16157_s0 + $0x670] sm:$0xfc]  ;;  %v1455_v11 = vld [vmem:[%s16157_s0 + $0x688] sm:$0x3] }
 0x235   :  { %v5033_v39 = vadd.f32 %v4937_v21, %v4741_v41  ;;  %v5888_v30 = vrot.slane %v5417_v5, 1  ;;  %v5036_v45 = vadd.f32 %v4940_v62, %v4744_v14  ;;  %v6473_v51 = vmul.f32 %v12834_v42, %v8920_v48  ;;  %v1458_v5 = vld [vmem:[%s16157_s0 + $0x6a0] sm:$0xfc] }
 0x236   :  { %v5880_v25 = vsel %vm801_vm0, %v5878_v57, %v5879_v60  ;;  %v6476_v43 = vmul.f32 %v12834_v42, %v8923_v53  ;;  %v6937_v10 = vrot.slane %v6467_v7, 2  ;;  %v6938_v26 = vrot.slane %v6470_v34, 2  ;;  %v1461_v60 = vld [vmem:[%s16157_s0 + $0x6b8] sm:$0x3] }
 0x237   :  { %v5889_v58 = vsel %vm801_vm0, %v5887_v44, %v5888_v30  ;;  %v6092_v18 = vadd.f32 %v5880_v25, %v5033_v39  ;;  %v6946_v33 = vrot.slane %v6473_v51, 2  ;;  %v212_v62 = vmul.f32 %v10601_v0, %v12841_v1 }
 0x238   :  { %v6095_v21 = vadd.f32 %v5889_v58, %v5036_v45  ;;  %v6947_v49 = vrot.slane %v6476_v43, 2  ;;  %v6939_v2 = vsel %vm1861_vm1, %v6937_v10, %v6938_v26  ;;  %v215_v61 = vmul.f32 %v10601_v0, %v116_v50  ;;  %v8243_v43 = vld [vmem:[%s16157_s0 + $0x6a0] sm:$0xfe]  ;;  %v8246_v10 = vld [vmem:[%s16157_s0 + $0x6b8] sm:$0x1] }
 0x239   :  { %v587_v29 = vmul.f32 %v10625_v52, %v392_v15  ;;  %v590_v41 = vmul.f32 %v10625_v52, %v395_v28  ;;  %v7151_v53 = vadd.f32 %v6939_v2, %v6092_v18  ;;  %v593_v14 = vmul.f32 %v10625_v52, %v398_v9  ;;  %v8249_v26 = vld [vmem:[%s16157_s0 + $0x6d0] sm:$0xfe] }
 0x23a   :  { %v6948_v48 = vsel %vm1861_vm1, %v6946_v33, %v6947_v49  ;;  %v596_v57 = vmul.f32 %v10625_v52, %v401_v40  ;;  %v1647_v30 = vmul.f32 %v10634_v35, %v1452_v12  ;;  %v1650_v25 = vmul.f32 %v10634_v35, %v1455_v11  ;;  %v8252_v49 = vld [vmem:[%s16157_s0 + $0x6e8] sm:$0x1]  ;;  %v8435_v12 = vld [vmem:[%s16157_s0 + $0x6a0] sm:$0xfc] }
 0x23b   :  { %v7154_v7 = vadd.f32 %v6948_v48, %v6095_v21  ;;  %v1060_v39 = vrot.slane %v587_v29, 1  ;;  %v1061_v44 = vrot.slane %v590_v41, 1  ;;  %v1069_v34 = vrot.slane %v593_v14, 1  ;;  %v8438_v14 = vld [vmem:[%s16157_s0 + $0x6b8] sm:$0x3] }
 0x23c   :  { %v1070_v45 = vrot.slane %v596_v57, 1  ;;  %v1653_v51 = vmul.f32 %v10634_v35, %v1458_v5  ;;  %v1656_v58 = vmul.f32 %v10634_v35, %v1461_v60  ;;  %v2120_v18 = vrot.slane %v1647_v30, 2  ;;  %v8444_v60 = vld [vmem:[%s16157_s0 + $0x6e8] sm:$0x3] }
 0x23d   :  { %v7205_v15 = vpack.c.bf16 %v7154_v7, %v7151_v53  ;;  %v1062_v28 = vsel %vm801_vm0, %v1060_v39, %v1061_v44  ;;  %v2121_v21 = vrot.slane %v1650_v25, 2  ;;  %v2528_v41 = vmul.f32 %v10637_v16, %v116_v50 }
 0x23e   :  { %v1071_v9 = vsel %vm801_vm0, %v1069_v34, %v1070_v45  ;;  %v1272_v40 = vadd.f32 %v1062_v28, %v212_v62  ;;  %v2129_v33 = vrot.slane %v1653_v51, 2  ;;  %v2130_v29 = vrot.slane %v1656_v58, 2  ;;  %v8546_v28 = vld [vmem:[%s16157_s0 + $0x700] sm:$0xff]  ;;  %v8723_v58 = vld [vmem:[%s16157_s0 + $0x6d0] sm:$0xfe] }
 0x23f   :  { %7282 = vmatpush.bf16.xpose.msrb.mxu0 %v7205_v15  ;;  %v1275_v2 = vadd.f32 %v1071_v9, %v215_v61  ;;  %v2531_v11 = vmul.f32 %v10637_v16, %v12314_v54  ;;  %v2122_v62 = vsel %vm1861_vm1, %v2120_v18, %v2121_v21  ;;  %v2999_v5 = vmul.f32 %v8243_v43, %v10640_v37  ;;  %v8441_v61 = vld [vmem:[%s16157_s0 + $0x6d0] sm:$0xfc]  ;;  %v8729_v21 = vld [vmem:[%s16157_s0 + $0x700] sm:$0xfe] }
 0x240   :  { %v3002_v48 = vmul.f32 %v8246_v10, %v10640_v37  ;;  %v3005_v53 = vmul.f32 %v8249_v26, %v10640_v37  ;;  %v2131_v50 = vsel %vm1861_vm1, %v2129_v33, %v2130_v29  ;;  %v2332_v57 = vadd.f32 %v2122_v62, %v1272_v40  ;;  %v8543_v15 = vld [vmem:[%s16157_s0 + $0x6d0] sm:$0xff]  ;;  %v8726_v40 = vld [vmem:[%s16157_s0 + $0x6e8] sm:$0x1]  ;;  %v8732_v29 = vld [vmem:[%s16157_s0 + $0x718] sm:$0x1] }
 0x241   :  { %v3008_v54 = vmul.f32 %v8252_v49, %v10640_v37  ;;  %v4058_v7 = vmul.f32 %v8435_v12, %v10643_v47  ;;  %v2335_v39 = vadd.f32 %v2131_v50, %v1275_v2  ;;  %v3471_v44 = vrot.slane %v2999_v5, 1 }
 0x242   :  { %v3472_v30 = vrot.slane %v3002_v48, 1  ;;  %v3480_v34 = vrot.slane %v3005_v53, 1  ;;  %v2624_v45 = vadd.f32 %v2528_v41, %v2332_v57  ;;  %v4061_v51 = vmul.f32 %v8438_v14, %v10643_v47  ;;  %v8915_v41 = vld [vmem:[%s16157_s0 + $0x6d0] sm:$0xfc]  ;;  %v8918_v57 = vld [vmem:[%s16157_s0 + $0x6e8] sm:$0x3] }
 0x243   :  { %v3481_v25 = vrot.slane %v3008_v54, 1  ;;  %v4064_v43 = vmul.f32 %v8441_v61, %v10643_v47  ;;  %v2627_v18 = vadd.f32 %v2531_v11, %v2335_v39  ;;  %v4067_v26 = vmul.f32 %v8444_v60, %v10643_v47  ;;  %v8921_v54 = vld [vmem:[%s16157_s0 + $0x700] sm:$0xfc] }
 0x244   :  { %v3473_v10 = vsel %vm801_vm0, %v3471_v44, %v3472_v30  ;;  %v4530_v9 = vrot.slane %v4058_v7, 2  ;;  %v4531_v12 = vrot.slane %v4061_v51, 2  ;;  %v4938_v5 = vmul.f32 %v8543_v15, %v10727_v36  ;;  %v8924_v44 = vld [vmem:[%s16157_s0 + $0x718] sm:$0x3] }
 0x245   :  { %v3482_v33 = vsel %vm801_vm0, %v3480_v34, %v3481_v25  ;;  %v3683_v49 = vadd.f32 %v3473_v10, %v2624_v45  ;;  %v4539_v2 = vrot.slane %v4064_v43, 2  ;;  %v4540_v62 = vrot.slane %v4067_v26, 2  ;;  %v50_v10 = vld [vmem:[%s16157_s0 + $0x160] sm:$0xff]  ;;  %v260_v26 = vld [vmem:[%s16157_s0 + $0x130] sm:$0xfe] }
 0x246   :  { %v3686_v11 = vadd.f32 %v3482_v33, %v2627_v18  ;;  %v4941_v48 = vmul.f32 %v8546_v28, %v10727_v36  ;;  %v4532_v53 = vsel %vm1861_vm1, %v4530_v9, %v4531_v12  ;;  %v5409_v14 = vmul.f32 %v8723_v58, %v10733_v38  ;;  %v12972_v18 = vld [vmem:[%s16157_s0 + $0x130] sm:$0xff]  ;;  %v266_v12 = vld [vmem:[%s16157_s0 + $0x160] sm:$0xfe] }
 0x247   :  { %v5412_v61 = vmul.f32 %v8726_v40, %v10733_v38  ;;  %v5415_v50 = vmul.f32 %v8729_v21, %v10733_v38  ;;  %v4541_v60 = vsel %vm1861_vm1, %v4539_v2, %v4540_v62  ;;  %v4742_v7 = vadd.f32 %v4532_v53, %v3683_v49  ;;  %v263_v49 = vld [vmem:[%s16157_s0 + $0x148] sm:$0x1]  ;;  %v269_v62 = vld [vmem:[%s16157_s0 + $0x178] sm:$0x1] }
 0x248   :  { %v5418_v39 = vmul.f32 %v8732_v29, %v10733_v38  ;;  %v6468_v30 = vmul.f32 %v12441_v32, %v8915_v41  ;;  %v4745_v34 = vadd.f32 %v4541_v60, %v3686_v11  ;;  %v5881_v45 = vrot.slane %v5409_v14, 1  ;;  %v1323_v60 = vld [vmem:[%s16157_s0 + $0x148] sm:$0x3] }
 0x249   :  { %v5882_v25 = vrot.slane %v5412_v61, 1  ;;  %v5890_v51 = vrot.slane %v5415_v50, 1  ;;  %v5034_v43 = vadd.f32 %v4938_v5, %v4742_v7  ;;  %v6471_v28 = vmul.f32 %v12441_v32, %v8918_v57  ;;  %v1326_v7 = vld [vmem:[%s16157_s0 + $0x160] sm:$0xfc] }
 0x24a   :  { %v5891_v15 = vrot.slane %v5418_v39, 1  ;;  %v6474_v58 = vmul.f32 %v12441_v32, %v8921_v54  ;;  %v5037_v9 = vadd.f32 %v4941_v48, %v4745_v34  ;;  %v6477_v21 = vmul.f32 %v12441_v32, %v8924_v44  ;;  %v1320_v32 = vld [vmem:[%s16157_s0 + $0x130] sm:$0xfc]  ;;  %v1329_v39 = vld [vmem:[%s16157_s0 + $0x178] sm:$0x3] }
 0x24b   :  { %v5883_v40 = vsel %vm801_vm0, %v5881_v45, %v5882_v25  ;;  %v6940_v33 = vrot.slane %v6468_v30, 2  ;;  %v6941_v41 = vrot.slane %v6471_v28, 2  ;;  %v146_v53 = vmul.f32 %v10601_v0, %v12972_v18 }
 0x24c   :  { %v5892_v2 = vsel %vm801_vm0, %v5890_v51, %v5891_v15  ;;  %v6093_v29 = vadd.f32 %v5883_v40, %v5034_v43  ;;  %v6949_v11 = vrot.slane %v6474_v58, 2  ;;  %v6950_v48 = vrot.slane %v6477_v21, 2  ;;  %v8000_v40 = vld [vmem:[%s16157_s0 + $0x190] sm:$0xff]  ;;  %v8111_v21 = vld [vmem:[%s16157_s0 + $0x160] sm:$0xfe] }
 0x24d   :  { %v6096_v5 = vadd.f32 %v5892_v2, %v5037_v9  ;;  %v149_v14 = vmul.f32 %v10601_v0, %v50_v10  ;;  %v6942_v61 = vsel %vm1861_vm1, %v6940_v33, %v6941_v41  ;;  %v455_v50 = vmul.f32 %v10625_v52, %v260_v26  ;;  %v8114_v33 = vld [vmem:[%s16157_s0 + $0x178] sm:$0x1]  ;;  %v8117_v41 = vld [vmem:[%s16157_s0 + $0x190] sm:$0xfe] }
 0x24e   :  { %v458_v57 = vmul.f32 %v10625_v52, %v263_v49  ;;  %v461_v54 = vmul.f32 %v10625_v52, %v266_v12  ;;  %v6951_v44 = vsel %vm1861_vm1, %v6949_v11, %v6950_v48  ;;  %v7152_v30 = vadd.f32 %v6942_v61, %v6093_v29  ;;  %v8120_v11 = vld [vmem:[%s16157_s0 + $0x1a8] sm:$0x1]  ;;  %v8303_v61 = vld [vmem:[%s16157_s0 + $0x160] sm:$0xfc] }
 0x24f   :  { %v464_v34 = vmul.f32 %v10625_v52, %v269_v62  ;;  %v1515_v45 = vmul.f32 %v10634_v35, %v1320_v32  ;;  %v7155_v25 = vadd.f32 %v6951_v44, %v6096_v5  ;;  %v862_v51 = vrot.slane %v455_v50, 1  ;;  %v8306_v44 = vld [vmem:[%s16157_s0 + $0x178] sm:$0x3] }
 0x250   :  { %v863_v43 = vrot.slane %v458_v57, 1  ;;  %v871_v15 = vrot.slane %v461_v54, 1  ;;  %v1518_v58 = vmul.f32 %v10634_v35, %v1323_v60  ;;  %v1521_v26 = vmul.f32 %v10634_v35, %v1326_v7 }
 0x251   :  { %v872_v28 = vrot.slane %v464_v34, 1  ;;  %v1524_v9 = vmul.f32 %v10634_v35, %v1329_v39  ;;  %v7206_v49 = vpack.c.bf16 %v7155_v25, %v7152_v30  ;;  %v1922_v2 = vrot.slane %v1515_v45, 2  ;;  %v8312_v30 = vld [vmem:[%s16157_s0 + $0x1a8] sm:$0x3] }
 0x252   :  { %v864_v12 = vsel %vm801_vm0, %v862_v51, %v863_v43  ;;  %v2462_v29 = vmul.f32 %v10637_v16, %v50_v10  ;;  %v1923_v5 = vrot.slane %v1518_v58, 2  ;;  %v1931_v48 = vrot.slane %v1521_v26, 2 }
 0x253   :  { %v873_v62 = vsel %vm801_vm0, %v871_v15, %v872_v28  ;;  %v1206_v32 = vadd.f32 %v864_v12, %v146_v53  ;;  %7295 = vmatpush.bf16.xpose.msrb.mxu1 %v7206_v49  ;;  %v1932_v10 = vrot.slane %v1524_v9, 2  ;;  %v2465_v57 = vmul.f32 %v8000_v40, %v10637_v16  ;;  %v8480_v49 = vld [vmem:[%s16157_s0 + $0x1c0] sm:$0xff]  ;;  %v8591_v12 = vld [vmem:[%s16157_s0 + $0x190] sm:$0xfe] }
 0x254   :  { %v1209_v50 = vadd.f32 %v873_v62, %v149_v14  ;;  %v2867_v54 = vmul.f32 %v8111_v21, %v10640_v37  ;;  %v1924_v60 = vsel %vm1861_vm1, %v1922_v2, %v1923_v5  ;;  %v2870_v7 = vmul.f32 %v8114_v33, %v10640_v37  ;;  %v8309_v14 = vld [vmem:[%s16157_s0 + $0x190] sm:$0xfc]  ;;  %v8594_v62 = vld [vmem:[%s16157_s0 + $0x1a8] sm:$0x1] }
 0x255   :  { %v2873_v39 = vmul.f32 %v8117_v41, %v10640_v37  ;;  %v2876_v53 = vmul.f32 %v8120_v11, %v10640_v37  ;;  %v1933_v34 = vsel %vm1861_vm1, %v1931_v48, %v1932_v10  ;;  %v2266_v45 = vadd.f32 %v1924_v60, %v1206_v32  ;;  %v8597_v32 = vld [vmem:[%s16157_s0 + $0x1c0] sm:$0xfe]  ;;  %v8600_v10 = vld [vmem:[%s16157_s0 + $0x1d8] sm:$0x1] }
 0x256   :  { %v3273_v25 = vrot.slane %v2867_v54, 1  ;;  %v3926_v51 = vmul.f32 %v8303_v61, %v10643_v47  ;;  %v2269_v43 = vadd.f32 %v1933_v34, %v1209_v50  ;;  %v3274_v15 = vrot.slane %v2870_v7, 1  ;;  %v8789_v34 = vld [vmem:[%s16157_s0 + $0x1c0] sm:$0xfc] }
 0x257   :  { %v3282_v28 = vrot.slane %v2873_v39, 1  ;;  %v3283_v58 = vrot.slane %v2876_v53, 1  ;;  %v2558_v26 = vadd.f32 %v2462_v29, %v2266_v45  ;;  %v3929_v9 = vmul.f32 %v8306_v44, %v10643_v47  ;;  %v8783_v39 = vld [vmem:[%s16157_s0 + $0x190] sm:$0xfc]  ;;  %v8786_v53 = vld [vmem:[%s16157_s0 + $0x1a8] sm:$0x3] }
 0x258   :  { %v3932_v21 = vmul.f32 %v8309_v14, %v10643_v47  ;;  %v3935_v33 = vmul.f32 %v8312_v30, %v10643_v47  ;;  %v2561_v2 = vadd.f32 %v2465_v57, %v2269_v43  ;;  %v3275_v41 = vsel %vm801_vm0, %v3273_v25, %v3274_v15  ;;  %v8792_v15 = vld [vmem:[%s16157_s0 + $0x1d8] sm:$0x3] }
 0x259   :  { %v3284_v11 = vsel %vm801_vm0, %v3282_v28, %v3283_v58  ;;  %v4332_v29 = vrot.slane %v3926_v51, 2  ;;  %v3617_v5 = vadd.f32 %v3275_v41, %v2558_v26  ;;  %v4333_v48 = vrot.slane %v3929_v9, 2  ;;  %v13098_v26 = vld [vmem:[%s16158_s1 + $0x28] ss:$0 sm:$0xff] }
 0x25a   :  { %v4341_v61 = vrot.slane %v3932_v21, 2  ;;  %v4342_v50 = vrot.slane %v3935_v33, 2  ;;  %v3620_v57 = vadd.f32 %v3284_v11, %v2561_v2  ;;  %v4872_v54 = vmul.f32 %v8000_v40, %v10727_v36  ;;  %v13105_v33 = vld [vmem:[%s16157_s0 + $0x4e0] sm:$0xff]  ;;  %v96_v11 = vld [vmem:[%s16157_s0 + $0x510] sm:$0xff] }
 0x25b   :  { %v4875_v60 = vmul.f32 %v8480_v49, %v10727_v36  ;;  %v5277_v7 = vmul.f32 %v8591_v12, %v10733_v38  ;;  %v4334_v44 = vsel %vm1861_vm1, %v4332_v29, %v4333_v48  ;;  %v5280_v30 = vmul.f32 %v8594_v62, %v10733_v38  ;;  %v354_v29 = vld [vmem:[%s16157_s0 + $0x4e0] sm:$0xfe]  ;;  %v357_v62 = vld [vmem:[%s16157_s0 + $0x4f8] sm:$0x1] }
 0x25c   :  { %v4343_v14 = vsel %vm1861_vm1, %v4341_v61, %v4342_v50  ;;  %v5283_v40 = vmul.f32 %v8597_v32, %v10733_v38  ;;  %v4676_v45 = vadd.f32 %v4334_v44, %v3617_v5  ;;  %v5286_v51 = vmul.f32 %v8600_v10, %v10733_v38  ;;  %v360_v50 = vld [vmem:[%s16157_s0 + $0x510] sm:$0xfe]  ;;  %v363_v10 = vld [vmem:[%s16157_s0 + $0x528] sm:$0x1] }
 0x25d   :  { %v4679_v25 = vadd.f32 %v4343_v14, %v3620_v57  ;;  %v5683_v43 = vrot.slane %v5277_v7, 1  ;;  %v5684_v28 = vrot.slane %v5280_v30, 1  ;;  %v6336_v9 = vmul.f32 %v13098_v26, %v8783_v39  ;;  %v1414_v39 = vld [vmem:[%s16157_s0 + $0x4e0] sm:$0xfc] }
 0x25e   :  { %v5692_v58 = vrot.slane %v5283_v40, 1  ;;  %v6339_v21 = vmul.f32 %v13098_v26, %v8786_v53  ;;  %v4968_v49 = vadd.f32 %v4872_v54, %v4676_v45  ;;  %v5693_v2 = vrot.slane %v5286_v51, 1  ;;  %v1417_v53 = vld [vmem:[%s16157_s0 + $0x4f8] sm:$0x3] }
 0x25f   :  { %v4971_v12 = vadd.f32 %v4875_v60, %v4679_v25  ;;  %v6342_v41 = vmul.f32 %v13098_v26, %v8789_v34  ;;  %v5685_v32 = vsel %vm801_vm0, %v5683_v43, %v5684_v28  ;;  %v6345_v5 = vmul.f32 %v13098_v26, %v8792_v15  ;;  %v1420_v43 = vld [vmem:[%s16157_s0 + $0x510] sm:$0xfc]  ;;  %v1423_v15 = vld [vmem:[%s16157_s0 + $0x528] sm:$0x3] }
 0x260   :  { %v6742_v48 = vrot.slane %v6336_v9, 2  ;;  %v6743_v61 = vrot.slane %v6339_v21, 2  ;;  %v5694_v57 = vsel %vm801_vm0, %v5692_v58, %v5693_v2  ;;  %v6027_v54 = vadd.f32 %v5685_v32, %v4968_v49 }
 0x261   :  { %v6751_v60 = vrot.slane %v6342_v41, 2  ;;  %v192_v7 = vmul.f32 %v9226_v3, %v13105_v33  ;;  %v6030_v44 = vadd.f32 %v5694_v57, %v4971_v12  ;;  %v6752_v30 = vrot.slane %v6345_v5, 2 }
 0x262   :  { %v6744_v14 = vsel %vm1861_vm1, %v6742_v48, %v6743_v61  ;;  %v195_v40 = vmul.f32 %v9226_v3, %v96_v11  ;;  %v549_v45 = vmul.f32 %v9229_v4, %v354_v29  ;;  %v552_v25 = vmul.f32 %v9229_v4, %v357_v62  ;;  %v8046_v48 = vld [vmem:[%s16157_s0 + $0x540] sm:$0xff]  ;;  %v8205_v61 = vld [vmem:[%s16157_s0 + $0x510] sm:$0xfe] }
 0x263   :  { %v7086_v34 = vadd.f32 %v6744_v14, %v6027_v54  ;;  %v555_v51 = vmul.f32 %v9229_v4, %v360_v50  ;;  %v6753_v28 = vsel %vm1861_vm1, %v6751_v60, %v6752_v30  ;;  %v558_v58 = vmul.f32 %v9229_v4, %v363_v10  ;;  %v8208_v60 = vld [vmem:[%s16157_s0 + $0x528] sm:$0x1] }
 0x264   :  { %v1609_v9 = vmul.f32 %v9264_v19, %v1414_v39  ;;  %v1612_v21 = vmul.f32 %v9264_v19, %v1417_v53  ;;  %v7089_v49 = vadd.f32 %v6753_v28, %v6030_v44  ;;  %v1000_v12 = vrot.slane %v549_v45, 1  ;;  %v8211_v39 = vld [vmem:[%s16157_s0 + $0x540] sm:$0xfe] }
 0x265   :  { %v1001_v2 = vrot.slane %v552_v25, 1  ;;  %v1009_v41 = vrot.slane %v555_v51, 1  ;;  %v1010_v29 = vrot.slane %v558_v58, 1  ;;  %v1615_v62 = vmul.f32 %v9264_v19, %v1420_v43 }
 0x266   :  { %v1618_v32 = vmul.f32 %v9264_v19, %v1423_v15  ;;  %v2060_v5 = vrot.slane %v1609_v9, 2  ;;  %v7173_v50 = vpack.c.bf16 %v7089_v49, %v7086_v34  ;;  %v2061_v57 = vrot.slane %v1612_v21, 2  ;;  %v8214_v34 = vld [vmem:[%s16157_s0 + $0x558] sm:$0x1] }
 0x267   :  { %v1002_v10 = vsel %vm801_vm0, %v1000_v12, %v1001_v2  ;;  %v2508_v54 = vmul.f32 %v9267_v22, %v96_v11  ;;  %v1011_v53 = vsel %vm801_vm0, %v1009_v41, %v1010_v29  ;;  %v2069_v14 = vrot.slane %v1615_v62, 2  ;;  %v8397_v11 = vld [vmem:[%s16157_s0 + $0x510] sm:$0xfc]  ;;  %v8406_v21 = vld [vmem:[%s16157_s0 + $0x558] sm:$0x3] }
 0x268   :  { %v1252_v44 = vadd.f32 %v1002_v10, %v192_v7  ;;  %v2070_v30 = vrot.slane %v1618_v32, 2  ;;  %7259 = vmatpush.bf16.xpose.msra.mxu2 %v7173_v50  ;;  %v1255_v45 = vadd.f32 %v1011_v53, %v195_v40  ;;  %v2062_v25 = vsel %vm1861_vm1, %v2060_v5, %v2061_v57  ;;  %v8400_v7 = vld [vmem:[%s16157_s0 + $0x528] sm:$0x3]  ;;  %v8403_v40 = vld [vmem:[%s16157_s0 + $0x540] sm:$0xfc] }
 0x269   :  { %v2511_v51 = vmul.f32 %v8046_v48, %v9267_v22  ;;  %v2961_v43 = vmul.f32 %v8205_v61, %v9270_v23  ;;  %v2964_v58 = vmul.f32 %v8208_v60, %v9270_v23  ;;  %v2967_v9 = vmul.f32 %v8211_v39, %v9270_v23  ;;  %v8526_v60 = vld [vmem:[%s16157_s0 + $0x570] sm:$0xff]  ;;  %v8685_v39 = vld [vmem:[%s16157_s0 + $0x540] sm:$0xfe] }
 0x26a   :  { %v2071_v15 = vsel %vm1861_vm1, %v2069_v14, %v2070_v30  ;;  %v2312_v28 = vadd.f32 %v2062_v25, %v1252_v44  ;;  %v2970_v12 = vmul.f32 %v8214_v34, %v9270_v23  ;;  %v4020_v41 = vmul.f32 %v8397_v11, %v9318_v56  ;;  %v8688_v30 = vld [vmem:[%s16157_s0 + $0x558] sm:$0x1]  ;;  %v8691_v34 = vld [vmem:[%s16157_s0 + $0x570] sm:$0xfe] }
 0x26b   :  { %v2315_v49 = vadd.f32 %v2071_v15, %v1255_v45  ;;  %v3411_v2 = vrot.slane %v2961_v43, 1  ;;  %v3412_v62 = vrot.slane %v2964_v58, 1  ;;  %v3420_v32 = vrot.slane %v2967_v9, 1  ;;  %v8694_v43 = vld [vmem:[%s16157_s0 + $0x588] sm:$0x1] }
 0x26c   :  { %v2604_v29 = vadd.f32 %v2508_v54, %v2312_v28  ;;  %v4023_v5 = vmul.f32 %v8400_v7, %v9318_v56  ;;  %v3421_v50 = vrot.slane %v2970_v12, 1  ;;  %v4026_v10 = vmul.f32 %v8403_v40, %v9318_v56  ;;  %v8880_v9 = vld [vmem:[%s16157_s0 + $0x558] sm:$0x3] }
 0x26d   :  { %v2607_v61 = vadd.f32 %v2511_v51, %v2315_v49  ;;  %v4029_v57 = vmul.f32 %v8406_v21, %v9318_v56  ;;  %v3413_v54 = vsel %vm801_vm0, %v3411_v2, %v3412_v62  ;;  %v4470_v53 = vrot.slane %v4020_v41, 2  ;;  %v8883_v2 = vld [vmem:[%s16157_s0 + $0x570] sm:$0xfc]  ;;  %v8886_v41 = vld [vmem:[%s16157_s0 + $0x588] sm:$0x3] }
 0x26e   :  { %v4471_v44 = vrot.slane %v4023_v5, 2  ;;  %v4918_v14 = vmul.f32 %v8046_v48, %v9350_v27  ;;  %v3422_v11 = vsel %vm801_vm0, %v3420_v32, %v3421_v50  ;;  %v3663_v45 = vadd.f32 %v3413_v54, %v2604_v29  ;;  %v8877_v48 = vld [vmem:[%s16157_s0 + $0x540] sm:$0xfc] }
 0x26f   :  { %v4479_v25 = vrot.slane %v4026_v10, 2  ;;  %v4480_v51 = vrot.slane %v4029_v57, 2  ;;  %v3666_v7 = vadd.f32 %v3422_v11, %v2607_v61  ;;  %v4921_v28 = vmul.f32 %v8526_v60, %v9350_v27  ;;  %v13233_v61 = vld [vmem:[%s16157_s0 + $0x608] sm:$0xff] }
 0x270   :  { %v4472_v15 = vsel %vm1861_vm1, %v4470_v53, %v4471_v44  ;;  %v5371_v58 = vmul.f32 %v8685_v39, %v9357_v31  ;;  %v5374_v49 = vmul.f32 %v8688_v30, %v9357_v31  ;;  %v5377_v12 = vmul.f32 %v8691_v34, %v9357_v31  ;;  %v109_v30 = vld [vmem:[%s16157_s0 + $0x638] sm:$0xff]  ;;  %v379_v34 = vld [vmem:[%s16157_s0 + $0x608] sm:$0xfe] }
 0x271   :  { %v4481_v40 = vsel %vm1861_vm1, %v4479_v25, %v4480_v51  ;;  %v4722_v21 = vadd.f32 %v4472_v15, %v3663_v45  ;;  %v5380_v62 = vmul.f32 %v8694_v43, %v9357_v31  ;;  %v6430_v5 = vmul.f32 %v12699_v20, %v8877_v48  ;;  %v382_v51 = vld [vmem:[%s16157_s0 + $0x620] sm:$0x1] }
 0x272   :  { %v4725_v29 = vadd.f32 %v4481_v40, %v3666_v7  ;;  %v5821_v32 = vrot.slane %v5371_v58, 1  ;;  %v5822_v10 = vrot.slane %v5374_v49, 1  ;;  %v5830_v57 = vrot.slane %v5377_v12, 1  ;;  %v1439_v58 = vld [vmem:[%s16157_s0 + $0x608] sm:$0xfc] }
 0x273   :  { %v5014_v50 = vadd.f32 %v4918_v14, %v4722_v21  ;;  %v6433_v60 = vmul.f32 %v12699_v20, %v8880_v9  ;;  %v5831_v54 = vrot.slane %v5380_v62, 1  ;;  %v6436_v53 = vmul.f32 %v12699_v20, %v8883_v2  ;;  %v1442_v12 = vld [vmem:[%s16157_s0 + $0x620] sm:$0x3]  ;;  %v1445_v2 = vld [vmem:[%s16157_s0 + $0x638] sm:$0xfc] }
 0x274   :  { %v5017_v39 = vadd.f32 %v4921_v28, %v4725_v29  ;;  %v6439_v44 = vmul.f32 %v12699_v20, %v8886_v41  ;;  %v5823_v14 = vsel %vm801_vm0, %v5821_v32, %v5822_v10  ;;  %v6880_v11 = vrot.slane %v6430_v5, 2  ;;  %v385_v20 = vld [vmem:[%s16157_s0 + $0x638] sm:$0xfe]  ;;  %v388_v28 = vld [vmem:[%s16157_s0 + $0x650] sm:$0x1] }
 0x275   :  { %v6881_v45 = vrot.slane %v6433_v60, 2  ;;  %v205_v25 = vmul.f32 %v9403_v63, %v13233_v61  ;;  %v5832_v43 = vsel %vm801_vm0, %v5830_v57, %v5831_v54  ;;  %v6073_v48 = vadd.f32 %v5823_v14, %v5014_v50  ;;  %v1448_v5 = vld [vmem:[%s16157_s0 + $0x650] sm:$0x3] }
 0x276   :  { %v6889_v7 = vrot.slane %v6436_v53, 2  ;;  %v6890_v15 = vrot.slane %v6439_v44, 2  ;;  %v6076_v9 = vadd.f32 %v5832_v43, %v5017_v39  ;;  %v208_v21 = vmul.f32 %v9403_v63, %v109_v30 }
 0x277   :  { %v6882_v40 = vsel %vm1861_vm1, %v6880_v11, %v6881_v45  ;;  %v574_v49 = vmul.f32 %v9409_v6, %v379_v34  ;;  %v577_v62 = vmul.f32 %v9409_v6, %v382_v51  ;;  %v580_v32 = vmul.f32 %v9409_v6, %v385_v20  ;;  %v8230_v51 = vld [vmem:[%s16157_s0 + $0x638] sm:$0xfe]  ;;  %v8233_v20 = vld [vmem:[%s16157_s0 + $0x650] sm:$0x1] }
 0x278   :  { %v6891_v41 = vsel %vm1861_vm1, %v6889_v7, %v6890_v15  ;;  %v7132_v29 = vadd.f32 %v6882_v40, %v6073_v48  ;;  %v583_v10 = vmul.f32 %v9409_v6, %v388_v28  ;;  %v1634_v60 = vmul.f32 %v9420_v13, %v1439_v58  ;;  %v8236_v28 = vld [vmem:[%s16157_s0 + $0x668] sm:$0xfe]  ;;  %v8239_v58 = vld [vmem:[%s16157_s0 + $0x680] sm:$0x1] }
 0x279   :  { %v7135_v50 = vadd.f32 %v6891_v41, %v6076_v9  ;;  %v1039_v57 = vrot.slane %v574_v49, 1  ;;  %v1040_v39 = vrot.slane %v577_v62, 1  ;;  %v1048_v54 = vrot.slane %v580_v32, 1  ;;  %v8425_v32 = vld [vmem:[%s16157_s0 + $0x650] sm:$0x3] }
 0x27a   :  { %v1637_v53 = vmul.f32 %v9420_v13, %v1442_v12  ;;  %v1640_v44 = vmul.f32 %v9420_v13, %v1445_v2  ;;  %v1049_v14 = vrot.slane %v583_v10, 1  ;;  %v1643_v11 = vmul.f32 %v9420_v13, %v1448_v5  ;;  %v8431_v10 = vld [vmem:[%s16157_s0 + $0x680] sm:$0x3] }
 0x27b   :  { %v7195_v34 = vpack.c.bf16 %v7135_v50, %v7132_v29  ;;  %v2099_v45 = vrot.slane %v1634_v60, 2  ;;  %v1041_v43 = vsel %vm801_vm0, %v1039_v57, %v1040_v39  ;;  %v2521_v15 = vmul.f32 %v9449_v46, %v109_v30  ;;  %v8422_v30 = vld [vmem:[%s16157_s0 + $0x638] sm:$0xfc] }
 0x27c   :  { %v2100_v48 = vrot.slane %v1637_v53, 2  ;;  %v2108_v7 = vrot.slane %v1640_v44, 2  ;;  %v1050_v9 = vsel %vm801_vm0, %v1048_v54, %v1049_v14  ;;  %v1265_v40 = vadd.f32 %v1041_v43, %v205_v25 }
 0x27d   :  { %7272 = vmatpush.bf16.xpose.msra.mxu3 %v7195_v34  ;;  %v2109_v49 = vrot.slane %v1643_v11, 2  ;;  %v2524_v12 = vmul.f32 %v9449_v46, %v12705_v8  ;;  %v1268_v2 = vadd.f32 %v1050_v9, %v208_v21  ;;  %v2986_v29 = vmul.f32 %v8230_v51, %v9462_v55  ;;  %v8428_v21 = vld [vmem:[%s16157_s0 + $0x668] sm:$0xfc] }
 0x27e   :  { %v2101_v41 = vsel %vm1861_vm1, %v2099_v45, %v2100_v48  ;;  %v2989_v62 = vmul.f32 %v8233_v20, %v9462_v55  ;;  %v2992_v8 = vmul.f32 %v8236_v28, %v9462_v55  ;;  %v2995_v50 = vmul.f32 %v8239_v58, %v9462_v55  ;;  %v8536_v11 = vld [vmem:[%s16157_s0 + $0x668] sm:$0xff]  ;;  %v8539_v48 = vld [vmem:[%s16157_s0 + $0x698] sm:$0xff] }
 0x27f   :  { %v2110_v25 = vsel %vm1861_vm1, %v2108_v7, %v2109_v49  ;;  %v2325_v5 = vadd.f32 %v2101_v41, %v1265_v40  ;;  %v3450_v60 = vrot.slane %v2986_v29, 1  ;;  %v4045_v54 = vmul.f32 %v8422_v30, %v9486_v17  ;;  %v8710_v7 = vld [vmem:[%s16157_s0 + $0x668] sm:$0xfe]  ;;  %v8716_v49 = vld [vmem:[%s16157_s0 + $0x698] sm:$0xfe] }
 0x280   :  { %v2328_v57 = vadd.f32 %v2110_v25, %v1268_v2  ;;  %v3451_v39 = vrot.slane %v2989_v62, 1  ;;  %v3459_v44 = vrot.slane %v2992_v8, 1  ;;  %v3460_v34 = vrot.slane %v2995_v50, 1  ;;  %v8902_v62 = vld [vmem:[%s16157_s0 + $0x668] sm:$0xfc] }
 0x281   :  { %v2617_v53 = vadd.f32 %v2521_v15, %v2325_v5  ;;  %v4048_v14 = vmul.f32 %v8425_v32, %v9486_v17  ;;  %v4051_v20 = vmul.f32 %v8428_v21, %v9486_v17  ;;  %v4054_v43 = vmul.f32 %v8431_v10, %v9486_v17  ;;  %v8713_v15 = vld [vmem:[%s16157_s0 + $0x680] sm:$0x1] }
 0x282   :  { %v2620_v45 = vadd.f32 %v2524_v12, %v2328_v57  ;;  %v3452_v51 = vsel %vm801_vm0, %v3450_v60, %v3451_v39  ;;  %v3461_v28 = vsel %vm801_vm0, %v3459_v44, %v3460_v34  ;;  %v4509_v9 = vrot.slane %v4045_v54, 2  ;;  %v8719_v12 = vld [vmem:[%s16157_s0 + $0x6b0] sm:$0x1]  ;;  %v8905_v50 = vld [vmem:[%s16157_s0 + $0x680] sm:$0x3] }
 0x283   :  { %v3676_v58 = vadd.f32 %v3452_v51, %v2617_v53  ;;  %v4510_v40 = vrot.slane %v4048_v14, 2  ;;  %v4518_v2 = vrot.slane %v4051_v20, 2  ;;  %v4519_v41 = vrot.slane %v4054_v43, 2  ;;  %v8908_v39 = vld [vmem:[%s16157_s0 + $0x698] sm:$0xfc]  ;;  %v13364_v43 = vld [vmem:[%s16157_s0 + $0x610] sm:$0xff] }
 0x284   :  { %v3679_v30 = vadd.f32 %v3461_v28, %v2620_v45  ;;  %v4931_v29 = vmul.f32 %v8536_v11, %v9489_v24  ;;  %v4934_v25 = vmul.f32 %v8539_v48, %v9489_v24  ;;  %v5396_v5 = vmul.f32 %v8710_v7, %v9532_v59  ;;  %v8911_v54 = vld [vmem:[%s16157_s0 + $0x6b0] sm:$0x3] }
 0x285   :  { %v4511_v32 = vsel %vm1861_vm1, %v4509_v9, %v4510_v40  ;;  %v5399_v8 = vmul.f32 %v8713_v15, %v9532_v59  ;;  %v4520_v21 = vsel %vm1861_vm1, %v4518_v2, %v4519_v41  ;;  %v5402_v57 = vmul.f32 %v8716_v49, %v9532_v59  ;;  %v380_v9 = vld [vmem:[%s16157_s0 + $0x610] sm:$0xfe]  ;;  %v383_v40 = vld [vmem:[%s16157_s0 + $0x628] sm:$0x1]  ;;  %v389_v41 = vld [vmem:[%s16157_s0 + $0x658] sm:$0x1] }
 0x286   :  { %v4735_v10 = vadd.f32 %v4511_v32, %v3676_v58  ;;  %v5405_v60 = vmul.f32 %v8719_v12, %v9532_v59  ;;  %v4738_v53 = vadd.f32 %v4520_v21, %v3679_v30  ;;  %v5860_v44 = vrot.slane %v5396_v5, 1  ;;  %v110_v58 = vld [vmem:[%s16157_s0 + $0x640] sm:$0xff]  ;;  %v1440_v5 = vld [vmem:[%s16157_s0 + $0x610] sm:$0xfc] }
 0x287   :  { %v5861_v34 = vrot.slane %v5399_v8, 1  ;;  %v6455_v14 = vmul.f32 %v12834_v42, %v8902_v62  ;;  %v5869_v45 = vrot.slane %v5402_v57, 1  ;;  %v6458_v20 = vmul.f32 %v12834_v42, %v8905_v50  ;;  %v1443_v57 = vld [vmem:[%s16157_s0 + $0x628] sm:$0x3] }
 0x288   :  { %v5027_v11 = vadd.f32 %v4931_v29, %v4735_v10  ;;  %v5870_v51 = vrot.slane %v5405_v60, 1  ;;  %v5030_v48 = vadd.f32 %v4934_v25, %v4738_v53  ;;  %v6461_v15 = vmul.f32 %v12834_v42, %v8908_v39  ;;  %v1446_v60 = vld [vmem:[%s16157_s0 + $0x640] sm:$0xfc] }
 0x289   :  { %v5862_v7 = vsel %vm801_vm0, %v5860_v44, %v5861_v34  ;;  %v6464_v28 = vmul.f32 %v12834_v42, %v8911_v54  ;;  %v6919_v30 = vrot.slane %v6455_v14, 2  ;;  %v6920_v2 = vrot.slane %v6458_v20, 2  ;;  %v386_v42 = vld [vmem:[%s16157_s0 + $0x640] sm:$0xfe]  ;;  %v1449_v34 = vld [vmem:[%s16157_s0 + $0x658] sm:$0x3] }
 0x28a   :  { %v5871_v49 = vsel %vm801_vm0, %v5869_v45, %v5870_v51  ;;  %v6086_v12 = vadd.f32 %v5862_v7, %v5027_v11  ;;  %v6928_v62 = vrot.slane %v6461_v15, 2  ;;  %v206_v25 = vmul.f32 %v10601_v0, %v13364_v43 }
 0x28b   :  { %v6089_v29 = vadd.f32 %v5871_v49, %v5030_v48  ;;  %v6929_v32 = vrot.slane %v6464_v28, 2  ;;  %v6921_v8 = vsel %vm1861_vm1, %v6919_v30, %v6920_v2  ;;  %v209_v50 = vmul.f32 %v10601_v0, %v110_v58  ;;  %v8231_v28 = vld [vmem:[%s16157_s0 + $0x640] sm:$0xfe]  ;;  %v8234_v30 = vld [vmem:[%s16157_s0 + $0x658] sm:$0x1] }
 0x28c   :  { %v575_v21 = vmul.f32 %v10625_v52, %v380_v9  ;;  %v578_v10 = vmul.f32 %v10625_v52, %v383_v40  ;;  %v7145_v54 = vadd.f32 %v6921_v8, %v6086_v12  ;;  %v581_v53 = vmul.f32 %v10625_v52, %v386_v42  ;;  %v8237_v2 = vld [vmem:[%s16157_s0 + $0x670] sm:$0xfe] }
 0x28d   :  { %v6930_v39 = vsel %vm1861_vm1, %v6928_v62, %v6929_v32  ;;  %v584_v44 = vmul.f32 %v10625_v52, %v389_v41  ;;  %v1635_v51 = vmul.f32 %v10634_v35, %v1440_v5  ;;  %v1638_v7 = vmul.f32 %v10634_v35, %v1443_v57  ;;  %v8240_v32 = vld [vmem:[%s16157_s0 + $0x688] sm:$0x1]  ;;  %v8423_v5 = vld [vmem:[%s16157_s0 + $0x640] sm:$0xfc] }
 0x28e   :  { %v7148_v14 = vadd.f32 %v6930_v39, %v6089_v29  ;;  %v1042_v11 = vrot.slane %v575_v21, 1  ;;  %v1043_v45 = vrot.slane %v578_v10, 1  ;;  %v1051_v20 = vrot.slane %v581_v53, 1  ;;  %v8426_v53 = vld [vmem:[%s16157_s0 + $0x658] sm:$0x3] }
 0x28f   :  { %v1052_v48 = vrot.slane %v584_v44, 1  ;;  %v1641_v15 = vmul.f32 %v10634_v35, %v1446_v60  ;;  %v1644_v49 = vmul.f32 %v10634_v35, %v1449_v34  ;;  %v2102_v12 = vrot.slane %v1635_v51, 2  ;;  %v8432_v34 = vld [vmem:[%s16157_s0 + $0x688] sm:$0x3] }
 0x290   :  { %v7202_v9 = vpack.c.bf16 %v7148_v14, %v7145_v54  ;;  %v1044_v40 = vsel %vm801_vm0, %v1042_v11, %v1043_v45  ;;  %v2103_v29 = vrot.slane %v1638_v7, 2  ;;  %v2522_v10 = vmul.f32 %v10637_v16, %v110_v58 }
 0x291   :  { %v1053_v42 = vsel %vm801_vm0, %v1051_v20, %v1052_v48  ;;  %v1266_v41 = vadd.f32 %v1044_v40, %v206_v25  ;;  %v2111_v62 = vrot.slane %v1641_v15, 2  ;;  %v2112_v21 = vrot.slane %v1644_v49, 2  ;;  %v8540_v40 = vld [vmem:[%s16157_s0 + $0x6a0] sm:$0xff]  ;;  %v8711_v49 = vld [vmem:[%s16157_s0 + $0x670] sm:$0xfe] }
 0x292   :  { %7283 = vmatpush.bf16.xpose.msrb.mxu0 %v7202_v9  ;;  %v1269_v8 = vadd.f32 %v1053_v42, %v209_v50  ;;  %v2525_v57 = vmul.f32 %v10637_v16, %v12841_v1  ;;  %v2104_v25 = vsel %vm1861_vm1, %v2102_v12, %v2103_v29  ;;  %v2987_v60 = vmul.f32 %v8231_v28, %v10640_v37  ;;  %v8429_v50 = vld [vmem:[%s16157_s0 + $0x670] sm:$0xfc]  ;;  %v8717_v29 = vld [vmem:[%s16157_s0 + $0x6a0] sm:$0xfe] }
 0x293   :  { %v2990_v39 = vmul.f32 %v8234_v30, %v10640_v37  ;;  %v2993_v54 = vmul.f32 %v8237_v2, %v10640_v37  ;;  %v2113_v58 = vsel %vm1861_vm1, %v2111_v62, %v2112_v21  ;;  %v2326_v44 = vadd.f32 %v2104_v25, %v1266_v41  ;;  %v8537_v9 = vld [vmem:[%s16157_s0 + $0x670] sm:$0xff]  ;;  %v8714_v41 = vld [vmem:[%s16157_s0 + $0x688] sm:$0x1]  ;;  %v8720_v21 = vld [vmem:[%s16157_s0 + $0x6b8] sm:$0x1] }
 0x294   :  { %v2996_v1 = vmul.f32 %v8240_v32, %v10640_v37  ;;  %v4046_v14 = vmul.f32 %v8423_v5, %v10643_v47  ;;  %v2329_v11 = vadd.f32 %v2113_v58, %v1269_v8  ;;  %v3453_v45 = vrot.slane %v2987_v60, 1 }
 0x295   :  { %v3454_v51 = vrot.slane %v2990_v39, 1  ;;  %v3462_v20 = vrot.slane %v2993_v54, 1  ;;  %v2618_v48 = vadd.f32 %v2522_v10, %v2326_v44  ;;  %v4049_v15 = vmul.f32 %v8426_v53, %v10643_v47  ;;  %v8903_v10 = vld [vmem:[%s16157_s0 + $0x670] sm:$0xfc]  ;;  %v8906_v44 = vld [vmem:[%s16157_s0 + $0x688] sm:$0x3] }
 0x296   :  { %v3463_v7 = vrot.slane %v2996_v1, 1  ;;  %v4052_v28 = vmul.f32 %v8429_v50, %v10643_v47  ;;  %v2621_v12 = vadd.f32 %v2525_v57, %v2329_v11  ;;  %v4055_v2 = vmul.f32 %v8432_v34, %v10643_v47  ;;  %v8909_v1 = vld [vmem:[%s16157_s0 + $0x6a0] sm:$0xfc] }
 0x297   :  { %v3455_v30 = vsel %vm801_vm0, %v3453_v45, %v3454_v51  ;;  %v4512_v42 = vrot.slane %v4046_v14, 2  ;;  %v4513_v5 = vrot.slane %v4049_v15, 2  ;;  %v4932_v60 = vmul.f32 %v8537_v9, %v10727_v36  ;;  %v8912_v45 = vld [vmem:[%s16157_s0 + $0x6b8] sm:$0x3] }
 0x298   :  { %v3464_v62 = vsel %vm801_vm0, %v3462_v20, %v3463_v7  ;;  %v3677_v32 = vadd.f32 %v3455_v30, %v2618_v48  ;;  %v4521_v8 = vrot.slane %v4052_v28, 2  ;;  %v4522_v25 = vrot.slane %v4055_v2, 2  ;;  %v44_v30 = vld [vmem:[%s16157_s0 + $0x100] sm:$0xff]  ;;  %v248_v2 = vld [vmem:[%s16157_s0 + $0xd0] sm:$0xfe] }
 0x299   :  { %v3680_v57 = vadd.f32 %v3464_v62, %v2621_v12  ;;  %v4935_v39 = vmul.f32 %v8540_v40, %v10727_v36  ;;  %v4514_v54 = vsel %vm1861_vm1, %v4512_v42, %v4513_v5  ;;  %v5397_v53 = vmul.f32 %v8711_v49, %v10733_v38  ;;  %v13495_v12 = vld [vmem:[%s16157_s0 + $0xd0] sm:$0xff]  ;;  %v254_v5 = vld [vmem:[%s16157_s0 + $0x100] sm:$0xfe] }
 0x29a   :  { %v5400_v50 = vmul.f32 %v8714_v41, %v10733_v38  ;;  %v5403_v58 = vmul.f32 %v8717_v29, %v10733_v38  ;;  %v4523_v34 = vsel %vm1861_vm1, %v4521_v8, %v4522_v25  ;;  %v4736_v14 = vadd.f32 %v4514_v54, %v3677_v32  ;;  %v251_v32 = vld [vmem:[%s16157_s0 + $0xe8] sm:$0x1]  ;;  %v257_v25 = vld [vmem:[%s16157_s0 + $0x118] sm:$0x1] }
 0x29b   :  { %v5406_v11 = vmul.f32 %v8720_v21, %v10733_v38  ;;  %v6456_v51 = vmul.f32 %v13098_v26, %v8903_v10  ;;  %v4739_v20 = vadd.f32 %v4523_v34, %v3680_v57  ;;  %v5863_v48 = vrot.slane %v5397_v53, 1 }
 0x29c   :  { %v5864_v7 = vrot.slane %v5400_v50, 1  ;;  %v5872_v15 = vrot.slane %v5403_v58, 1  ;;  %v5028_v28 = vadd.f32 %v4932_v60, %v4736_v14  ;;  %v6459_v40 = vmul.f32 %v13098_v26, %v8906_v44  ;;  %v1308_v60 = vld [vmem:[%s16157_s0 + $0xd0] sm:$0xfc]  ;;  %v1311_v14 = vld [vmem:[%s16157_s0 + $0xe8] sm:$0x3] }
 0x29d   :  { %v5873_v9 = vrot.slane %v5406_v11, 1  ;;  %v6462_v49 = vmul.f32 %v13098_v26, %v8909_v1  ;;  %v5031_v42 = vadd.f32 %v4935_v39, %v4739_v20  ;;  %v6465_v29 = vmul.f32 %v13098_v26, %v8912_v45  ;;  %v1314_v11 = vld [vmem:[%s16157_s0 + $0x100] sm:$0xfc]  ;;  %v1317_v45 = vld [vmem:[%s16157_s0 + $0x118] sm:$0x3] }
 0x29e   :  { %v5865_v41 = vsel %vm801_vm0, %v5863_v48, %v5864_v7  ;;  %v6922_v62 = vrot.slane %v6456_v51, 2  ;;  %v6923_v10 = vrot.slane %v6459_v40, 2  ;;  %v140_v53 = vmul.f32 %v10601_v0, %v13495_v12 }
 0x29f   :  { %v5874_v8 = vsel %vm801_vm0, %v5872_v15, %v5873_v9  ;;  %v6087_v21 = vadd.f32 %v5865_v41, %v5028_v28  ;;  %v6931_v57 = vrot.slane %v6462_v49, 2  ;;  %v6932_v54 = vrot.slane %v6465_v29, 2  ;;  %v8099_v29 = vld [vmem:[%s16157_s0 + $0x100] sm:$0xfe] }
 0x2a0   :  { %v6090_v39 = vadd.f32 %v5874_v8, %v5031_v42  ;;  %v143_v50 = vmul.f32 %v10601_v0, %v44_v30  ;;  %v6924_v58 = vsel %vm1861_vm1, %v6922_v62, %v6923_v10  ;;  %v443_v44 = vmul.f32 %v10625_v52, %v248_v2  ;;  %v8102_v62 = vld [vmem:[%s16157_s0 + $0x118] sm:$0x1]  ;;  %v8105_v10 = vld [vmem:[%s16157_s0 + $0x130] sm:$0xfe] }
 0x2a1   :  { %v446_v1 = vmul.f32 %v10625_v52, %v251_v32  ;;  %v449_v34 = vmul.f32 %v10625_v52, %v254_v5  ;;  %v6933_v51 = vsel %vm1861_vm1, %v6931_v57, %v6932_v54  ;;  %v7146_v20 = vadd.f32 %v6924_v58, %v6087_v21  ;;  %v8108_v57 = vld [vmem:[%s16157_s0 + $0x148] sm:$0x1]  ;;  %v8291_v58 = vld [vmem:[%s16157_s0 + $0x100] sm:$0xfc] }
 0x2a2   :  { %v452_v48 = vmul.f32 %v10625_v52, %v257_v25  ;;  %v1503_v7 = vmul.f32 %v10634_v35, %v1308_v60  ;;  %v7149_v15 = vadd.f32 %v6933_v51, %v6090_v39  ;;  %v844_v28 = vrot.slane %v443_v44, 1  ;;  %v8294_v51 = vld [vmem:[%s16157_s0 + $0x118] sm:$0x3] }
 0x2a3   :  { %v845_v9 = vrot.slane %v446_v1, 1  ;;  %v853_v40 = vrot.slane %v449_v34, 1  ;;  %v1506_v2 = vmul.f32 %v10634_v35, %v1311_v14  ;;  %v1509_v42 = vmul.f32 %v10634_v35, %v1314_v11 }
 0x2a4   :  { %v854_v49 = vrot.slane %v452_v48, 1  ;;  %v1512_v41 = vmul.f32 %v10634_v35, %v1317_v45  ;;  %v7203_v32 = vpack.c.bf16 %v7149_v15, %v7146_v20  ;;  %v1904_v8 = vrot.slane %v1503_v7, 2 }
 0x2a5   :  { %v846_v5 = vsel %vm801_vm0, %v844_v28, %v845_v9  ;;  %v2456_v21 = vmul.f32 %v10637_v16, %v44_v30  ;;  %v1905_v39 = vrot.slane %v1506_v2, 2  ;;  %v1913_v54 = vrot.slane %v1509_v42, 2 }
 0x2a6   :  { %v855_v25 = vsel %vm801_vm0, %v853_v40, %v854_v49  ;;  %v1200_v60 = vadd.f32 %v846_v5, %v140_v53  ;;  %7296 = vmatpush.bf16.xpose.msrb.mxu1 %v7203_v32  ;;  %v1914_v30 = vrot.slane %v1512_v41, 2  ;;  %v2459_v1 = vmul.f32 %v10637_v16, %v12972_v18  ;;  %v8300_v18 = vld [vmem:[%s16157_s0 + $0x148] sm:$0x3]  ;;  %v8474_v32 = vld [vmem:[%s16157_s0 + $0x160] sm:$0xff]  ;;  %v8579_v5 = vld [vmem:[%s16157_s0 + $0x130] sm:$0xfe] }
 0x2a7   :  { %v1203_v44 = vadd.f32 %v855_v25, %v143_v50  ;;  %v2855_v34 = vmul.f32 %v8099_v29, %v10640_v37  ;;  %v1906_v14 = vsel %vm1861_vm1, %v1904_v8, %v1905_v39  ;;  %v2858_v11 = vmul.f32 %v8102_v62, %v10640_v37  ;;  %v8297_v50 = vld [vmem:[%s16157_s0 + $0x130] sm:$0xfc]  ;;  %v8582_v25 = vld [vmem:[%s16157_s0 + $0x148] sm:$0x1] }
 0x2a8   :  { %v2861_v53 = vmul.f32 %v8105_v10, %v10640_v37  ;;  %v2864_v45 = vmul.f32 %v8108_v57, %v10640_v37  ;;  %v1915_v20 = vsel %vm1861_vm1, %v1913_v54, %v1914_v30  ;;  %v2260_v48 = vadd.f32 %v1906_v14, %v1200_v60  ;;  %v8471_v62 = vld [vmem:[%s16157_s0 + $0x130] sm:$0xff]  ;;  %v8585_v60 = vld [vmem:[%s16157_s0 + $0x160] sm:$0xfe]  ;;  %v8588_v30 = vld [vmem:[%s16157_s0 + $0x178] sm:$0x1] }
 0x2a9   :  { %v3255_v7 = vrot.slane %v2855_v34, 1  ;;  %v3914_v15 = vmul.f32 %v8291_v58, %v10643_v47  ;;  %v2263_v28 = vadd.f32 %v1915_v20, %v1203_v44  ;;  %v3256_v9 = vrot.slane %v2858_v11, 1 }
 0x2aa   :  { %v3264_v40 = vrot.slane %v2861_v53, 1  ;;  %v3265_v49 = vrot.slane %v2864_v45, 1  ;;  %v2552_v2 = vadd.f32 %v2456_v21, %v2260_v48  ;;  %v3917_v42 = vmul.f32 %v8294_v51, %v10643_v47  ;;  %v8771_v53 = vld [vmem:[%s16157_s0 + $0x130] sm:$0xfc]  ;;  %v8774_v45 = vld [vmem:[%s16157_s0 + $0x148] sm:$0x3] }
 0x2ab   :  { %v3920_v41 = vmul.f32 %v8297_v50, %v10643_v47  ;;  %v3923_v29 = vmul.f32 %v8300_v18, %v10643_v47  ;;  %v2555_v8 = vadd.f32 %v2459_v1, %v2263_v28  ;;  %v3257_v21 = vsel %vm801_vm0, %v3255_v7, %v3256_v9  ;;  %v8777_v48 = vld [vmem:[%s16157_s0 + $0x160] sm:$0xfc] }
 0x2ac   :  { %v3266_v10 = vsel %vm801_vm0, %v3264_v40, %v3265_v49  ;;  %v4314_v57 = vrot.slane %v3914_v15, 2  ;;  %v3611_v39 = vadd.f32 %v3257_v21, %v2552_v2  ;;  %v4315_v54 = vrot.slane %v3917_v42, 2  ;;  %v8780_v40 = vld [vmem:[%s16157_s0 + $0x178] sm:$0x3]  ;;  %v90_v21 = vld [vmem:[%s16157_s0 + $0x4b0] sm:$0xff] }
 0x2ad   :  { %v4323_v58 = vrot.slane %v3920_v41, 2  ;;  %v4324_v44 = vrot.slane %v3923_v29, 2  ;;  %v3614_v1 = vadd.f32 %v3266_v10, %v2555_v8  ;;  %v4866_v34 = vmul.f32 %v8471_v62, %v10727_v36  ;;  %v13624_v29 = vld [vmem:[%s16157_s0 + $0x480] sm:$0xff] }
 0x2ae   :  { %v4869_v14 = vmul.f32 %v8474_v32, %v10727_v36  ;;  %v5265_v11 = vmul.f32 %v8579_v5, %v10733_v38  ;;  %v4316_v51 = vsel %vm1861_vm1, %v4314_v57, %v4315_v54  ;;  %v5268_v18 = vmul.f32 %v8582_v25, %v10733_v38  ;;  %v342_v10 = vld [vmem:[%s16157_s0 + $0x480] sm:$0xfe]  ;;  %v345_v57 = vld [vmem:[%s16157_s0 + $0x498] sm:$0x1] }
 0x2af   :  { %v4325_v50 = vsel %vm1861_vm1, %v4323_v58, %v4324_v44  ;;  %v5271_v20 = vmul.f32 %v8585_v60, %v10733_v38  ;;  %v4670_v7 = vadd.f32 %v4316_v51, %v3611_v39  ;;  %v5274_v28 = vmul.f32 %v8588_v30, %v10733_v38  ;;  %v348_v58 = vld [vmem:[%s16157_s0 + $0x4b0] sm:$0xfe]  ;;  %v351_v44 = vld [vmem:[%s16157_s0 + $0x4c8] sm:$0x1] }
 0x2b0   :  { %v4673_v15 = vadd.f32 %v4325_v50, %v3614_v1  ;;  %v5665_v9 = vrot.slane %v5265_v11, 1  ;;  %v5666_v49 = vrot.slane %v5268_v18, 1  ;;  %v6324_v42 = vmul.f32 %v13098_v26, %v8771_v53  ;;  %v1405_v11 = vld [vmem:[%s16157_s0 + $0x498] sm:$0x3] }
 0x2b1   :  { %v5674_v2 = vrot.slane %v5271_v20, 1  ;;  %v6327_v41 = vmul.f32 %v13098_v26, %v8774_v45  ;;  %v4962_v62 = vadd.f32 %v4866_v34, %v4670_v7  ;;  %v5675_v5 = vrot.slane %v5274_v28, 1  ;;  %v1411_v28 = vld [vmem:[%s16157_s0 + $0x4c8] sm:$0x3] }
 0x2b2   :  { %v4965_v32 = vadd.f32 %v4869_v14, %v4673_v15  ;;  %v6330_v8 = vmul.f32 %v13098_v26, %v8777_v48  ;;  %v5667_v25 = vsel %vm801_vm0, %v5665_v9, %v5666_v49  ;;  %v6333_v60 = vmul.f32 %v13098_v26, %v8780_v40  ;;  %v1402_v26 = vld [vmem:[%s16157_s0 + $0x480] sm:$0xfc]  ;;  %v1408_v15 = vld [vmem:[%s16157_s0 + $0x4b0] sm:$0xfc] }
 0x2b3   :  { %v6724_v39 = vrot.slane %v6324_v42, 2  ;;  %v6725_v54 = vrot.slane %v6327_v41, 2  ;;  %v5676_v30 = vsel %vm801_vm0, %v5674_v2, %v5675_v5  ;;  %v6021_v1 = vadd.f32 %v5667_v25, %v4962_v62  ;;  %v8193_v25 = vld [vmem:[%s16157_s0 + $0x4b0] sm:$0xfe] }
 0x2b4   :  { %v6733_v34 = vrot.slane %v6330_v8, 2  ;;  %v186_v14 = vmul.f32 %v9226_v3, %v13624_v29  ;;  %v6024_v53 = vadd.f32 %v5676_v30, %v4965_v32  ;;  %v6734_v51 = vrot.slane %v6333_v60, 2  ;;  %v8199_v30 = vld [vmem:[%s16157_s0 + $0x4e0] sm:$0xfe] }
 0x2b5   :  { %v6726_v45 = vsel %vm1861_vm1, %v6724_v39, %v6725_v54  ;;  %v189_v50 = vmul.f32 %v9226_v3, %v90_v21  ;;  %v537_v20 = vmul.f32 %v9229_v4, %v342_v10  ;;  %v540_v48 = vmul.f32 %v9229_v4, %v345_v57 }
 0x2b6   :  { %v7080_v18 = vadd.f32 %v6726_v45, %v6021_v1  ;;  %v543_v7 = vmul.f32 %v9229_v4, %v348_v58  ;;  %v6735_v9 = vsel %vm1861_vm1, %v6733_v34, %v6734_v51  ;;  %v546_v40 = vmul.f32 %v9229_v4, %v351_v44  ;;  %v8196_v44 = vld [vmem:[%s16157_s0 + $0x4c8] sm:$0x1] }
 0x2b7   :  { %v1597_v49 = vmul.f32 %v9264_v19, %v1402_v26  ;;  %v1600_v2 = vmul.f32 %v9264_v19, %v1405_v11  ;;  %v7083_v42 = vadd.f32 %v6735_v9, %v6024_v53  ;;  %v982_v41 = vrot.slane %v537_v20, 1  ;;  %v8202_v53 = vld [vmem:[%s16157_s0 + $0x4f8] sm:$0x1] }
 0x2b8   :  { %v983_v62 = vrot.slane %v540_v48, 1  ;;  %v991_v32 = vrot.slane %v543_v7, 1  ;;  %v992_v5 = vrot.slane %v546_v40, 1  ;;  %v1603_v8 = vmul.f32 %v9264_v19, %v1408_v15 }
 0x2b9   :  { %v1606_v10 = vmul.f32 %v9264_v19, %v1411_v28  ;;  %v2042_v57 = vrot.slane %v1597_v49, 2  ;;  %v7170_v60 = vpack.c.bf16 %v7083_v42, %v7080_v18  ;;  %v2043_v54 = vrot.slane %v1600_v2, 2  ;;  %v8517_v42 = vld [vmem:[%s16157_s0 + $0x4e0] sm:$0xff] }
 0x2ba   :  { %v984_v39 = vsel %vm801_vm0, %v982_v41, %v983_v62  ;;  %v2502_v58 = vmul.f32 %v9267_v22, %v90_v21  ;;  %v993_v1 = vsel %vm801_vm0, %v991_v32, %v992_v5  ;;  %v2051_v26 = vrot.slane %v1603_v8, 2  ;;  %v8385_v21 = vld [vmem:[%s16157_s0 + $0x4b0] sm:$0xfc] }
 0x2bb   :  { %v1246_v34 = vadd.f32 %v984_v39, %v186_v14  ;;  %v2052_v11 = vrot.slane %v1606_v10, 2  ;;  %7260 = vmatpush.bf16.xpose.msra.mxu2 %v7170_v60  ;;  %v1249_v45 = vadd.f32 %v993_v1, %v189_v50  ;;  %v2044_v51 = vsel %vm1861_vm1, %v2042_v57, %v2043_v54  ;;  %v8388_v14 = vld [vmem:[%s16157_s0 + $0x4c8] sm:$0x3]  ;;  %v8391_v50 = vld [vmem:[%s16157_s0 + $0x4e0] sm:$0xfc]  ;;  %v8520_v60 = vld [vmem:[%s16157_s0 + $0x510] sm:$0xff] }
 0x2bc   :  { %v2505_v18 = vmul.f32 %v9267_v22, %v13105_v33  ;;  %v2949_v20 = vmul.f32 %v8193_v25, %v9270_v23  ;;  %v2952_v15 = vmul.f32 %v8196_v44, %v9270_v23  ;;  %v2955_v28 = vmul.f32 %v8199_v30, %v9270_v23  ;;  %v8394_v33 = vld [vmem:[%s16157_s0 + $0x4f8] sm:$0x3]  ;;  %v8673_v39 = vld [vmem:[%s16157_s0 + $0x4e0] sm:$0xfe] }
 0x2bd   :  { %v2053_v48 = vsel %vm1861_vm1, %v2051_v26, %v2052_v11  ;;  %v2306_v7 = vadd.f32 %v2044_v51, %v1246_v34  ;;  %v2958_v40 = vmul.f32 %v8202_v53, %v9270_v23  ;;  %v4008_v2 = vmul.f32 %v8385_v21, %v9318_v56  ;;  %v8676_v1 = vld [vmem:[%s16157_s0 + $0x4f8] sm:$0x1]  ;;  %v8679_v34 = vld [vmem:[%s16157_s0 + $0x510] sm:$0xfe]  ;;  %v8865_v51 = vld [vmem:[%s16157_s0 + $0x4e0] sm:$0xfc] }
 0x2be   :  { %v2309_v9 = vadd.f32 %v2053_v48, %v1249_v45  ;;  %v3393_v49 = vrot.slane %v2949_v20, 1  ;;  %v3394_v62 = vrot.slane %v2952_v15, 1  ;;  %v3402_v32 = vrot.slane %v2955_v28, 1  ;;  %v8682_v45 = vld [vmem:[%s16157_s0 + $0x528] sm:$0x1] }
 0x2bf   :  { %v2598_v41 = vadd.f32 %v2502_v58, %v2306_v7  ;;  %v4011_v5 = vmul.f32 %v8388_v14, %v9318_v56  ;;  %v3403_v10 = vrot.slane %v2958_v40, 1  ;;  %v4014_v57 = vmul.f32 %v8391_v50, %v9318_v56  ;;  %v8868_v7 = vld [vmem:[%s16157_s0 + $0x4f8] sm:$0x3]  ;;  %v8874_v40 = vld [vmem:[%s16157_s0 + $0x528] sm:$0x3] }
 0x2c0   :  { %v2601_v8 = vadd.f32 %v2505_v18, %v2309_v9  ;;  %v4017_v25 = vmul.f32 %v8394_v33, %v9318_v56  ;;  %v3395_v54 = vsel %vm801_vm0, %v3393_v49, %v3394_v62  ;;  %v4452_v58 = vrot.slane %v4008_v2, 2  ;;  %v8871_v9 = vld [vmem:[%s16157_s0 + $0x510] sm:$0xfc] }
 0x2c1   :  { %v4453_v44 = vrot.slane %v4011_v5, 2  ;;  %v4912_v30 = vmul.f32 %v8517_v42, %v9350_v27  ;;  %v3404_v26 = vsel %vm801_vm0, %v3402_v32, %v3403_v10  ;;  %v3657_v11 = vadd.f32 %v3395_v54, %v2598_v41  ;;  %v13752_v41 = vld [vmem:[%s16158_s1 + $0x18] ss:$0 sm:$0xff]  ;;  %v100_v32 = vld [vmem:[%s16157_s0 + $0x5a8] sm:$0xff] }
 0x2c2   :  { %v4461_v53 = vrot.slane %v4014_v57, 2  ;;  %v4462_v21 = vrot.slane %v4017_v25, 2  ;;  %v3660_v18 = vadd.f32 %v3404_v26, %v2601_v8  ;;  %v4915_v14 = vmul.f32 %v8520_v60, %v9350_v27 }
 0x2c3   :  { %v4454_v20 = vsel %vm1861_vm1, %v4452_v58, %v4453_v44  ;;  %v5359_v48 = vmul.f32 %v8673_v39, %v9357_v31  ;;  %v5362_v50 = vmul.f32 %v8676_v1, %v9357_v31  ;;  %v5365_v33 = vmul.f32 %v8679_v34, %v9357_v31  ;;  %v103_v58 = vld [vmem:[%s16157_s0 + $0x5d8] sm:$0xff]  ;;  %v367_v44 = vld [vmem:[%s16157_s0 + $0x5a8] sm:$0xfe] }
 0x2c4   :  { %v4463_v15 = vsel %vm1861_vm1, %v4461_v53, %v4462_v21  ;;  %v4716_v28 = vadd.f32 %v4454_v20, %v3657_v11  ;;  %v5368_v2 = vmul.f32 %v8682_v45, %v9357_v31  ;;  %v6418_v62 = vmul.f32 %v13752_v41, %v8865_v51  ;;  %v370_v11 = vld [vmem:[%s16157_s0 + $0x5c0] sm:$0x1]  ;;  %v373_v53 = vld [vmem:[%s16157_s0 + $0x5d8] sm:$0xfe]  ;;  %v376_v20 = vld [vmem:[%s16157_s0 + $0x5f0] sm:$0x1] }
 0x2c5   :  { %v4719_v49 = vadd.f32 %v4463_v15, %v3660_v18  ;;  %v5803_v42 = vrot.slane %v5359_v48, 1  ;;  %v5804_v8 = vrot.slane %v5362_v50, 1  ;;  %v5812_v10 = vrot.slane %v5365_v33, 1  ;;  %v1430_v50 = vld [vmem:[%s16157_s0 + $0x5c0] sm:$0x3] }
 0x2c6   :  { %v5008_v5 = vadd.f32 %v4912_v30, %v4716_v28  ;;  %v6421_v57 = vmul.f32 %v13752_v41, %v8868_v7  ;;  %v5813_v60 = vrot.slane %v5368_v2, 1  ;;  %v6424_v39 = vmul.f32 %v13752_v41, %v8871_v9  ;;  %v1433_v33 = vld [vmem:[%s16157_s0 + $0x5d8] sm:$0xfc] }
 0x2c7   :  { %v5011_v25 = vadd.f32 %v4915_v14, %v4719_v49  ;;  %v6427_v54 = vmul.f32 %v13752_v41, %v8874_v40  ;;  %v5805_v30 = vsel %vm801_vm0, %v5803_v42, %v5804_v8  ;;  %v6862_v1 = vrot.slane %v6418_v62, 2  ;;  %v1427_v14 = vld [vmem:[%s16157_s0 + $0x5a8] sm:$0xfc]  ;;  %v1436_v42 = vld [vmem:[%s16157_s0 + $0x5f0] sm:$0x3] }
 0x2c8   :  { %v6863_v34 = vrot.slane %v6421_v57, 2  ;;  %v199_v26 = vmul.f32 %v9403_v63, %v100_v32  ;;  %v5814_v21 = vsel %vm801_vm0, %v5812_v10, %v5813_v60  ;;  %v6067_v45 = vadd.f32 %v5805_v30, %v5008_v5 }
 0x2c9   :  { %v6871_v51 = vrot.slane %v6424_v39, 2  ;;  %v6872_v18 = vrot.slane %v6427_v54, 2  ;;  %v6070_v48 = vadd.f32 %v5814_v21, %v5011_v25  ;;  %v202_v15 = vmul.f32 %v9403_v63, %v103_v58 }
 0x2ca   :  { %v6864_v7 = vsel %vm1861_vm1, %v6862_v1, %v6863_v34  ;;  %v562_v28 = vmul.f32 %v9409_v6, %v367_v44  ;;  %v565_v49 = vmul.f32 %v9409_v6, %v370_v11  ;;  %v568_v2 = vmul.f32 %v9409_v6, %v373_v53  ;;  %v8218_v1 = vld [vmem:[%s16157_s0 + $0x5d8] sm:$0xfe]  ;;  %v8221_v34 = vld [vmem:[%s16157_s0 + $0x5f0] sm:$0x1] }
 0x2cb   :  { %v6873_v9 = vsel %vm1861_vm1, %v6871_v51, %v6872_v18  ;;  %v7126_v40 = vadd.f32 %v6864_v7, %v6067_v45  ;;  %v571_v32 = vmul.f32 %v9409_v6, %v376_v20  ;;  %v1622_v8 = vmul.f32 %v9420_v13, %v1427_v14  ;;  %v8224_v51 = vld [vmem:[%s16157_s0 + $0x608] sm:$0xfe]  ;;  %v8227_v18 = vld [vmem:[%s16157_s0 + $0x620] sm:$0x1] }
 0x2cc   :  { %v7129_v62 = vadd.f32 %v6873_v9, %v6070_v48  ;;  %v1021_v5 = vrot.slane %v562_v28, 1  ;;  %v1022_v10 = vrot.slane %v565_v49, 1  ;;  %v1030_v57 = vrot.slane %v568_v2, 1 }
 0x2cd   :  { %v1625_v25 = vmul.f32 %v9420_v13, %v1430_v50  ;;  %v1628_v60 = vmul.f32 %v9420_v13, %v1433_v33  ;;  %v1031_v54 = vrot.slane %v571_v32, 1  ;;  %v1631_v44 = vmul.f32 %v9420_v13, %v1436_v42  ;;  %v8419_v42 = vld [vmem:[%s16157_s0 + $0x620] sm:$0x3] }
 0x2ce   :  { %v7192_v39 = vpack.c.bf16 %v7129_v62, %v7126_v40  ;;  %v2081_v30 = vrot.slane %v1622_v8, 2  ;;  %v1023_v11 = vsel %vm801_vm0, %v1021_v5, %v1022_v10  ;;  %v2515_v45 = vmul.f32 %v9449_v46, %v103_v58  ;;  %v8410_v58 = vld [vmem:[%s16157_s0 + $0x5d8] sm:$0xfc]  ;;  %v8413_v40 = vld [vmem:[%s16157_s0 + $0x5f0] sm:$0x3] }
 0x2cf   :  { %v2082_v53 = vrot.slane %v1625_v25, 2  ;;  %v2090_v21 = vrot.slane %v1628_v60, 2  ;;  %v1032_v20 = vsel %vm801_vm0, %v1030_v57, %v1031_v54  ;;  %v1259_v14 = vadd.f32 %v1023_v11, %v199_v26  ;;  %v8698_v11 = vld [vmem:[%s16157_s0 + $0x608] sm:$0xfe] }
 0x2d0   :  { %7273 = vmatpush.bf16.xpose.msra.mxu3 %v7192_v39  ;;  %v2091_v48 = vrot.slane %v1631_v44, 2  ;;  %v2518_v7 = vmul.f32 %v9449_v46, %v13233_v61  ;;  %v1262_v28 = vadd.f32 %v1032_v20, %v202_v15  ;;  %v2974_v33 = vmul.f32 %v8218_v1, %v9462_v55  ;;  %v8416_v15 = vld [vmem:[%s16157_s0 + $0x608] sm:$0xfc]  ;;  %v8704_v20 = vld [vmem:[%s16157_s0 + $0x638] sm:$0xfe] }
 0x2d1   :  { %v2083_v50 = vsel %vm1861_vm1, %v2081_v30, %v2082_v53  ;;  %v2977_v9 = vmul.f32 %v8221_v34, %v9462_v55  ;;  %v2980_v61 = vmul.f32 %v8224_v51, %v9462_v55  ;;  %v2983_v2 = vmul.f32 %v8227_v18, %v9462_v55  ;;  %v8530_v39 = vld [vmem:[%s16157_s0 + $0x608] sm:$0xff]  ;;  %v8533_v34 = vld [vmem:[%s16157_s0 + $0x638] sm:$0xff]  ;;  %v8701_v53 = vld [vmem:[%s16157_s0 + $0x620] sm:$0x1] }
 0x2d2   :  { %v2092_v26 = vsel %vm1861_vm1, %v2090_v21, %v2091_v48  ;;  %v2319_v49 = vadd.f32 %v2083_v50, %v1259_v14  ;;  %v3432_v32 = vrot.slane %v2974_v33, 1  ;;  %v4033_v8 = vmul.f32 %v8410_v58, %v9486_v17  ;;  %v8707_v14 = vld [vmem:[%s16157_s0 + $0x650] sm:$0x1]  ;;  %v8890_v50 = vld [vmem:[%s16157_s0 + $0x608] sm:$0xfc] }
 0x2d3   :  { %v2322_v62 = vadd.f32 %v2092_v26, %v1262_v28  ;;  %v3433_v5 = vrot.slane %v2977_v9, 1  ;;  %v3441_v57 = vrot.slane %v2980_v61, 1  ;;  %v3442_v25 = vrot.slane %v2983_v2, 1 }
 0x2d4   :  { %v2611_v10 = vadd.f32 %v2515_v45, %v2319_v49  ;;  %v4036_v60 = vmul.f32 %v8413_v40, %v9486_v17  ;;  %v4039_v30 = vmul.f32 %v8416_v15, %v9486_v17  ;;  %v4042_v1 = vmul.f32 %v8419_v42, %v9486_v17  ;;  %v8893_v49 = vld [vmem:[%s16157_s0 + $0x620] sm:$0x3] }
 0x2d5   :  { %v2614_v54 = vadd.f32 %v2518_v7, %v2322_v62  ;;  %v3434_v44 = vsel %vm801_vm0, %v3432_v32, %v3433_v5  ;;  %v3443_v21 = vsel %vm801_vm0, %v3441_v57, %v3442_v25  ;;  %v4491_v51 = vrot.slane %v4033_v8, 2  ;;  %v8896_v62 = vld [vmem:[%s16157_s0 + $0x638] sm:$0xfc]  ;;  %v8899_v32 = vld [vmem:[%s16157_s0 + $0x650] sm:$0x3] }
 0x2d6   :  { %v3670_v45 = vadd.f32 %v3434_v44, %v2611_v10  ;;  %v4492_v18 = vrot.slane %v4036_v60, 2  ;;  %v4500_v7 = vrot.slane %v4039_v30, 2  ;;  %v4501_v58 = vrot.slane %v4042_v1, 2  ;;  %v13884_v57 = vld [vmem:[%s16158_s1 + $0x20] ss:$0 sm:$0xff]  ;;  %v101_v30 = vld [vmem:[%s16157_s0 + $0x5b0] sm:$0xff] }
 0x2d7   :  { %v3673_v48 = vadd.f32 %v3443_v21, %v2614_v54  ;;  %v4925_v28 = vmul.f32 %v8530_v39, %v9489_v24  ;;  %v4928_v9 = vmul.f32 %v8533_v34, %v9489_v24  ;;  %v5384_v40 = vmul.f32 %v8698_v11, %v9532_v59  ;;  %v104_v21 = vld [vmem:[%s16157_s0 + $0x5e0] sm:$0xff] }
 0x2d8   :  { %v4493_v33 = vsel %vm1861_vm1, %v4491_v51, %v4492_v18  ;;  %v5387_v26 = vmul.f32 %v8701_v53, %v9532_v59  ;;  %v4502_v61 = vsel %vm1861_vm1, %v4500_v7, %v4501_v58  ;;  %v5390_v15 = vmul.f32 %v8704_v20, %v9532_v59  ;;  %v371_v51 = vld [vmem:[%s16157_s0 + $0x5c8] sm:$0x1]  ;;  %v374_v7 = vld [vmem:[%s16157_s0 + $0x5e0] sm:$0xfe]  ;;  %v377_v58 = vld [vmem:[%s16157_s0 + $0x5f8] sm:$0x1] }
 0x2d9   :  { %v4729_v2 = vadd.f32 %v4493_v33, %v3670_v45  ;;  %v5393_v42 = vmul.f32 %v8707_v14, %v9532_v59  ;;  %v4732_v5 = vadd.f32 %v4502_v61, %v3673_v48  ;;  %v5842_v8 = vrot.slane %v5384_v40, 1  ;;  %v368_v45 = vld [vmem:[%s16157_s0 + $0x5b0] sm:$0xfe] }
 0x2da   :  { %v5843_v10 = vrot.slane %v5387_v26, 1  ;;  %v6443_v25 = vmul.f32 %v13884_v57, %v8890_v50  ;;  %v5851_v39 = vrot.slane %v5390_v15, 1  ;;  %v6446_v44 = vmul.f32 %v13884_v57, %v8893_v49  ;;  %v1428_v40 = vld [vmem:[%s16157_s0 + $0x5b0] sm:$0xfc]  ;;  %v1431_v15 = vld [vmem:[%s16157_s0 + $0x5c8] sm:$0x3] }
 0x2db   :  { %v5021_v60 = vadd.f32 %v4925_v28, %v4729_v2  ;;  %v5852_v54 = vrot.slane %v5393_v42, 1  ;;  %v5024_v1 = vadd.f32 %v4928_v9, %v4732_v5  ;;  %v6449_v11 = vmul.f32 %v13884_v57, %v8896_v62  ;;  %v1434_v42 = vld [vmem:[%s16157_s0 + $0x5e0] sm:$0xfc] }
 0x2dc   :  { %v5844_v34 = vsel %vm801_vm0, %v5842_v8, %v5843_v10  ;;  %v6452_v53 = vmul.f32 %v13884_v57, %v8899_v32  ;;  %v6901_v14 = vrot.slane %v6443_v25, 2  ;;  %v6902_v48 = vrot.slane %v6446_v44, 2  ;;  %v1437_v10 = vld [vmem:[%s16157_s0 + $0x5f8] sm:$0x3] }
 0x2dd   :  { %v5853_v18 = vsel %vm801_vm0, %v5851_v39, %v5852_v54  ;;  %v6080_v20 = vadd.f32 %v5844_v34, %v5021_v60  ;;  %v6910_v50 = vrot.slane %v6449_v11, 2  ;;  %v200_v9 = vmul.f32 %v10601_v0, %v101_v30  ;;  %v8219_v11 = vld [vmem:[%s16157_s0 + $0x5e0] sm:$0xfe] }
 0x2de   :  { %v6083_v28 = vadd.f32 %v5853_v18, %v5024_v1  ;;  %v6911_v33 = vrot.slane %v6452_v53, 2  ;;  %v6903_v26 = vsel %vm1861_vm1, %v6901_v14, %v6902_v48  ;;  %v203_v49 = vmul.f32 %v10601_v0, %v104_v21  ;;  %v8225_v14 = vld [vmem:[%s16157_s0 + $0x610] sm:$0xfe] }
 0x2df   :  { %v563_v61 = vmul.f32 %v10625_v52, %v368_v45  ;;  %v566_v2 = vmul.f32 %v10625_v52, %v371_v51  ;;  %v7139_v32 = vadd.f32 %v6903_v26, %v6080_v20  ;;  %v569_v5 = vmul.f32 %v10625_v52, %v374_v7  ;;  %v8222_v20 = vld [vmem:[%s16157_s0 + $0x5f8] sm:$0x1] }
 0x2e0   :  { %v6912_v62 = vsel %vm1861_vm1, %v6910_v50, %v6911_v33  ;;  %v572_v8 = vmul.f32 %v10625_v52, %v377_v58  ;;  %v1623_v54 = vmul.f32 %v10634_v35, %v1428_v40  ;;  %v1626_v1 = vmul.f32 %v10634_v35, %v1431_v15  ;;  %v8228_v50 = vld [vmem:[%s16157_s0 + $0x628] sm:$0x1]  ;;  %v8411_v33 = vld [vmem:[%s16157_s0 + $0x5e0] sm:$0xfc] }
 0x2e1   :  { %v7142_v25 = vadd.f32 %v6912_v62, %v6083_v28  ;;  %v1024_v60 = vrot.slane %v563_v61, 1  ;;  %v1025_v39 = vrot.slane %v566_v2, 1  ;;  %v1033_v44 = vrot.slane %v569_v5, 1 }
 0x2e2   :  { %v1034_v30 = vrot.slane %v572_v8, 1  ;;  %v1629_v34 = vmul.f32 %v10634_v35, %v1434_v42  ;;  %v1632_v51 = vmul.f32 %v10634_v35, %v1437_v10  ;;  %v2084_v18 = vrot.slane %v1623_v54, 2  ;;  %v8420_v8 = vld [vmem:[%s16157_s0 + $0x628] sm:$0x3] }
 0x2e3   :  { %v7199_v53 = vpack.c.bf16 %v7142_v25, %v7139_v32  ;;  %v1026_v45 = vsel %vm801_vm0, %v1024_v60, %v1025_v39  ;;  %v2085_v58 = vrot.slane %v1626_v1, 2  ;;  %v2516_v61 = vmul.f32 %v10637_v16, %v104_v21  ;;  %v8414_v32 = vld [vmem:[%s16157_s0 + $0x5f8] sm:$0x3] }
 0x2e4   :  { %v1035_v48 = vsel %vm801_vm0, %v1033_v44, %v1034_v30  ;;  %v1260_v7 = vadd.f32 %v1026_v45, %v200_v9  ;;  %v2093_v28 = vrot.slane %v1629_v34, 2  ;;  %v2094_v26 = vrot.slane %v1632_v51, 2  ;;  %v8699_v45 = vld [vmem:[%s16157_s0 + $0x610] sm:$0xfe] }
 0x2e5   :  { %7284 = vmatpush.bf16.xpose.msrb.mxu0 %v7199_v53  ;;  %v1263_v40 = vadd.f32 %v1035_v48, %v203_v49  ;;  %v2519_v2 = vmul.f32 %v10637_v16, %v13364_v43  ;;  %v2086_v9 = vsel %vm1861_vm1, %v2084_v18, %v2085_v58  ;;  %v2975_v15 = vmul.f32 %v8219_v11, %v10640_v37  ;;  %v8417_v49 = vld [vmem:[%s16157_s0 + $0x610] sm:$0xfc]  ;;  %v8534_v53 = vld [vmem:[%s16157_s0 + $0x640] sm:$0xff]  ;;  %v8702_v48 = vld [vmem:[%s16157_s0 + $0x628] sm:$0x1] }
 0x2e6   :  { %v2978_v42 = vmul.f32 %v8222_v20, %v10640_v37  ;;  %v2981_v62 = vmul.f32 %v8225_v14, %v10640_v37  ;;  %v2095_v21 = vsel %vm1861_vm1, %v2093_v28, %v2094_v26  ;;  %v2320_v5 = vadd.f32 %v2086_v9, %v1260_v7  ;;  %v8531_v11 = vld [vmem:[%s16157_s0 + $0x610] sm:$0xff]  ;;  %v8705_v7 = vld [vmem:[%s16157_s0 + $0x640] sm:$0xfe] }
 0x2e7   :  { %v2984_v43 = vmul.f32 %v8228_v50, %v10640_v37  ;;  %v4034_v10 = vmul.f32 %v8411_v33, %v10643_v47  ;;  %v2323_v25 = vadd.f32 %v2095_v21, %v1263_v40  ;;  %v3435_v60 = vrot.slane %v2975_v15, 1  ;;  %v8708_v40 = vld [vmem:[%s16157_s0 + $0x658] sm:$0x1]  ;;  %v8891_v26 = vld [vmem:[%s16157_s0 + $0x610] sm:$0xfc] }
 0x2e8   :  { %v3436_v39 = vrot.slane %v2978_v42, 1  ;;  %v3444_v54 = vrot.slane %v2981_v62, 1  ;;  %v2612_v44 = vadd.f32 %v2516_v61, %v2320_v5  ;;  %v4037_v1 = vmul.f32 %v8414_v32, %v10643_v47  ;;  %v8894_v21 = vld [vmem:[%s16157_s0 + $0x628] sm:$0x3]  ;;  %v8897_v5 = vld [vmem:[%s16157_s0 + $0x640] sm:$0xfc] }
 0x2e9   :  { %v3445_v30 = vrot.slane %v2984_v43, 1  ;;  %v4040_v34 = vmul.f32 %v8417_v49, %v10643_v47  ;;  %v2615_v51 = vadd.f32 %v2519_v2, %v2323_v25  ;;  %v4043_v20 = vmul.f32 %v8420_v8, %v10643_v47  ;;  %v8900_v25 = vld [vmem:[%s16157_s0 + $0x658] sm:$0x3] }
 0x2ea   :  { %v3437_v18 = vsel %vm801_vm0, %v3435_v60, %v3436_v39  ;;  %v4494_v14 = vrot.slane %v4034_v10, 2  ;;  %v4495_v50 = vrot.slane %v4037_v1, 2  ;;  %v4926_v9 = vmul.f32 %v8531_v11, %v10727_v36  ;;  %v14016_v60 = vld [vmem:[%s16158_s1 + $0x28] ss:$0 sm:$0xff] }
 0x2eb   :  { %v3446_v58 = vsel %vm801_vm0, %v3444_v54, %v3445_v30  ;;  %v3671_v28 = vadd.f32 %v3437_v18, %v2612_v44  ;;  %v4503_v33 = vrot.slane %v4040_v34, 2  ;;  %v4504_v2 = vrot.slane %v4043_v20, 2  ;;  %v38_v18 = vld [vmem:[%s16157_s0 + $0xa0] sm:$0xff]  ;;  %v236_v20 = vld [vmem:[%s16157_s0 + $0x70] sm:$0xfe] }
 0x2ec   :  { %v3674_v61 = vadd.f32 %v3446_v58, %v2615_v51  ;;  %v4929_v15 = vmul.f32 %v8534_v53, %v10727_v36  ;;  %v4496_v42 = vsel %vm1861_vm1, %v4494_v14, %v4495_v50  ;;  %v5385_v62 = vmul.f32 %v8699_v45, %v10733_v38  ;;  %v14024_v51 = vld [vmem:[%s16157_s0 + $0x70] sm:$0xff]  ;;  %v242_v50 = vld [vmem:[%s16157_s0 + $0xa0] sm:$0xfe] }
 0x2ed   :  { %v5388_v32 = vmul.f32 %v8702_v48, %v10733_v38  ;;  %v5391_v49 = vmul.f32 %v8705_v7, %v10733_v38  ;;  %v4505_v43 = vsel %vm1861_vm1, %v4503_v33, %v4504_v2  ;;  %v4730_v8 = vadd.f32 %v4496_v42, %v3671_v28  ;;  %v239_v28 = vld [vmem:[%s16157_s0 + $0x88] sm:$0x1]  ;;  %v245_v2 = vld [vmem:[%s16157_s0 + $0xb8] sm:$0x1] }
 0x2ee   :  { %v5394_v10 = vmul.f32 %v8708_v40, %v10733_v38  ;;  %v6444_v39 = vmul.f32 %v14016_v60, %v8891_v26  ;;  %v4733_v54 = vadd.f32 %v4505_v43, %v3674_v61  ;;  %v5845_v44 = vrot.slane %v5385_v62, 1 }
 0x2ef   :  { %v5846_v30 = vrot.slane %v5388_v32, 1  ;;  %v5854_v1 = vrot.slane %v5391_v49, 1  ;;  %v5022_v34 = vadd.f32 %v4926_v9, %v4730_v8  ;;  %v6447_v53 = vmul.f32 %v14016_v60, %v8894_v21  ;;  %v1296_v9 = vld [vmem:[%s16157_s0 + $0x70] sm:$0xfc]  ;;  %v1299_v8 = vld [vmem:[%s16157_s0 + $0x88] sm:$0x3] }
 0x2f0   :  { %v5855_v11 = vrot.slane %v5394_v10, 1  ;;  %v6450_v45 = vmul.f32 %v14016_v60, %v8897_v5  ;;  %v5025_v14 = vadd.f32 %v4929_v15, %v4733_v54  ;;  %v6453_v7 = vmul.f32 %v14016_v60, %v8900_v25  ;;  %v1302_v10 = vld [vmem:[%s16157_s0 + $0xa0] sm:$0xfc]  ;;  %v1305_v25 = vld [vmem:[%s16157_s0 + $0xb8] sm:$0x3] }
 0x2f1   :  { %v5847_v48 = vsel %vm801_vm0, %v5845_v44, %v5846_v30  ;;  %v6904_v58 = vrot.slane %v6444_v39, 2  ;;  %v6905_v26 = vrot.slane %v6447_v53, 2  ;;  %v134_v62 = vmul.f32 %v10601_v0, %v14024_v51 }
 0x2f2   :  { %v5856_v33 = vsel %vm801_vm0, %v5854_v1, %v5855_v11  ;;  %v6081_v40 = vadd.f32 %v5847_v48, %v5022_v34  ;;  %v6913_v61 = vrot.slane %v6450_v45, 2  ;;  %v6914_v42 = vrot.slane %v6453_v7, 2  ;;  %v8087_v7 = vld [vmem:[%s16157_s0 + $0xa0] sm:$0xfe] }
 0x2f3   :  { %v6084_v15 = vadd.f32 %v5856_v33, %v5025_v14  ;;  %v137_v32 = vmul.f32 %v10601_v0, %v38_v18  ;;  %v6906_v49 = vsel %vm1861_vm1, %v6904_v58, %v6905_v26  ;;  %v431_v21 = vmul.f32 %v10625_v52, %v236_v20  ;;  %v8090_v58 = vld [vmem:[%s16157_s0 + $0xb8] sm:$0x1]  ;;  %v8093_v26 = vld [vmem:[%s16157_s0 + $0xd0] sm:$0xfe] }
 0x2f4   :  { %v434_v5 = vmul.f32 %v10625_v52, %v239_v28  ;;  %v437_v43 = vmul.f32 %v10625_v52, %v242_v50  ;;  %v6915_v39 = vsel %vm1861_vm1, %v6913_v61, %v6914_v42  ;;  %v7140_v54 = vadd.f32 %v6906_v49, %v6081_v40  ;;  %v8096_v61 = vld [vmem:[%s16157_s0 + $0xe8] sm:$0x1]  ;;  %v8279_v49 = vld [vmem:[%s16157_s0 + $0xa0] sm:$0xfc] }
 0x2f5   :  { %v440_v44 = vmul.f32 %v10625_v52, %v245_v2  ;;  %v1491_v30 = vmul.f32 %v10634_v35, %v1296_v9  ;;  %v7143_v1 = vadd.f32 %v6915_v39, %v6084_v15  ;;  %v826_v34 = vrot.slane %v431_v21, 1  ;;  %v8282_v39 = vld [vmem:[%s16157_s0 + $0xb8] sm:$0x3] }
 0x2f6   :  { %v827_v11 = vrot.slane %v434_v5, 1  ;;  %v835_v53 = vrot.slane %v437_v43, 1  ;;  %v1494_v20 = vmul.f32 %v10634_v35, %v1299_v8  ;;  %v1497_v14 = vmul.f32 %v10634_v35, %v1302_v10 }
 0x2f7   :  { %v836_v45 = vrot.slane %v440_v44, 1  ;;  %v1500_v48 = vmul.f32 %v10634_v35, %v1305_v25  ;;  %v7200_v28 = vpack.c.bf16 %v7143_v1, %v7140_v54  ;;  %v1886_v33 = vrot.slane %v1491_v30, 2 }
 0x2f8   :  { %v828_v50 = vsel %vm801_vm0, %v826_v34, %v827_v11  ;;  %v2450_v40 = vmul.f32 %v10637_v16, %v38_v18  ;;  %v1887_v15 = vrot.slane %v1494_v20, 2  ;;  %v1895_v42 = vrot.slane %v1497_v14, 2 }
 0x2f9   :  { %v837_v2 = vsel %vm801_vm0, %v835_v53, %v836_v45  ;;  %v1194_v9 = vadd.f32 %v828_v50, %v134_v62  ;;  %7297 = vmatpush.bf16.xpose.msrb.mxu1 %v7200_v28  ;;  %v1896_v18 = vrot.slane %v1500_v48, 2  ;;  %v2453_v5 = vmul.f32 %v10637_v16, %v13495_v12  ;;  %v8288_v12 = vld [vmem:[%s16157_s0 + $0xe8] sm:$0x3]  ;;  %v8468_v28 = vld [vmem:[%s16157_s0 + $0x100] sm:$0xff]  ;;  %v8567_v50 = vld [vmem:[%s16157_s0 + $0xd0] sm:$0xfe] }
 0x2fa   :  { %v1197_v21 = vadd.f32 %v837_v2, %v137_v32  ;;  %v2843_v43 = vmul.f32 %v8087_v7, %v10640_v37  ;;  %v1888_v8 = vsel %vm1861_vm1, %v1886_v33, %v1887_v15  ;;  %v2846_v10 = vmul.f32 %v8090_v58, %v10640_v37  ;;  %v8285_v32 = vld [vmem:[%s16157_s0 + $0xd0] sm:$0xfc]  ;;  %v8570_v2 = vld [vmem:[%s16157_s0 + $0xe8] sm:$0x1] }
 0x2fb   :  { %v2849_v62 = vmul.f32 %v8093_v26, %v10640_v37  ;;  %v2852_v25 = vmul.f32 %v8096_v61, %v10640_v37  ;;  %v1897_v54 = vsel %vm1861_vm1, %v1895_v42, %v1896_v18  ;;  %v2254_v44 = vadd.f32 %v1888_v8, %v1194_v9  ;;  %v8465_v58 = vld [vmem:[%s16157_s0 + $0xd0] sm:$0xff]  ;;  %v8573_v9 = vld [vmem:[%s16157_s0 + $0x100] sm:$0xfe]  ;;  %v8576_v18 = vld [vmem:[%s16157_s0 + $0x118] sm:$0x1] }
 0x2fc   :  { %v3237_v30 = vrot.slane %v2843_v43, 1  ;;  %v3902_v1 = vmul.f32 %v8279_v49, %v10643_v47  ;;  %v2257_v34 = vadd.f32 %v1897_v54, %v1197_v21  ;;  %v3238_v11 = vrot.slane %v2846_v10, 1 }
 0x2fd   :  { %v3246_v53 = vrot.slane %v2849_v62, 1  ;;  %v3247_v45 = vrot.slane %v2852_v25, 1  ;;  %v2546_v20 = vadd.f32 %v2450_v40, %v2254_v44  ;;  %v3905_v14 = vmul.f32 %v8282_v39, %v10643_v47  ;;  %v8759_v62 = vld [vmem:[%s16157_s0 + $0xd0] sm:$0xfc]  ;;  %v8762_v25 = vld [vmem:[%s16157_s0 + $0xe8] sm:$0x3] }
 0x2fe   :  { %v3908_v48 = vmul.f32 %v8285_v32, %v10643_v47  ;;  %v3911_v7 = vmul.f32 %v8288_v12, %v10643_v47  ;;  %v2549_v33 = vadd.f32 %v2453_v5, %v2257_v34  ;;  %v3239_v40 = vsel %vm801_vm0, %v3237_v30, %v3238_v11  ;;  %v8765_v44 = vld [vmem:[%s16157_s0 + $0x100] sm:$0xfc] }
 0x2ff   :  { %v3248_v26 = vsel %vm801_vm0, %v3246_v53, %v3247_v45  ;;  %v4296_v61 = vrot.slane %v3902_v1, 2  ;;  %v3605_v15 = vadd.f32 %v3239_v40, %v2546_v20  ;;  %v4297_v42 = vrot.slane %v3905_v14, 2  ;;  %v8768_v53 = vld [vmem:[%s16157_s0 + $0x118] sm:$0x3]  ;;  %v84_v40 = vld [vmem:[%s16157_s0 + $0x450] sm:$0xff] }
 0x300   :  { %v4305_v49 = vrot.slane %v3908_v48, 2  ;;  %v4306_v21 = vrot.slane %v3911_v7, 2  ;;  %v3608_v5 = vadd.f32 %v3248_v26, %v2549_v33  ;;  %v4860_v43 = vmul.f32 %v8465_v58, %v10727_v36  ;;  %v14153_v7 = vld [vmem:[%s16157_s0 + $0x420] sm:$0xff] }
 0x301   :  { %v4863_v8 = vmul.f32 %v8468_v28, %v10727_v36  ;;  %v5253_v10 = vmul.f32 %v8567_v50, %v10733_v38  ;;  %v4298_v39 = vsel %vm1861_vm1, %v4296_v61, %v4297_v42  ;;  %v5256_v12 = vmul.f32 %v8570_v2, %v10733_v38  ;;  %v330_v26 = vld [vmem:[%s16157_s0 + $0x420] sm:$0xfe]  ;;  %v333_v61 = vld [vmem:[%s16157_s0 + $0x438] sm:$0x1] }
 0x302   :  { %v4307_v32 = vsel %vm1861_vm1, %v4305_v49, %v4306_v21  ;;  %v5259_v54 = vmul.f32 %v8573_v9, %v10733_v38  ;;  %v4664_v30 = vadd.f32 %v4298_v39, %v3605_v15  ;;  %v5262_v34 = vmul.f32 %v8576_v18, %v10733_v38  ;;  %v336_v49 = vld [vmem:[%s16157_s0 + $0x450] sm:$0xfe]  ;;  %v339_v21 = vld [vmem:[%s16157_s0 + $0x468] sm:$0x1] }
 0x303   :  { %v4667_v1 = vadd.f32 %v4307_v32, %v3608_v5  ;;  %v5647_v11 = vrot.slane %v5253_v10, 1  ;;  %v5648_v45 = vrot.slane %v5256_v12, 1  ;;  %v6312_v14 = vmul.f32 %v14016_v60, %v8759_v62  ;;  %v1390_v10 = vld [vmem:[%s16157_s0 + $0x420] sm:$0xfc]  ;;  %v1393_v62 = vld [vmem:[%s16157_s0 + $0x438] sm:$0x3] }
 0x304   :  { %v5656_v20 = vrot.slane %v5259_v54, 1  ;;  %v6315_v48 = vmul.f32 %v14016_v60, %v8762_v25  ;;  %v4956_v58 = vadd.f32 %v4860_v43, %v4664_v30  ;;  %v5657_v50 = vrot.slane %v5262_v34, 1  ;;  %v1396_v34 = vld [vmem:[%s16157_s0 + $0x450] sm:$0xfc] }
 0x305   :  { %v4959_v28 = vadd.f32 %v4863_v8, %v4667_v1  ;;  %v6318_v33 = vmul.f32 %v14016_v60, %v8765_v44  ;;  %v5649_v2 = vsel %vm801_vm0, %v5647_v11, %v5648_v45  ;;  %v6321_v9 = vmul.f32 %v14016_v60, %v8768_v53  ;;  %v1399_v11 = vld [vmem:[%s16157_s0 + $0x468] sm:$0x3] }
 0x306   :  { %v6706_v15 = vrot.slane %v6312_v14, 2  ;;  %v6707_v42 = vrot.slane %v6315_v48, 2  ;;  %v5658_v18 = vsel %vm801_vm0, %v5656_v20, %v5657_v50  ;;  %v6015_v5 = vadd.f32 %v5649_v2, %v4956_v58 }
 0x307   :  { %v6715_v43 = vrot.slane %v6318_v33, 2  ;;  %v180_v8 = vmul.f32 %v9226_v3, %v14153_v7  ;;  %v6018_v25 = vadd.f32 %v5658_v18, %v4959_v28  ;;  %v6716_v32 = vrot.slane %v6321_v9, 2  ;;  %v8181_v9 = vld [vmem:[%s16157_s0 + $0x450] sm:$0xfe]  ;;  %v8184_v18 = vld [vmem:[%s16157_s0 + $0x468] sm:$0x1] }
 0x308   :  { %v6708_v39 = vsel %vm1861_vm1, %v6706_v15, %v6707_v42  ;;  %v183_v12 = vmul.f32 %v9226_v3, %v84_v40  ;;  %v525_v44 = vmul.f32 %v9229_v4, %v330_v26  ;;  %v528_v30 = vmul.f32 %v9229_v4, %v333_v61 }
 0x309   :  { %v7074_v54 = vadd.f32 %v6708_v39, %v6015_v5  ;;  %v531_v1 = vmul.f32 %v9229_v4, %v336_v49  ;;  %v6717_v53 = vsel %vm1861_vm1, %v6715_v43, %v6716_v32  ;;  %v534_v45 = vmul.f32 %v9229_v4, %v339_v21  ;;  %v8187_v5 = vld [vmem:[%s16157_s0 + $0x480] sm:$0xfe]  ;;  %v8190_v39 = vld [vmem:[%s16157_s0 + $0x498] sm:$0x1] }
 0x30a   :  { %v1585_v20 = vmul.f32 %v9264_v19, %v1390_v10  ;;  %v1588_v14 = vmul.f32 %v9264_v19, %v1393_v62  ;;  %v7077_v48 = vadd.f32 %v6717_v53, %v6018_v25  ;;  %v964_v58 = vrot.slane %v525_v44, 1 }
 0x30b   :  { %v965_v28 = vrot.slane %v528_v30, 1  ;;  %v973_v50 = vrot.slane %v531_v1, 1  ;;  %v974_v33 = vrot.slane %v534_v45, 1  ;;  %v1591_v26 = vmul.f32 %v9264_v19, %v1396_v34 }
 0x30c   :  { %v1594_v61 = vmul.f32 %v9264_v19, %v1399_v11  ;;  %v2024_v2 = vrot.slane %v1585_v20, 2  ;;  %v7167_v15 = vpack.c.bf16 %v7077_v48, %v7074_v54  ;;  %v2025_v49 = vrot.slane %v1588_v14, 2 }
 0x30d   :  { %v966_v42 = vsel %vm801_vm0, %v964_v58, %v965_v28  ;;  %v2496_v21 = vmul.f32 %v9267_v22, %v84_v40  ;;  %v975_v43 = vsel %vm801_vm0, %v973_v50, %v974_v33  ;;  %v2033_v62 = vrot.slane %v1591_v26, 2  ;;  %v8373_v40 = vld [vmem:[%s16157_s0 + $0x450] sm:$0xfc]  ;;  %v8511_v58 = vld [vmem:[%s16157_s0 + $0x480] sm:$0xff] }
 0x30e   :  { %v1240_v10 = vadd.f32 %v966_v42, %v180_v8  ;;  %v2034_v25 = vrot.slane %v1594_v61, 2  ;;  %7261 = vmatpush.bf16.xpose.msra.mxu2 %v7167_v15  ;;  %v1243_v32 = vadd.f32 %v975_v43, %v183_v12  ;;  %v2026_v54 = vsel %vm1861_vm1, %v2024_v2, %v2025_v49  ;;  %v8376_v8 = vld [vmem:[%s16157_s0 + $0x468] sm:$0x3]  ;;  %v8379_v12 = vld [vmem:[%s16157_s0 + $0x480] sm:$0xfc]  ;;  %v8514_v42 = vld [vmem:[%s16157_s0 + $0x4b0] sm:$0xff] }
 0x30f   :  { %v2499_v44 = vmul.f32 %v9267_v22, %v13624_v29  ;;  %v2937_v30 = vmul.f32 %v8181_v9, %v9270_v23  ;;  %v2940_v11 = vmul.f32 %v8184_v18, %v9270_v23  ;;  %v2943_v53 = vmul.f32 %v8187_v5, %v9270_v23  ;;  %v8382_v29 = vld [vmem:[%s16157_s0 + $0x498] sm:$0x3]  ;;  %v8661_v49 = vld [vmem:[%s16157_s0 + $0x480] sm:$0xfe] }
 0x310   :  { %v2035_v1 = vsel %vm1861_vm1, %v2033_v62, %v2034_v25  ;;  %v2300_v34 = vadd.f32 %v2026_v54, %v1240_v10  ;;  %v2946_v20 = vmul.f32 %v8190_v39, %v9270_v23  ;;  %v3996_v48 = vmul.f32 %v8373_v40, %v9318_v56  ;;  %v8664_v10 = vld [vmem:[%s16157_s0 + $0x498] sm:$0x1]  ;;  %v8667_v62 = vld [vmem:[%s16157_s0 + $0x4b0] sm:$0xfe]  ;;  %v8670_v54 = vld [vmem:[%s16157_s0 + $0x4c8] sm:$0x1] }
 0x311   :  { %v2303_v45 = vadd.f32 %v2035_v1, %v1243_v32  ;;  %v3375_v14 = vrot.slane %v2937_v30, 1  ;;  %v3376_v50 = vrot.slane %v2940_v11, 1  ;;  %v3384_v33 = vrot.slane %v2943_v53, 1  ;;  %v8856_v11 = vld [vmem:[%s16157_s0 + $0x498] sm:$0x3] }
 0x312   :  { %v2592_v28 = vadd.f32 %v2496_v21, %v2300_v34  ;;  %v3999_v26 = vmul.f32 %v8376_v8, %v9318_v56  ;;  %v3385_v2 = vrot.slane %v2946_v20, 1  ;;  %v4002_v9 = vmul.f32 %v8379_v12, %v9318_v56  ;;  %v8859_v20 = vld [vmem:[%s16157_s0 + $0x4b0] sm:$0xfc] }
 0x313   :  { %v2595_v61 = vadd.f32 %v2499_v44, %v2303_v45  ;;  %v4005_v15 = vmul.f32 %v8382_v29, %v9318_v56  ;;  %v3377_v21 = vsel %vm801_vm0, %v3375_v14, %v3376_v50  ;;  %v4434_v18 = vrot.slane %v3996_v48, 2  ;;  %v8853_v44 = vld [vmem:[%s16157_s0 + $0x480] sm:$0xfc]  ;;  %v8862_v14 = vld [vmem:[%s16157_s0 + $0x4c8] sm:$0x3] }
 0x314   :  { %v4435_v5 = vrot.slane %v3999_v26, 2  ;;  %v4906_v43 = vmul.f32 %v8511_v58, %v9350_v27  ;;  %v3386_v25 = vsel %vm801_vm0, %v3384_v33, %v3385_v2  ;;  %v3651_v39 = vadd.f32 %v3377_v21, %v2592_v28  ;;  %v94_v33 = vld [vmem:[%s16157_s0 + $0x4e8] sm:$0xff] }
 0x315   :  { %v4443_v40 = vrot.slane %v4002_v9, 2  ;;  %v4444_v32 = vrot.slane %v4005_v15, 2  ;;  %v3654_v30 = vadd.f32 %v3386_v25, %v2595_v61  ;;  %v4909_v1 = vmul.f32 %v8514_v42, %v9350_v27 }
 0x316   :  { %v4436_v8 = vsel %vm1861_vm1, %v4434_v18, %v4435_v5  ;;  %v5347_v34 = vmul.f32 %v8661_v49, %v9357_v31  ;;  %v5350_v29 = vmul.f32 %v8664_v10, %v9357_v31  ;;  %v5353_v45 = vmul.f32 %v8667_v62, %v9357_v31  ;;  %v97_v18 = vld [vmem:[%s16157_s0 + $0x518] sm:$0xff]  ;;  %v355_v5 = vld [vmem:[%s16157_s0 + $0x4e8] sm:$0xfe] }
 0x317   :  { %v4445_v53 = vsel %vm1861_vm1, %v4443_v40, %v4444_v32  ;;  %v4710_v12 = vadd.f32 %v4436_v8, %v3651_v39  ;;  %v5356_v58 = vmul.f32 %v8670_v54, %v9357_v31  ;;  %v6406_v50 = vmul.f32 %v13752_v41, %v8853_v44  ;;  %v358_v39 = vld [vmem:[%s16157_s0 + $0x500] sm:$0x1]  ;;  %v1415_v8 = vld [vmem:[%s16157_s0 + $0x4e8] sm:$0xfc] }
 0x318   :  { %v4713_v48 = vadd.f32 %v4445_v53, %v3654_v30  ;;  %v5785_v28 = vrot.slane %v5347_v34, 1  ;;  %v5786_v61 = vrot.slane %v5350_v29, 1  ;;  %v5794_v2 = vrot.slane %v5353_v45, 1  ;;  %v364_v30 = vld [vmem:[%s16157_s0 + $0x530] sm:$0x1] }
 0x319   :  { %v5002_v26 = vadd.f32 %v4906_v43, %v4710_v12  ;;  %v6409_v9 = vmul.f32 %v13752_v41, %v8856_v11  ;;  %v5795_v42 = vrot.slane %v5356_v58, 1  ;;  %v6412_v49 = vmul.f32 %v13752_v41, %v8859_v20  ;;  %v1418_v12 = vld [vmem:[%s16157_s0 + $0x500] sm:$0x3]  ;;  %v1421_v29 = vld [vmem:[%s16157_s0 + $0x518] sm:$0xfc] }
 0x31a   :  { %v5005_v15 = vadd.f32 %v4909_v1, %v4713_v48  ;;  %v6415_v21 = vmul.f32 %v13752_v41, %v8862_v14  ;;  %v5787_v43 = vsel %vm801_vm0, %v5785_v28, %v5786_v61  ;;  %v6844_v10 = vrot.slane %v6406_v50, 2  ;;  %v361_v41 = vld [vmem:[%s16157_s0 + $0x518] sm:$0xfe]  ;;  %v1424_v58 = vld [vmem:[%s16157_s0 + $0x530] sm:$0x3] }
 0x31b   :  { %v6845_v62 = vrot.slane %v6409_v9, 2  ;;  %v193_v25 = vmul.f32 %v9403_v63, %v94_v33  ;;  %v5796_v40 = vsel %vm801_vm0, %v5794_v2, %v5795_v42  ;;  %v6061_v32 = vadd.f32 %v5787_v43, %v5002_v26  ;;  %v8047_v42 = vld [vmem:[%s16157_s0 + $0x548] sm:$0xff] }
 0x31c   :  { %v6853_v54 = vrot.slane %v6412_v49, 2  ;;  %v6854_v44 = vrot.slane %v6415_v21, 2  ;;  %v6064_v1 = vadd.f32 %v5796_v40, %v5005_v15  ;;  %v196_v11 = vmul.f32 %v9403_v63, %v97_v18 }
 0x31d   :  { %v6846_v34 = vsel %vm1861_vm1, %v6844_v10, %v6845_v62  ;;  %v550_v53 = vmul.f32 %v9409_v6, %v355_v5  ;;  %v553_v14 = vmul.f32 %v9409_v6, %v358_v39  ;;  %v556_v48 = vmul.f32 %v9409_v6, %v361_v41  ;;  %v8206_v10 = vld [vmem:[%s16157_s0 + $0x518] sm:$0xfe]  ;;  %v8209_v62 = vld [vmem:[%s16157_s0 + $0x530] sm:$0x1] }
 0x31e   :  { %v6855_v45 = vsel %vm1861_vm1, %v6853_v54, %v6854_v44  ;;  %v7120_v20 = vadd.f32 %v6846_v34, %v6061_v32  ;;  %v559_v50 = vmul.f32 %v9409_v6, %v364_v30  ;;  %v1610_v26 = vmul.f32 %v9420_v13, %v1415_v8  ;;  %v8212_v54 = vld [vmem:[%s16157_s0 + $0x548] sm:$0xfe]  ;;  %v8215_v44 = vld [vmem:[%s16157_s0 + $0x560] sm:$0x1] }
 0x31f   :  { %v7123_v28 = vadd.f32 %v6855_v45, %v6064_v1  ;;  %v1003_v33 = vrot.slane %v550_v53, 1  ;;  %v1004_v61 = vrot.slane %v553_v14, 1  ;;  %v1012_v2 = vrot.slane %v556_v48, 1  ;;  %v8398_v53 = vld [vmem:[%s16157_s0 + $0x518] sm:$0xfc] }
 0x320   :  { %v1613_v9 = vmul.f32 %v9420_v13, %v1418_v12  ;;  %v1616_v15 = vmul.f32 %v9420_v13, %v1421_v29  ;;  %v1013_v21 = vrot.slane %v559_v50, 1  ;;  %v1619_v5 = vmul.f32 %v9420_v13, %v1424_v58 }
 0x321   :  { %v7189_v49 = vpack.c.bf16 %v7123_v28, %v7120_v20  ;;  %v2063_v43 = vrot.slane %v1610_v26, 2  ;;  %v1005_v39 = vsel %vm801_vm0, %v1003_v33, %v1004_v61  ;;  %v2509_v32 = vmul.f32 %v9449_v46, %v97_v18  ;;  %v8401_v20 = vld [vmem:[%s16157_s0 + $0x530] sm:$0x3]  ;;  %v8407_v28 = vld [vmem:[%s16157_s0 + $0x560] sm:$0x3] }
 0x322   :  { %v2064_v41 = vrot.slane %v1613_v9, 2  ;;  %v2072_v40 = vrot.slane %v1616_v15, 2  ;;  %v1014_v30 = vsel %vm801_vm0, %v1012_v2, %v1013_v21  ;;  %v1253_v8 = vadd.f32 %v1005_v39, %v193_v25  ;;  %v8686_v39 = vld [vmem:[%s16157_s0 + $0x548] sm:$0xfe] }
 0x323   :  { %7274 = vmatpush.bf16.xpose.msra.mxu3 %v7189_v49  ;;  %v2073_v1 = vrot.slane %v1619_v5, 2  ;;  %v2512_v34 = vmul.f32 %v8047_v42, %v9449_v46  ;;  %v1256_v18 = vadd.f32 %v1014_v30, %v196_v11  ;;  %v2962_v29 = vmul.f32 %v8206_v10, %v9462_v55  ;;  %v8404_v11 = vld [vmem:[%s16157_s0 + $0x548] sm:$0xfc]  ;;  %v8692_v30 = vld [vmem:[%s16157_s0 + $0x578] sm:$0xfe] }
 0x324   :  { %v2065_v12 = vsel %vm1861_vm1, %v2063_v43, %v2064_v41  ;;  %v2965_v45 = vmul.f32 %v8209_v62, %v9462_v55  ;;  %v2968_v48 = vmul.f32 %v8212_v54, %v9462_v55  ;;  %v2971_v58 = vmul.f32 %v8215_v44, %v9462_v55  ;;  %v8527_v62 = vld [vmem:[%s16157_s0 + $0x578] sm:$0xff]  ;;  %v8689_v41 = vld [vmem:[%s16157_s0 + $0x560] sm:$0x1] }
 0x325   :  { %v2074_v25 = vsel %vm1861_vm1, %v2072_v40, %v2073_v1  ;;  %v2313_v14 = vadd.f32 %v2065_v12, %v1253_v8  ;;  %v3414_v33 = vrot.slane %v2962_v29, 1  ;;  %v4021_v61 = vmul.f32 %v8398_v53, %v9486_v17  ;;  %v8695_v8 = vld [vmem:[%s16157_s0 + $0x590] sm:$0x1]  ;;  %v8878_v12 = vld [vmem:[%s16157_s0 + $0x548] sm:$0xfc] }
 0x326   :  { %v2316_v50 = vadd.f32 %v2074_v25, %v1256_v18  ;;  %v3415_v26 = vrot.slane %v2965_v45, 1  ;;  %v3423_v9 = vrot.slane %v2968_v48, 1  ;;  %v3424_v15 = vrot.slane %v2971_v58, 1 }
 0x327   :  { %v2605_v2 = vadd.f32 %v2509_v32, %v2313_v14  ;;  %v4024_v49 = vmul.f32 %v8401_v20, %v9486_v17  ;;  %v4027_v43 = vmul.f32 %v8404_v11, %v9486_v17  ;;  %v4030_v10 = vmul.f32 %v8407_v28, %v9486_v17  ;;  %v8881_v14 = vld [vmem:[%s16157_s0 + $0x560] sm:$0x3]  ;;  %v8884_v28 = vld [vmem:[%s16157_s0 + $0x578] sm:$0xfc] }
 0x328   :  { %v2608_v21 = vadd.f32 %v2512_v34, %v2316_v50  ;;  %v3416_v5 = vsel %vm801_vm0, %v3414_v33, %v3415_v26  ;;  %v3425_v40 = vsel %vm801_vm0, %v3423_v9, %v3424_v15  ;;  %v4473_v54 = vrot.slane %v4021_v61, 2  ;;  %v8887_v50 = vld [vmem:[%s16157_s0 + $0x590] sm:$0x3] }
 0x329   :  { %v3664_v32 = vadd.f32 %v3416_v5, %v2605_v2  ;;  %v4474_v44 = vrot.slane %v4024_v49, 2  ;;  %v4482_v34 = vrot.slane %v4027_v43, 2  ;;  %v4483_v53 = vrot.slane %v4030_v10, 2  ;;  %v14409_v5 = vld [vmem:[%s16157_s0 + $0x4f0] sm:$0xff] }
 0x32a   :  { %v3667_v1 = vadd.f32 %v3425_v40, %v2608_v21  ;;  %v4919_v18 = vmul.f32 %v8047_v42, %v9489_v24  ;;  %v4922_v45 = vmul.f32 %v8527_v62, %v9489_v24  ;;  %v5372_v20 = vmul.f32 %v8686_v39, %v9532_v59  ;;  %v356_v40 = vld [vmem:[%s16157_s0 + $0x4f0] sm:$0xfe] }
 0x32b   :  { %v4475_v29 = vsel %vm1861_vm1, %v4473_v54, %v4474_v44  ;;  %v5375_v25 = vmul.f32 %v8689_v41, %v9532_v59  ;;  %v4484_v48 = vsel %vm1861_vm1, %v4482_v34, %v4483_v53  ;;  %v5378_v42 = vmul.f32 %v8692_v30, %v9532_v59  ;;  %v98_v41 = vld [vmem:[%s16157_s0 + $0x520] sm:$0xff] }
 0x32c   :  { %v4723_v58 = vadd.f32 %v4475_v29, %v3664_v32  ;;  %v5381_v11 = vmul.f32 %v8695_v8, %v9532_v59  ;;  %v4726_v33 = vadd.f32 %v4484_v48, %v3667_v1  ;;  %v5824_v26 = vrot.slane %v5372_v20, 1  ;;  %v359_v32 = vld [vmem:[%s16157_s0 + $0x508] sm:$0x1]  ;;  %v365_v1 = vld [vmem:[%s16157_s0 + $0x538] sm:$0x1] }
 0x32d   :  { %v5825_v61 = vrot.slane %v5375_v25, 1  ;;  %v6431_v2 = vmul.f32 %v13884_v57, %v8878_v12  ;;  %v5833_v15 = vrot.slane %v5378_v42, 1  ;;  %v6434_v21 = vmul.f32 %v13884_v57, %v8881_v14  ;;  %v1416_v29 = vld [vmem:[%s16157_s0 + $0x4f0] sm:$0xfc]  ;;  %v1419_v48 = vld [vmem:[%s16157_s0 + $0x508] sm:$0x3] }
 0x32e   :  { %v5015_v9 = vadd.f32 %v4919_v18, %v4723_v58  ;;  %v5834_v49 = vrot.slane %v5381_v11, 1  ;;  %v5018_v43 = vadd.f32 %v4922_v45, %v4726_v33  ;;  %v6437_v62 = vmul.f32 %v13884_v57, %v8884_v28  ;;  %v1422_v58 = vld [vmem:[%s16157_s0 + $0x520] sm:$0xfc]  ;;  %v1425_v33 = vld [vmem:[%s16157_s0 + $0x538] sm:$0x3] }
 0x32f   :  { %v5826_v10 = vsel %vm801_vm0, %v5824_v26, %v5825_v61  ;;  %v6440_v39 = vmul.f32 %v13884_v57, %v8887_v50  ;;  %v6883_v30 = vrot.slane %v6431_v2, 2  ;;  %v6884_v8 = vrot.slane %v6434_v21, 2  ;;  %v362_v57 = vld [vmem:[%s16157_s0 + $0x520] sm:$0xfe] }
 0x330   :  { %v5835_v54 = vsel %vm801_vm0, %v5833_v15, %v5834_v49  ;;  %v6074_v44 = vadd.f32 %v5826_v10, %v5015_v9  ;;  %v6892_v53 = vrot.slane %v6437_v62, 2  ;;  %v194_v12 = vmul.f32 %v10601_v0, %v14409_v5  ;;  %v8048_v10 = vld [vmem:[%s16157_s0 + $0x550] sm:$0xff]  ;;  %v8207_v62 = vld [vmem:[%s16157_s0 + $0x520] sm:$0xfe] }
 0x331   :  { %v6077_v34 = vadd.f32 %v5835_v54, %v5018_v43  ;;  %v6893_v18 = vrot.slane %v6440_v39, 2  ;;  %v6885_v45 = vsel %vm1861_vm1, %v6883_v30, %v6884_v8  ;;  %v197_v20 = vmul.f32 %v10601_v0, %v98_v41  ;;  %v8213_v30 = vld [vmem:[%s16157_s0 + $0x550] sm:$0xfe] }
 0x332   :  { %v551_v25 = vmul.f32 %v10625_v52, %v356_v40  ;;  %v554_v14 = vmul.f32 %v10625_v52, %v359_v32  ;;  %v7133_v11 = vadd.f32 %v6885_v45, %v6074_v44  ;;  %v557_v28 = vmul.f32 %v10625_v52, %v362_v57  ;;  %v8210_v44 = vld [vmem:[%s16157_s0 + $0x538] sm:$0x1] }
 0x333   :  { %v6894_v42 = vsel %vm1861_vm1, %v6892_v53, %v6893_v18  ;;  %v560_v50 = vmul.f32 %v10625_v52, %v365_v1  ;;  %v1611_v9 = vmul.f32 %v10634_v35, %v1416_v29  ;;  %v1614_v21 = vmul.f32 %v10634_v35, %v1419_v48  ;;  %v8216_v53 = vld [vmem:[%s16157_s0 + $0x568] sm:$0x1]  ;;  %v8399_v18 = vld [vmem:[%s16157_s0 + $0x520] sm:$0xfc] }
 0x334   :  { %v7136_v26 = vadd.f32 %v6894_v42, %v6077_v34  ;;  %v1006_v61 = vrot.slane %v551_v25, 1  ;;  %v1007_v2 = vrot.slane %v554_v14, 1  ;;  %v1015_v15 = vrot.slane %v557_v28, 1 }
 0x335   :  { %v1016_v49 = vrot.slane %v560_v50, 1  ;;  %v1617_v43 = vmul.f32 %v10634_v35, %v1422_v58  ;;  %v1620_v32 = vmul.f32 %v10634_v35, %v1425_v33  ;;  %v2066_v54 = vrot.slane %v1611_v9, 2  ;;  %v8408_v33 = vld [vmem:[%s16157_s0 + $0x568] sm:$0x3] }
 0x336   :  { %v7196_v39 = vpack.c.bf16 %v7136_v26, %v7133_v11  ;;  %v1008_v40 = vsel %vm801_vm0, %v1006_v61, %v1007_v2  ;;  %v2067_v1 = vrot.slane %v1614_v21, 2  ;;  %v2510_v25 = vmul.f32 %v10637_v16, %v98_v41  ;;  %v8402_v11 = vld [vmem:[%s16157_s0 + $0x538] sm:$0x3] }
 0x337   :  { %v1017_v8 = vsel %vm801_vm0, %v1015_v15, %v1016_v49  ;;  %v1254_v57 = vadd.f32 %v1008_v40, %v194_v12  ;;  %v2075_v34 = vrot.slane %v1617_v43, 2  ;;  %v2076_v45 = vrot.slane %v1620_v32, 2  ;;  %v8687_v40 = vld [vmem:[%s16157_s0 + $0x550] sm:$0xfe] }
 0x338   :  { %7285 = vmatpush.bf16.xpose.msrb.mxu0 %v7196_v39  ;;  %v1257_v29 = vadd.f32 %v1017_v8, %v197_v20  ;;  %v2513_v14 = vmul.f32 %v8048_v10, %v10637_v16  ;;  %v2068_v48 = vsel %vm1861_vm1, %v2066_v54, %v2067_v1  ;;  %v2963_v12 = vmul.f32 %v8207_v62, %v10640_v37  ;;  %v8405_v20 = vld [vmem:[%s16157_s0 + $0x550] sm:$0xfc]  ;;  %v8528_v39 = vld [vmem:[%s16157_s0 + $0x580] sm:$0xff]  ;;  %v8690_v8 = vld [vmem:[%s16157_s0 + $0x568] sm:$0x1] }
 0x339   :  { %v2966_v58 = vmul.f32 %v8210_v44, %v10640_v37  ;;  %v2969_v42 = vmul.f32 %v8213_v30, %v10640_v37  ;;  %v2077_v41 = vsel %vm1861_vm1, %v2075_v34, %v2076_v45  ;;  %v2314_v28 = vadd.f32 %v2068_v48, %v1254_v57  ;;  %v8693_v57 = vld [vmem:[%s16157_s0 + $0x580] sm:$0xfe]  ;;  %v8879_v45 = vld [vmem:[%s16157_s0 + $0x550] sm:$0xfc] }
 0x33a   :  { %v2972_v50 = vmul.f32 %v8216_v53, %v10640_v37  ;;  %v4022_v26 = vmul.f32 %v8399_v18, %v10643_v47  ;;  %v2317_v61 = vadd.f32 %v2077_v41, %v1257_v29  ;;  %v3417_v2 = vrot.slane %v2963_v12, 1  ;;  %v8696_v29 = vld [vmem:[%s16157_s0 + $0x598] sm:$0x1]  ;;  %v8882_v41 = vld [vmem:[%s16157_s0 + $0x568] sm:$0x3] }
 0x33b   :  { %v3418_v9 = vrot.slane %v2966_v58, 1  ;;  %v3426_v15 = vrot.slane %v2969_v42, 1  ;;  %v2606_v49 = vadd.f32 %v2510_v25, %v2314_v28  ;;  %v4025_v43 = vmul.f32 %v8402_v11, %v10643_v47  ;;  %v8885_v28 = vld [vmem:[%s16157_s0 + $0x580] sm:$0xfc] }
 0x33c   :  { %v3427_v21 = vrot.slane %v2972_v50, 1  ;;  %v4028_v62 = vmul.f32 %v8405_v20, %v10643_v47  ;;  %v2609_v32 = vadd.f32 %v2513_v14, %v2317_v61  ;;  %v4031_v44 = vmul.f32 %v8408_v33, %v10643_v47 }
 0x33d   :  { %v3419_v54 = vsel %vm801_vm0, %v3417_v2, %v3418_v9  ;;  %v4476_v30 = vrot.slane %v4022_v26, 2  ;;  %v4477_v53 = vrot.slane %v4025_v43, 2  ;;  %v4920_v48 = vmul.f32 %v8048_v10, %v10727_v36  ;;  %v8888_v26 = vld [vmem:[%s16157_s0 + $0x598] sm:$0x3] }
 0x33e   :  { %v3428_v1 = vsel %vm801_vm0, %v3426_v15, %v3427_v21  ;;  %v3665_v34 = vadd.f32 %v3419_v54, %v2606_v49  ;;  %v4485_v18 = vrot.slane %v4028_v62, 2  ;;  %v4486_v14 = vrot.slane %v4031_v44, 2  ;;  %v224_v54 = vld [vmem:[%s16157_s0 + $0x10] sm:$0xfe] }
 0x33f   :  { %v3668_v25 = vadd.f32 %v3428_v1, %v2609_v32  ;;  %v4923_v12 = vmul.f32 %v8528_v39, %v10727_v36  ;;  %v4478_v58 = vsel %vm1861_vm1, %v4476_v30, %v4477_v53  ;;  %v5373_v42 = vmul.f32 %v8687_v40, %v10733_v38  ;;  %v29_v40 = vld [vmem:[%s16157_s0 + $0x10] sm:$0xff]  ;;  %v32_v32 = vld [vmem:[%s16157_s0 + $0x40] sm:$0xff]  ;;  %v227_v1 = vld [vmem:[%s16157_s0 + $0x28] sm:$0x1] }
 0x340   :  { %v5376_v11 = vmul.f32 %v8690_v8, %v10733_v38  ;;  %v5379_v20 = vmul.f32 %v8693_v57, %v10733_v38  ;;  %v4487_v10 = vsel %vm1861_vm1, %v4485_v18, %v4486_v14  ;;  %v4724_v50 = vadd.f32 %v4478_v58, %v3665_v34  ;;  %v230_v34 = vld [vmem:[%s16157_s0 + $0x40] sm:$0xfe] }
 0x341   :  { %v5382_v33 = vmul.f32 %v8696_v29, %v10733_v38  ;;  %v6432_v61 = vmul.f32 %v14016_v60, %v8879_v45  ;;  %v4727_v2 = vadd.f32 %v4487_v10, %v3668_v25  ;;  %v5827_v9 = vrot.slane %v5373_v42, 1  ;;  %v233_v25 = vld [vmem:[%s16157_s0 + $0x58] sm:$0x1]  ;;  %v1290_v10 = vld [vmem:[%s16157_s0 + $0x40] sm:$0xfc] }
 0x342   :  { %v5828_v15 = vrot.slane %v5376_v11, 1  ;;  %v5836_v49 = vrot.slane %v5379_v20, 1  ;;  %v5016_v21 = vadd.f32 %v4920_v48, %v4724_v50  ;;  %v6435_v62 = vmul.f32 %v14016_v60, %v8882_v41  ;;  %v1293_v50 = vld [vmem:[%s16157_s0 + $0x58] sm:$0x3] }
 0x343   :  { %v5837_v43 = vrot.slane %v5382_v33, 1  ;;  %v6438_v39 = vmul.f32 %v14016_v60, %v8885_v28  ;;  %v5019_v44 = vadd.f32 %v4923_v12, %v4727_v2  ;;  %v6441_v8 = vmul.f32 %v14016_v60, %v8888_v26  ;;  %v1284_v60 = vld [vmem:[%s16157_s0 + $0x10] sm:$0xfc]  ;;  %v1287_v28 = vld [vmem:[%s16157_s0 + $0x28] sm:$0x3] }
 0x344   :  { %v5829_v30 = vsel %vm801_vm0, %v5827_v9, %v5828_v15  ;;  %v6886_v57 = vrot.slane %v6432_v61, 2  ;;  %v6887_v29 = vrot.slane %v6435_v62, 2  ;;  %v128_v12 = vmul.f32 %v10601_v0, %v29_v40 }
 0x345   :  { %v5838_v53 = vsel %vm801_vm0, %v5836_v49, %v5837_v43  ;;  %v6075_v18 = vadd.f32 %v5829_v30, %v5016_v21  ;;  %v6895_v45 = vrot.slane %v6438_v39, 2  ;;  %v6896_v48 = vrot.slane %v6441_v8, 2 }
 0x346   :  { %v6078_v14 = vadd.f32 %v5838_v53, %v5019_v44  ;;  %v131_v58 = vmul.f32 %v10601_v0, %v32_v32  ;;  %v6888_v42 = vsel %vm1861_vm1, %v6886_v57, %v6887_v29  ;;  %v419_v11 = vmul.f32 %v10625_v52, %v224_v54  ;;  %v8075_v54 = vld [vmem:[%s16157_s0 + $0x40] sm:$0xfe]  ;;  %v8078_v44 = vld [vmem:[%s16157_s0 + $0x58] sm:$0x1]  ;;  %v8084_v53 = vld [vmem:[%s16157_s0 + $0x88] sm:$0x1] }
 0x347   :  { %v422_v20 = vmul.f32 %v10625_v52, %v227_v1  ;;  %v425_v41 = vmul.f32 %v10625_v52, %v230_v34  ;;  %v6897_v33 = vsel %vm1861_vm1, %v6895_v45, %v6896_v48  ;;  %v7134_v26 = vadd.f32 %v6888_v42, %v6075_v18  ;;  %v8081_v34 = vld [vmem:[%s16157_s0 + $0x70] sm:$0xfe] }
 0x348   :  { %v428_v61 = vmul.f32 %v10625_v52, %v233_v25  ;;  %v1479_v2 = vmul.f32 %v10634_v35, %v1284_v60  ;;  %v7137_v9 = vadd.f32 %v6897_v33, %v6078_v14  ;;  %v808_v15 = vrot.slane %v419_v11, 1  ;;  %v8267_v60 = vld [vmem:[%s16157_s0 + $0x40] sm:$0xfc] }
 0x349   :  { %v809_v49 = vrot.slane %v422_v20, 1  ;;  %v817_v21 = vrot.slane %v425_v41, 1  ;;  %v1482_v62 = vmul.f32 %v10634_v35, %v1287_v28  ;;  %v1485_v39 = vmul.f32 %v10634_v35, %v1290_v10  ;;  %v8270_v28 = vld [vmem:[%s16157_s0 + $0x58] sm:$0x3] }
 0x34a   :  { %v818_v43 = vrot.slane %v428_v61, 1  ;;  %v1488_v40 = vmul.f32 %v10634_v35, %v1293_v50  ;;  %v7197_v30 = vpack.c.bf16 %v7137_v9, %v7134_v26  ;;  %v1868_v57 = vrot.slane %v1479_v2, 2 }
 0x34b   :  { %v810_v8 = vsel %vm801_vm0, %v808_v15, %v809_v49  ;;  %v2444_v1 = vmul.f32 %v10637_v16, %v32_v32  ;;  %v1869_v45 = vrot.slane %v1482_v62, 2  ;;  %v1877_v25 = vrot.slane %v1485_v39, 2  ;;  %v8459_v39 = vld [vmem:[%s16157_s0 + $0x70] sm:$0xff] }
 0x34c   :  { %v819_v18 = vsel %vm801_vm0, %v817_v21, %v818_v43  ;;  %v1188_v29 = vadd.f32 %v810_v8, %v128_v12  ;;  %7298 = vmatpush.bf16.xpose.msrb.mxu1 %v7197_v30  ;;  %v1878_v32 = vrot.slane %v1488_v40, 2  ;;  %v2447_v48 = vmul.f32 %v10637_v16, %v14024_v51  ;;  %v8276_v51 = vld [vmem:[%s16157_s0 + $0x88] sm:$0x3]  ;;  %v8462_v40 = vld [vmem:[%s16157_s0 + $0xa0] sm:$0xff] }
 0x34d   :  { %v1191_v14 = vadd.f32 %v819_v18, %v131_v58  ;;  %v2831_v42 = vmul.f32 %v8075_v54, %v10640_v37  ;;  %v1870_v11 = vsel %vm1861_vm1, %v1868_v57, %v1869_v45  ;;  %v2834_v20 = vmul.f32 %v8078_v44, %v10640_v37  ;;  %v8273_v58 = vld [vmem:[%s16157_s0 + $0x70] sm:$0xfc] }
 0x34e   :  { %v2837_v12 = vmul.f32 %v8081_v34, %v10640_v37  ;;  %v2840_v41 = vmul.f32 %v8084_v53, %v10640_v37  ;;  %v1879_v10 = vsel %vm1861_vm1, %v1877_v25, %v1878_v32  ;;  %v2248_v50 = vadd.f32 %v1870_v11, %v1188_v29  ;;  %v8555_v54 = vld [vmem:[%s16157_s0 + $0x70] sm:$0xfe]  ;;  %v8561_v34 = vld [vmem:[%s16157_s0 + $0xa0] sm:$0xfe]  ;;  %v8564_v25 = vld [vmem:[%s16157_s0 + $0xb8] sm:$0x1] }
 0x34f   :  { %v3219_v33 = vrot.slane %v2831_v42, 1  ;;  %v3890_v26 = vmul.f32 %v8267_v60, %v10643_v47  ;;  %v2251_v61 = vadd.f32 %v1879_v10, %v1191_v14  ;;  %v3220_v2 = vrot.slane %v2834_v20, 1  ;;  %v8747_v42 = vld [vmem:[%s16157_s0 + $0x70] sm:$0xfc]  ;;  %v8750_v11 = vld [vmem:[%s16157_s0 + $0x88] sm:$0x3] }
 0x350   :  { %v3228_v9 = vrot.slane %v2837_v12, 1  ;;  %v3229_v15 = vrot.slane %v2840_v41, 1  ;;  %v2540_v49 = vadd.f32 %v2444_v1, %v2248_v50  ;;  %v3893_v21 = vmul.f32 %v8270_v28, %v10643_v47  ;;  %v8558_v1 = vld [vmem:[%s16157_s0 + $0x88] sm:$0x1] }
 0x351   :  { %v3896_v43 = vmul.f32 %v8273_v58, %v10643_v47  ;;  %v3899_v62 = vmul.f32 %v8276_v51, %v10643_v47  ;;  %v2543_v44 = vadd.f32 %v2447_v48, %v2251_v61  ;;  %v3221_v30 = vsel %vm801_vm0, %v3219_v33, %v3220_v2  ;;  %v8753_v58 = vld [vmem:[%s16157_s0 + $0xa0] sm:$0xfc] }
 0x352   :  { %v3230_v8 = vsel %vm801_vm0, %v3228_v9, %v3229_v15  ;;  %v4278_v57 = vrot.slane %v3890_v26, 2  ;;  %v3599_v53 = vadd.f32 %v3221_v30, %v2540_v49  ;;  %v4279_v18 = vrot.slane %v3893_v21, 2  ;;  %v8756_v26 = vld [vmem:[%s16157_s0 + $0xb8] sm:$0x3]  ;;  %v14663_v9 = vld [vmem:[%s16158_s1 + $0x28] ss:$0 sm:$0xff] }
 0x353   :  { %v4287_v29 = vrot.slane %v3896_v43, 2  ;;  %v4288_v45 = vrot.slane %v3899_v62, 2  ;;  %v3602_v60 = vadd.f32 %v3230_v8, %v2543_v44  ;;  %v4854_v14 = vmul.f32 %v8459_v39, %v10727_v36  ;;  %v14670_v21 = vld [vmem:[%s16159_s2] sm:$0xff]  ;;  %v78_v44 = vld [vmem:[%s16157_s0 + $0x3f0] sm:$0xff] }
 0x354   :  { %v4857_v32 = vmul.f32 %v8462_v40, %v10727_v36  ;;  %v5241_v48 = vmul.f32 %v8555_v54, %v10733_v38  ;;  %v4280_v20 = vsel %vm1861_vm1, %v4278_v57, %v4279_v18  ;;  %v5244_v41 = vmul.f32 %v8558_v1, %v10733_v38  ;;  %v75_v54 = vld [vmem:[%s16157_s0 + $0x3c0] sm:$0xff] }
 0x355   :  { %v4289_v12 = vsel %vm1861_vm1, %v4287_v29, %v4288_v45  ;;  %v5247_v28 = vmul.f32 %v8561_v34, %v10733_v38  ;;  %v4658_v51 = vadd.f32 %v4280_v20, %v3599_v53  ;;  %v5250_v50 = vmul.f32 %v8564_v25, %v10733_v38  ;;  %v318_v34 = vld [vmem:[%s16157_s0 + $0x3c0] sm:$0xfe]  ;;  %v321_v53 = vld [vmem:[%s16157_s0 + $0x3d8] sm:$0x1] }
 0x356   :  { %v4661_v10 = vadd.f32 %v4289_v12, %v3602_v60  ;;  %v5629_v33 = vrot.slane %v5241_v48, 1  ;;  %v5630_v61 = vrot.slane %v5244_v41, 1  ;;  %v6300_v15 = vmul.f32 %v14663_v9, %v8747_v42  ;;  %v324_v60 = vld [vmem:[%s16157_s0 + $0x3f0] sm:$0xfe]  ;;  %v1378_v20 = vld [vmem:[%s16157_s0 + $0x3c0] sm:$0xfc] }
 0x357   :  { %v5638_v2 = vrot.slane %v5247_v28, 1  ;;  %v6303_v49 = vmul.f32 %v14663_v9, %v8750_v11  ;;  %v4950_v43 = vadd.f32 %v4854_v14, %v4658_v51  ;;  %v5639_v39 = vrot.slane %v5250_v50, 1  ;;  %v327_v14 = vld [vmem:[%s16157_s0 + $0x408] sm:$0x1]  ;;  %v1381_v12 = vld [vmem:[%s16157_s0 + $0x3d8] sm:$0x3] }
 0x358   :  { %v4953_v62 = vadd.f32 %v4857_v32, %v4661_v10  ;;  %v6306_v40 = vmul.f32 %v14663_v9, %v8753_v58  ;;  %v5631_v30 = vsel %vm801_vm0, %v5629_v33, %v5630_v61  ;;  %v6309_v8 = vmul.f32 %v14663_v9, %v8756_v26  ;;  %v1384_v10 = vld [vmem:[%s16157_s0 + $0x3f0] sm:$0xfc] }
 0x359   :  { %v6688_v57 = vrot.slane %v6300_v15, 2  ;;  %v6689_v1 = vrot.slane %v6303_v49, 2  ;;  %v5640_v18 = vsel %vm801_vm0, %v5638_v2, %v5639_v39  ;;  %v6009_v29 = vadd.f32 %v5631_v30, %v4950_v43  ;;  %v1387_v2 = vld [vmem:[%s16157_s0 + $0x408] sm:$0x3] }
 0x35a   :  { %v6697_v45 = vrot.slane %v6306_v40, 2  ;;  %v7220_v25 = vunpack.c.l.b16 %v14670_v21  ;;  %v6012_v32 = vadd.f32 %v5640_v18, %v4953_v62  ;;  %v6698_v42 = vrot.slane %v6309_v8, 2 }
 0x35b   :  { %v6690_v48 = vsel %vm1861_vm1, %v6688_v57, %v6689_v1  ;;  %v174_v11 = vmul.f32 %v9226_v3, %v75_v54  ;;  %v177_v58 = vmul.f32 %v9226_v3, %v78_v44  ;;  %v513_v51 = vmul.f32 %v9229_v4, %v318_v34  ;;  %v8172_v34 = vld [vmem:[%s16157_s0 + $0x408] sm:$0x1] }
 0x35c   :  { %v7068_v41 = vadd.f32 %v6690_v48, %v6009_v29  ;;  %v14703_v28 = vpack.c.b16 %v7220_v25, %v7220_v25  ;;  %v6699_v50 = vsel %vm1861_vm1, %v6697_v45, %v6698_v42  ;;  %v516_v33 = vmul.f32 %v9229_v4, %v321_v53  ;;  %v8175_v53 = vld [vmem:[%s16157_s0 + $0x420] sm:$0xfe] }
 0x35d   :  { %v519_v26 = vmul.f32 %v9229_v4, %v324_v60  ;;  %v522_v61 = vmul.f32 %v9229_v4, %v327_v14  ;;  %v7071_v15 = vadd.f32 %v6699_v50, %v6012_v32  ;;  %v946_v3 = vrot.slane %v513_v51, 1  ;;  %v8169_v4 = vld [vmem:[%s16157_s0 + $0x3f0] sm:$0xfe]  ;;  %v8364_v51 = vld [vmem:[%s16157_s0 + $0x408] sm:$0x3] }
 0x35e   :  { %7237 = vmatmul.bf16.vlgmr.msra.gmra.mxu0 %v14703_v28  ;;  %v1573_v49 = vmul.f32 %v9264_v19, %v1378_v20  ;;  %v1576_v43 = vmul.f32 %v9264_v19, %v1381_v12  ;;  %v947_v62 = vrot.slane %v516_v33, 1  ;;  %v1579_v54 = vmul.f32 %v9264_v19, %v1384_v10  ;;  %v8361_v60 = vld [vmem:[%s16157_s0 + $0x3f0] sm:$0xfc] }
 0x35f   :  { %v955_v39 = vrot.slane %v519_v26, 1  ;;  %v956_v40 = vrot.slane %v522_v61, 1  ;;  %v7164_v30 = vpack.c.bf16 %v7071_v15, %v7068_v41  ;;  %v1582_v8 = vmul.f32 %v9264_v19, %v1387_v2  ;;  %v8178_v19 = vld [vmem:[%s16157_s0 + $0x438] sm:$0x1] }
 0x360   :  { %v2006_v57 = vrot.slane %v1573_v49, 2  ;;  %v2007_v1 = vrot.slane %v1576_v43, 2  ;;  %v948_v18 = vsel %vm801_vm0, %v946_v3, %v947_v62  ;;  %v2015_v45 = vrot.slane %v1579_v54, 2  ;;  %v8508_v62 = vld [vmem:[%s16157_s0 + $0x450] sm:$0xff] }
 0x361   :  { %v957_v29 = vsel %vm801_vm0, %v955_v39, %v956_v40  ;;  %v2490_v25 = vmul.f32 %v9267_v22, %v78_v44  ;;  %7262 = vmatpush.bf16.xpose.msra.mxu2 %v7164_v30  ;;  %v1234_v14 = vadd.f32 %v948_v18, %v174_v11  ;;  %v2016_v42 = vrot.slane %v1582_v8, 2  ;;  %v8367_v11 = vld [vmem:[%s16157_s0 + $0x420] sm:$0xfc]  ;;  %v8652_v8 = vld [vmem:[%s16157_s0 + $0x438] sm:$0x1] }
 0x362   :  { %v1237_v32 = vadd.f32 %v957_v29, %v177_v58  ;;  %v2008_v48 = vsel %vm1861_vm1, %v2006_v57, %v2007_v1  ;;  %v2493_v20 = vmul.f32 %v9267_v22, %v14153_v7  ;;  %v2925_v12 = vmul.f32 %v8169_v4, %v9270_v23  ;;  %v8370_v22 = vld [vmem:[%s16157_s0 + $0x438] sm:$0x3]  ;;  %v8649_v39 = vld [vmem:[%s16157_s0 + $0x420] sm:$0xfe]  ;;  %v8655_v57 = vld [vmem:[%s16157_s0 + $0x450] sm:$0xfe] }
 0x363   :  { %v2928_v44 = vmul.f32 %v8172_v34, %v9270_v23  ;;  %v2931_v41 = vmul.f32 %v8175_v53, %v9270_v23  ;;  %v2017_v58 = vsel %vm1861_vm1, %v2015_v45, %v2016_v42  ;;  %v2294_v10 = vadd.f32 %v2008_v48, %v1234_v14  ;;  %v8658_v29 = vld [vmem:[%s16157_s0 + $0x468] sm:$0x1] }
 0x364   :  { %v2934_v50 = vmul.f32 %v8178_v19, %v9270_v23  ;;  %v3984_v7 = vmul.f32 %v8361_v60, %v9318_v56  ;;  %v2297_v33 = vadd.f32 %v2017_v58, %v1237_v32  ;;  %v3357_v26 = vrot.slane %v2925_v12, 1  ;;  %v8505_v23 = vld [vmem:[%s16157_s0 + $0x420] sm:$0xff]  ;;  %v8847_v12 = vld [vmem:[%s16157_s0 + $0x450] sm:$0xfc] }
 0x365   :  { %v3358_v61 = vrot.slane %v2928_v44, 1  ;;  %v3366_v2 = vrot.slane %v2931_v41, 1  ;;  %v2586_v15 = vadd.f32 %v2490_v25, %v2294_v10  ;;  %v3987_v49 = vmul.f32 %v8364_v51, %v9318_v56  ;;  %v8850_v51 = vld [vmem:[%s16157_s0 + $0x468] sm:$0x3] }
 0x366   :  { %v3367_v3 = vrot.slane %v2934_v50, 1  ;;  %v3990_v43 = vmul.f32 %v8367_v11, %v9318_v56  ;;  %v2589_v40 = vadd.f32 %v2493_v20, %v2297_v33  ;;  %v3993_v4 = vmul.f32 %v8370_v22, %v9318_v56  ;;  %v8841_v56 = vld [vmem:[%s16157_s0 + $0x420] sm:$0xfc]  ;;  %v8844_v20 = vld [vmem:[%s16157_s0 + $0x438] sm:$0x3] }
 0x367   :  { %v3359_v54 = vsel %vm801_vm0, %v3357_v26, %v3358_v61  ;;  %v4416_v30 = vrot.slane %v3984_v7, 2  ;;  %v4417_v53 = vrot.slane %v3987_v49, 2  ;;  %v4900_v19 = vmul.f32 %v8505_v23, %v9350_v27  ;;  %v9174_v11 = vld [vmem:[%s16158_s1 + $0x18] ss:$0 sm:$0xff] }
 0x368   :  { %v3368_v1 = vsel %vm801_vm0, %v3366_v2, %v3367_v3  ;;  %v3645_v34 = vadd.f32 %v3359_v54, %v2586_v15  ;;  %v4425_v18 = vrot.slane %v3990_v43, 2  ;;  %v4426_v25 = vrot.slane %v3993_v4, 2  ;;  %v14812_v15 = vld [vmem:[%s16157_s0 + $0x4b8] sm:$0xff]  ;;  %v343_v3 = vld [vmem:[%s16157_s0 + $0x488] sm:$0xfe] }
 0x369   :  { %v3648_v45 = vadd.f32 %v3368_v1, %v2589_v40  ;;  %v4903_v60 = vmul.f32 %v8508_v62, %v9350_v27  ;;  %v4418_v14 = vsel %vm1861_vm1, %v4416_v30, %v4417_v53  ;;  %v5335_v32 = vmul.f32 %v8649_v39, %v9357_v31  ;;  %v346_v39 = vld [vmem:[%s16157_s0 + $0x4a0] sm:$0x1]  ;;  %v349_v40 = vld [vmem:[%s16157_s0 + $0x4b8] sm:$0xfe]  ;;  %v1403_v1 = vld [vmem:[%s16157_s0 + $0x488] sm:$0xfc] }
 0x36a   :  { %v5338_v48 = vmul.f32 %v8652_v8, %v9357_v31  ;;  %v5341_v42 = vmul.f32 %v8655_v57, %v9357_v31  ;;  %v4427_v44 = vsel %vm1861_vm1, %v4425_v18, %v4426_v25  ;;  %v4704_v41 = vadd.f32 %v4418_v14, %v3645_v34  ;;  %v352_v57 = vld [vmem:[%s16157_s0 + $0x4d0] sm:$0x1]  ;;  %v1409_v14 = vld [vmem:[%s16157_s0 + $0x4b8] sm:$0xfc] }
 0x36b   :  { %v5344_v27 = vmul.f32 %v8658_v29, %v9357_v31  ;;  %v6394_v58 = vmul.f32 %v9174_v11, %v8841_v56  ;;  %v4707_v10 = vadd.f32 %v4427_v44, %v3648_v45  ;;  %v5767_v50 = vrot.slane %v5335_v32, 1  ;;  %v14807_v31 = vld [vmem:[%s16157_s0 + $0x488] sm:$0xff]  ;;  %v1412_v32 = vld [vmem:[%s16157_s0 + $0x4d0] sm:$0x3] }
 0x36c   :  { %v5768_v22 = vrot.slane %v5338_v48, 1  ;;  %v5776_v7 = vrot.slane %v5341_v42, 1  ;;  %v4996_v33 = vadd.f32 %v4900_v19, %v4704_v41  ;;  %v6397_v61 = vmul.f32 %v9174_v11, %v8844_v20 }
 0x36d   :  { %v5777_v26 = vrot.slane %v5344_v27, 1  ;;  %v6400_v2 = vmul.f32 %v9174_v11, %v8847_v12  ;;  %v4999_v49 = vadd.f32 %v4903_v60, %v4707_v10  ;;  %v6403_v23 = vmul.f32 %v9174_v11, %v8850_v51  ;;  %v1406_v60 = vld [vmem:[%s16157_s0 + $0x4a0] sm:$0x3] }
 0x36e   :  { %v5769_v43 = vsel %vm801_vm0, %v5767_v50, %v5768_v22  ;;  %v6826_v62 = vrot.slane %v6394_v58, 2  ;;  %v6827_v30 = vrot.slane %v6397_v61, 2  ;;  %v187_v18 = vmul.f32 %v9403_v63, %v14807_v31  ;;  %v8194_v22 = vld [vmem:[%s16157_s0 + $0x4b8] sm:$0xfe] }
 0x36f   :  { %v5778_v54 = vsel %vm801_vm0, %v5776_v7, %v5777_v26  ;;  %v6055_v4 = vadd.f32 %v5769_v43, %v4996_v33  ;;  %v6835_v8 = vrot.slane %v6400_v2, 2  ;;  %v6836_v53 = vrot.slane %v6403_v23, 2  ;;  %v8197_v7 = vld [vmem:[%s16157_s0 + $0x4d0] sm:$0x1] }
 0x370   :  { %v6058_v34 = vadd.f32 %v5778_v54, %v4999_v49  ;;  %v190_v29 = vmul.f32 %v9403_v63, %v14812_v15  ;;  %v6828_v56 = vsel %vm1861_vm1, %v6826_v62, %v6827_v30  ;;  %v538_v45 = vmul.f32 %v9409_v6, %v343_v3  ;;  %v8200_v3 = vld [vmem:[%s16157_s0 + $0x4e8] sm:$0xfe]  ;;  %v8203_v49 = vld [vmem:[%s16157_s0 + $0x500] sm:$0x1] }
 0x371   :  { %v541_v25 = vmul.f32 %v9409_v6, %v346_v39  ;;  %v544_v19 = vmul.f32 %v9409_v6, %v349_v40  ;;  %v6837_v48 = vsel %vm1861_vm1, %v6835_v8, %v6836_v53  ;;  %v7114_v42 = vadd.f32 %v6828_v56, %v6055_v4  ;;  %v8386_v40 = vld [vmem:[%s16157_s0 + $0x4b8] sm:$0xfc]  ;;  %v9175_v30 = vld [vmem:[%s16157_s0 + $0x4e8] sm:$0xff] }
 0x372   :  { %v547_v20 = vmul.f32 %v9409_v6, %v352_v57  ;;  %v1598_v12 = vmul.f32 %v9420_v13, %v1403_v1  ;;  %v7117_v44 = vadd.f32 %v6837_v48, %v6058_v34  ;;  %v985_v41 = vrot.slane %v538_v45, 1  ;;  %v8392_v56 = vld [vmem:[%s16157_s0 + $0x4e8] sm:$0xfc]  ;;  %v8395_v45 = vld [vmem:[%s16157_s0 + $0x500] sm:$0x3] }
 0x373   :  { %v986_v27 = vrot.slane %v541_v25, 1  ;;  %v994_v51 = vrot.slane %v544_v19, 1  ;;  %v1601_v58 = vmul.f32 %v9420_v13, %v1406_v60  ;;  %v1604_v10 = vmul.f32 %v9420_v13, %v1409_v14 }
 0x374   :  { %v995_v11 = vrot.slane %v547_v20, 1  ;;  %v1607_v50 = vmul.f32 %v9420_v13, %v1412_v32  ;;  %v7186_v33 = vpack.c.bf16 %v7117_v44, %v7114_v42  ;;  %v2045_v61 = vrot.slane %v1598_v12, 2 }
 0x375   :  { %v987_v26 = vsel %vm801_vm0, %v985_v41, %v986_v27  ;;  %v2503_v2 = vmul.f32 %v9449_v46, %v14812_v15  ;;  %v2046_v62 = vrot.slane %v1601_v58, 2  ;;  %v2054_v39 = vrot.slane %v1604_v10, 2  ;;  %v8674_v58 = vld [vmem:[%s16157_s0 + $0x4e8] sm:$0xfe] }
 0x376   :  { %v996_v43 = vsel %vm801_vm0, %v994_v51, %v995_v11  ;;  %v1247_v23 = vadd.f32 %v987_v26, %v187_v18  ;;  %7275 = vmatpush.bf16.xpose.msra.mxu3 %v7186_v33  ;;  %v2055_v4 = vrot.slane %v1607_v50, 2  ;;  %v2506_v8 = vmul.f32 %v9175_v30, %v9449_v46  ;;  %v8518_v51 = vld [vmem:[%s16157_s0 + $0x4e8] sm:$0xff]  ;;  %v8521_v11 = vld [vmem:[%s16157_s0 + $0x518] sm:$0xff]  ;;  %v8677_v33 = vld [vmem:[%s16157_s0 + $0x500] sm:$0x1] }
 0x377   :  { %v1250_v54 = vadd.f32 %v996_v43, %v190_v29  ;;  %v2950_v57 = vmul.f32 %v8194_v22, %v9462_v55  ;;  %v2047_v1 = vsel %vm1861_vm1, %v2045_v61, %v2046_v62  ;;  %v2953_v34 = vmul.f32 %v8197_v7, %v9462_v55  ;;  %v8389_v29 = vld [vmem:[%s16157_s0 + $0x4d0] sm:$0x3]  ;;  %v8680_v26 = vld [vmem:[%s16157_s0 + $0x518] sm:$0xfe] }
 0x378   :  { %v2956_v53 = vmul.f32 %v8200_v3, %v9462_v55  ;;  %v2959_v18 = vmul.f32 %v8203_v49, %v9462_v55  ;;  %v2056_v25 = vsel %vm1861_vm1, %v2054_v39, %v2055_v4  ;;  %v2307_v19 = vadd.f32 %v2047_v1, %v1247_v23  ;;  %v8683_v43 = vld [vmem:[%s16157_s0 + $0x530] sm:$0x1]  ;;  %v8869_v4 = vld [vmem:[%s16157_s0 + $0x500] sm:$0x3] }
 0x379   :  { %v3396_v60 = vrot.slane %v2950_v57, 1  ;;  %v4009_v14 = vmul.f32 %v8386_v40, %v9486_v17  ;;  %v2310_v32 = vadd.f32 %v2056_v25, %v1250_v54  ;;  %v3397_v48 = vrot.slane %v2953_v34, 1  ;;  %v8866_v54 = vld [vmem:[%s16157_s0 + $0x4e8] sm:$0xfc]  ;;  %v8872_v34 = vld [vmem:[%s16157_s0 + $0x518] sm:$0xfc] }
 0x37a   :  { %v3405_v42 = vrot.slane %v2956_v53, 1  ;;  %v3406_v20 = vrot.slane %v2959_v18, 1  ;;  %v2599_v12 = vadd.f32 %v2503_v2, %v2307_v19  ;;  %v4012_v44 = vmul.f32 %v8389_v29, %v9486_v17  ;;  %v14940_v19 = vld [vmem:[%s16158_s1 + $0x20] ss:$0 sm:$0xff] }
 0x37b   :  { %v4015_v41 = vmul.f32 %v8392_v56, %v9486_v17  ;;  %v4018_v27 = vmul.f32 %v8395_v45, %v9486_v17  ;;  %v2602_v10 = vadd.f32 %v2506_v8, %v2310_v32  ;;  %v3398_v50 = vsel %vm801_vm0, %v3396_v60, %v3397_v48  ;;  %v14947_v32 = vld [vmem:[%s16157_s0 + $0x490] sm:$0xff] }
 0x37c   :  { %v3407_v22 = vsel %vm801_vm0, %v3405_v42, %v3406_v20  ;;  %v4455_v7 = vrot.slane %v4009_v14, 2  ;;  %v3658_v61 = vadd.f32 %v3398_v50, %v2599_v12  ;;  %v4456_v2 = vrot.slane %v4012_v44, 2  ;;  %v14953_v44 = vld [vmem:[%s16157_s0 + $0x4c0] sm:$0xff] }
 0x37d   :  { %v4464_v3 = vrot.slane %v4015_v41, 2  ;;  %v4465_v49 = vrot.slane %v4018_v27, 2  ;;  %v3661_v23 = vadd.f32 %v3407_v22, %v2602_v10  ;;  %v4913_v62 = vmul.f32 %v8518_v51, %v9489_v24  ;;  %7276 = vmatmul.bf16.vlgmr.msra.gmra.mxu3 %v14703_v28  ;;  %v8875_v28 = vld [vmem:[%s16157_s0 + $0x530] sm:$0x3]  ;;  %v347_v27 = vld [vmem:[%s16157_s0 + $0x4a8] sm:$0x1] }
 0x37e   :  { %v4916_v39 = vmul.f32 %v8521_v11, %v9489_v24  ;;  %v5360_v40 = vmul.f32 %v8674_v58, %v9532_v59  ;;  %v4457_v30 = vsel %vm1861_vm1, %v4455_v7, %v4456_v2  ;;  %v5363_v57 = vmul.f32 %v8677_v33, %v9532_v59  ;;  %v344_v41 = vld [vmem:[%s16157_s0 + $0x490] sm:$0xfe]  ;;  %v350_v50 = vld [vmem:[%s16157_s0 + $0x4c0] sm:$0xfe]  ;;  %v353_v22 = vld [vmem:[%s16157_s0 + $0x4d8] sm:$0x1] }
 0x37f   :  { %v4466_v8 = vsel %vm1861_vm1, %v4464_v3, %v4465_v49  ;;  %v5366_v1 = vmul.f32 %v8680_v26, %v9532_v59  ;;  %v4717_v53 = vadd.f32 %v4457_v30, %v3658_v61  ;;  %v5369_v29 = vmul.f32 %v8683_v43, %v9532_v59  ;;  %v1404_v2 = vld [vmem:[%s16157_s0 + $0x490] sm:$0xfc]  ;;  %v1407_v3 = vld [vmem:[%s16157_s0 + $0x4a8] sm:$0x3]  ;;  %v1410_v30 = vld [vmem:[%s16157_s0 + $0x4c0] sm:$0xfc] }
 0x380   :  { %v4720_v18 = vadd.f32 %v4466_v8, %v3661_v23  ;;  %v5806_v56 = vrot.slane %v5360_v40, 1  ;;  %v5807_v45 = vrot.slane %v5363_v57, 1  ;;  %v6419_v60 = vmul.f32 %v14940_v19, %v8866_v54  ;;  %v1413_v8 = vld [vmem:[%s16157_s0 + $0x4d8] sm:$0x3] }
 0x381   :  { %v5815_v25 = vrot.slane %v5366_v1, 1  ;;  %v6422_v14 = vmul.f32 %v14940_v19, %v8869_v4  ;;  %v5009_v48 = vadd.f32 %v4913_v62, %v4717_v53  ;;  %v5816_v20 = vrot.slane %v5369_v29, 1 }
 0x382   :  { %v5012_v42 = vadd.f32 %v4916_v39, %v4720_v18  ;;  %v6425_v12 = vmul.f32 %v14940_v19, %v8872_v34  ;;  %v5808_v51 = vsel %vm801_vm0, %v5806_v56, %v5807_v45  ;;  %v6428_v11 = vmul.f32 %v14940_v19, %v8875_v28 }
 0x383   :  { %v6865_v58 = vrot.slane %v6419_v60, 2  ;;  %v6866_v10 = vrot.slane %v6422_v14, 2  ;;  %v5817_v7 = vsel %vm801_vm0, %v5815_v25, %v5816_v20  ;;  %v6068_v33 = vadd.f32 %v5808_v51, %v5009_v48  ;;  %v8195_v48 = vld [vmem:[%s16157_s0 + $0x4c0] sm:$0xfe]  ;;  %v8201_v51 = vld [vmem:[%s16157_s0 + $0x4f0] sm:$0xfe] }
 0x384   :  { %v6874_v26 = vrot.slane %v6425_v12, 2  ;;  %v188_v61 = vmul.f32 %v10601_v0, %v14947_v32  ;;  %v6071_v49 = vadd.f32 %v5817_v7, %v5012_v42  ;;  %v6875_v23 = vrot.slane %v6428_v11, 2  ;;  %v8387_v7 = vld [vmem:[%s16157_s0 + $0x4c0] sm:$0xfc] }
 0x385   :  { %v6867_v43 = vsel %vm1861_vm1, %v6865_v58, %v6866_v10  ;;  %v191_v62 = vmul.f32 %v10601_v0, %v14953_v44  ;;  %v539_v40 = vmul.f32 %v10625_v52, %v344_v41  ;;  %v542_v54 = vmul.f32 %v10625_v52, %v347_v27  ;;  %v8198_v27 = vld [vmem:[%s16157_s0 + $0x4d8] sm:$0x1] }
 0x386   :  { %v7127_v39 = vadd.f32 %v6867_v43, %v6068_v33  ;;  %v545_v4 = vmul.f32 %v10625_v52, %v350_v50  ;;  %v6876_v57 = vsel %vm1861_vm1, %v6874_v26, %v6875_v23  ;;  %v548_v1 = vmul.f32 %v10625_v52, %v353_v22  ;;  %v8204_v22 = vld [vmem:[%s16157_s0 + $0x508] sm:$0x1] }
 0x387   :  { %v1599_v34 = vmul.f32 %v10634_v35, %v1404_v2  ;;  %v1602_v53 = vmul.f32 %v10634_v35, %v1407_v3  ;;  %v7130_v18 = vadd.f32 %v6876_v57, %v6071_v49  ;;  %v988_v29 = vrot.slane %v539_v40, 1 }
 0x388   :  { %v989_v56 = vrot.slane %v542_v54, 1  ;;  %v997_v28 = vrot.slane %v545_v4, 1  ;;  %v998_v45 = vrot.slane %v548_v1, 1  ;;  %v1605_v25 = vmul.f32 %v10634_v35, %v1410_v30 }
 0x389   :  { %v1608_v60 = vmul.f32 %v10634_v35, %v1413_v8  ;;  %v2048_v14 = vrot.slane %v1599_v34, 2  ;;  %v7193_v42 = vpack.c.bf16 %v7130_v18, %v7127_v39  ;;  %v2049_v12 = vrot.slane %v1602_v53, 2  ;;  %v8519_v8 = vld [vmem:[%s16157_s0 + $0x4f0] sm:$0xff] }
 0x38a   :  { %v990_v20 = vsel %vm801_vm0, %v988_v29, %v989_v56  ;;  %v2504_v41 = vmul.f32 %v10637_v16, %v14953_v44  ;;  %v999_v11 = vsel %vm801_vm0, %v997_v28, %v998_v45  ;;  %v2057_v10 = vrot.slane %v1605_v25, 2  ;;  %v8522_v45 = vld [vmem:[%s16157_s0 + $0x520] sm:$0xff]  ;;  %v8675_v25 = vld [vmem:[%s16157_s0 + $0x4f0] sm:$0xfe] }
 0x38b   :  { %v1248_v58 = vadd.f32 %v990_v20, %v188_v61  ;;  %v2058_v50 = vrot.slane %v1608_v60, 2  ;;  %7286 = vmatpush.bf16.xpose.msrb.mxu0 %v7193_v42  ;;  %v1251_v33 = vadd.f32 %v999_v11, %v191_v62  ;;  %v2050_v26 = vsel %vm1861_vm1, %v2048_v14, %v2049_v12  ;;  %v8390_v61 = vld [vmem:[%s16157_s0 + $0x4d8] sm:$0x3]  ;;  %v8393_v62 = vld [vmem:[%s16157_s0 + $0x4f0] sm:$0xfc] }
 0x38c   :  { %v2507_v2 = vmul.f32 %v10637_v16, %v14409_v5  ;;  %v2951_v3 = vmul.f32 %v8195_v48, %v10640_v37  ;;  %v2954_v23 = vmul.f32 %v8198_v27, %v10640_v37  ;;  %v2957_v39 = vmul.f32 %v8201_v51, %v10640_v37  ;;  %v8396_v5 = vld [vmem:[%s16157_s0 + $0x508] sm:$0x3]  ;;  %v8681_v12 = vld [vmem:[%s16157_s0 + $0x520] sm:$0xfe] }
 0x38d   :  { %v2059_v49 = vsel %vm1861_vm1, %v2057_v10, %v2058_v50  ;;  %v2308_v43 = vadd.f32 %v2050_v26, %v1248_v58  ;;  %v2960_v54 = vmul.f32 %v8204_v22, %v10640_v37  ;;  %v4010_v30 = vmul.f32 %v8387_v7, %v10643_v47  ;;  %v8678_v20 = vld [vmem:[%s16157_s0 + $0x508] sm:$0x1]  ;;  %v8684_v58 = vld [vmem:[%s16157_s0 + $0x538] sm:$0x1]  ;;  %v8867_v10 = vld [vmem:[%s16157_s0 + $0x4f0] sm:$0xfc] }
 0x38e   :  { %v2311_v40 = vadd.f32 %v2059_v49, %v1251_v33  ;;  %v3399_v4 = vrot.slane %v2951_v3, 1  ;;  %v3400_v1 = vrot.slane %v2954_v23, 1  ;;  %v3408_v34 = vrot.slane %v2957_v39, 1  ;;  %v8870_v26 = vld [vmem:[%s16157_s0 + $0x508] sm:$0x3] }
 0x38f   :  { %v2600_v57 = vadd.f32 %v2504_v41, %v2308_v43  ;;  %v4013_v53 = vmul.f32 %v8390_v61, %v10643_v47  ;;  %v3409_v29 = vrot.slane %v2960_v54, 1  ;;  %v4016_v56 = vmul.f32 %v8393_v62, %v10643_v47  ;;  %v8873_v43 = vld [vmem:[%s16157_s0 + $0x520] sm:$0xfc]  ;;  %v8876_v23 = vld [vmem:[%s16157_s0 + $0x538] sm:$0x3] }
 0x390   :  { %v2603_v18 = vadd.f32 %v2507_v2, %v2311_v40  ;;  %v4019_v28 = vmul.f32 %v8396_v5, %v10643_v47  ;;  %v3401_v60 = vsel %vm801_vm0, %v3399_v4, %v3400_v1  ;;  %v4458_v14 = vrot.slane %v4010_v30, 2 }
 0x391   :  { %v4459_v48 = vrot.slane %v4013_v53, 2  ;;  %v4914_v42 = vmul.f32 %v8519_v8, %v10727_v36  ;;  %v3410_v41 = vsel %vm801_vm0, %v3408_v34, %v3409_v29  ;;  %v3659_v27 = vadd.f32 %v3401_v60, %v2600_v57  ;;  %v15093_v60 = vld [vmem:[%s16157_s0 + $0x458] sm:$0xff] }
 0x392   :  { %v4467_v51 = vrot.slane %v4016_v56, 2  ;;  %v4468_v11 = vrot.slane %v4019_v28, 2  ;;  %v3662_v50 = vadd.f32 %v3410_v41, %v2603_v18  ;;  %v4917_v7 = vmul.f32 %v8522_v45, %v10727_v36  ;;  %v7211_v18 = vld [vmem:[%s16159_s2 + $0x8] sm:$0xf]  ;;  %s9179_s2 = smov 64  }
 0x393   :  { %v4460_v22 = vsel %vm1861_vm1, %v4458_v14, %v4459_v48  ;;  %v5361_v33 = vmul.f32 %v8675_v25, %v10733_v38  ;;  %v5364_v61 = vmul.f32 %v8678_v20, %v10733_v38  ;;  %v5367_v49 = vmul.f32 %v8681_v12, %v10733_v38  ;;  %v15088_v25 = vld [vmem:[%s16157_s0 + $0x428] sm:$0xff]  ;;  %v337_v12 = vld [vmem:[%s16157_s0 + $0x458] sm:$0xfe] }
 0x394   :  { %v4469_v2 = vsel %vm1861_vm1, %v4467_v51, %v4468_v11  ;;  %v4718_v3 = vadd.f32 %v4460_v22, %v3659_v27  ;;  %v5370_v62 = vmul.f32 %v8684_v58, %v10733_v38  ;;  %v6420_v40 = vmul.f32 %v14663_v9, %v8867_v10  ;;  %v340_v58 = vld [vmem:[%s16157_s0 + $0x470] sm:$0x1]  ;;  %v1391_v10 = vld [vmem:[%s16157_s0 + $0x428] sm:$0xfc] }
 0x395   :  { %v4721_v39 = vadd.f32 %v4469_v2, %v3662_v50  ;;  %v5809_v5 = vrot.slane %v5361_v33, 1  ;;  %v5810_v4 = vrot.slane %v5364_v61, 1  ;;  %v5818_v30 = vrot.slane %v5367_v49, 1  ;;  %v1394_v50 = vld [vmem:[%s16157_s0 + $0x440] sm:$0x3] }
 0x396   :  { %v5010_v54 = vadd.f32 %v4914_v42, %v4718_v3  ;;  %v6423_v8 = vmul.f32 %v14663_v9, %v8870_v26  ;;  %v5819_v1 = vrot.slane %v5370_v62, 1  ;;  %v6426_v34 = vmul.f32 %v14663_v9, %v8873_v43  ;;  %v1397_v2 = vld [vmem:[%s16157_s0 + $0x458] sm:$0xfc] }
 0x397   :  { %v5013_v57 = vadd.f32 %v4917_v7, %v4721_v39  ;;  %v6429_v53 = vmul.f32 %v14663_v9, %v8876_v23  ;;  %v5811_v29 = vsel %vm801_vm0, %v5809_v5, %v5810_v4  ;;  %v6868_v56 = vrot.slane %v6420_v40, 2  ;;  %v331_v9 = vld [vmem:[%s16157_s0 + $0x428] sm:$0xfe]  ;;  %v1400_v23 = vld [vmem:[%s16157_s0 + $0x470] sm:$0x3] }
 0x398   :  { %v6869_v28 = vrot.slane %v6423_v8, 2  ;;  %v7221_v45 = vunpack.c.h.b16 %v14670_v21  ;;  %v5820_v14 = vsel %vm801_vm0, %v5818_v30, %v5819_v1  ;;  %v6069_v48 = vadd.f32 %v5811_v29, %v5010_v54  ;;  %v334_v21 = vld [vmem:[%s16157_s0 + $0x440] sm:$0x1]  ;;  %v8185_v29 = vld [vmem:[%s16157_s0 + $0x470] sm:$0x1] }
 0x399   :  { %v6877_v42 = vrot.slane %v6426_v34, 2  ;;  %v6878_v20 = vrot.slane %v6429_v53, 2  ;;  %v6072_v41 = vadd.f32 %v5820_v14, %v5013_v57  ;;  %v7222_v11 = vunpack.c.l.b16 %v7211_v18  ;;  %v8182_v57 = vld [vmem:[%s16157_s0 + $0x458] sm:$0xfe]  ;;  %v8188_v14 = vld [vmem:[%s16157_s0 + $0x488] sm:$0xfe] }
 0x39a   :  { %v6870_v27 = vsel %vm1861_vm1, %v6868_v56, %v6869_v28  ;;  %v15106_v51 = vpack.c.b16 %v7221_v45, %v7221_v45  ;;  %v181_v33 = vmul.f32 %v9403_v63, %v15088_v25  ;;  %v184_v26 = vmul.f32 %v9403_v63, %v15093_v60 }
 0x39b   :  { %v6879_v22 = vsel %vm1861_vm1, %v6877_v42, %v6878_v20  ;;  %v7128_v7 = vadd.f32 %v6870_v27, %v6069_v48  ;;  %v15126_v61 = vpack.c.b16 %v7222_v11, %v7222_v11  ;;  %v526_v49 = vmul.f32 %v9409_v6, %v331_v9  ;;  %v8191_v48 = vld [vmem:[%s16157_s0 + $0x4a0] sm:$0x1] }
 0x39c   :  { %v7131_v3 = vadd.f32 %v6879_v22, %v6072_v41  ;;  %7250 = vmatmul.bf16.vlgmr.msra.gmra.mxu1 %v15106_v51  ;;  %v529_v43 = vmul.f32 %v9409_v6, %v334_v21  ;;  %v532_v39 = vmul.f32 %v9409_v6, %v337_v12  ;;  %v535_v62 = vmul.f32 %v9409_v6, %v340_v58  ;;  %v8374_v41 = vld [vmem:[%s16157_s0 + $0x458] sm:$0xfc] }
 0x39d   :  { %v1586_v5 = vmul.f32 %v9420_v13, %v1391_v10  ;;  %v1589_v40 = vmul.f32 %v9420_v13, %v1394_v50  ;;  %7263 = vmatmul.bf16.vlgmr.msra.gmra.mxu2 %v15126_v61  ;;  %v967_v4 = vrot.slane %v526_v49, 1  ;;  %v1592_v8 = vmul.f32 %v9420_v13, %v1397_v2  ;;  %v8377_v50 = vld [vmem:[%s16157_s0 + $0x470] sm:$0x3] }
 0x39e   :  { %v7194_v54 = vpack.c.bf16 %v7131_v3, %v7128_v7  ;;  %v968_v30 = vrot.slane %v529_v43, 1  ;;  %v976_v1 = vrot.slane %v532_v39, 1  ;;  %v977_v34 = vrot.slane %v535_v62, 1  ;;  %v8383_v3 = vld [vmem:[%s16157_s0 + $0x4a0] sm:$0x3] }
 0x39f   :  { %v1595_v53 = vmul.f32 %v9420_v13, %v1400_v23  ;;  %v2027_v18 = vrot.slane %v1586_v5, 2  ;;  %v2028_v28 = vrot.slane %v1589_v40, 2  ;;  %v2036_v45 = vrot.slane %v1592_v8, 2 }
 0x3a0   :  { %7299 = vmatpush.bf16.xpose.msrb.mxu1 %v7194_v54  ;;  %v969_v56 = vsel %vm801_vm0, %v967_v4, %v968_v30  ;;  %v2497_v9 = vmul.f32 %v9449_v46, %v15093_v60  ;;  %v978_v42 = vsel %vm801_vm0, %v976_v1, %v977_v34  ;;  %v2500_v12 = vmul.f32 %v9449_v46, %v14807_v31  ;;  %v8662_v1 = vld [vmem:[%s16157_s0 + $0x488] sm:$0xfe]  ;;  %v8665_v34 = vld [vmem:[%s16157_s0 + $0x4a0] sm:$0x1] }
 0x3a1   :  { %v1241_v20 = vadd.f32 %v969_v56, %v181_v33  ;;  %v2037_v21 = vrot.slane %v1595_v53, 2  ;;  %v1244_v27 = vadd.f32 %v978_v42, %v184_v26  ;;  %v2029_v11 = vsel %vm1861_vm1, %v2027_v18, %v2028_v28  ;;  %v8380_v26 = vld [vmem:[%s16157_s0 + $0x488] sm:$0xfc]  ;;  %v8668_v28 = vld [vmem:[%s16157_s0 + $0x4b8] sm:$0xfe] }
 0x3a2   :  { %v2938_v58 = vmul.f32 %v8182_v57, %v9462_v55  ;;  %v2941_v10 = vmul.f32 %v8185_v29, %v9462_v55  ;;  %v2944_v33 = vmul.f32 %v8188_v14, %v9462_v55  ;;  %v2947_v2 = vmul.f32 %v8191_v48, %v9462_v55 }
 0x3a3   :  { %v2038_v22 = vsel %vm1861_vm1, %v2036_v45, %v2037_v21  ;;  %v2301_v7 = vadd.f32 %v2029_v11, %v1241_v20  ;;  %v3997_v39 = vmul.f32 %v8374_v41, %v9486_v17  ;;  %v4000_v54 = vmul.f32 %v8377_v50, %v9486_v17  ;;  %v8671_v45 = vld [vmem:[%s16157_s0 + $0x4d0] sm:$0x1]  ;;  %v8854_v20 = vld [vmem:[%s16157_s0 + $0x488] sm:$0xfc]  ;;  %v8857_v11 = vld [vmem:[%s16157_s0 + $0x4a0] sm:$0x3] }
 0x3a4   :  { %v2304_v49 = vadd.f32 %v2038_v22, %v1244_v27  ;;  %v3378_v43 = vrot.slane %v2938_v58, 1  ;;  %v3379_v23 = vrot.slane %v2941_v10, 1  ;;  %v3387_v5 = vrot.slane %v2944_v33, 1  ;;  %v8860_v22 = vld [vmem:[%s16157_s0 + $0x4b8] sm:$0xfc] }
 0x3a5   :  { %v2593_v62 = vadd.f32 %v2497_v9, %v2301_v7  ;;  %v3388_v40 = vrot.slane %v2947_v2, 1  ;;  %v4003_v8 = vmul.f32 %v8380_v26, %v9486_v17  ;;  %v4006_v57 = vmul.f32 %v8383_v3, %v9486_v17 }
 0x3a6   :  { %v2596_v4 = vadd.f32 %v2500_v12, %v2304_v49  ;;  %v3380_v30 = vsel %vm801_vm0, %v3378_v43, %v3379_v23  ;;  %v4437_v29 = vrot.slane %v3997_v39, 2  ;;  %v4438_v56 = vrot.slane %v4000_v54, 2  ;;  %v15221_v39 = vld [vmem:[%s16157_s0 + $0x430] sm:$0xff] }
 0x3a7   :  { %v3389_v53 = vsel %vm801_vm0, %v3387_v5, %v3388_v40  ;;  %v3652_v18 = vadd.f32 %v3380_v30, %v2593_v62  ;;  %v4446_v14 = vrot.slane %v4003_v8, 2  ;;  %v4447_v48 = vrot.slane %v4006_v57, 2  ;;  %v332_v30 = vld [vmem:[%s16157_s0 + $0x430] sm:$0xfe]  ;;  %v335_v8 = vld [vmem:[%s16157_s0 + $0x448] sm:$0x1] }
 0x3a8   :  { %v3655_v9 = vadd.f32 %v3389_v53, %v2596_v4  ;;  %v4907_v42 = vmul.f32 %v9489_v24, %v14807_v31  ;;  %v4439_v21 = vsel %vm1861_vm1, %v4437_v29, %v4438_v56  ;;  %v4910_v12 = vmul.f32 %v9489_v24, %v14812_v15  ;;  %v8863_v15 = vld [vmem:[%s16157_s0 + $0x4d0] sm:$0x3]  ;;  %v15229_v4 = vld [vmem:[%s16157_s0 + $0x460] sm:$0xff]  ;;  %v341_v29 = vld [vmem:[%s16157_s0 + $0x478] sm:$0x1] }
 0x3a9   :  { %v5348_v41 = vmul.f32 %v8662_v1, %v9532_v59  ;;  %v5351_v27 = vmul.f32 %v8665_v34, %v9532_v59  ;;  %v4448_v58 = vsel %vm1861_vm1, %v4446_v14, %v4447_v48  ;;  %v4711_v31 = vadd.f32 %v4439_v21, %v3652_v18  ;;  %v338_v18 = vld [vmem:[%s16157_s0 + $0x460] sm:$0xfe]  ;;  %v1392_v14 = vld [vmem:[%s16157_s0 + $0x430] sm:$0xfc] }
 0x3aa   :  { %v5354_v10 = vmul.f32 %v8668_v28, %v9532_v59  ;;  %v5357_v50 = vmul.f32 %v8671_v45, %v9532_v59  ;;  %v4714_v7 = vadd.f32 %v4448_v58, %v3655_v9  ;;  %v6407_v26 = vmul.f32 %v14940_v19, %v8854_v20 }
 0x3ab   :  { %v5788_v33 = vrot.slane %v5348_v41, 1  ;;  %v5789_v2 = vrot.slane %v5351_v27, 1  ;;  %v5003_v3 = vadd.f32 %v4907_v42, %v4711_v31  ;;  %v6410_v23 = vmul.f32 %v14940_v19, %v8857_v11  ;;  %v1398_v41 = vld [vmem:[%s16157_s0 + $0x460] sm:$0xfc] }
 0x3ac   :  { %v5797_v49 = vrot.slane %v5354_v10, 1  ;;  %v5798_v43 = vrot.slane %v5357_v50, 1  ;;  %v5006_v62 = vadd.f32 %v4910_v12, %v4714_v7  ;;  %v6413_v40 = vmul.f32 %v14940_v19, %v8860_v22  ;;  %v1395_v12 = vld [vmem:[%s16157_s0 + $0x448] sm:$0x3]  ;;  %v1401_v10 = vld [vmem:[%s16157_s0 + $0x478] sm:$0x3] }
 0x3ad   :  { %v5790_v5 = vsel %vm801_vm0, %v5788_v33, %v5789_v2  ;;  %v6416_v54 = vmul.f32 %v14940_v19, %v8863_v15  ;;  %v6847_v34 = vrot.slane %v6407_v26, 2  ;;  %v6848_v53 = vrot.slane %v6410_v23, 2 }
 0x3ae   :  { %v5799_v57 = vsel %vm801_vm0, %v5797_v49, %v5798_v43  ;;  %v6062_v1 = vadd.f32 %v5790_v5, %v5003_v3  ;;  %v6856_v28 = vrot.slane %v6413_v40, 2  ;;  %v182_v9 = vmul.f32 %v10601_v0, %v15221_v39  ;;  %v8183_v49 = vld [vmem:[%s16157_s0 + $0x460] sm:$0xfe]  ;;  %v8186_v40 = vld [vmem:[%s16157_s0 + $0x478] sm:$0x1] }
 0x3af   :  { %v6065_v56 = vadd.f32 %v5799_v57, %v5006_v62  ;;  %v6857_v45 = vrot.slane %v6416_v54, 2  ;;  %v6849_v48 = vsel %vm1861_vm1, %v6847_v34, %v6848_v53  ;;  %v185_v42 = vmul.f32 %v10601_v0, %v15229_v4  ;;  %v8189_v54 = vld [vmem:[%s16157_s0 + $0x490] sm:$0xfe]  ;;  %v8192_v34 = vld [vmem:[%s16157_s0 + $0x4a8] sm:$0x1] }
 0x3b0   :  { %v527_v20 = vmul.f32 %v10625_v52, %v332_v30  ;;  %v530_v21 = vmul.f32 %v10625_v52, %v335_v8  ;;  %v7121_v11 = vadd.f32 %v6849_v48, %v6062_v1  ;;  %v533_v58 = vmul.f32 %v10625_v52, %v338_v18  ;;  %v8375_v53 = vld [vmem:[%s16157_s0 + $0x460] sm:$0xfc] }
 0x3b1   :  { %v6858_v27 = vsel %vm1861_vm1, %v6856_v28, %v6857_v45  ;;  %v536_v31 = vmul.f32 %v10625_v52, %v341_v29  ;;  %v1587_v7 = vmul.f32 %v10634_v35, %v1392_v14  ;;  %v1590_v26 = vmul.f32 %v10634_v35, %v1395_v12 }
 0x3b2   :  { %v7124_v50 = vadd.f32 %v6858_v27, %v6065_v56  ;;  %v970_v22 = vrot.slane %v527_v20, 1  ;;  %v971_v15 = vrot.slane %v530_v21, 1  ;;  %v979_v33 = vrot.slane %v533_v58, 1  ;;  %v8378_v20 = vld [vmem:[%s16157_s0 + $0x478] sm:$0x3] }
 0x3b3   :  { %v980_v2 = vrot.slane %v536_v31, 1  ;;  %v1593_v3 = vmul.f32 %v10634_v35, %v1398_v41  ;;  %v1596_v62 = vmul.f32 %v10634_v35, %v1401_v10  ;;  %v2030_v5 = vrot.slane %v1587_v7, 2  ;;  %v8384_v27 = vld [vmem:[%s16157_s0 + $0x4a8] sm:$0x3] }
 0x3b4   :  { %v7190_v43 = vpack.c.bf16 %v7124_v50, %v7121_v11  ;;  %v972_v23 = vsel %vm801_vm0, %v970_v22, %v971_v15  ;;  %v2031_v57 = vrot.slane %v1590_v26, 2  ;;  %v2498_v56 = vmul.f32 %v10637_v16, %v15229_v4 }
 0x3b5   :  { %v981_v30 = vsel %vm801_vm0, %v979_v33, %v980_v2  ;;  %v1242_v8 = vadd.f32 %v972_v23, %v182_v9  ;;  %v2039_v1 = vrot.slane %v1593_v3, 2  ;;  %v2040_v29 = vrot.slane %v1596_v62, 2  ;;  %v8663_v2 = vld [vmem:[%s16157_s0 + $0x490] sm:$0xfe]  ;;  %v8666_v23 = vld [vmem:[%s16157_s0 + $0x4a8] sm:$0x1] }
 0x3b6   :  { %7287 = vmatpush.bf16.xpose.msrb.mxu0 %v7190_v43  ;;  %v1245_v18 = vadd.f32 %v981_v30, %v185_v42  ;;  %v2501_v28 = vmul.f32 %v10637_v16, %v14947_v32  ;;  %v2032_v45 = vsel %vm1861_vm1, %v2030_v5, %v2031_v57  ;;  %v2939_v9 = vmul.f32 %v8183_v49, %v10640_v37  ;;  %v8381_v42 = vld [vmem:[%s16157_s0 + $0x490] sm:$0xfc]  ;;  %v8669_v62 = vld [vmem:[%s16157_s0 + $0x4c0] sm:$0xfe] }
 0x3b7   :  { %v2942_v14 = vmul.f32 %v8186_v40, %v10640_v37  ;;  %v2945_v48 = vmul.f32 %v8189_v54, %v10640_v37  ;;  %v2041_v21 = vsel %vm1861_vm1, %v2039_v1, %v2040_v29  ;;  %v2302_v12 = vadd.f32 %v2032_v45, %v1242_v8  ;;  %v8672_v8 = vld [vmem:[%s16157_s0 + $0x4d8] sm:$0x1]  ;;  %v8855_v57 = vld [vmem:[%s16157_s0 + $0x490] sm:$0xfc] }
 0x3b8   :  { %v2948_v41 = vmul.f32 %v8192_v34, %v10640_v37  ;;  %v3998_v11 = vmul.f32 %v8375_v53, %v10643_v47  ;;  %v2305_v58 = vadd.f32 %v2041_v21, %v1245_v18  ;;  %v3381_v31 = vrot.slane %v2939_v9, 1  ;;  %v8858_v9 = vld [vmem:[%s16157_s0 + $0x4a8] sm:$0x3] }
 0x3b9   :  { %v3382_v10 = vrot.slane %v2942_v14, 1  ;;  %v3390_v50 = vrot.slane %v2945_v48, 1  ;;  %v2594_v22 = vadd.f32 %v2498_v56, %v2302_v12  ;;  %v4001_v7 = vmul.f32 %v8378_v20, %v10643_v47  ;;  %v8861_v14 = vld [vmem:[%s16157_s0 + $0x4c0] sm:$0xfc]  ;;  %v8864_v20 = vld [vmem:[%s16157_s0 + $0x4d8] sm:$0x3] }
 0x3ba   :  { %v3391_v15 = vrot.slane %v2948_v41, 1  ;;  %v4004_v33 = vmul.f32 %v8381_v42, %v10643_v47  ;;  %v2597_v26 = vadd.f32 %v2501_v28, %v2305_v58  ;;  %v4007_v49 = vmul.f32 %v8384_v27, %v10643_v47  ;;  %v15349_v42 = vld [vmem:[%s16158_s1 + $0x28] ss:$0 sm:$0xff] }
 0x3bb   :  { %v3383_v3 = vsel %vm801_vm0, %v3381_v31, %v3382_v10  ;;  %v4440_v43 = vrot.slane %v3998_v11, 2  ;;  %v4441_v54 = vrot.slane %v4001_v7, 2  ;;  %v4908_v53 = vmul.f32 %v10727_v36, %v14947_v32  ;;  %v319_v7 = vld [vmem:[%s16157_s0 + $0x3c8] sm:$0xfe] }
 0x3bc   :  { %v3392_v5 = vsel %vm801_vm0, %v3390_v50, %v3391_v15  ;;  %v3653_v40 = vadd.f32 %v3383_v3, %v2594_v22  ;;  %v4449_v30 = vrot.slane %v4004_v33, 2  ;;  %v4450_v34 = vrot.slane %v4007_v49, 2  ;;  %v76_v22 = vld [vmem:[%s16157_s0 + $0x3c8] sm:$0xff]  ;;  %v79_v15 = vld [vmem:[%s16157_s0 + $0x3f8] sm:$0xff]  ;;  %v322_v49 = vld [vmem:[%s16157_s0 + $0x3e0] sm:$0x1] }
 0x3bd   :  { %v3656_v1 = vadd.f32 %v3392_v5, %v2597_v26  ;;  %v4911_v18 = vmul.f32 %v10727_v36, %v14953_v44  ;;  %v4442_v29 = vsel %vm1861_vm1, %v4440_v43, %v4441_v54  ;;  %v5349_v56 = vmul.f32 %v8663_v2, %v10733_v38  ;;  %v325_v43 = vld [vmem:[%s16157_s0 + $0x3f8] sm:$0xfe]  ;;  %v328_v54 = vld [vmem:[%s16157_s0 + $0x410] sm:$0x1] }
 0x3be   :  { %v5352_v28 = vmul.f32 %v8666_v23, %v10733_v38  ;;  %v5355_v45 = vmul.f32 %v8669_v62, %v10733_v38  ;;  %v4451_v32 = vsel %vm1861_vm1, %v4449_v30, %v4450_v34  ;;  %v4712_v48 = vadd.f32 %v4442_v29, %v3653_v40  ;;  %v1379_v30 = vld [vmem:[%s16157_s0 + $0x3c8] sm:$0xfc] }
 0x3bf   :  { %v5358_v44 = vmul.f32 %v8672_v8, %v10733_v38  ;;  %v6408_v21 = vmul.f32 %v15349_v42, %v8855_v57  ;;  %v4715_v12 = vadd.f32 %v4451_v32, %v3656_v1  ;;  %v5791_v41 = vrot.slane %v5349_v56, 1 }
 0x3c0   :  { %v5792_v27 = vrot.slane %v5352_v28, 1  ;;  %v5800_v11 = vrot.slane %v5355_v45, 1  ;;  %v5004_v58 = vadd.f32 %v4908_v53, %v4712_v48  ;;  %v6411_v10 = vmul.f32 %v15349_v42, %v8858_v9  ;;  %v1382_v28 = vld [vmem:[%s16157_s0 + $0x3e0] sm:$0x3]  ;;  %v1385_v45 = vld [vmem:[%s16157_s0 + $0x3f8] sm:$0xfc] }
 0x3c1   :  { %v5801_v31 = vrot.slane %v5358_v44, 1  ;;  %v6414_v50 = vmul.f32 %v15349_v42, %v8861_v14  ;;  %v5007_v33 = vadd.f32 %v4911_v18, %v4715_v12  ;;  %v6417_v26 = vmul.f32 %v15349_v42, %v8864_v20 }
 0x3c2   :  { %v5793_v2 = vsel %vm801_vm0, %v5791_v41, %v5792_v27  ;;  %v6850_v3 = vrot.slane %v6408_v21, 2  ;;  %v6851_v5 = vrot.slane %v6411_v10, 2  ;;  %v175_v1 = vmul.f32 %v9403_v63, %v76_v22 }
 0x3c3   :  { %v5802_v23 = vsel %vm801_vm0, %v5800_v11, %v5801_v31  ;;  %v6063_v62 = vadd.f32 %v5793_v2, %v5004_v58  ;;  %v6859_v40 = vrot.slane %v6414_v50, 2  ;;  %v6860_v57 = vrot.slane %v6417_v26, 2  ;;  %v8170_v31 = vld [vmem:[%s16157_s0 + $0x3f8] sm:$0xfe] }
 0x3c4   :  { %v6066_v8 = vadd.f32 %v5802_v23, %v5007_v33  ;;  %v178_v34 = vmul.f32 %v9403_v63, %v79_v15  ;;  %v6852_v53 = vsel %vm1861_vm1, %v6850_v3, %v6851_v5  ;;  %v514_v18 = vmul.f32 %v9409_v6, %v319_v7  ;;  %v1388_v63 = vld [vmem:[%s16157_s0 + $0x410] sm:$0x3]  ;;  %v8176_v33 = vld [vmem:[%s16157_s0 + $0x428] sm:$0xfe] }
 0x3c5   :  { %v517_v29 = vmul.f32 %v9409_v6, %v322_v49  ;;  %v520_v56 = vmul.f32 %v9409_v6, %v325_v43  ;;  %v6861_v9 = vsel %vm1861_vm1, %v6859_v40, %v6860_v57  ;;  %v7122_v14 = vadd.f32 %v6852_v53, %v6063_v62  ;;  %v8362_v43 = vld [vmem:[%s16157_s0 + $0x3f8] sm:$0xfc]  ;;  %v8365_v57 = vld [vmem:[%s16157_s0 + $0x410] sm:$0x3] }
 0x3c6   :  { %v523_v32 = vmul.f32 %v9409_v6, %v328_v54  ;;  %v1574_v48 = vmul.f32 %v9420_v13, %v1379_v30  ;;  %v7125_v44 = vadd.f32 %v6861_v9, %v6066_v8  ;;  %v949_v20 = vrot.slane %v514_v18, 1  ;;  %v8173_v6 = vld [vmem:[%s16157_s0 + $0x410] sm:$0x1] }
 0x3c7   :  { %v950_v21 = vrot.slane %v517_v29, 1  ;;  %v958_v12 = vrot.slane %v520_v56, 1  ;;  %v1577_v27 = vmul.f32 %v9420_v13, %v1382_v28  ;;  %v1580_v11 = vmul.f32 %v9420_v13, %v1385_v45 }
 0x3c8   :  { %v959_v41 = vrot.slane %v523_v32, 1  ;;  %v1583_v58 = vmul.f32 %v9420_v13, %v1388_v63  ;;  %v7191_v10 = vpack.c.bf16 %v7125_v44, %v7122_v14  ;;  %v2009_v22 = vrot.slane %v1574_v48, 2  ;;  %v8179_v13 = vld [vmem:[%s16157_s0 + $0x440] sm:$0x1]  ;;  %v8650_v48 = vld [vmem:[%s16157_s0 + $0x428] sm:$0xfe] }
 0x3c9   :  { %v951_v50 = vsel %vm801_vm0, %v949_v20, %v950_v21  ;;  %v2491_v7 = vmul.f32 %v9449_v46, %v79_v15  ;;  %v2010_v3 = vrot.slane %v1577_v27, 2  ;;  %v2018_v49 = vrot.slane %v1580_v11, 2  ;;  %v8656_v27 = vld [vmem:[%s16157_s0 + $0x458] sm:$0xfe] }
 0x3ca   :  { %v960_v2 = vsel %vm801_vm0, %v958_v12, %v959_v41  ;;  %v1235_v26 = vadd.f32 %v951_v50, %v175_v1  ;;  %7300 = vmatpush.bf16.xpose.msrb.mxu1 %v7191_v10  ;;  %v2019_v15 = vrot.slane %v1583_v58, 2  ;;  %v2494_v62 = vmul.f32 %v9449_v46, %v15088_v25  ;;  %v8368_v1 = vld [vmem:[%s16157_s0 + $0x428] sm:$0xfc]  ;;  %v8371_v46 = vld [vmem:[%s16157_s0 + $0x440] sm:$0x3] }
 0x3cb   :  { %v1238_v23 = vadd.f32 %v960_v2, %v178_v34  ;;  %v2926_v5 = vmul.f32 %v8170_v31, %v9462_v55  ;;  %v2011_v40 = vsel %vm1861_vm1, %v2009_v22, %v2010_v3  ;;  %v2929_v54 = vmul.f32 %v8173_v6, %v9462_v55  ;;  %v8653_v41 = vld [vmem:[%s16157_s0 + $0x440] sm:$0x1]  ;;  %v8659_v6 = vld [vmem:[%s16157_s0 + $0x470] sm:$0x1] }
 0x3cc   :  { %v2932_v30 = vmul.f32 %v8176_v33, %v9462_v55  ;;  %v2935_v8 = vmul.f32 %v8179_v13, %v9462_v55  ;;  %v2020_v34 = vsel %vm1861_vm1, %v2018_v49, %v2019_v15  ;;  %v2295_v53 = vadd.f32 %v2011_v40, %v1235_v26  ;;  %v8842_v33 = vld [vmem:[%s16157_s0 + $0x428] sm:$0xfc]  ;;  %v8845_v13 = vld [vmem:[%s16157_s0 + $0x440] sm:$0x3]  ;;  %v8851_v15 = vld [vmem:[%s16157_s0 + $0x470] sm:$0x3] }
 0x3cd   :  { %v3360_v18 = vrot.slane %v2926_v5, 1  ;;  %v3985_v29 = vmul.f32 %v8362_v43, %v9486_v17  ;;  %v2298_v56 = vadd.f32 %v2020_v34, %v1238_v23  ;;  %v3361_v55 = vrot.slane %v2929_v54, 1  ;;  %v320_v34 = vld [vmem:[%s16157_s0 + $0x3d0] sm:$0xfe] }
 0x3ce   :  { %v3369_v28 = vrot.slane %v2932_v30, 1  ;;  %v3370_v45 = vrot.slane %v2935_v8, 1  ;;  %v2587_v63 = vadd.f32 %v2491_v7, %v2295_v53  ;;  %v3988_v9 = vmul.f32 %v8365_v57, %v9486_v17  ;;  %v77_v30 = vld [vmem:[%s16157_s0 + $0x3d0] sm:$0xff]  ;;  %v323_v53 = vld [vmem:[%s16157_s0 + $0x3e8] sm:$0x1] }
 0x3cf   :  { %v3991_v14 = vmul.f32 %v8368_v1, %v9486_v17  ;;  %v3994_v32 = vmul.f32 %v8371_v46, %v9486_v17  ;;  %v2590_v44 = vadd.f32 %v2494_v62, %v2298_v56  ;;  %v3362_v20 = vsel %vm801_vm0, %v3360_v18, %v3361_v55  ;;  %v80_v46 = vld [vmem:[%s16157_s0 + $0x400] sm:$0xff] }
 0x3d0   :  { %v3371_v21 = vsel %vm801_vm0, %v3369_v28, %v3370_v45  ;;  %v4419_v12 = vrot.slane %v3985_v29, 2  ;;  %v3646_v11 = vadd.f32 %v3362_v20, %v2587_v63  ;;  %v4420_v17 = vrot.slane %v3988_v9, 2  ;;  %v326_v28 = vld [vmem:[%s16157_s0 + $0x400] sm:$0xfe]  ;;  %v329_v45 = vld [vmem:[%s16157_s0 + $0x418] sm:$0x1] }
 0x3d1   :  { %v4428_v58 = vrot.slane %v3991_v14, 2  ;;  %v4429_v31 = vrot.slane %v3994_v32, 2  ;;  %v3649_v10 = vadd.f32 %v3371_v21, %v2590_v44  ;;  %v4901_v50 = vmul.f32 %v9489_v24, %v15088_v25 }
 0x3d2   :  { %v4904_v22 = vmul.f32 %v9489_v24, %v15093_v60  ;;  %v5336_v7 = vmul.f32 %v8650_v48, %v9532_v59  ;;  %v4421_v2 = vsel %vm1861_vm1, %v4419_v12, %v4420_v17  ;;  %v5339_v3 = vmul.f32 %v8653_v41, %v9532_v59  ;;  %v8848_v24 = vld [vmem:[%s16157_s0 + $0x458] sm:$0xfc]  ;;  %v1383_v48 = vld [vmem:[%s16157_s0 + $0x3e8] sm:$0x3] }
 0x3d3   :  { %v4430_v26 = vsel %vm1861_vm1, %v4428_v58, %v4429_v31  ;;  %v5342_v25 = vmul.f32 %v8656_v27, %v9532_v59  ;;  %v4705_v60 = vadd.f32 %v4421_v2, %v3646_v11  ;;  %v5345_v43 = vmul.f32 %v8659_v6, %v9532_v59  ;;  %v1386_v58 = vld [vmem:[%s16157_s0 + $0x400] sm:$0xfc]  ;;  %v1389_v31 = vld [vmem:[%s16157_s0 + $0x418] sm:$0x3] }
 0x3d4   :  { %v4708_v49 = vadd.f32 %v4430_v26, %v3649_v10  ;;  %v5770_v23 = vrot.slane %v5336_v7, 1  ;;  %v5771_v62 = vrot.slane %v5339_v3, 1  ;;  %v6395_v40 = vmul.f32 %v14940_v19, %v8842_v33 }
 0x3d5   :  { %v5779_v5 = vrot.slane %v5342_v25, 1  ;;  %v6398_v54 = vmul.f32 %v14940_v19, %v8845_v13  ;;  %v4997_v8 = vadd.f32 %v4901_v50, %v4705_v60  ;;  %v5780_v1 = vrot.slane %v5345_v43, 1 }
 0x3d6   :  { %v5000_v57 = vadd.f32 %v4904_v22, %v4708_v49  ;;  %v6401_v59 = vmul.f32 %v14940_v19, %v8848_v24  ;;  %v5772_v18 = vsel %vm801_vm0, %v5770_v23, %v5771_v62  ;;  %v6404_v29 = vmul.f32 %v14940_v19, %v8851_v15  ;;  %v1380_v19 = vld [vmem:[%s16157_s0 + $0x3d0] sm:$0xfc]  ;;  %v8174_v15 = vld [vmem:[%s16157_s0 + $0x418] sm:$0x1] }
 0x3d7   :  { %v6829_v56 = vrot.slane %v6395_v40, 2  ;;  %v6830_v55 = vrot.slane %v6398_v54, 2  ;;  %v5781_v63 = vsel %vm801_vm0, %v5779_v5, %v5780_v1  ;;  %v6056_v9 = vadd.f32 %v5772_v18, %v4997_v8  ;;  %v8177_v62 = vld [vmem:[%s16157_s0 + $0x430] sm:$0xfe]  ;;  %v8363_v8 = vld [vmem:[%s16157_s0 + $0x400] sm:$0xfc] }
 0x3d8   :  { %v6838_v14 = vrot.slane %v6401_v59, 2  ;;  %v176_v32 = vmul.f32 %v10601_v0, %v77_v30  ;;  %v6059_v44 = vadd.f32 %v5781_v63, %v5000_v57  ;;  %v6839_v21 = vrot.slane %v6404_v29, 2  ;;  %v8180_v30 = vld [vmem:[%s16157_s0 + $0x448] sm:$0x1] }
 0x3d9   :  { %v6831_v20 = vsel %vm1861_vm1, %v6829_v56, %v6830_v55  ;;  %v179_v12 = vmul.f32 %v10601_v0, %v80_v46  ;;  %v515_v27 = vmul.f32 %v10625_v52, %v320_v34  ;;  %v518_v11 = vmul.f32 %v10625_v52, %v323_v53  ;;  %v8366_v34 = vld [vmem:[%s16157_s0 + $0x418] sm:$0x3]  ;;  %v8369_v55 = vld [vmem:[%s16157_s0 + $0x430] sm:$0xfc] }
 0x3da   :  { %v7115_v41 = vadd.f32 %v6831_v20, %v6056_v9  ;;  %v521_v17 = vmul.f32 %v10625_v52, %v326_v28  ;;  %v6840_v6 = vsel %vm1861_vm1, %v6838_v14, %v6839_v21  ;;  %v524_v10 = vmul.f32 %v10625_v52, %v329_v45  ;;  %v8171_v52 = vld [vmem:[%s16157_s0 + $0x400] sm:$0xfe] }
 0x3db   :  { %v1575_v0 = vmul.f32 %v10634_v35, %v1380_v19  ;;  %v1578_v50 = vmul.f32 %v10634_v35, %v1383_v48  ;;  %v15520_v22 = vpop.f32.mrf.mxu0  ;;  %v7118_v7 = vadd.f32 %v6840_v6, %v6059_v44  ;;  %v952_v33 = vrot.slane %v515_v27, 1  ;;  %v8651_v27 = vld [vmem:[%s16157_s0 + $0x430] sm:$0xfe]  ;;  %v8657_v6 = vld [vmem:[%s16157_s0 + $0x460] sm:$0xfe] }
 0x3dc   :  { %v953_v13 = vrot.slane %v518_v11, 1  ;;  %v961_v2 = vrot.slane %v521_v17, 1  ;;  %v962_v26 = vrot.slane %v524_v10, 1  ;;  %v1581_v3 = vmul.f32 %v10634_v35, %v1386_v58 }
 0x3dd   :  { %v1584_v25 = vmul.f32 %v10634_v35, %v1389_v31  ;;  %v2012_v24 = vrot.slane %v1575_v0, 2  ;;  %v7187_v60 = vpack.c.bf16 %v7118_v7, %v7115_v41  ;;  %v2013_v43 = vrot.slane %v1578_v50, 2  ;;  %v8654_v31 = vld [vmem:[%s16157_s0 + $0x448] sm:$0x1]  ;;  %v8660_v7 = vld [vmem:[%s16157_s0 + $0x478] sm:$0x1] }
 0x3de   :  { %v954_v49 = vsel %vm801_vm0, %v952_v33, %v953_v13  ;;  %v2492_v23 = vmul.f32 %v10637_v16, %v80_v46  ;;  %v963_v35 = vsel %vm801_vm0, %v961_v2, %v962_v26  ;;  %v2021_v40 = vrot.slane %v1581_v3, 2  ;;  %v8846_v3 = vld [vmem:[%s16157_s0 + $0x448] sm:$0x3] }
 0x3df   :  { %v1236_v5 = vadd.f32 %v954_v49, %v176_v32  ;;  %v2022_v54 = vrot.slane %v1584_v25, 2  ;;  %7288 = vmatpush.bf16.xpose.msrb.mxu0 %v7187_v60  ;;  %v1239_v57 = vadd.f32 %v963_v35, %v179_v12  ;;  %v2014_v1 = vsel %vm1861_vm1, %v2012_v24, %v2013_v43  ;;  %v8849_v49 = vld [vmem:[%s16157_s0 + $0x460] sm:$0xfc] }
 0x3e0   :  { %v2495_v59 = vmul.f32 %v10637_v16, %v15221_v39  ;;  %v2927_v46 = vmul.f32 %v8171_v52, %v10640_v37  ;;  %v2930_v29 = vmul.f32 %v8174_v15, %v10640_v37  ;;  %v2933_v56 = vmul.f32 %v8177_v62, %v10640_v37  ;;  %v8372_v16 = vld [vmem:[%s16157_s0 + $0x448] sm:$0x3] }
 0x3e1   :  { %v2023_v53 = vsel %vm1861_vm1, %v2021_v40, %v2022_v54  ;;  %v2296_v18 = vadd.f32 %v2014_v1, %v1236_v5  ;;  %v2936_v45 = vmul.f32 %v8180_v30, %v10640_v37  ;;  %v3986_v9 = vmul.f32 %v8363_v8, %v10643_v47 }
 0x3e2   :  { %v2299_v28 = vadd.f32 %v2023_v53, %v1239_v57  ;;  %v3363_v63 = vrot.slane %v2927_v46, 1  ;;  %v3364_v32 = vrot.slane %v2930_v29, 1  ;;  %v3372_v19 = vrot.slane %v2933_v56, 1  ;;  %v7212_v57 = vld [vmem:[%s16160_s3] sm:$0x7f] }
 0x3e3   :  { %v2588_v14 = vadd.f32 %v2492_v23, %v2296_v18  ;;  %v3989_v48 = vmul.f32 %v8366_v34, %v10643_v47  ;;  %v7240_v44 = vpop.f32.mrf.mxu0  ;;  %v3373_v21 = vrot.slane %v2936_v45, 1  ;;  %v3992_v12 = vmul.f32 %v8369_v55, %v10643_v47 }
 0x3e4   :  { %v2591_v20 = vadd.f32 %v2495_v59, %v2299_v28  ;;  %v3995_v41 = vmul.f32 %v8372_v16, %v10643_v47  ;;  %v3365_v37 = vsel %vm801_vm0, %v3363_v63, %v3364_v32  ;;  %v4422_v11 = vrot.slane %v3986_v9, 2  ;;  %v9145_v44 = vld [vmem:[%s16161_s4 + $0xc4] sm:$0xf] }
 0x3e5   :  { %v4423_v17 = vrot.slane %v3989_v48, 2  ;;  %v4902_v58 = vmul.f32 %v10727_v36, %v15221_v39  ;;  %v3374_v47 = vsel %vm801_vm0, %v3372_v19, %v3373_v21  ;;  %v3647_v10 = vadd.f32 %v3365_v37, %v2588_v14  ;;  %v8843_v39 = vld [vmem:[%s16157_s0 + $0x430] sm:$0xfc]  ;;  %v9035_v19 = vld [vmem:[%s16161_s4 + $0xc0] sm:$0xf] }
 0x3e6   :  { %v4431_v0 = vrot.slane %v3992_v12, 2  ;;  %v4432_v50 = vrot.slane %v3995_v41, 2  ;;  %v3650_v33 = vadd.f32 %v3374_v47, %v2591_v20  ;;  %v4905_v2 = vmul.f32 %v10727_v36, %v15229_v4  ;;  %7289 = vmatmul.bf16.vlgmr.msrb.gmra.mxu0 %v15106_v51  ;;  %v8852_v36 = vld [vmem:[%s16157_s0 + $0x478] sm:$0x3]  ;;  %v9149_v48 = vld [vmem:[%s16161_s4 + $0xdc] sm:$0xf0] }
 0x3e7   :  { %v4424_v13 = vsel %vm1861_vm1, %v4422_v11, %v4423_v17  ;;  %v5337_v26 = vmul.f32 %v8651_v27, %v10733_v38  ;;  %v5340_v52 = vmul.f32 %v8654_v31, %v10733_v38  ;;  %v5343_v60 = vmul.f32 %v8657_v6, %v10733_v38  ;;  %v9037_v20 = vld [vmem:[%s16161_s4 + $0xe0] sm:$0xf0]  ;;  %v9003_v21 = vld [vmem:[%s16161_s4 + $0x80] sm:$0xf] }
 0x3e8   :  { %v4433_v25 = vsel %vm1861_vm1, %v4431_v0, %v4432_v50  ;;  %v4706_v24 = vadd.f32 %v4424_v13, %v3647_v10  ;;  %v5346_v43 = vmul.f32 %v8660_v7, %v10733_v38  ;;  %v6396_v51 = vmul.f32 %v15349_v42, %v8843_v39  ;;  %v9141_v12 = vld [vmem:[%s16161_s4 + $0x9c] sm:$0xf0]  ;;  %v9137_v27 = vld [vmem:[%s16161_s4 + $0x84] sm:$0xf] }
 0x3e9   :  { %v4709_v4 = vadd.f32 %v4433_v25, %v3650_v33  ;;  %v5773_v23 = vrot.slane %v5337_v26, 1  ;;  %v5774_v62 = vrot.slane %v5340_v52, 1  ;;  %v5782_v35 = vrot.slane %v5343_v60, 1  ;;  %v9005_v37 = vld [vmem:[%s16161_s4 + $0xa0] sm:$0xf0] }
 0x3ea   :  { %v4998_v15 = vadd.f32 %v4902_v58, %v4706_v24  ;;  %v6399_v5 = vmul.f32 %v15349_v42, %v8846_v3  ;;  %v5783_v54 = vrot.slane %v5346_v43, 1  ;;  %v6402_v30 = vmul.f32 %v15349_v42, %v8849_v49  ;;  %v8971_v6 = vld [vmem:[%s16161_s4 + $0x40] sm:$0xf]  ;;  %v9129_v10 = vld [vmem:[%s16161_s4 + $0x44] sm:$0xf] }
 0x3eb   :  { %v5001_v40 = vadd.f32 %v4905_v2, %v4709_v4  ;;  %v6405_v8 = vmul.f32 %v15349_v42, %v8852_v36  ;;  %v5775_v38 = vsel %vm801_vm0, %v5773_v23, %v5774_v62  ;;  %v6832_v1 = vrot.slane %v6396_v51, 2  ;;  %v9133_v47 = vld [vmem:[%s16161_s4 + $0x5c] sm:$0xf0]  ;;  %v8973_v50 = vld [vmem:[%s16161_s4 + $0x60] sm:$0xf0] }
 0x3ec   :  { %v6833_v59 = vrot.slane %v6399_v5, 2  ;;  %v5784_v46 = vsel %vm801_vm0, %v5782_v35, %v5783_v54  ;;  %v6057_v34 = vadd.f32 %v5775_v38, %v4998_v15  ;;  %v6841_v53 = vrot.slane %v6402_v30, 2  ;;  %v8939_v39 = vld [vmem:[%s16161_s4] sm:$0xf]  ;;  %v9121_v13 = vld [vmem:[%s16161_s4 + $0x4] sm:$0xf] }
 0x3ed   :  { %v6842_v18 = vrot.slane %v6405_v8, 2  ;;  %v9178_v29 = vmov 0   ;;  %v6060_v56 = vadd.f32 %v5784_v46, %v5001_v40  ;;  %v15638_v41 = vor.u32 %v9145_v44, %v9037_v20  ;;  %v9125_v33 = vld [vmem:[%s16161_s4 + $0x1c] sm:$0xf0]  ;;  %v8941_v26 = vld [vmem:[%s16161_s4 + $0x20] sm:$0xf0] }
 0x3ee   :  { %9155 = vset.pattern.permute.xlu0 %v9178_v29  ;;  %v6834_v55 = vsel %vm1861_vm1, %v6832_v1, %v6833_v59  ;;  %v15647_v11 = vor.u32 %v9141_v12, %v9003_v21  ;;  %v15651_v17 = vor.u32 %v9137_v27, %v9005_v37  ;;  %v15667_v0 = vor.u32 %v9133_v47, %v8971_v6  ;;  %v9043_v25 = vld [vmem:[%s16161_s4 + $0xc8] sm:$0xf]  ;;  %v9146_v52 = vld [vmem:[%s16161_s4 + $0xcc] sm:$0xf]  ;;  %v9051_v29 = vld [vmem:[%s16161_s4 + $0xd0] sm:$0xf] }
 0x3ef   :  { %7215 = vperm.xlu0 %9155, %v7212_v57   ;;  %v6843_v42 = vsel %vm1861_vm1, %v6841_v53, %v6842_v18  ;;  %v7116_v16 = vadd.f32 %v6834_v55, %v6057_v34  ;;  %7521 = vmatpush.bf16.msrb.mxu3 %v15638_v41  ;;  %v15672_v7 = vor.u32 %v9129_v10, %v8973_v50  ;;  %v9150_v24 = vld [vmem:[%s16161_s4 + $0xe4] sm:$0xf0]  ;;  %v9045_v49 = vld [vmem:[%s16161_s4 + $0xe8] sm:$0xf0]  ;;  %v9147_v55 = vld [vmem:[%s16161_s4 + $0xd4] sm:$0xf] }
 0x3f0   :  { %v7119_v28 = vadd.f32 %v6843_v42, %v6060_v56  ;;  %v15687_v2 = vor.u32 %v9125_v33, %v8939_v39  ;;  %v15692_v3 = vor.u32 %v9121_v13, %v8941_v26  ;;  %v15707_v60 = vor.u32 %v9150_v24, %v9043_v25  ;;  %v9011_v4 = vld [vmem:[%s16161_s4 + $0x88] sm:$0xf]  ;;  %v9138_v23 = vld [vmem:[%s16161_s4 + $0x8c] sm:$0xf]  ;;  %v9151_v56 = vld [vmem:[%s16161_s4 + $0xec] sm:$0xf0] }
 0x3f1   :  { %v15712_v36 = vor.u32 %v9146_v52, %v9045_v49  ;;  %v9142_v43 = vld [vmem:[%s16161_s4 + $0xa4] sm:$0xf0]  ;;  %v9013_v15 = vld [vmem:[%s16161_s4 + $0xa8] sm:$0xf0]  ;;  %v9021_v44 = vld [vmem:[%s16161_s4 + $0xb0] sm:$0xf0] }
 0x3f2   :  { %v7188_v45 = vpack.c.bf16 %v7119_v28, %v7116_v16  ;;  %v15725_v51 = vor.u32 %v9142_v43, %v9011_v4  ;;  %v8979_v62 = vld [vmem:[%s16161_s4 + $0x48] sm:$0xf]  ;;  %v15736_v5 = vor.u32 %v9138_v23, %v9013_v15  ;;  %v9130_v40 = vld [vmem:[%s16161_s4 + $0x4c] sm:$0xf]  ;;  %v15779_v16 = vor.u32 %v9151_v56, %v9051_v29  ;;  %v9053_v28 = vld [vmem:[%s16161_s4 + $0xf0] sm:$0xf0] }
 0x3f3   :  { %7522 = vmatpush.bf16.msrb.mxu3 %v15651_v17  ;;  %v9134_v35 = vld [vmem:[%s16161_s4 + $0x64] sm:$0xf0]  ;;  %v8981_v54 = vld [vmem:[%s16161_s4 + $0x68] sm:$0xf0]  ;;  %v8987_v37 = vld [vmem:[%s16161_s4 + $0x50] sm:$0xf] }
 0x3f4   :  { %7301 = vmatpush.bf16.xpose.msrb.mxu1 %v7188_v45  ;;  %v15745_v8 = vor.u32 %v9134_v35, %v8979_v62  ;;  %v15748_v57 = vor.u32 %v9130_v40, %v8981_v54  ;;  %v8947_v38 = vld [vmem:[%s16161_s4 + $0x8] sm:$0xf]  ;;  %v9122_v59 = vld [vmem:[%s16161_s4 + $0xc] sm:$0xf]  ;;  %v15784_v45 = vor.u32 %v9147_v55, %v9053_v28  ;;  %v8955_v50 = vld [vmem:[%s16161_s4 + $0x10] sm:$0xf] }
 0x3f5   :  { %v9126_v1 = vld [vmem:[%s16161_s4 + $0x24] sm:$0xf0]  ;;  %v8949_v46 = vld [vmem:[%s16161_s4 + $0x28] sm:$0xf0]  ;;  %v9127_v39 = vld [vmem:[%s16161_s4 + $0x2c] sm:$0xf0] }
 0x3f6   :  { %v15763_v34 = vor.u32 %v9126_v1, %v8947_v38  ;;  %v15766_v53 = vor.u32 %v9122_v59, %v8949_v46  ;;  %v15834_v26 = vor.u32 %v9127_v39, %v8955_v50  ;;  %v9123_v25 = vld [vmem:[%s16161_s4 + $0x14] sm:$0xf]  ;;  %v9059_v62 = vld [vmem:[%s16161_s4 + $0xd8] sm:$0xf]  ;;  %v9148_v40 = vld [vmem:[%s16161_s4 + $0xdc] sm:$0xf] }
 0x3f7   :  { %7523 = vmatpush.bf16.msrb.mxu3 %v15672_v7  ;;  %v8957_v24 = vld [vmem:[%s16161_s4 + $0x30] sm:$0xf0]  ;;  %v9152_v35 = vld [vmem:[%s16161_s4 + $0xf4] sm:$0xf0]  ;;  %v9061_v54 = vld [vmem:[%s16161_s4 + $0xf8] sm:$0xf0] }
 0x3f8   :  { %v15851_v4 = vor.u32 %v9123_v25, %v8957_v24  ;;  %v15879_v38 = vor.u32 %v9148_v40, %v9061_v54  ;;  %v9027_v1 = vld [vmem:[%s16161_s4 + $0x98] sm:$0xf]  ;;  %v9140_v46 = vld [vmem:[%s16161_s4 + $0x9c] sm:$0xf] }
 0x3f9   :  { %v9144_v59 = vld [vmem:[%s16161_s4 + $0xb4] sm:$0xf0]  ;;  %v9132_v28 = vld [vmem:[%s16161_s4 + $0x5c] sm:$0xf] }
 0x3fa   :  { %v15899_v29 = vor.u32 %v9144_v59, %v9027_v1  ;;  %v8995_v55 = vld [vmem:[%s16161_s4 + $0x58] sm:$0xf] }
 0x3fb   :  { %7302 = vmatmul.bf16.vlgmr.msrb.gmra.mxu1 %v15126_v61  ;;  %v15627_v61 = vor.u32 %v9149_v48, %v9035_v19  ;;  %7524 = vmatpush.bf16.msrb.mxu3 %v15692_v3  ;;  %v9143_v19 = vld [vmem:[%s16161_s4 + $0xac] sm:$0xf0]  ;;  %v9139_v48 = vld [vmem:[%s16161_s4 + $0x94] sm:$0xf] }
 0x3fc   :  { %7641 = vmatpush.bf16.msra.mxu1 %v15638_v41  ;;  %v15804_v27 = vor.u32 %v9139_v48, %v9021_v44  ;;  %v8963_v44 = vld [vmem:[%s16161_s4 + $0x18] sm:$0xf] }
 0x3fd   :  { %7508 = vmatpush.bf16.msrb.mxu2 %v15627_v61  ;;  %7628 = vmatpush.bf16.msra.mxu0 %v15627_v61 }
 0x3ff   :  { %7547 = vmatpush.bf16.msra.mxu3 %v15712_v36 }
 0x400   :  { %v15616_v32 = vpop.f32.mrf.mxu3  ;;  %7642 = vmatpush.bf16.msra.mxu1 %v15651_v17 }
 0x401   :  { %7509 = vmatpush.bf16.msrb.mxu2 %v15647_v11  ;;  %7629 = vmatpush.bf16.msra.mxu0 %v15647_v11 }
 0x403   :  { %7548 = vmatpush.bf16.msra.mxu3 %v15736_v5 }
 0x404   :  { %7643 = vmatpush.bf16.msra.mxu1 %v15672_v7 }
 0x405   :  { %7510 = vmatpush.bf16.msrb.mxu2 %v15667_v0  ;;  %7630 = vmatpush.bf16.msra.mxu0 %v15667_v0 }
 0x407   :  { %7549 = vmatpush.bf16.msra.mxu3 %v15748_v57 }
 0x408   :  { %v7279_v31 = vpop.f32.mrf.mxu3  ;;  %7644 = vmatpush.bf16.msra.mxu1 %v15692_v3 }
 0x409   :  { %7511 = vmatpush.bf16.msrb.mxu2 %v15687_v2  ;;  %7631 = vmatpush.bf16.msra.mxu0 %v15687_v2 }
 0x40b   :  { %7550 = vmatpush.bf16.msra.mxu3 %v15766_v53 }
 0x40c   :  { %7693 = vmatpush.bf16.msrb.mxu1 %v15784_v45 }
 0x40d   :  { %7534 = vmatpush.bf16.msra.mxu2 %v15707_v60  ;;  %7680 = vmatpush.bf16.msrb.mxu0 %v15779_v16 }
 0x410   :  { %7694 = vmatpush.bf16.msrb.mxu1 %v15804_v27 }
 0x411   :  { %7535 = vmatpush.bf16.msra.mxu2 %v15725_v51 }
 0x415   :  { %7536 = vmatpush.bf16.msra.mxu2 %v15745_v8 }
 0x419   :  { %v15612_v63 = vpop.f32.mrf.mxu1  ;;  %7537 = vmatpush.bf16.msra.mxu2 %v15763_v34 }
 0x420   :  { %v15614_v14 = vpop.f32.mrf.mxu2 }
 0x421   :  { %v7253_v9 = vpop.f32.mrf.mxu1 }
 0x422   :  { %v9019_v9 = vld [vmem:[%s16161_s4 + $0x90] sm:$0xf] }
 0x423   :  { %v15802_v12 = vor.u32 %v9143_v19, %v9019_v9  ;;  %v8997_v9 = vld [vmem:[%s16161_s4 + $0x78] sm:$0xf0] }
 0x424   :  { %v15919_v48 = vor.u32 %v9132_v28, %v8997_v9 }
 0x425   :  { %7681 = vmatpush.bf16.msrb.mxu0 %v15802_v12 }
 0x428   :  { %v7266_v58 = vpop.f32.mrf.mxu2 }
 0x429   :  { %v9135_v58 = vld [vmem:[%s16161_s4 + $0x6c] sm:$0xf0] }
 0x42a   :  { %v15821_v47 = vor.u32 %v9135_v58, %v8987_v37  ;;  %v8965_v37 = vld [vmem:[%s16161_s4 + $0x38] sm:$0xf0] }
 0x42c   :  { %7682 = vmatpush.bf16.msrb.mxu0 %v15821_v47 }
 0x430   :  { %7683 = vmatpush.bf16.msrb.mxu0 %v15834_v26 }
 0x461   :  { %v7216_v42 = vpop.permute.xlu0 %7215 }
 0x462   :  { %v7239_v20 = vadd.f32 %v15520_v22, %v7216_v42  ;;  %v7278_v21 = vadd.f32 %v15616_v32, %v7216_v42  ;;  %v9131_v22 = vld [vmem:[%s16161_s4 + $0x54] sm:$0xf]  ;;  %v9136_v42 = vld [vmem:[%s16161_s4 + $0x74] sm:$0xf0] }
 0x463   :  { %v7290_v30 = vpop.f32.mrf.mxu0  ;;  %v8989_v32 = vld [vmem:[%s16161_s4 + $0x70] sm:$0xf0]  ;;  %v15917_v19 = vor.u32 %v9136_v42, %v8995_v55 }
 0x464   :  { %v7252_v31 = vadd.f32 %v15612_v63, %v7239_v20  ;;  %v7291_v6 = vadd.f32 %v7290_v30, %v7278_v21  ;;  %v15823_v10 = vor.u32 %v9131_v22, %v8989_v32  ;;  %v15877_v30 = vor.u32 %v9152_v35, %v9059_v62  ;;  %v9128_v20 = vld [vmem:[%s16161_s4 + $0x34] sm:$0xf0]  ;;  %v9124_v21 = vld [vmem:[%s16161_s4 + $0x1c] sm:$0xf] }
 0x465   :  { %v15935_v58 = vor.u32 %v9128_v20, %v8963_v44  ;;  %v15937_v22 = vor.u32 %v9124_v21, %v8965_v37 }
 0x466   :  { %v7265_v63 = vadd.f32 %v15614_v14, %v7252_v31  ;;  %7695 = vmatpush.bf16.msrb.mxu1 %v15823_v10 }
 0x46a   :  { %7696 = vmatpush.bf16.msrb.mxu1 %v15851_v4 }
 0x46b   :  { %v7292_v18 = vpop.f32.mrf.mxu0 }
 0x46c   :  { %v9029_v18 = vld [vmem:[%s16161_s4 + $0xb8] sm:$0xf0] }
 0x46d   :  { %v15901_v56 = vor.u32 %v9140_v46, %v9029_v18 }
 0x478   :  { %v7303_v33 = vpop.f32.mrf.mxu1 }
 0x479   :  { %v7304_v13 = vadd.f32 %v7303_v33, %v7291_v6 }
 0x47b   :  { %v15842_v52 = vpack.c.bf16 %v7304_v13, %v7265_v63 }
 0x47d   :  { %9065 = vmatmul.msk.bf16.vlgmr.msrb.gmra.mxu2 %vm7500_vm2, %v15842_v52  ;;  %9066 = vmatmul.msk.bf16.vlgmr.msrb.gmra.mxu3 %vm7500_vm2, %v15842_v52  ;;  %v7737_v14 = vunpack.c.h.b16 %v15842_v52  ;;  %v7617_v49 = vunpack.c.l.b16 %v15842_v52 }
 0x47e   :  { %7560 = vmatpush.bf16.msrb.mxu2 %v15779_v16  ;;  %7573 = vmatpush.bf16.msrb.mxu3 %v15784_v45 }
 0x47f   :  { %v15855_v43 = vpack.c.b16 %v7737_v14, %v7737_v14  ;;  %v7618_v23 = vpack.c.b16 %v7617_v49, %v7617_v49 }
 0x480   :  { %v7305_v15 = vpop.f32.mrf.mxu1 }
 0x481   :  { %7855 = vrot.lane.b32.xlu1 %v15855_v43, %s9179_s2  ;;  %7619 = vrot.lane.b32.xlu0 %v7618_v23, %s9179_s2 }
 0x482   :  { %7561 = vmatpush.bf16.msrb.mxu2 %v15802_v12  ;;  %7574 = vmatpush.bf16.msrb.mxu3 %v15804_v27 }
 0x486   :  { %7562 = vmatpush.bf16.msrb.mxu2 %v15821_v47  ;;  %7575 = vmatpush.bf16.msrb.mxu3 %v15823_v10 }
 0x48a   :  { %7563 = vmatpush.bf16.msrb.mxu2 %v15834_v26  ;;  %7576 = vmatpush.bf16.msrb.mxu3 %v15851_v4 }
 0x48d   :  { %9067 = vmatmul.msk.bf16.vlgmr.msra.gmra.mxu2 %vm7500_vm2, %v15842_v52  ;;  %9068 = vmatmul.msk.bf16.vlgmr.msra.gmra.mxu3 %vm7500_vm2, %v15842_v52 }
 0x48e   :  { %7586 = vmatpush.bf16.msra.mxu2 %v15877_v30  ;;  %7599 = vmatpush.bf16.msra.mxu3 %v15879_v38 }
 0x492   :  { %7587 = vmatpush.bf16.msra.mxu2 %v15899_v29  ;;  %7600 = vmatpush.bf16.msra.mxu3 %v15901_v56 }
 0x496   :  { %7588 = vmatpush.bf16.msra.mxu2 %v15917_v19  ;;  %7601 = vmatpush.bf16.msra.mxu3 %v15919_v48 }
 0x49a   :  { %7589 = vmatpush.bf16.msra.mxu2 %v15935_v58  ;;  %7602 = vmatpush.bf16.msra.mxu3 %v15937_v22 }
 0x49d   :  { %9069 = vmatmul.msk.bf16.vlgmr.msrb.gmra.mxu2 %vm7500_vm2, %v15842_v52  ;;  %9070 = vmatmul.msk.bf16.vlgmr.msrb.gmra.mxu3 %vm7500_vm2, %v15842_v52 }
 0x49e   :  { %7654 = vmatpush.bf16.msrb.mxu2 %v15707_v60  ;;  %7667 = vmatpush.bf16.msrb.mxu3 %v15712_v36 }
 0x4a2   :  { %7655 = vmatpush.bf16.msrb.mxu2 %v15725_v51  ;;  %7668 = vmatpush.bf16.msrb.mxu3 %v15736_v5 }
 0x4a6   :  { %7656 = vmatpush.bf16.msrb.mxu2 %v15745_v8  ;;  %7669 = vmatpush.bf16.msrb.mxu3 %v15748_v57 }
 0x4aa   :  { %7657 = vmatpush.bf16.msrb.mxu2 %v15763_v34  ;;  %7670 = vmatpush.bf16.msrb.mxu3 %v15766_v53 }
 0x4ad   :  { %9071 = vmatmul.msk.bf16.vlgmr.msra.gmra.mxu2 %vm7500_vm2, %v15842_v52  ;;  %9072 = vmatmul.msk.bf16.vlgmr.msra.gmra.mxu3 %vm7500_vm2, %v15842_v52 }
 0x4ae   :  { %7706 = vmatpush.bf16.msra.mxu2 %v15877_v30  ;;  %7719 = vmatpush.bf16.msra.mxu3 %v15879_v38 }
 0x4b2   :  { %7707 = vmatpush.bf16.msra.mxu2 %v15899_v29  ;;  %7720 = vmatpush.bf16.msra.mxu3 %v15901_v56 }
 0x4b6   :  { %7708 = vmatpush.bf16.msra.mxu2 %v15917_v19  ;;  %7721 = vmatpush.bf16.msra.mxu3 %v15919_v48 }
 0x4ba   :  { %7709 = vmatpush.bf16.msra.mxu2 %v15935_v58  ;;  %7722 = vmatpush.bf16.msra.mxu3 %v15937_v22 }
 0x4f3   :  { %v7620_v32 = vpop.permute.xlu0 %7619 }
 0x4f4   :  { %9073 = vmatmul.msk.bf16.vlgmr.msra.gmra.mxu0 %vm7500_vm2, %v7620_v32  ;;  %9074 = vmatmul.msk.bf16.vlgmr.msra.gmra.mxu1 %vm7500_vm2, %v7620_v32 }
 0x4f5   :  { %9075 = vmatmul.msk.bf16.vlgmr.msrb.gmra.mxu2 %vm7500_vm2, %v7620_v32  ;;  %9076 = vmatmul.msk.bf16.vlgmr.msrb.gmra.mxu3 %vm7500_vm2, %v7620_v32 }
 0x4f6   :  { %7772 = vmatpush.bf16.msrb.mxu2 %v15707_v60  ;;  %7785 = vmatpush.bf16.msrb.mxu3 %v15712_v36 }
 0x4f7   :  { %7746 = vmatpush.bf16.msra.mxu0 %v15627_v61  ;;  %7759 = vmatpush.bf16.msra.mxu1 %v15638_v41 }
 0x4fa   :  { %7773 = vmatpush.bf16.msrb.mxu2 %v15725_v51  ;;  %7786 = vmatpush.bf16.msrb.mxu3 %v15736_v5 }
 0x4fb   :  { %7747 = vmatpush.bf16.msra.mxu0 %v15647_v11  ;;  %7760 = vmatpush.bf16.msra.mxu1 %v15651_v17 }
 0x4fe   :  { %7774 = vmatpush.bf16.msrb.mxu2 %v15745_v8  ;;  %7787 = vmatpush.bf16.msrb.mxu3 %v15748_v57 }
 0x4ff   :  { %7748 = vmatpush.bf16.msra.mxu0 %v15667_v0  ;;  %7761 = vmatpush.bf16.msra.mxu1 %v15672_v7 }
 0x500   :  { %v7513_v31 = vpop.f32.mrf.mxu2  ;;  %v7526_v6 = vpop.f32.mrf.mxu3 }
 0x501   :  { %7608 = vst [vmem:[%s16162_s5] sm:$0x7f] %v7513_v31 }
 0x502   :  { %7609 = vst [vmem:[%s16162_s5 + $0x8] sm:$0x7f] %v7526_v6  ;;  %7775 = vmatpush.bf16.msrb.mxu2 %v15763_v34  ;;  %7788 = vmatpush.bf16.msrb.mxu3 %v15766_v53 }
 0x503   :  { %7749 = vmatpush.bf16.msra.mxu0 %v15687_v2  ;;  %7762 = vmatpush.bf16.msra.mxu1 %v15692_v3 }
 0x504   :  { %9077 = vmatmul.msk.bf16.vlgmr.msrb.gmra.mxu0 %vm7500_vm2, %v7620_v32  ;;  %9078 = vmatmul.msk.bf16.vlgmr.msrb.gmra.mxu1 %vm7500_vm2, %v7620_v32 }
 0x505   :  { %9079 = vmatmul.msk.bf16.vlgmr.msra.gmra.mxu2 %vm7500_vm2, %v7620_v32  ;;  %9080 = vmatmul.msk.bf16.vlgmr.msra.gmra.mxu3 %vm7500_vm2, %v7620_v32 }
 0x506   :  { %7824 = vmatpush.bf16.msra.mxu2 %v15877_v30  ;;  %7837 = vmatpush.bf16.msra.mxu3 %v15879_v38 }
 0x507   :  { %7798 = vmatpush.bf16.msrb.mxu0 %v15779_v16  ;;  %7811 = vmatpush.bf16.msrb.mxu1 %v15784_v45 }
 0x508   :  { %v7515_v50 = vpop.f32.mrf.mxu2  ;;  %v7528_v39 = vpop.f32.mrf.mxu3 }
 0x50a   :  { %7825 = vmatpush.bf16.msra.mxu2 %v15899_v29  ;;  %7838 = vmatpush.bf16.msra.mxu3 %v15901_v56 }
 0x50b   :  { %7799 = vmatpush.bf16.msrb.mxu0 %v15802_v12  ;;  %7812 = vmatpush.bf16.msrb.mxu1 %v15804_v27 }
 0x50e   :  { %7826 = vmatpush.bf16.msra.mxu2 %v15917_v19  ;;  %7839 = vmatpush.bf16.msra.mxu3 %v15919_v48 }
 0x50f   :  { %7800 = vmatpush.bf16.msrb.mxu0 %v15821_v47  ;;  %7813 = vmatpush.bf16.msrb.mxu1 %v15823_v10 }
 0x510   :  { %v7539_v33 = vpop.f32.mrf.mxu2  ;;  %v7552_v63 = vpop.f32.mrf.mxu3 }
 0x511   :  { %7610 = vst [vmem:[%s16162_s5 + $0x10] sm:$0x7f] %v7539_v33 }
 0x512   :  { %7611 = vst [vmem:[%s16162_s5 + $0x18] sm:$0x7f] %v7552_v63  ;;  %7827 = vmatpush.bf16.msra.mxu2 %v15935_v58  ;;  %7840 = vmatpush.bf16.msra.mxu3 %v15937_v22 }
 0x513   :  { %7801 = vmatpush.bf16.msrb.mxu0 %v15834_v26  ;;  %7814 = vmatpush.bf16.msrb.mxu1 %v15851_v4 }
 0x514   :  { %9089 = vmatmul.msk.bf16.vlgmr.msra.gmra.mxu0 %vm7500_vm2, %v15855_v43  ;;  %9090 = vmatmul.msk.bf16.vlgmr.msra.gmra.mxu1 %vm7500_vm2, %v15855_v43 }
 0x515   :  { %9091 = vmatmul.msk.bf16.vlgmr.msrb.gmra.mxu2 %vm7500_vm2, %v15855_v43  ;;  %9092 = vmatmul.msk.bf16.vlgmr.msrb.gmra.mxu3 %vm7500_vm2, %v15855_v43 }
 0x516   :  { %7890 = vmatpush.bf16.msrb.mxu2 %v15707_v60  ;;  %7903 = vmatpush.bf16.msrb.mxu3 %v15712_v36 }
 0x517   :  { %7864 = vmatpush.bf16.msra.mxu0 %v15627_v61  ;;  %7877 = vmatpush.bf16.msra.mxu1 %v15638_v41 }
 0x518   :  { %v7541_v13 = vpop.f32.mrf.mxu2  ;;  %v7554_v25 = vpop.f32.mrf.mxu3 }
 0x51a   :  { %7891 = vmatpush.bf16.msrb.mxu2 %v15725_v51  ;;  %7904 = vmatpush.bf16.msrb.mxu3 %v15736_v5 }
 0x51b   :  { %7865 = vmatpush.bf16.msra.mxu0 %v15647_v11  ;;  %7878 = vmatpush.bf16.msra.mxu1 %v15651_v17 }
 0x51e   :  { %7892 = vmatpush.bf16.msrb.mxu2 %v15745_v8  ;;  %7905 = vmatpush.bf16.msrb.mxu3 %v15748_v57 }
 0x51f   :  { %7866 = vmatpush.bf16.msra.mxu0 %v15667_v0  ;;  %7879 = vmatpush.bf16.msra.mxu1 %v15672_v7 }
 0x520   :  { %v7565_v61 = vpop.f32.mrf.mxu2  ;;  %v7578_v41 = vpop.f32.mrf.mxu3 }
 0x521   :  { %7612 = vst [vmem:[%s16162_s5 + $0x20] sm:$0x7f] %v7565_v61 }
 0x522   :  { %7613 = vst [vmem:[%s16162_s5 + $0x28] sm:$0x7f] %v7578_v41  ;;  %7893 = vmatpush.bf16.msrb.mxu2 %v15763_v34  ;;  %7906 = vmatpush.bf16.msrb.mxu3 %v15766_v53 }
 0x523   :  { %7867 = vmatpush.bf16.msra.mxu0 %v15687_v2  ;;  %7880 = vmatpush.bf16.msra.mxu1 %v15692_v3  ;;  %v7856_v2 = vpop.permute.xlu1 %7855 }
 0x524   :  { %9093 = vmatmul.msk.bf16.vlgmr.msrb.gmra.mxu0 %vm7500_vm2, %v15855_v43  ;;  %9094 = vmatmul.msk.bf16.vlgmr.msrb.gmra.mxu1 %vm7500_vm2, %v15855_v43 }
 0x525   :  { %9095 = vmatmul.msk.bf16.vlgmr.msra.gmra.mxu2 %vm7500_vm2, %v15855_v43  ;;  %9096 = vmatmul.msk.bf16.vlgmr.msra.gmra.mxu3 %vm7500_vm2, %v15855_v43 }
 0x526   :  { %7942 = vmatpush.bf16.msra.mxu2 %v15877_v30  ;;  %7955 = vmatpush.bf16.msra.mxu3 %v15879_v38 }
 0x527   :  { %7916 = vmatpush.bf16.msrb.mxu0 %v15779_v16  ;;  %7929 = vmatpush.bf16.msrb.mxu1 %v15784_v45 }
 0x528   :  { %v7567_v11 = vpop.f32.mrf.mxu2  ;;  %v7580_v17 = vpop.f32.mrf.mxu3 }
 0x52a   :  { %7943 = vmatpush.bf16.msra.mxu2 %v15899_v29  ;;  %7956 = vmatpush.bf16.msra.mxu3 %v15901_v56 }
 0x52b   :  { %7917 = vmatpush.bf16.msrb.mxu0 %v15802_v12  ;;  %7930 = vmatpush.bf16.msrb.mxu1 %v15804_v27 }
 0x52e   :  { %7944 = vmatpush.bf16.msra.mxu2 %v15917_v19  ;;  %7957 = vmatpush.bf16.msra.mxu3 %v15919_v48 }
 0x52f   :  { %7918 = vmatpush.bf16.msrb.mxu0 %v15821_v47  ;;  %7931 = vmatpush.bf16.msrb.mxu1 %v15823_v10 }
 0x530   :  { %v7591_v0 = vpop.f32.mrf.mxu2  ;;  %v7604_v7 = vpop.f32.mrf.mxu3 }
 0x531   :  { %7614 = vst [vmem:[%s16162_s5 + $0x30] sm:$0x7f] %v7591_v0 }
 0x532   :  { %7615 = vst [vmem:[%s16162_s5 + $0x38] sm:$0x7f] %v7604_v7  ;;  %7945 = vmatpush.bf16.msra.mxu2 %v15935_v58  ;;  %7958 = vmatpush.bf16.msra.mxu3 %v15937_v22 }
 0x533   :  { %7919 = vmatpush.bf16.msrb.mxu0 %v15834_v26  ;;  %7932 = vmatpush.bf16.msrb.mxu1 %v15851_v4 }
 0x534   :  { %9105 = vmatmul.msk.bf16.vlgmr.msra.gmra.mxu0 %vm7500_vm2, %v7856_v2  ;;  %9106 = vmatmul.msk.bf16.vlgmr.msra.gmra.mxu1 %vm7500_vm2, %v7856_v2 }
 0x535   :  { %9107 = vmatmul.msk.bf16.vlgmr.msrb.gmra.mxu2 %vm7500_vm2, %v7856_v2  ;;  %9108 = vmatmul.msk.bf16.vlgmr.msrb.gmra.mxu3 %vm7500_vm2, %v7856_v2 }
 0x538   :  { %v7593_v3 = vpop.f32.mrf.mxu2  ;;  %v7606_v60 = vpop.f32.mrf.mxu3 }
 0x544   :  { %9109 = vmatmul.msk.bf16.vlgmr.msrb.gmra.mxu0 %vm7500_vm2, %v7856_v2  ;;  %9110 = vmatmul.msk.bf16.vlgmr.msrb.gmra.mxu1 %vm7500_vm2, %v7856_v2 }
 0x545   :  { %9111 = vmatmul.msk.bf16.vlgmr.msra.gmra.mxu2 %vm7500_vm2, %v7856_v2  ;;  %9112 = vmatmul.msk.bf16.vlgmr.msra.gmra.mxu3 %vm7500_vm2, %v7856_v2 }
 0x571   :  { %v7633_v36 = vpop.f32.mrf.mxu0  ;;  %v7646_v51 = vpop.f32.mrf.mxu1 }
 0x572   :  { %9081 = vst [vmem:[%s16162_s5 + $0x40] sm:$0x7f] %v7633_v36 }
 0x573   :  { %9082 = vst [vmem:[%s16162_s5 + $0x48] sm:$0x7f] %v7646_v51 }
 0x578   :  { %v7659_v5 = vpop.f32.mrf.mxu2  ;;  %v7672_v8 = vpop.f32.mrf.mxu3 }
 0x579   :  { %9083 = vst [vmem:[%s16162_s5 + $0x50] sm:$0x7f] %v7659_v5  ;;  %v7635_v57 = vpop.f32.mrf.mxu0  ;;  %v7648_v34 = vpop.f32.mrf.mxu1 }
 0x57a   :  { %9084 = vst [vmem:[%s16162_s5 + $0x58] sm:$0x7f] %v7672_v8 }
 0x580   :  { %v7661_v53 = vpop.f32.mrf.mxu2  ;;  %v7674_v16 = vpop.f32.mrf.mxu3 }
 0x581   :  { %v7685_v45 = vpop.f32.mrf.mxu0  ;;  %v7698_v12 = vpop.f32.mrf.mxu1 }
 0x582   :  { %9085 = vst [vmem:[%s16162_s5 + $0x60] sm:$0x7f] %v7685_v45 }
 0x583   :  { %9086 = vst [vmem:[%s16162_s5 + $0x68] sm:$0x7f] %v7698_v12 }
 0x588   :  { %v7711_v27 = vpop.f32.mrf.mxu2  ;;  %v7724_v47 = vpop.f32.mrf.mxu3 }
 0x589   :  { %9087 = vst [vmem:[%s16162_s5 + $0x70] sm:$0x7f] %v7711_v27  ;;  %v7687_v10 = vpop.f32.mrf.mxu0  ;;  %v7700_v26 = vpop.f32.mrf.mxu1 }
 0x58a   :  { %9088 = vst [vmem:[%s16162_s5 + $0x78] sm:$0x7f] %v7724_v47 }
 0x590   :  { %v7713_v24 = vpop.f32.mrf.mxu2  ;;  %v7726_v52 = vpop.f32.mrf.mxu3 }
 0x591   :  { %v7751_v14 = vpop.f32.mrf.mxu0  ;;  %v7764_v49 = vpop.f32.mrf.mxu1 }
 0x592   :  { %9097 = vst [vmem:[%s16162_s5 + $0x80] sm:$0x7f] %v7751_v14 }
 0x593   :  { %9098 = vst [vmem:[%s16162_s5 + $0x88] sm:$0x7f] %v7764_v49 }
 0x598   :  { %v7777_v4 = vpop.f32.mrf.mxu2  ;;  %v7790_v43 = vpop.f32.mrf.mxu3 }
 0x599   :  { %9099 = vst [vmem:[%s16162_s5 + $0x90] sm:$0x7f] %v7777_v4  ;;  %v7753_v23 = vpop.f32.mrf.mxu0  ;;  %v7766_v15 = vpop.f32.mrf.mxu1 }
 0x59a   :  { %9100 = vst [vmem:[%s16162_s5 + $0x98] sm:$0x7f] %v7790_v43 }
 0x5a0   :  { %v7779_v62 = vpop.f32.mrf.mxu2  ;;  %v7792_v35 = vpop.f32.mrf.mxu3 }
 0x5a1   :  { %v7803_v40 = vpop.f32.mrf.mxu0  ;;  %v7816_v54 = vpop.f32.mrf.mxu1 }
 0x5a2   :  { %9101 = vst [vmem:[%s16162_s5 + $0xa0] sm:$0x7f] %v7803_v40 }
 0x5a3   :  { %9102 = vst [vmem:[%s16162_s5 + $0xa8] sm:$0x7f] %v7816_v54 }
 0x5a8   :  { %v7829_v30 = vpop.f32.mrf.mxu2  ;;  %v7842_v38 = vpop.f32.mrf.mxu3 }
 0x5a9   :  { %9103 = vst [vmem:[%s16162_s5 + $0xb0] sm:$0x7f] %v7829_v30  ;;  %v7805_v1 = vpop.f32.mrf.mxu0  ;;  %v7818_v59 = vpop.f32.mrf.mxu1 }
 0x5aa   :  { %9104 = vst [vmem:[%s16162_s5 + $0xb8] sm:$0x7f] %v7842_v38 }
 0x5b0   :  { %v7831_v46 = vpop.f32.mrf.mxu2  ;;  %v7844_v18 = vpop.f32.mrf.mxu3 }
 0x5b1   :  { %v7869_v29 = vpop.f32.mrf.mxu0  ;;  %v7882_v56 = vpop.f32.mrf.mxu1 }
 0x5b2   :  { %9113 = vst [vmem:[%s16162_s5 + $0xc0] sm:$0x7f] %v7869_v29 }
 0x5b3   :  { %9114 = vst [vmem:[%s16162_s5 + $0xc8] sm:$0x7f] %v7882_v56 }
 0x5b8   :  { %v7895_v55 = vpop.f32.mrf.mxu2  ;;  %v7908_v42 = vpop.f32.mrf.mxu3 }
 0x5b9   :  { %9115 = vst [vmem:[%s16162_s5 + $0xd0] sm:$0x7f] %v7895_v55  ;;  %v7871_v28 = vpop.f32.mrf.mxu0  ;;  %v7884_v9 = vpop.f32.mrf.mxu1 }
 0x5ba   :  { %9116 = vst [vmem:[%s16162_s5 + $0xd8] sm:$0x7f] %v7908_v42 }
 0x5c0   :  { %v7897_v19 = vpop.f32.mrf.mxu2  ;;  %v7910_v48 = vpop.f32.mrf.mxu3 }
 0x5c1   :  { %v7921_v44 = vpop.f32.mrf.mxu0  ;;  %v7934_v20 = vpop.f32.mrf.mxu1 }
 0x5c2   :  { %9117 = vst [vmem:[%s16162_s5 + $0xe0] sm:$0x7f] %v7921_v44 }
 0x5c3   :  { %9118 = vst [vmem:[%s16162_s5 + $0xe8] sm:$0x7f] %v7934_v20 }
 0x5c8   :  { %v7947_v21 = vpop.f32.mrf.mxu2  ;;  %v7960_v37 = vpop.f32.mrf.mxu3 }
 0x5c9   :  { %9119 = vst [vmem:[%s16162_s5 + $0xf0] sm:$0x7f] %v7947_v21  ;;  %v7923_v58 = vpop.f32.mrf.mxu0  ;;  %v7936_v22 = vpop.f32.mrf.mxu1 }
 0x5ca   :  { %9120 = vst [vmem:[%s16162_s5 + $0xf8] sm:$0x7f] %v7960_v37 }
 0x5d0   :  { %v7949_v32 = vpop.f32.mrf.mxu2  ;;  %v7962_v31 = vpop.f32.mrf.mxu3 }

</bundles_post_ra>
